<compile_context>
chip_gen: v7x
topology: tpu7x:2x2x1
jax: 0.10.0
libtpu: 0.0.40
codegen_flags: <defaults>
</compile_context>

<pallas_src>
import functools

import jax
import jax.numpy as jnp
from jax import lax
from jax.experimental import pallas as pl
from jax.experimental.pallas import tpu as pltpu


# ----------------------------- kernel-side math -----------------------------

def _layernorm(x, gamma, beta, eps):
    # x: (R, D) f32; gamma/beta: (1, D) f32
    mean = jnp.mean(x, axis=-1, keepdims=True)
    var = jnp.mean((x - mean) ** 2, axis=-1, keepdims=True)
    y = (x - mean) * lax.rsqrt(var + eps)          # rsqrt -> EUP slot
    return y * gamma + beta


def decoder_kernel(x_ref,                    # (Bt, S, D)        f32  embeddings + PE
                   wqkv_ref,                 # (NB, D, 3D)       bf16 fused [q|k|v]
                   wu_ref,                   # (NB, D, D)        bf16 unify
                   bu_ref,                   # (NB, 1, D)        f32
                   w1_ref, b1_ref,           # (NB, D, FF) bf16 / (NB, 1, FF) f32
                   w2_ref, b2_ref,           # (NB, FF, D) bf16 / (NB, 1, D)  f32
                   g1_ref, be1_ref,          # (NB, 1, D)        f32  LN1
                   g2_ref, be2_ref,          # (NB, 1, D)        f32  LN2
                   gf_ref, bef_ref,          # (1, D)            f32  final LN
                   hw_ref, hb_ref,           # (S, Vpad) bf16 / (1, Vpad) f32 head (padded)
                   out_ref,                  # (Bt, S, Vpad)     f32
                   *, heads, eps):
    bt, s, d = x_ref.shape
    rows = bt * s                              # folded MXU row dimension
    head_dim = d // heads
    scale = 1.0 / (float(head_dim) ** 0.5)
    num_blocks = wqkv_ref.shape[0]

    # folded residual stream: (Bt*S, D)
    xf = x_ref[...].reshape(rows, d)

    for blk in range(num_blocks):              # static loop; all weights resident in VMEM
        # ---------------- MHSA on LN1(x) ----------------
        h = _layernorm(xf, g1_ref[blk], be1_ref[blk], eps)                  # (R, D)
        qkv = jnp.dot(h.astype(jnp.bfloat16), wqkv_ref[blk],
                      preferred_element_type=jnp.float32)                   # (R, 3D)
        # hoisted D-wide slices (3 total), then cheap 8-lane head sub-slices
        q = qkv[:, :d].reshape(bt, s, d)
        k = qkv[:, d:2 * d].reshape(bt, s, d)
        v = qkv[:, 2 * d:].reshape(bt, s, d)

        ctx_heads = []
        for hh in range(heads):                # tiny static loop (heads == 4)
            lo = hh * head_dim
            q_h = q[:, :, lo:lo + head_dim].astype(jnp.bfloat16)
            k_h = k[:, :, lo:lo + head_dim].astype(jnp.bfloat16)
            v_h = v[:, :, lo:lo + head_dim].astype(jnp.bfloat16)
            # reference mask is a no-op (masked_fill result discarded) -> no masking
            sc = jnp.einsum("bqd,bkd->bqk", q_h, k_h,
                            preferred_element_type=jnp.float32) * scale
            sc = sc - jnp.max(sc, axis=-1, keepdims=True)
            p = jnp.exp(sc)
            p = p * pl.reciprocal(jnp.sum(p, axis=-1, keepdims=True), approx=True)
            ctx_heads.append(
                jnp.einsum("bqk,bkd->bqd", p.astype(jnp.bfloat16), v_h,
                           preferred_element_type=jnp.float32))              # (Bt, S, hd)
        # lane-concat per-head contexts (all within one 128-lane vreg at D=32),
        # then ONE unify matmul instead of 4 per-head matmuls
        ctx = jnp.concatenate(ctx_heads, axis=-1).reshape(rows, d)
        attn = jnp.dot(ctx.astype(jnp.bfloat16), wu_ref[blk],
                       preferred_element_type=jnp.float32) + bu_ref[blk]
        xf = xf + attn                                                       # residual (f32)

        # ---------------- FFN on LN2(x) ----------------
        f = _layernorm(xf, g2_ref[blk], be2_ref[blk], eps)
        hid = jnp.dot(f.astype(jnp.bfloat16), w1_ref[blk],
                      preferred_element_type=jnp.float32) + b1_ref[blk]
        hid = jnp.maximum(hid, 0.0)
        ff = jnp.dot(hid.astype(jnp.bfloat16), w2_ref[blk],
                     preferred_element_type=jnp.float32) + b2_ref[blk]
        xf = xf + ff

    # ---------------- final LN + head ----------------
    xn = _layernorm(xf, gf_ref[...], bef_ref[...], eps)                      # (R, D)
    # head: Linear(seq_len -> v_size) on the last axis; bf16 operands, f32 acc;
    # Vpad-wide lane-dense (unmasked) store
    logits = jnp.dot(xn.astype(jnp.bfloat16), hw_ref[...],
                     preferred_element_type=jnp.float32) + hb_ref[...]       # (R, Vpad)
    out_ref[...] = logits.reshape(bt, s, out_ref.shape[-1])


# ------------------------------- host wrapper --------------------------------

def build_params(key, *, num_blocks, mod_dim, ff_dim, seq_len, heads, v_size,
                 ln_key=None):
    ks = jax.random.split(key, 12)
    nrm = lambda k, shp: 0.02 * jax.random.normal(k, shp, jnp.float32)

    wq = nrm(ks[1], (num_blocks, mod_dim, mod_dim))
    wk = nrm(ks[2], (num_blocks, mod_dim, mod_dim))
    wv = nrm(ks[3], (num_blocks, mod_dim, mod_dim))
    wu = nrm(ks[4], (num_blocks, mod_dim, mod_dim))

    if ln_key is None:
        # faithful to the reference LN.__init__: gamma = zeros, beta = ones
        g1 = g2 = jnp.zeros((num_blocks, 1, mod_dim), jnp.float32)
        be1 = be2 = jnp.ones((num_blocks, 1, mod_dim), jnp.float32)
        gf = jnp.zeros((1, mod_dim), jnp.float32)
        bef = jnp.ones((1, mod_dim), jnp.float32)
    else:
        lk = jax.random.split(ln_key, 6)
        r = lambda k, shp: 0.5 * jax.random.normal(k, shp, jnp.float32)
        g1, be1 = r(lk[0], (num_blocks, 1, mod_dim)), r(lk[1], (num_blocks, 1, mod_dim))
        g2, be2 = r(lk[2], (num_blocks, 1, mod_dim)), r(lk[3], (num_blocks, 1, mod_dim))
        gf, bef = r(lk[4], (1, mod_dim)), r(lk[5], (1, mod_dim))

    params = dict(
        emb=nrm(ks[0], (v_size, mod_dim)),
        # fused QKV, (in, out) layout, packed [q|k|v], bf16
        wqkv=jnp.concatenate([wq, wk, wv], axis=-1).astype(jnp.bfloat16),
        wu=wu.astype(jnp.bfloat16),
        bu=nrm(ks[5], (num_blocks, 1, mod_dim)),
        w1=nrm(ks[6], (num_blocks, mod_dim, ff_dim)).astype(jnp.bfloat16),
        b1=nrm(ks[7], (num_blocks, 1, ff_dim)),
        w2=nrm(ks[8], (num_blocks, ff_dim, mod_dim)).astype(jnp.bfloat16),
        b2=nrm(ks[9], (num_blocks, 1, mod_dim)),
        g1=g1, be1=be1, g2=g2, be2=be2, gf=gf, bef=bef,
        # head: Linear(seq_len, v_size), (in, out) layout, f32 master copy
        hw=nrm(ks[10], (seq_len, v_size)),
        hb=nrm(ks[11], (1, v_size)),
    )
    # sinusoidal PE with positions = zeros: even cols sin(0)=0, odd cols cos(0)=1
    params["pe"] = jnp.zeros((seq_len, mod_dim), jnp.float32).at[:, 1::2].set(1.0)
    return params


def decoder_forward(tokens, params, *, num_blocks, heads, mod_dim, seq_len, v_size,
                    eps=1e-4, batch_tile=4):
    B, S = tokens.shape
    assert B >= 2, "head(x[:-1]) yields an empty output for batch size 1"
    assert mod_dim == seq_len, "head = Linear(seq_len, v_size) requires mod_dim == seq_len"
    D = mod_dim
    head_dim = D // heads
    ff_dim = params["w1"].shape[-1]
    vpad = ((v_size + 127) // 128) * 128          # lane-dense output width

    # head(x[:-1]) discards the last batch element -> never compute it
    b_eff = B - 1
    bt = min(batch_tile, b_eff)                   # Bt*S = 128 folded rows at S=32, bt=4
    b_pad = ((b_eff + bt - 1) // bt) * bt
    n_tiles = b_pad // bt

    # embedding gather + positional encoding kept as plain-JAX glue
    x = jnp.take(params["emb"], tokens[:b_eff], axis=0) + params["pe"][None]  # (b_eff,S,D)
    if b_pad != b_eff:
        x = jnp.pad(x, ((0, b_pad - b_eff), (0, 0), (0, 0)))

    # zero-pad head weight/bias to a full 128-lane output slab; weight in bf16
    hw_pad = (jnp.zeros((seq_len, vpad), jnp.float32)
              .at[:, :v_size].set(params["hw"]).astype(jnp.bfloat16))
    hb_pad = jnp.zeros((1, vpad), jnp.float32).at[:, :v_size].set(params["hb"])

    inputs = (x, params["wqkv"], params["wu"], params["bu"],
              params["w1"], params["b1"], params["w2"], params["b2"],
              params["g1"], params["be1"], params["g2"], params["be2"],
              params["gf"], params["bef"], hw_pad, hb_pad)

    batch_map = lambda i: (i, 0, 0)
    resident3 = lambda i: (0, 0, 0)               # weights stay resident across tiles
    resident2 = lambda i: (0, 0)

    in_specs = [
        pl.BlockSpec((bt, S, D), batch_map),                    # x
        pl.BlockSpec((num_blocks, D, 3 * D), resident3),        # wqkv
        pl.BlockSpec((num_blocks, D, D), resident3),            # wu
        pl.BlockSpec((num_blocks, 1, D), resident3),            # bu
        pl.BlockSpec((num_blocks, D, ff_dim), resident3),       # w1
        pl.BlockSpec((num_blocks, 1, ff_dim), resident3),       # b1
        pl.BlockSpec((num_blocks, ff_dim, D), resident3),       # w2
        pl.BlockSpec((num_blocks, 1, D), resident3),            # b2
        pl.BlockSpec((num_blocks, 1, D), resident3),            # g1
        pl.BlockSpec((num_blocks, 1, D), resident3),            # be1
        pl.BlockSpec((num_blocks, 1, D), resident3),            # g2
        pl.BlockSpec((num_blocks, 1, D), resident3),            # be2
        pl.BlockSpec((1, D), resident2),                        # gf
        pl.BlockSpec((1, D), resident2),                        # bef
        pl.BlockSpec((S, vpad), resident2),                     # hw (padded, bf16)
        pl.BlockSpec((1, vpad), resident2),                     # hb (padded)
    ]
    out_spec = pl.BlockSpec((bt, S, vpad), batch_map)

    # advisory cost estimate for XLA scheduling
    flops = 2 * b_pad * num_blocks * (S * D * 3 * D                  # fused QKV
                                      + heads * 2 * S * S * head_dim  # scores + ctx
                                      + S * D * D                    # unify
                                      + 2 * S * D * ff_dim)          # FFN
    flops += 2 * b_pad * S * D * vpad                                # head
    transcendentals = b_pad * num_blocks * (heads * S * S + 4 * S)
    bytes_accessed = (sum(int(a.size) * a.dtype.itemsize for a in inputs)
                      + b_pad * S * vpad * 4)

    kernel = functools.partial(decoder_kernel, heads=heads, eps=eps)

    out_full = pl.pallas_call(
        kernel,
        out_shape=jax.ShapeDtypeStruct((b_pad, S, vpad), jnp.float32),
        grid_spec=pltpu.PrefetchScalarGridSpec(
            num_scalar_prefetch=0,
            grid=(n_tiles,),                                     # batch tiles only
            in_specs=in_specs,
            out_specs=out_spec,
        ),
        compiler_params=pltpu.CompilerParams(
            dimension_semantics=("parallel",),                   # shardable across TCs
            vmem_limit_bytes=32 * 1024 * 1024,                   # safe on v5e/v6e/v7x
        ),
        cost_estimate=pl.CostEstimate(flops=int(flops),
                                      transcendentals=int(transcendentals),
                                      bytes_accessed=int(bytes_accessed)),
    )(*inputs)

    # drop batch padding and the lane padding of the head output
    return out_full[:b_eff, :, :v_size]


# ------------------------------ pure-JAX reference ---------------------------

def decoder_reference(tokens, params, *, num_blocks, heads, mod_dim, seq_len, v_size,
                      eps=1e-4):
    D = mod_dim
    hd = D // heads

    def ln(x, g, b):
        m = jnp.mean(x, -1, keepdims=True)
        v = jnp.mean((x - m) ** 2, -1, keepdims=True)
        return (x - m) / jnp.sqrt(v + eps) * g + b

    x = jnp.take(params["emb"], tokens, axis=0) + params["pe"][None]
    for i in range(num_blocks):
        h = ln(x, params["g1"][i, 0], params["be1"][i, 0])
        qkv = h @ params["wqkv"][i].astype(jnp.float32)
        q, k, v = qkv[..., :D], qkv[..., D:2 * D], qkv[..., 2 * D:]
        B, S, _ = q.shape
        split = lambda t: t.reshape(B, S, heads, hd).transpose(0, 2, 1, 3)
        qh, kh, vh = split(q), split(k), split(v)
        sc = (qh @ kh.transpose(0, 1, 3, 2)) / jnp.sqrt(jnp.float32(hd))
        p = jax.nn.softmax(sc, axis=-1)
        ctx = (p @ vh).transpose(0, 2, 1, 3).reshape(B, S, D)
        x = ctx @ params["wu"][i].astype(jnp.float32) + params["bu"][i, 0] + x
        f = ln(x, params["g2"][i, 0], params["be2"][i, 0])
        f = jnp.maximum(f @ params["w1"][i].astype(jnp.float32) + params["b1"][i, 0], 0.0)
        x = f @ params["w2"][i].astype(jnp.float32) + params["b2"][i, 0] + x
    xn = ln(x, params["gf"][0], params["bef"][0])
    return xn[:-1] @ params["hw"] + params["hb"][0]


# ----------------------------------- main ------------------------------------

if __name__ == "__main__":
    # mod_dim must equal seq_len because head = Linear(seq_len, v_size) acts on the
    # last (mod_dim) axis.  B=5 -> 4 kept batch rows -> one folded (4*32, D) tile.
    B, seq_len, mod_dim, heads, ff_dim, num_blocks, v_size = 5, 32, 32, 4, 64, 2, 16

    key = jax.random.PRNGKey(0)
    pkey, tkey, lkey = jax.random.split(key, 3)
    tokens = jax.random.randint(tkey, (B, seq_len), 0, v_size, dtype=jnp.int32)

    cfg = dict(num_blocks=num_blocks, heads=heads, mod_dim=mod_dim,
               seq_len=seq_len, v_size=v_size)

    # 1) faithful-to-the-reference parameters (LN gamma=zeros, beta=ones)
    params = build_params(pkey, num_blocks=num_blocks, mod_dim=mod_dim, ff_dim=ff_dim,
                          seq_len=seq_len, heads=heads, v_size=v_size)
    out = jax.block_until_ready(decoder_forward(tokens, params, **cfg))
    ref = decoder_reference(tokens, params, **cfg)
    assert out.shape == (B - 1, seq_len, v_size), out.shape
    assert jnp.allclose(out, ref, atol=1e-2, rtol=1e-2), "mismatch (faithful LN params)"

    # 2) validation with non-trivial LN gamma/beta (the faithful params make every
    #    LayerNorm output a constant, so this run actually exercises the
    #    attention / FFN layout paths)
    vparams = build_params(pkey, num_blocks=num_blocks, mod_dim=mod_dim, ff_dim=ff_dim,
                           seq_len=seq_len, heads=heads, v_size=v_size, ln_key=lkey)
    out_v = jax.block_until_ready(decoder_forward(tokens, vparams, **cfg))
    ref_v = decoder_reference(tokens, vparams, **cfg)
    assert jnp.allclose(out_v, ref_v, atol=1e-2, rtol=1e-2), "mismatch (validation LN params)"

    print("KERNEL_OK")
</pallas_src>

<mosaic_0001>
module attributes {stable_mosaic.version = 11 : i64} {
  func.func @decoder_kernel(%arg0: i32, %arg1: memref<4x32x32xf32, #tpu.memory_space<vmem>>, %arg2: memref<2x32x96xbf16, #tpu.memory_space<vmem>>, %arg3: memref<2x32x32xbf16, #tpu.memory_space<vmem>>, %arg4: memref<2x1x32xf32, #tpu.memory_space<vmem>>, %arg5: memref<2x32x64xbf16, #tpu.memory_space<vmem>>, %arg6: memref<2x1x64xf32, #tpu.memory_space<vmem>>, %arg7: memref<2x64x32xbf16, #tpu.memory_space<vmem>>, %arg8: memref<2x1x32xf32, #tpu.memory_space<vmem>>, %arg9: memref<2x1x32xf32, #tpu.memory_space<vmem>>, %arg10: memref<2x1x32xf32, #tpu.memory_space<vmem>>, %arg11: memref<2x1x32xf32, #tpu.memory_space<vmem>>, %arg12: memref<2x1x32xf32, #tpu.memory_space<vmem>>, %arg13: memref<1x32xf32, #tpu.memory_space<vmem>>, %arg14: memref<1x32xf32, #tpu.memory_space<vmem>>, %arg15: memref<32x128xbf16, #tpu.memory_space<vmem>>, %arg16: memref<1x128xf32, #tpu.memory_space<vmem>>, %arg17: memref<4x32x128xf32, #tpu.memory_space<vmem>>) attributes {dimension_semantics = [#tpu.dimension_semantics<parallel>], iteration_bounds = array<i64: 1>, scalar_prefetch = 0 : i64, scratch_operands = 0 : i64, tpu.core_type = #tpu.core_type<tc>, window_params = [{transform_indices = @transform_0, window_bounds = array<i64: 4, 32, 32>}, {pipeline_mode = #tpu.pipeline_mode<synchronous>, transform_indices = @transform_1, window_bounds = array<i64: 2, 32, 96>}, {pipeline_mode = #tpu.pipeline_mode<synchronous>, transform_indices = @transform_2, window_bounds = array<i64: 2, 32, 32>}, {pipeline_mode = #tpu.pipeline_mode<synchronous>, transform_indices = @transform_3, window_bounds = array<i64: 2, 1, 32>}, {pipeline_mode = #tpu.pipeline_mode<synchronous>, transform_indices = @transform_4, window_bounds = array<i64: 2, 32, 64>}, {pipeline_mode = #tpu.pipeline_mode<synchronous>, transform_indices = @transform_5, window_bounds = array<i64: 2, 1, 64>}, {pipeline_mode = #tpu.pipeline_mode<synchronous>, transform_indices = @transform_6, window_bounds = array<i64: 2, 64, 32>}, {pipeline_mode = #tpu.pipeline_mode<synchronous>, transform_indices = @transform_7, window_bounds = array<i64: 2, 1, 32>}, {pipeline_mode = #tpu.pipeline_mode<synchronous>, transform_indices = @transform_8, window_bounds = array<i64: 2, 1, 32>}, {pipeline_mode = #tpu.pipeline_mode<synchronous>, transform_indices = @transform_9, window_bounds = array<i64: 2, 1, 32>}, {pipeline_mode = #tpu.pipeline_mode<synchronous>, transform_indices = @transform_10, window_bounds = array<i64: 2, 1, 32>}, {pipeline_mode = #tpu.pipeline_mode<synchronous>, transform_indices = @transform_11, window_bounds = array<i64: 2, 1, 32>}, {pipeline_mode = #tpu.pipeline_mode<synchronous>, transform_indices = @transform_12, window_bounds = array<i64: 1, 32>}, {pipeline_mode = #tpu.pipeline_mode<synchronous>, transform_indices = @transform_13, window_bounds = array<i64: 1, 32>}, {pipeline_mode = #tpu.pipeline_mode<synchronous>, transform_indices = @transform_14, window_bounds = array<i64: 32, 128>}, {pipeline_mode = #tpu.pipeline_mode<synchronous>, transform_indices = @transform_15, window_bounds = array<i64: 1, 128>}, {transform_indices = @transform_16, window_bounds = array<i64: 4, 32, 128>}]} {
    %c0 = arith.constant 0 : index
    %c0_0 = arith.constant 0 : index
    %c0_1 = arith.constant 0 : index
    %0 = vector.load %arg1[%c0, %c0_0, %c0_1] : memref<4x32x32xf32, #tpu.memory_space<vmem>>, vector<4x32x32xf32>
    %1 = vector.shape_cast %0 : vector<4x32x32xf32> to vector<128x32xf32>
    %c0_2 = arith.constant 0 : index
    %c0_3 = arith.constant 0 : index
    %c0_4 = arith.constant 0 : index
    %2 = vector.load %arg9[%c0_2, %c0_3, %c0_4] : memref<2x1x32xf32, #tpu.memory_space<vmem>>, vector<1x1x32xf32>
    %3 = vector.shape_cast %2 : vector<1x1x32xf32> to vector<1x32xf32>
    %c0_5 = arith.constant 0 : index
    %c0_6 = arith.constant 0 : index
    %c0_7 = arith.constant 0 : index
    %4 = vector.load %arg10[%c0_5, %c0_6, %c0_7] : memref<2x1x32xf32, #tpu.memory_space<vmem>>, vector<1x1x32xf32>
    %5 = vector.shape_cast %4 : vector<1x1x32xf32> to vector<1x32xf32>
    %cst = arith.constant dense<0.000000e+00> : vector<128xf32>
    %6 = vector.multi_reduction <add>, %1, %cst [1] : vector<128x32xf32> to vector<128xf32>
    %7 = vector.shape_cast %6 : vector<128xf32> to vector<128x1xf32>
    %cst_8 = arith.constant 3.200000e+01 : f32
    %8 = vector.broadcast %cst_8 : f32 to vector<128x1xf32>
    %9 = arith.divf %7, %8 : vector<128x1xf32>
    %10 = vector.broadcast %9 : vector<128x1xf32> to vector<128x32xf32>
    %11 = arith.subf %1, %10 : vector<128x32xf32>
    %12 = arith.mulf %11, %11 : vector<128x32xf32>
    %cst_9 = arith.constant dense<0.000000e+00> : vector<128xf32>
    %13 = vector.multi_reduction <add>, %12, %cst_9 [1] : vector<128x32xf32> to vector<128xf32>
    %14 = vector.shape_cast %13 : vector<128xf32> to vector<128x1xf32>
    %cst_10 = arith.constant 3.200000e+01 : f32
    %15 = vector.broadcast %cst_10 : f32 to vector<128x1xf32>
    %16 = arith.divf %14, %15 : vector<128x1xf32>
    %17 = vector.broadcast %9 : vector<128x1xf32> to vector<128x32xf32>
    %18 = arith.subf %1, %17 : vector<128x32xf32>
    %cst_11 = arith.constant 9.99999974E-5 : f32
    %19 = vector.broadcast %cst_11 : f32 to vector<128x1xf32>
    %20 = arith.addf %16, %19 : vector<128x1xf32>
    %21 = math.rsqrt %20 : vector<128x1xf32>
    %22 = vector.broadcast %21 : vector<128x1xf32> to vector<128x32xf32>
    %23 = arith.mulf %18, %22 : vector<128x32xf32>
    %24 = vector.broadcast %3 : vector<1x32xf32> to vector<128x32xf32>
    %25 = arith.mulf %23, %24 : vector<128x32xf32>
    %26 = vector.broadcast %5 : vector<1x32xf32> to vector<128x32xf32>
    %27 = arith.addf %25, %26 : vector<128x32xf32>
    %28 = arith.truncf %27 : vector<128x32xf32> to vector<128x32xbf16>
    %c0_12 = arith.constant 0 : index
    %c0_13 = arith.constant 0 : index
    %c0_14 = arith.constant 0 : index
    %29 = vector.load %arg2[%c0_12, %c0_13, %c0_14] : memref<2x32x96xbf16, #tpu.memory_space<vmem>>, vector<1x32x96xbf16>
    %30 = vector.shape_cast %29 : vector<1x32x96xbf16> to vector<32x96xbf16>
    %cst_15 = arith.constant dense<0.000000e+00> : vector<128x96xf32>
    %31 = tpu.matmul %28, %30, %cst_15 {dimension_numbers = #tpu.dot_dimension_numbers<[1], [0], [0], [1], [0, 0, 1, 1], [], []>} : vector<128x32xbf16>, vector<32x96xbf16>, vector<128x96xf32> -> vector<128x96xf32>
    %32 = vector.extract_strided_slice %31 {offsets = [0, 0], sizes = [128, 32], strides = [1, 1]} : vector<128x96xf32> to vector<128x32xf32>
    %33 = vector.shape_cast %32 : vector<128x32xf32> to vector<4x32x32xf32>
    %34 = vector.extract_strided_slice %31 {offsets = [0, 32], sizes = [128, 32], strides = [1, 1]} : vector<128x96xf32> to vector<128x32xf32>
    %35 = vector.shape_cast %34 : vector<128x32xf32> to vector<4x32x32xf32>
    %36 = vector.extract_strided_slice %31 {offsets = [0, 64], sizes = [128, 32], strides = [1, 1]} : vector<128x96xf32> to vector<128x32xf32>
    %37 = vector.shape_cast %36 : vector<128x32xf32> to vector<4x32x32xf32>
    %38 = vector.extract_strided_slice %33 {offsets = [0, 0, 0], sizes = [4, 32, 8], strides = [1, 1, 1]} : vector<4x32x32xf32> to vector<4x32x8xf32>
    %39 = arith.truncf %38 : vector<4x32x8xf32> to vector<4x32x8xbf16>
    %40 = vector.extract_strided_slice %35 {offsets = [0, 0, 0], sizes = [4, 32, 8], strides = [1, 1, 1]} : vector<4x32x32xf32> to vector<4x32x8xf32>
    %41 = arith.truncf %40 : vector<4x32x8xf32> to vector<4x32x8xbf16>
    %42 = vector.extract_strided_slice %37 {offsets = [0, 0, 0], sizes = [4, 32, 8], strides = [1, 1, 1]} : vector<4x32x32xf32> to vector<4x32x8xf32>
    %43 = arith.truncf %42 : vector<4x32x8xf32> to vector<4x32x8xbf16>
    "tpu.trace_start"() <{level = 10 : i32, message = "bqd,bkd->bqk"}> : () -> ()
    %cst_16 = arith.constant dense<0.000000e+00> : vector<4x32x32xf32>
    %44 = tpu.matmul %39, %41, %cst_16 {dimension_numbers = #tpu.dot_dimension_numbers<[2], [2], [1], [1], [0, 0, 0, 1, 1, 1], [0], [0]>} : vector<4x32x8xbf16>, vector<4x32x8xbf16>, vector<4x32x32xf32> -> vector<4x32x32xf32>
    "tpu.trace_stop"() : () -> ()
    %cst_17 = arith.constant 0.353553385 : f32
    %45 = vector.broadcast %cst_17 : f32 to vector<4x32x32xf32>
    %46 = arith.mulf %44, %45 : vector<4x32x32xf32>
    %cst_18 = arith.constant dense<0xFF800000> : vector<4x32xf32>
    %47 = vector.multi_reduction <maximumf>, %46, %cst_18 [2] : vector<4x32x32xf32> to vector<4x32xf32>
    %48 = vector.shape_cast %47 : vector<4x32xf32> to vector<4x32x1xf32>
    %49 = vector.broadcast %48 : vector<4x32x1xf32> to vector<4x32x32xf32>
    %50 = arith.subf %46, %49 : vector<4x32x32xf32>
    %51 = math.exp %50 : vector<4x32x32xf32>
    %cst_19 = arith.constant dense<0.000000e+00> : vector<4x32xf32>
    %52 = vector.multi_reduction <add>, %51, %cst_19 [2] : vector<4x32x32xf32> to vector<4x32xf32>
    %53 = vector.shape_cast %52 : vector<4x32xf32> to vector<4x32x1xf32>
    %54 = tpu.reciprocal %53 {approx = true} : vector<4x32x1xf32> -> vector<4x32x1xf32>
    %55 = vector.broadcast %54 : vector<4x32x1xf32> to vector<4x32x32xf32>
    %56 = arith.mulf %51, %55 : vector<4x32x32xf32>
    %57 = arith.truncf %56 : vector<4x32x32xf32> to vector<4x32x32xbf16>
    "tpu.trace_start"() <{level = 10 : i32, message = "bqk,bkd->bqd"}> : () -> ()
    %cst_20 = arith.constant dense<0.000000e+00> : vector<4x32x8xf32>
    %58 = tpu.matmul %57, %43, %cst_20 {dimension_numbers = #tpu.dot_dimension_numbers<[2], [1], [1], [2], [0, 0, 0, 1, 1, 2], [0], [0]>} : vector<4x32x32xbf16>, vector<4x32x8xbf16>, vector<4x32x8xf32> -> vector<4x32x8xf32>
    "tpu.trace_stop"() : () -> ()
    %59 = vector.extract_strided_slice %33 {offsets = [0, 0, 8], sizes = [4, 32, 8], strides = [1, 1, 1]} : vector<4x32x32xf32> to vector<4x32x8xf32>
    %60 = arith.truncf %59 : vector<4x32x8xf32> to vector<4x32x8xbf16>
    %61 = vector.extract_strided_slice %35 {offsets = [0, 0, 8], sizes = [4, 32, 8], strides = [1, 1, 1]} : vector<4x32x32xf32> to vector<4x32x8xf32>
    %62 = arith.truncf %61 : vector<4x32x8xf32> to vector<4x32x8xbf16>
    %63 = vector.extract_strided_slice %37 {offsets = [0, 0, 8], sizes = [4, 32, 8], strides = [1, 1, 1]} : vector<4x32x32xf32> to vector<4x32x8xf32>
    %64 = arith.truncf %63 : vector<4x32x8xf32> to vector<4x32x8xbf16>
    "tpu.trace_start"() <{level = 10 : i32, message = "bqd,bkd->bqk"}> : () -> ()
    %cst_21 = arith.constant dense<0.000000e+00> : vector<4x32x32xf32>
    %65 = tpu.matmul %60, %62, %cst_21 {dimension_numbers = #tpu.dot_dimension_numbers<[2], [2], [1], [1], [0, 0, 0, 1, 1, 1], [0], [0]>} : vector<4x32x8xbf16>, vector<4x32x8xbf16>, vector<4x32x32xf32> -> vector<4x32x32xf32>
    "tpu.trace_stop"() : () -> ()
    %cst_22 = arith.constant 0.353553385 : f32
    %66 = vector.broadcast %cst_22 : f32 to vector<4x32x32xf32>
    %67 = arith.mulf %65, %66 : vector<4x32x32xf32>
    %cst_23 = arith.constant dense<0xFF800000> : vector<4x32xf32>
    %68 = vector.multi_reduction <maximumf>, %67, %cst_23 [2] : vector<4x32x32xf32> to vector<4x32xf32>
    %69 = vector.shape_cast %68 : vector<4x32xf32> to vector<4x32x1xf32>
    %70 = vector.broadcast %69 : vector<4x32x1xf32> to vector<4x32x32xf32>
    %71 = arith.subf %67, %70 : vector<4x32x32xf32>
    %72 = math.exp %71 : vector<4x32x32xf32>
    %cst_24 = arith.constant dense<0.000000e+00> : vector<4x32xf32>
    %73 = vector.multi_reduction <add>, %72, %cst_24 [2] : vector<4x32x32xf32> to vector<4x32xf32>
    %74 = vector.shape_cast %73 : vector<4x32xf32> to vector<4x32x1xf32>
    %75 = tpu.reciprocal %74 {approx = true} : vector<4x32x1xf32> -> vector<4x32x1xf32>
    %76 = vector.broadcast %75 : vector<4x32x1xf32> to vector<4x32x32xf32>
    %77 = arith.mulf %72, %76 : vector<4x32x32xf32>
    %78 = arith.truncf %77 : vector<4x32x32xf32> to vector<4x32x32xbf16>
    "tpu.trace_start"() <{level = 10 : i32, message = "bqk,bkd->bqd"}> : () -> ()
    %cst_25 = arith.constant dense<0.000000e+00> : vector<4x32x8xf32>
    %79 = tpu.matmul %78, %64, %cst_25 {dimension_numbers = #tpu.dot_dimension_numbers<[2], [1], [1], [2], [0, 0, 0, 1, 1, 2], [0], [0]>} : vector<4x32x32xbf16>, vector<4x32x8xbf16>, vector<4x32x8xf32> -> vector<4x32x8xf32>
    "tpu.trace_stop"() : () -> ()
    %80 = vector.extract_strided_slice %33 {offsets = [0, 0, 16], sizes = [4, 32, 8], strides = [1, 1, 1]} : vector<4x32x32xf32> to vector<4x32x8xf32>
    %81 = arith.truncf %80 : vector<4x32x8xf32> to vector<4x32x8xbf16>
    %82 = vector.extract_strided_slice %35 {offsets = [0, 0, 16], sizes = [4, 32, 8], strides = [1, 1, 1]} : vector<4x32x32xf32> to vector<4x32x8xf32>
    %83 = arith.truncf %82 : vector<4x32x8xf32> to vector<4x32x8xbf16>
    %84 = vector.extract_strided_slice %37 {offsets = [0, 0, 16], sizes = [4, 32, 8], strides = [1, 1, 1]} : vector<4x32x32xf32> to vector<4x32x8xf32>
    %85 = arith.truncf %84 : vector<4x32x8xf32> to vector<4x32x8xbf16>
    "tpu.trace_start"() <{level = 10 : i32, message = "bqd,bkd->bqk"}> : () -> ()
    %cst_26 = arith.constant dense<0.000000e+00> : vector<4x32x32xf32>
    %86 = tpu.matmul %81, %83, %cst_26 {dimension_numbers = #tpu.dot_dimension_numbers<[2], [2], [1], [1], [0, 0, 0, 1, 1, 1], [0], [0]>} : vector<4x32x8xbf16>, vector<4x32x8xbf16>, vector<4x32x32xf32> -> vector<4x32x32xf32>
    "tpu.trace_stop"() : () -> ()
    %cst_27 = arith.constant 0.353553385 : f32
    %87 = vector.broadcast %cst_27 : f32 to vector<4x32x32xf32>
    %88 = arith.mulf %86, %87 : vector<4x32x32xf32>
    %cst_28 = arith.constant dense<0xFF800000> : vector<4x32xf32>
    %89 = vector.multi_reduction <maximumf>, %88, %cst_28 [2] : vector<4x32x32xf32> to vector<4x32xf32>
    %90 = vector.shape_cast %89 : vector<4x32xf32> to vector<4x32x1xf32>
    %91 = vector.broadcast %90 : vector<4x32x1xf32> to vector<4x32x32xf32>
    %92 = arith.subf %88, %91 : vector<4x32x32xf32>
    %93 = math.exp %92 : vector<4x32x32xf32>
    %cst_29 = arith.constant dense<0.000000e+00> : vector<4x32xf32>
    %94 = vector.multi_reduction <add>, %93, %cst_29 [2] : vector<4x32x32xf32> to vector<4x32xf32>
    %95 = vector.shape_cast %94 : vector<4x32xf32> to vector<4x32x1xf32>
    %96 = tpu.reciprocal %95 {approx = true} : vector<4x32x1xf32> -> vector<4x32x1xf32>
    %97 = vector.broadcast %96 : vector<4x32x1xf32> to vector<4x32x32xf32>
    %98 = arith.mulf %93, %97 : vector<4x32x32xf32>
    %99 = arith.truncf %98 : vector<4x32x32xf32> to vector<4x32x32xbf16>
    "tpu.trace_start"() <{level = 10 : i32, message = "bqk,bkd->bqd"}> : () -> ()
    %cst_30 = arith.constant dense<0.000000e+00> : vector<4x32x8xf32>
    %100 = tpu.matmul %99, %85, %cst_30 {dimension_numbers = #tpu.dot_dimension_numbers<[2], [1], [1], [2], [0, 0, 0, 1, 1, 2], [0], [0]>} : vector<4x32x32xbf16>, vector<4x32x8xbf16>, vector<4x32x8xf32> -> vector<4x32x8xf32>
    "tpu.trace_stop"() : () -> ()
    %101 = vector.extract_strided_slice %33 {offsets = [0, 0, 24], sizes = [4, 32, 8], strides = [1, 1, 1]} : vector<4x32x32xf32> to vector<4x32x8xf32>
    %102 = arith.truncf %101 : vector<4x32x8xf32> to vector<4x32x8xbf16>
    %103 = vector.extract_strided_slice %35 {offsets = [0, 0, 24], sizes = [4, 32, 8], strides = [1, 1, 1]} : vector<4x32x32xf32> to vector<4x32x8xf32>
    %104 = arith.truncf %103 : vector<4x32x8xf32> to vector<4x32x8xbf16>
    %105 = vector.extract_strided_slice %37 {offsets = [0, 0, 24], sizes = [4, 32, 8], strides = [1, 1, 1]} : vector<4x32x32xf32> to vector<4x32x8xf32>
    %106 = arith.truncf %105 : vector<4x32x8xf32> to vector<4x32x8xbf16>
    "tpu.trace_start"() <{level = 10 : i32, message = "bqd,bkd->bqk"}> : () -> ()
    %cst_31 = arith.constant dense<0.000000e+00> : vector<4x32x32xf32>
    %107 = tpu.matmul %102, %104, %cst_31 {dimension_numbers = #tpu.dot_dimension_numbers<[2], [2], [1], [1], [0, 0, 0, 1, 1, 1], [0], [0]>} : vector<4x32x8xbf16>, vector<4x32x8xbf16>, vector<4x32x32xf32> -> vector<4x32x32xf32>
    "tpu.trace_stop"() : () -> ()
    %cst_32 = arith.constant 0.353553385 : f32
    %108 = vector.broadcast %cst_32 : f32 to vector<4x32x32xf32>
    %109 = arith.mulf %107, %108 : vector<4x32x32xf32>
    %cst_33 = arith.constant dense<0xFF800000> : vector<4x32xf32>
    %110 = vector.multi_reduction <maximumf>, %109, %cst_33 [2] : vector<4x32x32xf32> to vector<4x32xf32>
    %111 = vector.shape_cast %110 : vector<4x32xf32> to vector<4x32x1xf32>
    %112 = vector.broadcast %111 : vector<4x32x1xf32> to vector<4x32x32xf32>
    %113 = arith.subf %109, %112 : vector<4x32x32xf32>
    %114 = math.exp %113 : vector<4x32x32xf32>
    %cst_34 = arith.constant dense<0.000000e+00> : vector<4x32xf32>
    %115 = vector.multi_reduction <add>, %114, %cst_34 [2] : vector<4x32x32xf32> to vector<4x32xf32>
    %116 = vector.shape_cast %115 : vector<4x32xf32> to vector<4x32x1xf32>
    %117 = tpu.reciprocal %116 {approx = true} : vector<4x32x1xf32> -> vector<4x32x1xf32>
    %118 = vector.broadcast %117 : vector<4x32x1xf32> to vector<4x32x32xf32>
    %119 = arith.mulf %114, %118 : vector<4x32x32xf32>
    %120 = arith.truncf %119 : vector<4x32x32xf32> to vector<4x32x32xbf16>
    "tpu.trace_start"() <{level = 10 : i32, message = "bqk,bkd->bqd"}> : () -> ()
    %cst_35 = arith.constant dense<0.000000e+00> : vector<4x32x8xf32>
    %121 = tpu.matmul %120, %106, %cst_35 {dimension_numbers = #tpu.dot_dimension_numbers<[2], [1], [1], [2], [0, 0, 0, 1, 1, 2], [0], [0]>} : vector<4x32x32xbf16>, vector<4x32x8xbf16>, vector<4x32x8xf32> -> vector<4x32x8xf32>
    "tpu.trace_stop"() : () -> ()
    %122 = tpu.concatenate %58, %79, %100, %121 in 2 : vector<4x32x8xf32>, vector<4x32x8xf32>, vector<4x32x8xf32>, vector<4x32x8xf32> -> vector<4x32x32xf32>
    %123 = vector.shape_cast %122 : vector<4x32x32xf32> to vector<128x32xf32>
    %124 = arith.truncf %123 : vector<128x32xf32> to vector<128x32xbf16>
    %c0_36 = arith.constant 0 : index
    %c0_37 = arith.constant 0 : index
    %c0_38 = arith.constant 0 : index
    %125 = vector.load %arg3[%c0_36, %c0_37, %c0_38] : memref<2x32x32xbf16, #tpu.memory_space<vmem>>, vector<1x32x32xbf16>
    %126 = vector.shape_cast %125 : vector<1x32x32xbf16> to vector<32x32xbf16>
    %cst_39 = arith.constant dense<0.000000e+00> : vector<128x32xf32>
    %127 = tpu.matmul %124, %126, %cst_39 {dimension_numbers = #tpu.dot_dimension_numbers<[1], [0], [0], [1], [0, 0, 1, 1], [], []>} : vector<128x32xbf16>, vector<32x32xbf16>, vector<128x32xf32> -> vector<128x32xf32>
    %c0_40 = arith.constant 0 : index
    %c0_41 = arith.constant 0 : index
    %c0_42 = arith.constant 0 : index
    %128 = vector.load %arg4[%c0_40, %c0_41, %c0_42] : memref<2x1x32xf32, #tpu.memory_space<vmem>>, vector<1x1x32xf32>
    %129 = vector.shape_cast %128 : vector<1x1x32xf32> to vector<1x32xf32>
    %130 = vector.broadcast %129 : vector<1x32xf32> to vector<128x32xf32>
    %131 = arith.addf %127, %130 : vector<128x32xf32>
    %132 = arith.addf %1, %131 : vector<128x32xf32>
    %c0_43 = arith.constant 0 : index
    %c0_44 = arith.constant 0 : index
    %c0_45 = arith.constant 0 : index
    %133 = vector.load %arg11[%c0_43, %c0_44, %c0_45] : memref<2x1x32xf32, #tpu.memory_space<vmem>>, vector<1x1x32xf32>
    %134 = vector.shape_cast %133 : vector<1x1x32xf32> to vector<1x32xf32>
    %c0_46 = arith.constant 0 : index
    %c0_47 = arith.constant 0 : index
    %c0_48 = arith.constant 0 : index
    %135 = vector.load %arg12[%c0_46, %c0_47, %c0_48] : memref<2x1x32xf32, #tpu.memory_space<vmem>>, vector<1x1x32xf32>
    %136 = vector.shape_cast %135 : vector<1x1x32xf32> to vector<1x32xf32>
    %cst_49 = arith.constant dense<0.000000e+00> : vector<128xf32>
    %137 = vector.multi_reduction <add>, %132, %cst_49 [1] : vector<128x32xf32> to vector<128xf32>
    %138 = vector.shape_cast %137 : vector<128xf32> to vector<128x1xf32>
    %cst_50 = arith.constant 3.200000e+01 : f32
    %139 = vector.broadcast %cst_50 : f32 to vector<128x1xf32>
    %140 = arith.divf %138, %139 : vector<128x1xf32>
    %141 = vector.broadcast %140 : vector<128x1xf32> to vector<128x32xf32>
    %142 = arith.subf %132, %141 : vector<128x32xf32>
    %143 = arith.mulf %142, %142 : vector<128x32xf32>
    %cst_51 = arith.constant dense<0.000000e+00> : vector<128xf32>
    %144 = vector.multi_reduction <add>, %143, %cst_51 [1] : vector<128x32xf32> to vector<128xf32>
    %145 = vector.shape_cast %144 : vector<128xf32> to vector<128x1xf32>
    %cst_52 = arith.constant 3.200000e+01 : f32
    %146 = vector.broadcast %cst_52 : f32 to vector<128x1xf32>
    %147 = arith.divf %145, %146 : vector<128x1xf32>
    %148 = vector.broadcast %140 : vector<128x1xf32> to vector<128x32xf32>
    %149 = arith.subf %132, %148 : vector<128x32xf32>
    %cst_53 = arith.constant 9.99999974E-5 : f32
    %150 = vector.broadcast %cst_53 : f32 to vector<128x1xf32>
    %151 = arith.addf %147, %150 : vector<128x1xf32>
    %152 = math.rsqrt %151 : vector<128x1xf32>
    %153 = vector.broadcast %152 : vector<128x1xf32> to vector<128x32xf32>
    %154 = arith.mulf %149, %153 : vector<128x32xf32>
    %155 = vector.broadcast %134 : vector<1x32xf32> to vector<128x32xf32>
    %156 = arith.mulf %154, %155 : vector<128x32xf32>
    %157 = vector.broadcast %136 : vector<1x32xf32> to vector<128x32xf32>
    %158 = arith.addf %156, %157 : vector<128x32xf32>
    %159 = arith.truncf %158 : vector<128x32xf32> to vector<128x32xbf16>
    %c0_54 = arith.constant 0 : index
    %c0_55 = arith.constant 0 : index
    %c0_56 = arith.constant 0 : index
    %160 = vector.load %arg5[%c0_54, %c0_55, %c0_56] : memref<2x32x64xbf16, #tpu.memory_space<vmem>>, vector<1x32x64xbf16>
    %161 = vector.shape_cast %160 : vector<1x32x64xbf16> to vector<32x64xbf16>
    %cst_57 = arith.constant dense<0.000000e+00> : vector<128x64xf32>
    %162 = tpu.matmul %159, %161, %cst_57 {dimension_numbers = #tpu.dot_dimension_numbers<[1], [0], [0], [1], [0, 0, 1, 1], [], []>} : vector<128x32xbf16>, vector<32x64xbf16>, vector<128x64xf32> -> vector<128x64xf32>
    %c0_58 = arith.constant 0 : index
    %c0_59 = arith.constant 0 : index
    %c0_60 = arith.constant 0 : index
    %163 = vector.load %arg6[%c0_58, %c0_59, %c0_60] : memref<2x1x64xf32, #tpu.memory_space<vmem>>, vector<1x1x64xf32>
    %164 = vector.shape_cast %163 : vector<1x1x64xf32> to vector<1x64xf32>
    %165 = vector.broadcast %164 : vector<1x64xf32> to vector<128x64xf32>
    %166 = arith.addf %162, %165 : vector<128x64xf32>
    %cst_61 = arith.constant 0.000000e+00 : f32
    %167 = vector.broadcast %cst_61 : f32 to vector<128x64xf32>
    %168 = arith.maximumf %166, %167 : vector<128x64xf32>
    %169 = arith.truncf %168 : vector<128x64xf32> to vector<128x64xbf16>
    %c0_62 = arith.constant 0 : index
    %c0_63 = arith.constant 0 : index
    %c0_64 = arith.constant 0 : index
    %170 = vector.load %arg7[%c0_62, %c0_63, %c0_64] : memref<2x64x32xbf16, #tpu.memory_space<vmem>>, vector<1x64x32xbf16>
    %171 = vector.shape_cast %170 : vector<1x64x32xbf16> to vector<64x32xbf16>
    %cst_65 = arith.constant dense<0.000000e+00> : vector<128x32xf32>
    %172 = tpu.matmul %169, %171, %cst_65 {dimension_numbers = #tpu.dot_dimension_numbers<[1], [0], [0], [1], [0, 0, 1, 1], [], []>} : vector<128x64xbf16>, vector<64x32xbf16>, vector<128x32xf32> -> vector<128x32xf32>
    %c0_66 = arith.constant 0 : index
    %c0_67 = arith.constant 0 : index
    %c0_68 = arith.constant 0 : index
    %173 = vector.load %arg8[%c0_66, %c0_67, %c0_68] : memref<2x1x32xf32, #tpu.memory_space<vmem>>, vector<1x1x32xf32>
    %174 = vector.shape_cast %173 : vector<1x1x32xf32> to vector<1x32xf32>
    %175 = vector.broadcast %174 : vector<1x32xf32> to vector<128x32xf32>
    %176 = arith.addf %172, %175 : vector<128x32xf32>
    %177 = arith.addf %132, %176 : vector<128x32xf32>
    %c1 = arith.constant 1 : index
    %c0_69 = arith.constant 0 : index
    %c0_70 = arith.constant 0 : index
    %178 = vector.load %arg9[%c1, %c0_69, %c0_70] : memref<2x1x32xf32, #tpu.memory_space<vmem>>, vector<1x1x32xf32>
    %179 = vector.shape_cast %178 : vector<1x1x32xf32> to vector<1x32xf32>
    %c1_71 = arith.constant 1 : index
    %c0_72 = arith.constant 0 : index
    %c0_73 = arith.constant 0 : index
    %180 = vector.load %arg10[%c1_71, %c0_72, %c0_73] : memref<2x1x32xf32, #tpu.memory_space<vmem>>, vector<1x1x32xf32>
    %181 = vector.shape_cast %180 : vector<1x1x32xf32> to vector<1x32xf32>
    %cst_74 = arith.constant dense<0.000000e+00> : vector<128xf32>
    %182 = vector.multi_reduction <add>, %177, %cst_74 [1] : vector<128x32xf32> to vector<128xf32>
    %183 = vector.shape_cast %182 : vector<128xf32> to vector<128x1xf32>
    %cst_75 = arith.constant 3.200000e+01 : f32
    %184 = vector.broadcast %cst_75 : f32 to vector<128x1xf32>
    %185 = arith.divf %183, %184 : vector<128x1xf32>
    %186 = vector.broadcast %185 : vector<128x1xf32> to vector<128x32xf32>
    %187 = arith.subf %177, %186 : vector<128x32xf32>
    %188 = arith.mulf %187, %187 : vector<128x32xf32>
    %cst_76 = arith.constant dense<0.000000e+00> : vector<128xf32>
    %189 = vector.multi_reduction <add>, %188, %cst_76 [1] : vector<128x32xf32> to vector<128xf32>
    %190 = vector.shape_cast %189 : vector<128xf32> to vector<128x1xf32>
    %cst_77 = arith.constant 3.200000e+01 : f32
    %191 = vector.broadcast %cst_77 : f32 to vector<128x1xf32>
    %192 = arith.divf %190, %191 : vector<128x1xf32>
    %193 = vector.broadcast %185 : vector<128x1xf32> to vector<128x32xf32>
    %194 = arith.subf %177, %193 : vector<128x32xf32>
    %cst_78 = arith.constant 9.99999974E-5 : f32
    %195 = vector.broadcast %cst_78 : f32 to vector<128x1xf32>
    %196 = arith.addf %192, %195 : vector<128x1xf32>
    %197 = math.rsqrt %196 : vector<128x1xf32>
    %198 = vector.broadcast %197 : vector<128x1xf32> to vector<128x32xf32>
    %199 = arith.mulf %194, %198 : vector<128x32xf32>
    %200 = vector.broadcast %179 : vector<1x32xf32> to vector<128x32xf32>
    %201 = arith.mulf %199, %200 : vector<128x32xf32>
    %202 = vector.broadcast %181 : vector<1x32xf32> to vector<128x32xf32>
    %203 = arith.addf %201, %202 : vector<128x32xf32>
    %204 = arith.truncf %203 : vector<128x32xf32> to vector<128x32xbf16>
    %c1_79 = arith.constant 1 : index
    %c0_80 = arith.constant 0 : index
    %c0_81 = arith.constant 0 : index
    %205 = vector.load %arg2[%c1_79, %c0_80, %c0_81] : memref<2x32x96xbf16, #tpu.memory_space<vmem>>, vector<1x32x96xbf16>
    %206 = vector.shape_cast %205 : vector<1x32x96xbf16> to vector<32x96xbf16>
    %cst_82 = arith.constant dense<0.000000e+00> : vector<128x96xf32>
    %207 = tpu.matmul %204, %206, %cst_82 {dimension_numbers = #tpu.dot_dimension_numbers<[1], [0], [0], [1], [0, 0, 1, 1], [], []>} : vector<128x32xbf16>, vector<32x96xbf16>, vector<128x96xf32> -> vector<128x96xf32>
    %208 = vector.extract_strided_slice %207 {offsets = [0, 0], sizes = [128, 32], strides = [1, 1]} : vector<128x96xf32> to vector<128x32xf32>
    %209 = vector.shape_cast %208 : vector<128x32xf32> to vector<4x32x32xf32>
    %210 = vector.extract_strided_slice %207 {offsets = [0, 32], sizes = [128, 32], strides = [1, 1]} : vector<128x96xf32> to vector<128x32xf32>
    %211 = vector.shape_cast %210 : vector<128x32xf32> to vector<4x32x32xf32>
    %212 = vector.extract_strided_slice %207 {offsets = [0, 64], sizes = [128, 32], strides = [1, 1]} : vector<128x96xf32> to vector<128x32xf32>
    %213 = vector.shape_cast %212 : vector<128x32xf32> to vector<4x32x32xf32>
    %214 = vector.extract_strided_slice %209 {offsets = [0, 0, 0], sizes = [4, 32, 8], strides = [1, 1, 1]} : vector<4x32x32xf32> to vector<4x32x8xf32>
    %215 = arith.truncf %214 : vector<4x32x8xf32> to vector<4x32x8xbf16>
    %216 = vector.extract_strided_slice %211 {offsets = [0, 0, 0], sizes = [4, 32, 8], strides = [1, 1, 1]} : vector<4x32x32xf32> to vector<4x32x8xf32>
    %217 = arith.truncf %216 : vector<4x32x8xf32> to vector<4x32x8xbf16>
    %218 = vector.extract_strided_slice %213 {offsets = [0, 0, 0], sizes = [4, 32, 8], strides = [1, 1, 1]} : vector<4x32x32xf32> to vector<4x32x8xf32>
    %219 = arith.truncf %218 : vector<4x32x8xf32> to vector<4x32x8xbf16>
    "tpu.trace_start"() <{level = 10 : i32, message = "bqd,bkd->bqk"}> : () -> ()
    %cst_83 = arith.constant dense<0.000000e+00> : vector<4x32x32xf32>
    %220 = tpu.matmul %215, %217, %cst_83 {dimension_numbers = #tpu.dot_dimension_numbers<[2], [2], [1], [1], [0, 0, 0, 1, 1, 1], [0], [0]>} : vector<4x32x8xbf16>, vector<4x32x8xbf16>, vector<4x32x32xf32> -> vector<4x32x32xf32>
    "tpu.trace_stop"() : () -> ()
    %cst_84 = arith.constant 0.353553385 : f32
    %221 = vector.broadcast %cst_84 : f32 to vector<4x32x32xf32>
    %222 = arith.mulf %220, %221 : vector<4x32x32xf32>
    %cst_85 = arith.constant dense<0xFF800000> : vector<4x32xf32>
    %223 = vector.multi_reduction <maximumf>, %222, %cst_85 [2] : vector<4x32x32xf32> to vector<4x32xf32>
    %224 = vector.shape_cast %223 : vector<4x32xf32> to vector<4x32x1xf32>
    %225 = vector.broadcast %224 : vector<4x32x1xf32> to vector<4x32x32xf32>
    %226 = arith.subf %222, %225 : vector<4x32x32xf32>
    %227 = math.exp %226 : vector<4x32x32xf32>
    %cst_86 = arith.constant dense<0.000000e+00> : vector<4x32xf32>
    %228 = vector.multi_reduction <add>, %227, %cst_86 [2] : vector<4x32x32xf32> to vector<4x32xf32>
    %229 = vector.shape_cast %228 : vector<4x32xf32> to vector<4x32x1xf32>
    %230 = tpu.reciprocal %229 {approx = true} : vector<4x32x1xf32> -> vector<4x32x1xf32>
    %231 = vector.broadcast %230 : vector<4x32x1xf32> to vector<4x32x32xf32>
    %232 = arith.mulf %227, %231 : vector<4x32x32xf32>
    %233 = arith.truncf %232 : vector<4x32x32xf32> to vector<4x32x32xbf16>
    "tpu.trace_start"() <{level = 10 : i32, message = "bqk,bkd->bqd"}> : () -> ()
    %cst_87 = arith.constant dense<0.000000e+00> : vector<4x32x8xf32>
    %234 = tpu.matmul %233, %219, %cst_87 {dimension_numbers = #tpu.dot_dimension_numbers<[2], [1], [1], [2], [0, 0, 0, 1, 1, 2], [0], [0]>} : vector<4x32x32xbf16>, vector<4x32x8xbf16>, vector<4x32x8xf32> -> vector<4x32x8xf32>
    "tpu.trace_stop"() : () -> ()
    %235 = vector.extract_strided_slice %209 {offsets = [0, 0, 8], sizes = [4, 32, 8], strides = [1, 1, 1]} : vector<4x32x32xf32> to vector<4x32x8xf32>
    %236 = arith.truncf %235 : vector<4x32x8xf32> to vector<4x32x8xbf16>
    %237 = vector.extract_strided_slice %211 {offsets = [0, 0, 8], sizes = [4, 32, 8], strides = [1, 1, 1]} : vector<4x32x32xf32> to vector<4x32x8xf32>
    %238 = arith.truncf %237 : vector<4x32x8xf32> to vector<4x32x8xbf16>
    %239 = vector.extract_strided_slice %213 {offsets = [0, 0, 8], sizes = [4, 32, 8], strides = [1, 1, 1]} : vector<4x32x32xf32> to vector<4x32x8xf32>
    %240 = arith.truncf %239 : vector<4x32x8xf32> to vector<4x32x8xbf16>
    "tpu.trace_start"() <{level = 10 : i32, message = "bqd,bkd->bqk"}> : () -> ()
    %cst_88 = arith.constant dense<0.000000e+00> : vector<4x32x32xf32>
    %241 = tpu.matmul %236, %238, %cst_88 {dimension_numbers = #tpu.dot_dimension_numbers<[2], [2], [1], [1], [0, 0, 0, 1, 1, 1], [0], [0]>} : vector<4x32x8xbf16>, vector<4x32x8xbf16>, vector<4x32x32xf32> -> vector<4x32x32xf32>
    "tpu.trace_stop"() : () -> ()
    %cst_89 = arith.constant 0.353553385 : f32
    %242 = vector.broadcast %cst_89 : f32 to vector<4x32x32xf32>
    %243 = arith.mulf %241, %242 : vector<4x32x32xf32>
    %cst_90 = arith.constant dense<0xFF800000> : vector<4x32xf32>
    %244 = vector.multi_reduction <maximumf>, %243, %cst_90 [2] : vector<4x32x32xf32> to vector<4x32xf32>
    %245 = vector.shape_cast %244 : vector<4x32xf32> to vector<4x32x1xf32>
    %246 = vector.broadcast %245 : vector<4x32x1xf32> to vector<4x32x32xf32>
    %247 = arith.subf %243, %246 : vector<4x32x32xf32>
    %248 = math.exp %247 : vector<4x32x32xf32>
    %cst_91 = arith.constant dense<0.000000e+00> : vector<4x32xf32>
    %249 = vector.multi_reduction <add>, %248, %cst_91 [2] : vector<4x32x32xf32> to vector<4x32xf32>
    %250 = vector.shape_cast %249 : vector<4x32xf32> to vector<4x32x1xf32>
    %251 = tpu.reciprocal %250 {approx = true} : vector<4x32x1xf32> -> vector<4x32x1xf32>
    %252 = vector.broadcast %251 : vector<4x32x1xf32> to vector<4x32x32xf32>
    %253 = arith.mulf %248, %252 : vector<4x32x32xf32>
    %254 = arith.truncf %253 : vector<4x32x32xf32> to vector<4x32x32xbf16>
    "tpu.trace_start"() <{level = 10 : i32, message = "bqk,bkd->bqd"}> : () -> ()
    %cst_92 = arith.constant dense<0.000000e+00> : vector<4x32x8xf32>
    %255 = tpu.matmul %254, %240, %cst_92 {dimension_numbers = #tpu.dot_dimension_numbers<[2], [1], [1], [2], [0, 0, 0, 1, 1, 2], [0], [0]>} : vector<4x32x32xbf16>, vector<4x32x8xbf16>, vector<4x32x8xf32> -> vector<4x32x8xf32>
    "tpu.trace_stop"() : () -> ()
    %256 = vector.extract_strided_slice %209 {offsets = [0, 0, 16], sizes = [4, 32, 8], strides = [1, 1, 1]} : vector<4x32x32xf32> to vector<4x32x8xf32>
    %257 = arith.truncf %256 : vector<4x32x8xf32> to vector<4x32x8xbf16>
    %258 = vector.extract_strided_slice %211 {offsets = [0, 0, 16], sizes = [4, 32, 8], strides = [1, 1, 1]} : vector<4x32x32xf32> to vector<4x32x8xf32>
    %259 = arith.truncf %258 : vector<4x32x8xf32> to vector<4x32x8xbf16>
    %260 = vector.extract_strided_slice %213 {offsets = [0, 0, 16], sizes = [4, 32, 8], strides = [1, 1, 1]} : vector<4x32x32xf32> to vector<4x32x8xf32>
    %261 = arith.truncf %260 : vector<4x32x8xf32> to vector<4x32x8xbf16>
    "tpu.trace_start"() <{level = 10 : i32, message = "bqd,bkd->bqk"}> : () -> ()
    %cst_93 = arith.constant dense<0.000000e+00> : vector<4x32x32xf32>
    %262 = tpu.matmul %257, %259, %cst_93 {dimension_numbers = #tpu.dot_dimension_numbers<[2], [2], [1], [1], [0, 0, 0, 1, 1, 1], [0], [0]>} : vector<4x32x8xbf16>, vector<4x32x8xbf16>, vector<4x32x32xf32> -> vector<4x32x32xf32>
    "tpu.trace_stop"() : () -> ()
    %cst_94 = arith.constant 0.353553385 : f32
    %263 = vector.broadcast %cst_94 : f32 to vector<4x32x32xf32>
    %264 = arith.mulf %262, %263 : vector<4x32x32xf32>
    %cst_95 = arith.constant dense<0xFF800000> : vector<4x32xf32>
    %265 = vector.multi_reduction <maximumf>, %264, %cst_95 [2] : vector<4x32x32xf32> to vector<4x32xf32>
    %266 = vector.shape_cast %265 : vector<4x32xf32> to vector<4x32x1xf32>
    %267 = vector.broadcast %266 : vector<4x32x1xf32> to vector<4x32x32xf32>
    %268 = arith.subf %264, %267 : vector<4x32x32xf32>
    %269 = math.exp %268 : vector<4x32x32xf32>
    %cst_96 = arith.constant dense<0.000000e+00> : vector<4x32xf32>
    %270 = vector.multi_reduction <add>, %269, %cst_96 [2] : vector<4x32x32xf32> to vector<4x32xf32>
    %271 = vector.shape_cast %270 : vector<4x32xf32> to vector<4x32x1xf32>
    %272 = tpu.reciprocal %271 {approx = true} : vector<4x32x1xf32> -> vector<4x32x1xf32>
    %273 = vector.broadcast %272 : vector<4x32x1xf32> to vector<4x32x32xf32>
    %274 = arith.mulf %269, %273 : vector<4x32x32xf32>
    %275 = arith.truncf %274 : vector<4x32x32xf32> to vector<4x32x32xbf16>
    "tpu.trace_start"() <{level = 10 : i32, message = "bqk,bkd->bqd"}> : () -> ()
    %cst_97 = arith.constant dense<0.000000e+00> : vector<4x32x8xf32>
    %276 = tpu.matmul %275, %261, %cst_97 {dimension_numbers = #tpu.dot_dimension_numbers<[2], [1], [1], [2], [0, 0, 0, 1, 1, 2], [0], [0]>} : vector<4x32x32xbf16>, vector<4x32x8xbf16>, vector<4x32x8xf32> -> vector<4x32x8xf32>
    "tpu.trace_stop"() : () -> ()
    %277 = vector.extract_strided_slice %209 {offsets = [0, 0, 24], sizes = [4, 32, 8], strides = [1, 1, 1]} : vector<4x32x32xf32> to vector<4x32x8xf32>
    %278 = arith.truncf %277 : vector<4x32x8xf32> to vector<4x32x8xbf16>
    %279 = vector.extract_strided_slice %211 {offsets = [0, 0, 24], sizes = [4, 32, 8], strides = [1, 1, 1]} : vector<4x32x32xf32> to vector<4x32x8xf32>
    %280 = arith.truncf %279 : vector<4x32x8xf32> to vector<4x32x8xbf16>
    %281 = vector.extract_strided_slice %213 {offsets = [0, 0, 24], sizes = [4, 32, 8], strides = [1, 1, 1]} : vector<4x32x32xf32> to vector<4x32x8xf32>
    %282 = arith.truncf %281 : vector<4x32x8xf32> to vector<4x32x8xbf16>
    "tpu.trace_start"() <{level = 10 : i32, message = "bqd,bkd->bqk"}> : () -> ()
    %cst_98 = arith.constant dense<0.000000e+00> : vector<4x32x32xf32>
    %283 = tpu.matmul %278, %280, %cst_98 {dimension_numbers = #tpu.dot_dimension_numbers<[2], [2], [1], [1], [0, 0, 0, 1, 1, 1], [0], [0]>} : vector<4x32x8xbf16>, vector<4x32x8xbf16>, vector<4x32x32xf32> -> vector<4x32x32xf32>
    "tpu.trace_stop"() : () -> ()
    %cst_99 = arith.constant 0.353553385 : f32
    %284 = vector.broadcast %cst_99 : f32 to vector<4x32x32xf32>
    %285 = arith.mulf %283, %284 : vector<4x32x32xf32>
    %cst_100 = arith.constant dense<0xFF800000> : vector<4x32xf32>
    %286 = vector.multi_reduction <maximumf>, %285, %cst_100 [2] : vector<4x32x32xf32> to vector<4x32xf32>
    %287 = vector.shape_cast %286 : vector<4x32xf32> to vector<4x32x1xf32>
    %288 = vector.broadcast %287 : vector<4x32x1xf32> to vector<4x32x32xf32>
    %289 = arith.subf %285, %288 : vector<4x32x32xf32>
    %290 = math.exp %289 : vector<4x32x32xf32>
    %cst_101 = arith.constant dense<0.000000e+00> : vector<4x32xf32>
    %291 = vector.multi_reduction <add>, %290, %cst_101 [2] : vector<4x32x32xf32> to vector<4x32xf32>
    %292 = vector.shape_cast %291 : vector<4x32xf32> to vector<4x32x1xf32>
    %293 = tpu.reciprocal %292 {approx = true} : vector<4x32x1xf32> -> vector<4x32x1xf32>
    %294 = vector.broadcast %293 : vector<4x32x1xf32> to vector<4x32x32xf32>
    %295 = arith.mulf %290, %294 : vector<4x32x32xf32>
    %296 = arith.truncf %295 : vector<4x32x32xf32> to vector<4x32x32xbf16>
    "tpu.trace_start"() <{level = 10 : i32, message = "bqk,bkd->bqd"}> : () -> ()
    %cst_102 = arith.constant dense<0.000000e+00> : vector<4x32x8xf32>
    %297 = tpu.matmul %296, %282, %cst_102 {dimension_numbers = #tpu.dot_dimension_numbers<[2], [1], [1], [2], [0, 0, 0, 1, 1, 2], [0], [0]>} : vector<4x32x32xbf16>, vector<4x32x8xbf16>, vector<4x32x8xf32> -> vector<4x32x8xf32>
    "tpu.trace_stop"() : () -> ()
    %298 = tpu.concatenate %234, %255, %276, %297 in 2 : vector<4x32x8xf32>, vector<4x32x8xf32>, vector<4x32x8xf32>, vector<4x32x8xf32> -> vector<4x32x32xf32>
    %299 = vector.shape_cast %298 : vector<4x32x32xf32> to vector<128x32xf32>
    %300 = arith.truncf %299 : vector<128x32xf32> to vector<128x32xbf16>
    %c1_103 = arith.constant 1 : index
    %c0_104 = arith.constant 0 : index
    %c0_105 = arith.constant 0 : index
    %301 = vector.load %arg3[%c1_103, %c0_104, %c0_105] : memref<2x32x32xbf16, #tpu.memory_space<vmem>>, vector<1x32x32xbf16>
    %302 = vector.shape_cast %301 : vector<1x32x32xbf16> to vector<32x32xbf16>
    %cst_106 = arith.constant dense<0.000000e+00> : vector<128x32xf32>
    %303 = tpu.matmul %300, %302, %cst_106 {dimension_numbers = #tpu.dot_dimension_numbers<[1], [0], [0], [1], [0, 0, 1, 1], [], []>} : vector<128x32xbf16>, vector<32x32xbf16>, vector<128x32xf32> -> vector<128x32xf32>
    %c1_107 = arith.constant 1 : index
    %c0_108 = arith.constant 0 : index
    %c0_109 = arith.constant 0 : index
    %304 = vector.load %arg4[%c1_107, %c0_108, %c0_109] : memref<2x1x32xf32, #tpu.memory_space<vmem>>, vector<1x1x32xf32>
    %305 = vector.shape_cast %304 : vector<1x1x32xf32> to vector<1x32xf32>
    %306 = vector.broadcast %305 : vector<1x32xf32> to vector<128x32xf32>
    %307 = arith.addf %303, %306 : vector<128x32xf32>
    %308 = arith.addf %177, %307 : vector<128x32xf32>
    %c1_110 = arith.constant 1 : index
    %c0_111 = arith.constant 0 : index
    %c0_112 = arith.constant 0 : index
    %309 = vector.load %arg11[%c1_110, %c0_111, %c0_112] : memref<2x1x32xf32, #tpu.memory_space<vmem>>, vector<1x1x32xf32>
    %310 = vector.shape_cast %309 : vector<1x1x32xf32> to vector<1x32xf32>
    %c1_113 = arith.constant 1 : index
    %c0_114 = arith.constant 0 : index
    %c0_115 = arith.constant 0 : index
    %311 = vector.load %arg12[%c1_113, %c0_114, %c0_115] : memref<2x1x32xf32, #tpu.memory_space<vmem>>, vector<1x1x32xf32>
    %312 = vector.shape_cast %311 : vector<1x1x32xf32> to vector<1x32xf32>
    %cst_116 = arith.constant dense<0.000000e+00> : vector<128xf32>
    %313 = vector.multi_reduction <add>, %308, %cst_116 [1] : vector<128x32xf32> to vector<128xf32>
    %314 = vector.shape_cast %313 : vector<128xf32> to vector<128x1xf32>
    %cst_117 = arith.constant 3.200000e+01 : f32
    %315 = vector.broadcast %cst_117 : f32 to vector<128x1xf32>
    %316 = arith.divf %314, %315 : vector<128x1xf32>
    %317 = vector.broadcast %316 : vector<128x1xf32> to vector<128x32xf32>
    %318 = arith.subf %308, %317 : vector<128x32xf32>
    %319 = arith.mulf %318, %318 : vector<128x32xf32>
    %cst_118 = arith.constant dense<0.000000e+00> : vector<128xf32>
    %320 = vector.multi_reduction <add>, %319, %cst_118 [1] : vector<128x32xf32> to vector<128xf32>
    %321 = vector.shape_cast %320 : vector<128xf32> to vector<128x1xf32>
    %cst_119 = arith.constant 3.200000e+01 : f32
    %322 = vector.broadcast %cst_119 : f32 to vector<128x1xf32>
    %323 = arith.divf %321, %322 : vector<128x1xf32>
    %324 = vector.broadcast %316 : vector<128x1xf32> to vector<128x32xf32>
    %325 = arith.subf %308, %324 : vector<128x32xf32>
    %cst_120 = arith.constant 9.99999974E-5 : f32
    %326 = vector.broadcast %cst_120 : f32 to vector<128x1xf32>
    %327 = arith.addf %323, %326 : vector<128x1xf32>
    %328 = math.rsqrt %327 : vector<128x1xf32>
    %329 = vector.broadcast %328 : vector<128x1xf32> to vector<128x32xf32>
    %330 = arith.mulf %325, %329 : vector<128x32xf32>
    %331 = vector.broadcast %310 : vector<1x32xf32> to vector<128x32xf32>
    %332 = arith.mulf %330, %331 : vector<128x32xf32>
    %333 = vector.broadcast %312 : vector<1x32xf32> to vector<128x32xf32>
    %334 = arith.addf %332, %333 : vector<128x32xf32>
    %335 = arith.truncf %334 : vector<128x32xf32> to vector<128x32xbf16>
    %c1_121 = arith.constant 1 : index
    %c0_122 = arith.constant 0 : index
    %c0_123 = arith.constant 0 : index
    %336 = vector.load %arg5[%c1_121, %c0_122, %c0_123] : memref<2x32x64xbf16, #tpu.memory_space<vmem>>, vector<1x32x64xbf16>
    %337 = vector.shape_cast %336 : vector<1x32x64xbf16> to vector<32x64xbf16>
    %cst_124 = arith.constant dense<0.000000e+00> : vector<128x64xf32>
    %338 = tpu.matmul %335, %337, %cst_124 {dimension_numbers = #tpu.dot_dimension_numbers<[1], [0], [0], [1], [0, 0, 1, 1], [], []>} : vector<128x32xbf16>, vector<32x64xbf16>, vector<128x64xf32> -> vector<128x64xf32>
    %c1_125 = arith.constant 1 : index
    %c0_126 = arith.constant 0 : index
    %c0_127 = arith.constant 0 : index
    %339 = vector.load %arg6[%c1_125, %c0_126, %c0_127] : memref<2x1x64xf32, #tpu.memory_space<vmem>>, vector<1x1x64xf32>
    %340 = vector.shape_cast %339 : vector<1x1x64xf32> to vector<1x64xf32>
    %341 = vector.broadcast %340 : vector<1x64xf32> to vector<128x64xf32>
    %342 = arith.addf %338, %341 : vector<128x64xf32>
    %cst_128 = arith.constant 0.000000e+00 : f32
    %343 = vector.broadcast %cst_128 : f32 to vector<128x64xf32>
    %344 = arith.maximumf %342, %343 : vector<128x64xf32>
    %345 = arith.truncf %344 : vector<128x64xf32> to vector<128x64xbf16>
    %c1_129 = arith.constant 1 : index
    %c0_130 = arith.constant 0 : index
    %c0_131 = arith.constant 0 : index
    %346 = vector.load %arg7[%c1_129, %c0_130, %c0_131] : memref<2x64x32xbf16, #tpu.memory_space<vmem>>, vector<1x64x32xbf16>
    %347 = vector.shape_cast %346 : vector<1x64x32xbf16> to vector<64x32xbf16>
    %cst_132 = arith.constant dense<0.000000e+00> : vector<128x32xf32>
    %348 = tpu.matmul %345, %347, %cst_132 {dimension_numbers = #tpu.dot_dimension_numbers<[1], [0], [0], [1], [0, 0, 1, 1], [], []>} : vector<128x64xbf16>, vector<64x32xbf16>, vector<128x32xf32> -> vector<128x32xf32>
    %c1_133 = arith.constant 1 : index
    %c0_134 = arith.constant 0 : index
    %c0_135 = arith.constant 0 : index
    %349 = vector.load %arg8[%c1_133, %c0_134, %c0_135] : memref<2x1x32xf32, #tpu.memory_space<vmem>>, vector<1x1x32xf32>
    %350 = vector.shape_cast %349 : vector<1x1x32xf32> to vector<1x32xf32>
    %351 = vector.broadcast %350 : vector<1x32xf32> to vector<128x32xf32>
    %352 = arith.addf %348, %351 : vector<128x32xf32>
    %353 = arith.addf %308, %352 : vector<128x32xf32>
    %c0_136 = arith.constant 0 : index
    %c0_137 = arith.constant 0 : index
    %354 = vector.load %arg13[%c0_136, %c0_137] : memref<1x32xf32, #tpu.memory_space<vmem>>, vector<1x32xf32>
    %c0_138 = arith.constant 0 : index
    %c0_139 = arith.constant 0 : index
    %355 = vector.load %arg14[%c0_138, %c0_139] : memref<1x32xf32, #tpu.memory_space<vmem>>, vector<1x32xf32>
    %cst_140 = arith.constant dense<0.000000e+00> : vector<128xf32>
    %356 = vector.multi_reduction <add>, %353, %cst_140 [1] : vector<128x32xf32> to vector<128xf32>
    %357 = vector.shape_cast %356 : vector<128xf32> to vector<128x1xf32>
    %cst_141 = arith.constant 3.200000e+01 : f32
    %358 = vector.broadcast %cst_141 : f32 to vector<128x1xf32>
    %359 = arith.divf %357, %358 : vector<128x1xf32>
    %360 = vector.broadcast %359 : vector<128x1xf32> to vector<128x32xf32>
    %361 = arith.subf %353, %360 : vector<128x32xf32>
    %362 = arith.mulf %361, %361 : vector<128x32xf32>
    %cst_142 = arith.constant dense<0.000000e+00> : vector<128xf32>
    %363 = vector.multi_reduction <add>, %362, %cst_142 [1] : vector<128x32xf32> to vector<128xf32>
    %364 = vector.shape_cast %363 : vector<128xf32> to vector<128x1xf32>
    %cst_143 = arith.constant 3.200000e+01 : f32
    %365 = vector.broadcast %cst_143 : f32 to vector<128x1xf32>
    %366 = arith.divf %364, %365 : vector<128x1xf32>
    %367 = vector.broadcast %359 : vector<128x1xf32> to vector<128x32xf32>
    %368 = arith.subf %353, %367 : vector<128x32xf32>
    %cst_144 = arith.constant 9.99999974E-5 : f32
    %369 = vector.broadcast %cst_144 : f32 to vector<128x1xf32>
    %370 = arith.addf %366, %369 : vector<128x1xf32>
    %371 = math.rsqrt %370 : vector<128x1xf32>
    %372 = vector.broadcast %371 : vector<128x1xf32> to vector<128x32xf32>
    %373 = arith.mulf %368, %372 : vector<128x32xf32>
    %374 = vector.broadcast %354 : vector<1x32xf32> to vector<128x32xf32>
    %375 = arith.mulf %373, %374 : vector<128x32xf32>
    %376 = vector.broadcast %355 : vector<1x32xf32> to vector<128x32xf32>
    %377 = arith.addf %375, %376 : vector<128x32xf32>
    %378 = arith.truncf %377 : vector<128x32xf32> to vector<128x32xbf16>
    %c0_145 = arith.constant 0 : index
    %c0_146 = arith.constant 0 : index
    %379 = vector.load %arg15[%c0_145, %c0_146] : memref<32x128xbf16, #tpu.memory_space<vmem>>, vector<32x128xbf16>
    %cst_147 = arith.constant dense<0.000000e+00> : vector<128x128xf32>
    %380 = tpu.matmul %378, %379, %cst_147 {dimension_numbers = #tpu.dot_dimension_numbers<[1], [0], [0], [1], [0, 0, 1, 1], [], []>} : vector<128x32xbf16>, vector<32x128xbf16>, vector<128x128xf32> -> vector<128x128xf32>
    %c0_148 = arith.constant 0 : index
    %c0_149 = arith.constant 0 : index
    %381 = vector.load %arg16[%c0_148, %c0_149] : memref<1x128xf32, #tpu.memory_space<vmem>>, vector<1x128xf32>
    %382 = vector.broadcast %381 : vector<1x128xf32> to vector<128x128xf32>
    %383 = arith.addf %380, %382 : vector<128x128xf32>
    %384 = vector.shape_cast %383 : vector<128x128xf32> to vector<4x32x128xf32>
    %c0_150 = arith.constant 0 : index
    %c0_151 = arith.constant 0 : index
    %c0_152 = arith.constant 0 : index
    %385 = vector.load %arg17[%c0_150, %c0_151, %c0_152] : memref<4x32x128xf32, #tpu.memory_space<vmem>>, vector<4x32x128xf32>
    tpu.vector_store %arg17[%c0_150, %c0_151, %c0_152], %384 {strides = array<i32>} : memref<4x32x128xf32, #tpu.memory_space<vmem>>, vector<4x32x128xf32>,
    return
  }
  func.func @transform_0(%arg0: i32) -> (i32, i32, i32) {
    %c0_i32 = arith.constant 0 : i32
    %c0_i32_0 = arith.constant 0 : i32
    %c0_i32_1 = arith.constant 0 : i32
    return %arg0, %c0_i32, %c0_i32_0 : i32, i32, i32
  }
  func.func @transform_1(%arg0: i32) -> (i32, i32, i32) {
    %c0_i32 = arith.constant 0 : i32
    %c0_i32_0 = arith.constant 0 : i32
    %c0_i32_1 = arith.constant 0 : i32
    %c0_i32_2 = arith.constant 0 : i32
    return %c0_i32, %c0_i32_0, %c0_i32_1 : i32, i32, i32
  }
  func.func @transform_2(%arg0: i32) -> (i32, i32, i32) {
    %c0_i32 = arith.constant 0 : i32
    %c0_i32_0 = arith.constant 0 : i32
    %c0_i32_1 = arith.constant 0 : i32
    %c0_i32_2 = arith.constant 0 : i32
    return %c0_i32, %c0_i32_0, %c0_i32_1 : i32, i32, i32
  }
  func.func @transform_3(%arg0: i32) -> (i32, i32, i32) {
    %c0_i32 = arith.constant 0 : i32
    %c0_i32_0 = arith.constant 0 : i32
    %c0_i32_1 = arith.constant 0 : i32
    %c0_i32_2 = arith.constant 0 : i32
    return %c0_i32, %c0_i32_0, %c0_i32_1 : i32, i32, i32
  }
  func.func @transform_4(%arg0: i32) -> (i32, i32, i32) {
    %c0_i32 = arith.constant 0 : i32
    %c0_i32_0 = arith.constant 0 : i32
    %c0_i32_1 = arith.constant 0 : i32
    %c0_i32_2 = arith.constant 0 : i32
    return %c0_i32, %c0_i32_0, %c0_i32_1 : i32, i32, i32
  }
  func.func @transform_5(%arg0: i32) -> (i32, i32, i32) {
    %c0_i32 = arith.constant 0 : i32
    %c0_i32_0 = arith.constant 0 : i32
    %c0_i32_1 = arith.constant 0 : i32
    %c0_i32_2 = arith.constant 0 : i32
    return %c0_i32, %c0_i32_0, %c0_i32_1 : i32, i32, i32
  }
  func.func @transform_6(%arg0: i32) -> (i32, i32, i32) {
    %c0_i32 = arith.constant 0 : i32
    %c0_i32_0 = arith.constant 0 : i32
    %c0_i32_1 = arith.constant 0 : i32
    %c0_i32_2 = arith.constant 0 : i32
    return %c0_i32, %c0_i32_0, %c0_i32_1 : i32, i32, i32
  }
  func.func @transform_7(%arg0: i32) -> (i32, i32, i32) {
    %c0_i32 = arith.constant 0 : i32
    %c0_i32_0 = arith.constant 0 : i32
    %c0_i32_1 = arith.constant 0 : i32
    %c0_i32_2 = arith.constant 0 : i32
    return %c0_i32, %c0_i32_0, %c0_i32_1 : i32, i32, i32
  }
  func.func @transform_8(%arg0: i32) -> (i32, i32, i32) {
    %c0_i32 = arith.constant 0 : i32
    %c0_i32_0 = arith.constant 0 : i32
    %c0_i32_1 = arith.constant 0 : i32
    %c0_i32_2 = arith.constant 0 : i32
    return %c0_i32, %c0_i32_0, %c0_i32_1 : i32, i32, i32
  }
  func.func @transform_9(%arg0: i32) -> (i32, i32, i32) {
    %c0_i32 = arith.constant 0 : i32
    %c0_i32_0 = arith.constant 0 : i32
    %c0_i32_1 = arith.constant 0 : i32
    %c0_i32_2 = arith.constant 0 : i32
    return %c0_i32, %c0_i32_0, %c0_i32_1 : i32, i32, i32
  }
  func.func @transform_10(%arg0: i32) -> (i32, i32, i32) {
    %c0_i32 = arith.constant 0 : i32
    %c0_i32_0 = arith.constant 0 : i32
    %c0_i32_1 = arith.constant 0 : i32
    %c0_i32_2 = arith.constant 0 : i32
    return %c0_i32, %c0_i32_0, %c0_i32_1 : i32, i32, i32
  }
  func.func @transform_11(%arg0: i32) -> (i32, i32, i32) {
    %c0_i32 = arith.constant 0 : i32
    %c0_i32_0 = arith.constant 0 : i32
    %c0_i32_1 = arith.constant 0 : i32
    %c0_i32_2 = arith.constant 0 : i32
    return %c0_i32, %c0_i32_0, %c0_i32_1 : i32, i32, i32
  }
  func.func @transform_12(%arg0: i32) -> (i32, i32) {
    %c0_i32 = arith.constant 0 : i32
    %c0_i32_0 = arith.constant 0 : i32
    %c0_i32_1 = arith.constant 0 : i32
    return %c0_i32, %c0_i32_0 : i32, i32
  }
  func.func @transform_13(%arg0: i32) -> (i32, i32) {
    %c0_i32 = arith.constant 0 : i32
    %c0_i32_0 = arith.constant 0 : i32
    %c0_i32_1 = arith.constant 0 : i32
    return %c0_i32, %c0_i32_0 : i32, i32
  }
  func.func @transform_14(%arg0: i32) -> (i32, i32) {
    %c0_i32 = arith.constant 0 : i32
    %c0_i32_0 = arith.constant 0 : i32
    %c0_i32_1 = arith.constant 0 : i32
    return %c0_i32, %c0_i32_0 : i32, i32
  }
  func.func @transform_15(%arg0: i32) -> (i32, i32) {
    %c0_i32 = arith.constant 0 : i32
    %c0_i32_0 = arith.constant 0 : i32
    %c0_i32_1 = arith.constant 0 : i32
    return %c0_i32, %c0_i32_0 : i32, i32
  }
  func.func @transform_16(%arg0: i32) -> (i32, i32, i32) {
    %c0_i32 = arith.constant 0 : i32
    %c0_i32_0 = arith.constant 0 : i32
    %c0_i32_1 = arith.constant 0 : i32
    return %arg0, %c0_i32, %c0_i32_0 : i32, i32, i32
  }
}

</mosaic_0001>

<bundles_post_ra>
// kernel: tpu_custom_call.1
= control target key start
LH: loop header
LB: loop body
LE: loop exit
PB: predicated region body
PF: predicated region fallthrough
CT: control target
= control target key end

     0   :  { %s15657_s0 = inlined_call_operand.hbm [shape: f32[4,32,32], index: 0, kind: input, shape index: {}]   ;;  %s15658_s1 = inlined_call_operand.vmem [shape: bf16[2,32,96], index: 1, kind: input, shape index: {}]   ;;  %s15659_s2 = inlined_call_operand.vmem [shape: bf16[2,32,32], index: 2, kind: input, shape index: {}]   ;;  %s15660_s3 = inlined_call_operand.vmem [shape: f32[2,1,32], index: 3, kind: input, shape index: {}]   ;;  %s15661_s4 = inlined_call_operand.vmem [shape: bf16[2,32,64], index: 4, kind: input, shape index: {}]   ;;  %s15662_s5 = inlined_call_operand.hbm [shape: f32[2,1,64], index: 5, kind: input, shape index: {}]   ;;  %s15663_s6 = inlined_call_operand.vmem [shape: bf16[2,64,32], index: 6, kind: input, shape index: {}]   ;;  %s15664_s7 = inlined_call_operand.vmem [shape: f32[2,1,32], index: 7, kind: input, shape index: {}]   ;;  %s15665_s8 = inlined_call_operand.vmem [shape: f32[2,1,32], index: 8, kind: input, shape index: {}]   ;;  %s15666_s9 = inlined_call_operand.vmem [shape: f32[2,1,32], index: 9, kind: input, shape index: {}]   ;;  %s15667_s10 = inlined_call_operand.vmem [shape: f32[2,1,32], index: 10, kind: input, shape index: {}]   ;;  %s15668_s11 = inlined_call_operand.vmem [shape: f32[2,1,32], index: 11, kind: input, shape index: {}]   ;;  %s15669_s12 = inlined_call_operand.vmem [shape: f32[1,32], index: 12, kind: input, shape index: {}]   ;;  %s15670_s13 = inlined_call_operand.vmem [shape: f32[1,32], index: 13, kind: input, shape index: {}]   ;;  %s15671_s14 = inlined_call_operand.vmem [shape: bf16[32,128], index: 14, kind: input, shape index: {}]   ;;  %s15672_s15 = inlined_call_operand.vmem [shape: f32[1,128], index: 15, kind: input, shape index: {}]   ;;  %s15673_s16 = inlined_call_operand.hbm [shape: f32[4,32,128], index: 16, kind: output, shape index: {}]  }
   0x1   :  { %15698 = sst [smem:[#allocation43_spill]] %s15657_s0 }
   0x2   :  { %15699 = sst [smem:[#allocation44_spill]] %s15673_s16 }
   0x3   :  { %21 = vsyncpa [#allocation3], 0 }
   0x4   :  { %22 = vsyncpa [#allocation6], 0 }
   0x5   :  { %23 = vsyncpa [#allocation4], 0  ;;  %s11562_s21 = smov [#allocation2]   ;;  %s15700_s25 = sld [smem:[#allocation43_spill]] }
   0x6   :  { %s29_s22 = sshll.u32 %s11562_s21, 4  ;;  %s30_s22 = int_to_ptr.vmem [resolvable:$true] %s29_s22 }
   0xb   :  { %s11490_s26 = scalar_lea.hbm %s15700_s25, 2048 }
   0xc   :  { %p11491_p0 = scmp.ne.s32.totalorder %s15700_s25, %s11490_s26  ;;  %p11494_p1 = scmp.lt.u32.totalorder %s11490_s26, %s15700_s25 }
   0xe   :  { %p11496_p2 = pnand %p11494_p1, %p11491_p0 }
  0x10   :  { %11499 = shalt.err (!%p11496_p2)
}
  0x11   :  { %s11500_s0 = scalar_lea.vmem %s30_s22, 2048  ;;  %p11505_p4 = scmp.lt.s32.totalorder %s30_s22, %s30_s22 }
  0x12   :  { %p11501_p3 = scmp.ne.s32.totalorder %s30_s22, %s11500_s0  ;;  %p11506_p5 = scmp.lt.s32.totalorder %s11500_s0, %s11500_s0 }
  0x14   :  { %p11507_p6 = por %p11506_p5, %p11505_p4 }
  0x16   :  { %p11508_p7 = pnand %p11507_p6, %p11501_p3 }
  0x18   :  { %11511 = shalt.err (!%p11508_p7)
}
  0x19   :  { %s15679_s17 = smov 128   ;;  %s11564_s18 = smov 8  }
  0x1a   :  { %35 = dma.hbm_to_vmem [thread:$0]  %s15700_s25, 2048, %s30_s22, [#allocation3], %s15679_s17, %s15679_s17, %s11564_s18  }
  0x1b   :  { %s11565_s21 = smov [#allocation5]   ;;  %s11512_s27 = scalar_lea.hbm %s15662_s5, 32 }
  0x1c   :  { %s49_s23 = sshll.u32 %s11565_s21, 4  ;;  %p11513_p8 = scmp.ne.s32.totalorder %s15662_s5, %s11512_s27  ;;  %s50_s23 = int_to_ptr.vmem [resolvable:$true] %s49_s23 }
  0x1d   :  { %p11516_p9 = scmp.lt.u32.totalorder %s11512_s27, %s15662_s5 }
  0x1f   :  { %p11518_p10 = pnand %p11516_p9, %p11513_p8 }
  0x21   :  { %11521 = shalt.err (!%p11518_p10)
}
  0x22   :  { %s11522_s16 = scalar_lea.vmem %s50_s23, 32  ;;  %p11527_p12 = scmp.lt.s32.totalorder %s50_s23, %s50_s23 }
  0x23   :  { %p11523_p11 = scmp.ne.s32.totalorder %s50_s23, %s11522_s16  ;;  %p11528_p13 = scmp.lt.s32.totalorder %s11522_s16, %s11522_s16 }
  0x25   :  { %p11529_p0 = por %p11528_p13, %p11527_p12 }
  0x27   :  { %p11530_p1 = pnand %p11529_p0, %p11523_p11 }
  0x29   :  { %11533 = shalt.err (!%p11530_p1)
}
  0x2a   :  { %s11566_s22 = smov 16   ;;  %s11567_s25 = smov 1  }
  0x2b   :  { %55 = dma.hbm_to_vmem [thread:$0]  %s15662_s5, 32, %s50_s23, [#allocation6], %s11566_s22, %s11566_s22, %s11567_s25  }
  0x2c   :  { %11556 = dma.done.wait [#allocation3], 2048  }
  0x2d   :  { %11557 = vsyncadd [#allocation3], 4294965248 }
  0x2e   :  { %11558 = dma.done.wait [#allocation6], 32  }
  0x2f   :  { %11559 = vsyncadd [#allocation6], 4294967264  ;;  %vm101_vm0 = vcmask 261120   ;;  %v83_v0 = vld [vmem:[#allocation2] sm:$0xff]  ;;  %v85_v1 = vld [vmem:[#allocation2 + $0x10] sm:$0xff]  ;;  %vm514_vm1 = vcmask 64512  }
  0x30   :  { %v84_v2 = vld [vmem:[#allocation2 + $0x8] sm:$0xff]  ;;  %v102_v3 = vsel %vm101_vm0, %v83_v0, 0.0  ;;  %v108_v4 = vsel %vm101_vm0, %v85_v1, 0.0  ;;  %v86_v5 = vld [vmem:[#allocation2 + $0x18] sm:$0xff]  ;;  %v11697_v6 = vld [vmem:[#allocation2 + $0x20] sm:$0xff]  ;;  %s11568_s29 = smov 96  }
  0x31   :  { %v11699_v7 = vld [vmem:[#allocation2 + $0x28] sm:$0xff]  ;;  %103 = vadd.xlane.f32.xlu0 %v102_v3  ;;  %109 = vadd.xlane.f32.xlu1 %v108_v4  ;;  %v11701_v8 = vld [vmem:[#allocation2 + $0x30] sm:$0xff]  ;;  %v11703_v9 = vld [vmem:[#allocation2 + $0x38] sm:$0xff]  ;;  %v105_v11 = vsel %vm101_vm0, %v84_v2, 0.0  ;;  %v111_v12 = vsel %vm101_vm0, %v86_v5, 0.0  ;;  %v114_v16 = vsel %vm101_vm0, %v11697_v6, 0.0 }
  0x32   :  { %v11705_v10 = vld [vmem:[#allocation2 + $0x40] sm:$0xff]  ;;  %v11709_v13 = vld [vmem:[#allocation2 + $0x48] sm:$0xff]  ;;  %v11711_v14 = vld [vmem:[#allocation2 + $0x50] sm:$0xff]  ;;  %v117_v17 = vsel %vm101_vm0, %v11699_v7, 0.0  ;;  %v120_v18 = vsel %vm101_vm0, %v11701_v8, 0.0  ;;  %v123_v19 = vsel %vm101_vm0, %v11703_v9, 0.0 }
  0x33   :  { %v11713_v15 = vld [vmem:[#allocation2 + $0x58] sm:$0xff]  ;;  %v126_v20 = vsel %vm101_vm0, %v11705_v10, 0.0  ;;  %v129_v21 = vsel %vm101_vm0, %v11709_v13, 0.0  ;;  %v132_v22 = vsel %vm101_vm0, %v11711_v14, 0.0  ;;  %v11731_v24 = vld [vmem:[#allocation2 + $0x60] sm:$0xff]  ;;  %v11733_v25 = vld [vmem:[#allocation2 + $0x68] sm:$0xff] }
  0x34   :  { %v135_v23 = vsel %vm101_vm0, %v11713_v15, 0.0  ;;  %v138_v26 = vsel %vm101_vm0, %v11731_v24, 0.0  ;;  %v141_v27 = vsel %vm101_vm0, %v11733_v25, 0.0  ;;  %v11739_v28 = vld [vmem:[#allocation2 + $0x70] sm:$0xff]  ;;  %v11741_v29 = vld [vmem:[#allocation2 + $0x78] sm:$0xff]  ;;  %s11569_s30 = smov 64  }
  0x35   :  { %106 = vadd.xlane.f32.xlu0 %v105_v11  ;;  %112 = vadd.xlane.f32.xlu1 %v111_v12  ;;  %v144_v30 = vsel %vm101_vm0, %v11739_v28, 0.0  ;;  %v147_v31 = vsel %vm101_vm0, %v11741_v29, 0.0  ;;  %s11570_s0 = smov 88   ;;  %s11571_s25 = smov 120   ;;  %vm3589_vm2 = vcmask 130048   ;;  %vm3606_vm3 = vcmask 195584  }
  0x36   :  { %s11572_s19 = smov 56   ;;  %s11573_s20 = smov 80   ;;  %vm4260_vm4 = vcmask 523264  }
  0x37   :  { %s11574_s5 = smov 112   ;;  %s11575_s16 = smov 48  }
  0x38   :  { %s11576_s21 = smov 72   ;;  %s11577_s23 = smov 104  }
  0x39   :  { %115 = vadd.xlane.f32.xlu0 %v114_v16  ;;  %118 = vadd.xlane.f32.xlu1 %v117_v17  ;;  %s15680_s24 = smov 40  }
  0x3d   :  { %121 = vadd.xlane.f32.xlu0 %v120_v18  ;;  %124 = vadd.xlane.f32.xlu1 %v123_v19 }
  0x41   :  { %127 = vadd.xlane.f32.xlu0 %v126_v20  ;;  %130 = vadd.xlane.f32.xlu1 %v129_v21 }
  0x45   :  { %133 = vadd.xlane.f32.xlu0 %v132_v22  ;;  %136 = vadd.xlane.f32.xlu1 %v135_v23 }
  0x49   :  { %139 = vadd.xlane.f32.xlu0 %v138_v26  ;;  %142 = vadd.xlane.f32.xlu1 %v141_v27 }
  0x4d   :  { %145 = vadd.xlane.f32.xlu0 %v144_v30  ;;  %148 = vadd.xlane.f32.xlu1 %v147_v31 }
  0xbe   :  { %v104_v32 = vpop.xlane.xlu0 %103  ;;  %v110_v33 = vpop.xlane.xlu1 %109 }
  0xbf   :  { %v151_v34 = vmul.f32 0.03125, %v104_v32  ;;  %v153_v35 = vmul.f32 0.03125, %v110_v33 }
  0xc1   :  { %v11747_v36 = vsub.f32 %v83_v0, %v151_v34  ;;  %v11749_v37 = vsub.f32 %v85_v1, %v153_v35 }
  0xc2   :  { %v107_v38 = vpop.xlane.xlu0 %106  ;;  %v113_v39 = vpop.xlane.xlu1 %112 }
  0xc3   :  { %v152_v40 = vmul.f32 0.03125, %v107_v38  ;;  %v154_v41 = vmul.f32 0.03125, %v113_v39  ;;  %v183_v42 = vmul.f32 %v11747_v36, %v11747_v36  ;;  %v185_v43 = vmul.f32 %v11749_v37, %v11749_v37 }
  0xc5   :  { %v11755_v44 = vsub.f32 %v84_v2, %v152_v40  ;;  %v11757_v45 = vsub.f32 %v86_v5, %v154_v41  ;;  %v199_v46 = vsel %vm101_vm0, %v183_v42, 0.0  ;;  %v205_v49 = vsel %vm101_vm0, %v185_v43, 0.0 }
  0xc6   :  { %200 = vadd.xlane.f32.xlu0 %v199_v46  ;;  %v116_v47 = vpop.xlane.xlu0 %115  ;;  %v119_v48 = vpop.xlane.xlu1 %118 }
  0xc7   :  { %v155_v50 = vmul.f32 0.03125, %v116_v47  ;;  %v156_v51 = vmul.f32 0.03125, %v119_v48  ;;  %v184_v52 = vmul.f32 %v11755_v44, %v11755_v44  ;;  %v186_v53 = vmul.f32 %v11757_v45, %v11757_v45 }
  0xc9   :  { %v11766_v54 = vsub.f32 %v11697_v6, %v155_v50  ;;  %v11769_v55 = vsub.f32 %v11699_v7, %v156_v51  ;;  %v202_v56 = vsel %vm101_vm0, %v184_v52, 0.0  ;;  %v208_v59 = vsel %vm101_vm0, %v186_v53, 0.0  ;;  %v10781_v53 = vld [vmem:[%s15658_s1 + $0x8] sm:$0xff]  }
  0xca   :  { %206 = vadd.xlane.f32.xlu0 %v205_v49  ;;  %203 = vadd.xlane.f32.xlu1 %v202_v56  ;;  %v122_v57 = vpop.xlane.xlu0 %121  ;;  %v125_v58 = vpop.xlane.xlu1 %124 }
  0xcb   :  { %v157_v60 = vmul.f32 0.03125, %v122_v57  ;;  %v158_v61 = vmul.f32 0.03125, %v125_v58  ;;  %v187_v62 = vmul.f32 %v11766_v54, %v11766_v54  ;;  %v188_v63 = vmul.f32 %v11769_v55, %v11769_v55 }
  0xcd   :  { %v11778_v0 = vsub.f32 %v11701_v8, %v157_v60  ;;  %v11781_v1 = vsub.f32 %v11703_v9, %v158_v61  ;;  %v211_v2 = vsel %vm101_vm0, %v187_v62, 0.0  ;;  %v214_v5 = vsel %vm101_vm0, %v188_v63, 0.0 }
  0xce   :  { %209 = vadd.xlane.f32.xlu1 %v208_v59  ;;  %212 = vadd.xlane.f32.xlu0 %v211_v2  ;;  %v128_v3 = vpop.xlane.xlu0 %127  ;;  %v131_v4 = vpop.xlane.xlu1 %130 }
  0xcf   :  { %v159_v6 = vmul.f32 0.03125, %v128_v3  ;;  %v160_v7 = vmul.f32 0.03125, %v131_v4  ;;  %v189_v11 = vmul.f32 %v11778_v0, %v11778_v0  ;;  %v190_v8 = vmul.f32 %v11781_v1, %v11781_v1 }
  0xd1   :  { %v11790_v12 = vsub.f32 %v11705_v10, %v159_v6  ;;  %v11793_v9 = vsub.f32 %v11709_v13, %v160_v7  ;;  %v217_v16 = vsel %vm101_vm0, %v189_v11, 0.0  ;;  %v220_v19 = vsel %vm101_vm0, %v190_v8, 0.0 }
  0xd2   :  { %215 = vadd.xlane.f32.xlu1 %v214_v5  ;;  %218 = vadd.xlane.f32.xlu0 %v217_v16  ;;  %v134_v17 = vpop.xlane.xlu0 %133  ;;  %v137_v18 = vpop.xlane.xlu1 %136 }
  0xd3   :  { %v161_v20 = vmul.f32 0.03125, %v134_v17  ;;  %v162_v21 = vmul.f32 0.03125, %v137_v18  ;;  %v191_v22 = vmul.f32 %v11790_v12, %v11790_v12  ;;  %v192_v10 = vmul.f32 %v11793_v9, %v11793_v9 }
  0xd5   :  { %v11802_v23 = vsub.f32 %v11711_v14, %v161_v20  ;;  %v11805_v13 = vsub.f32 %v11713_v15, %v162_v21  ;;  %v223_v26 = vsel %vm101_vm0, %v191_v22, 0.0  ;;  %v226_v31 = vsel %vm101_vm0, %v192_v10, 0.0 }
  0xd6   :  { %221 = vadd.xlane.f32.xlu1 %v220_v19  ;;  %224 = vadd.xlane.f32.xlu0 %v223_v26  ;;  %v140_v27 = vpop.xlane.xlu0 %139  ;;  %v143_v30 = vpop.xlane.xlu1 %142 }
  0xd7   :  { %v163_v32 = vmul.f32 0.03125, %v140_v27  ;;  %v164_v33 = vmul.f32 0.03125, %v143_v30  ;;  %v193_v34 = vmul.f32 %v11802_v23, %v11802_v23  ;;  %v194_v14 = vmul.f32 %v11805_v13, %v11805_v13 }
  0xd9   :  { %v11814_v35 = vsub.f32 %v11731_v24, %v163_v32  ;;  %v11817_v15 = vsub.f32 %v11733_v25, %v164_v33  ;;  %v229_v38 = vsel %vm101_vm0, %v193_v34, 0.0  ;;  %v232_v41 = vsel %vm101_vm0, %v194_v14, 0.0 }
  0xda   :  { %227 = vadd.xlane.f32.xlu1 %v226_v31  ;;  %230 = vadd.xlane.f32.xlu0 %v229_v38  ;;  %v146_v39 = vpop.xlane.xlu0 %145  ;;  %v149_v40 = vpop.xlane.xlu1 %148  ;;  %v11849_v31 = vld [vmem:[%s15665_s8] ss:$0 sm:$0xff] }
  0xdb   :  { %v165_v42 = vmul.f32 0.03125, %v146_v39  ;;  %v166_v43 = vmul.f32 0.03125, %v149_v40  ;;  %v195_v46 = vmul.f32 %v11814_v35, %v11814_v35  ;;  %v196_v24 = vmul.f32 %v11817_v15, %v11817_v15 }
  0xdd   :  { %v11826_v47 = vsub.f32 %v11739_v28, %v165_v42  ;;  %v11829_v25 = vsub.f32 %v11741_v29, %v166_v43  ;;  %v235_v48 = vsel %vm101_vm0, %v195_v46, 0.0  ;;  %v238_v49 = vsel %vm101_vm0, %v196_v24, 0.0  ;;  %v10780_v29 = vld [vmem:[%s15658_s1] sm:$0xff]  }
  0xde   :  { %233 = vadd.xlane.f32.xlu1 %v232_v41  ;;  %236 = vadd.xlane.f32.xlu0 %v235_v48  ;;  %v11856_v43 = vld [vmem:[%s15666_s9] ss:$0 sm:$0xff] }
  0xdf   :  { %v197_v50 = vmul.f32 %v11826_v47, %v11826_v47  ;;  %v198_v51 = vmul.f32 %v11829_v25, %v11829_v25  ;;  %9757 = vmatprep.subr.bf16.mxu0 %v10780_v29 }
  0xe0   :  { %9758 = vmatpush3.bf16.msra.mxu0 %v10780_v29 }
  0xe1   :  { %v241_v52 = vsel %vm101_vm0, %v197_v50, 0.0  ;;  %v244_v28 = vsel %vm101_vm0, %v198_v51, 0.0  ;;  %9759 = vmatprep.subr.bf16.mxu0 %v10781_v53 }
  0xe2   :  { %239 = vadd.xlane.f32.xlu1 %v238_v49  ;;  %242 = vadd.xlane.f32.xlu0 %v241_v52 }
  0xe4   :  { %9760 = vmatpush3.bf16.msra.mxu0 %v10781_v53 }
  0xe6   :  { %245 = vadd.xlane.f32.xlu1 %v244_v28 }
 0x153   :  { %v201_v56 = vpop.xlane.xlu0 %200 }
 0x154   :  { %v247_v57 = vmul.f32 0.03125, %v201_v56 }
 0x156   :  { %v263_v58 = vadd.f32 0.0001, %v247_v57 }
 0x157   :  { %v204_v59 = vpop.xlane.xlu1 %203  ;;  %v207_v60 = vpop.xlane.xlu0 %206 }
 0x158   :  { %10802 = vrsqrt.f32 %v263_v58  ;;  %v248_v61 = vmul.f32 0.03125, %v204_v59  ;;  %v249_v62 = vmul.f32 0.03125, %v207_v60 }
 0x15a   :  { %v264_v63 = vadd.f32 0.0001, %v248_v61  ;;  %v265_v2 = vadd.f32 0.0001, %v249_v62 }
 0x15b   :  { %v210_v3 = vpop.xlane.xlu1 %209  ;;  %v213_v4 = vpop.xlane.xlu0 %212 }
 0x15c   :  { %10804 = vrsqrt.f32 %v264_v63  ;;  %v250_v5 = vmul.f32 0.03125, %v210_v3  ;;  %v251_v6 = vmul.f32 0.03125, %v213_v4 }
 0x15d   :  { %10806 = vrsqrt.f32 %v265_v2 }
 0x15e   :  { %v266_v7 = vadd.f32 0.0001, %v250_v5  ;;  %v267_v11 = vadd.f32 0.0001, %v251_v6 }
 0x15f   :  { %v216_v8 = vpop.xlane.xlu1 %215  ;;  %v219_v16 = vpop.xlane.xlu0 %218 }
 0x160   :  { %10808 = vrsqrt.f32 %v266_v7  ;;  %v252_v17 = vmul.f32 0.03125, %v216_v8  ;;  %v253_v18 = vmul.f32 0.03125, %v219_v16 }
 0x161   :  { %10810 = vrsqrt.f32 %v267_v11 }
 0x162   :  { %v10803_v19 = vpop.eup %10802  ;;  %v268_v20 = vadd.f32 0.0001, %v252_v17  ;;  %v269_v21 = vadd.f32 0.0001, %v253_v18 }
 0x163   :  { %v222_v22 = vpop.xlane.xlu1 %221  ;;  %v225_v10 = vpop.xlane.xlu0 %224  ;;  %v295_v26 = vmul.f32 %v10803_v19, %v11747_v36 }
 0x164   :  { %10812 = vrsqrt.f32 %v268_v20  ;;  %v254_v27 = vmul.f32 0.03125, %v222_v22  ;;  %v255_v30 = vmul.f32 0.03125, %v225_v10 }
 0x165   :  { %10814 = vrsqrt.f32 %v269_v21  ;;  %v317_v41 = vmul.f32 %v11849_v31, %v295_v26 }
 0x166   :  { %v10805_v32 = vpop.eup %10804  ;;  %v270_v33 = vadd.f32 0.0001, %v254_v27  ;;  %v271_v34 = vadd.f32 0.0001, %v255_v30 }
 0x167   :  { %v10807_v14 = vpop.eup %10806  ;;  %v228_v38 = vpop.xlane.xlu1 %227  ;;  %v296_v40 = vmul.f32 %v10805_v32, %v11755_v44  ;;  %v339_v28 = vadd.f32 %v11856_v43, %v317_v41 }
 0x168   :  { %v231_v39 = vpop.xlane.xlu0 %230  ;;  %10816 = vrsqrt.f32 %v270_v33  ;;  %v256_v36 = vmul.f32 0.03125, %v228_v38  ;;  %v297_v46 = vmul.f32 %v10807_v14, %v11749_v37 }
 0x169   :  { %v257_v42 = vmul.f32 0.03125, %v231_v39  ;;  %10818 = vrsqrt.f32 %v271_v34  ;;  %v318_v24 = vmul.f32 %v11849_v31, %v296_v40 }
 0x16a   :  { %v10809_v48 = vpop.eup %10808  ;;  %v272_v49 = vadd.f32 0.0001, %v256_v36  ;;  %v319_v56 = vmul.f32 %v11849_v31, %v297_v46 }
 0x16b   :  { %v273_v50 = vadd.f32 0.0001, %v257_v42  ;;  %v10811_v51 = vpop.eup %10810  ;;  %v234_v44 = vpop.xlane.xlu1 %233  ;;  %v340_v29 = vadd.f32 %v11856_v43, %v318_v24  ;;  %v298_v53 = vmul.f32 %v10809_v48, %v11757_v45 }
 0x16c   :  { %v237_v52 = vpop.xlane.xlu0 %236  ;;  %10820 = vrsqrt.f32 %v272_v49  ;;  %v258_v57 = vmul.f32 0.03125, %v234_v44  ;;  %v299_v60 = vmul.f32 %v10811_v51, %v11766_v54  ;;  %v341_v45 = vadd.f32 %v11856_v43, %v319_v56 }
 0x16d   :  { %v259_v37 = vmul.f32 0.03125, %v237_v52  ;;  %10822 = vrsqrt.f32 %v273_v50  ;;  %v355_v58 = vpack.c.bf16 %v340_v29, %v339_v28  ;;  %v320_v59 = vmul.f32 %v11849_v31, %v298_v53 }
 0x16e   :  { %v10813_v61 = vpop.eup %10812  ;;  %v274_v62 = vadd.f32 0.0001, %v258_v57  ;;  %v321_v7 = vmul.f32 %v11849_v31, %v299_v60 }
 0x16f   :  { %v275_v63 = vadd.f32 0.0001, %v259_v37  ;;  %v10815_v2 = vpop.eup %10814  ;;  %v240_v3 = vpop.xlane.xlu1 %239  ;;  %9761 = vmatprep.mubr.msk.bf16.mxu0 %vm101_vm0, %v355_v58  ;;  %v342_v5 = vadd.f32 %v11856_v43, %v320_v59  ;;  %v300_v6 = vmul.f32 %v10813_v61, %v11769_v55 }
 0x170   :  { %v243_v4 = vpop.xlane.xlu0 %242  ;;  %10824 = vrsqrt.f32 %v274_v62  ;;  %v260_v11 = vmul.f32 0.03125, %v240_v3  ;;  %v301_v54 = vmul.f32 %v10815_v2, %v11778_v0  ;;  %v343_v55 = vadd.f32 %v11856_v43, %v321_v7 }
 0x171   :  { %v261_v8 = vmul.f32 0.03125, %v243_v4  ;;  %10826 = vrsqrt.f32 %v275_v63  ;;  %v356_v16 = vpack.c.bf16 %v342_v5, %v341_v45  ;;  %v322_v17 = vmul.f32 %v11849_v31, %v300_v6 }
 0x172   :  { %v10817_v18 = vpop.eup %10816  ;;  %v276_v19 = vadd.f32 0.0001, %v260_v11  ;;  %v323_v27 = vmul.f32 %v11849_v31, %v301_v54 }
 0x173   :  { %v277_v20 = vadd.f32 0.0001, %v261_v8  ;;  %v10819_v21 = vpop.eup %10818  ;;  %v246_v22 = vpop.xlane.xlu1 %245  ;;  %9762 = vmatmul.mubr.msk.bf16.vlgmr.msra.gmra.mrb[0].mxu0 %vm101_vm0, %v356_v16  ;;  %v344_v10 = vadd.f32 %v11856_v43, %v322_v17  ;;  %v302_v26 = vmul.f32 %v10817_v18, %v11781_v1 }
 0x174   :  { %10828 = vrsqrt.f32 %v276_v19  ;;  %v262_v0 = vmul.f32 0.03125, %v246_v22  ;;  %v303_v30 = vmul.f32 %v10819_v21, %v11790_v12  ;;  %v345_v39 = vadd.f32 %v11856_v43, %v323_v27 }
 0x175   :  { %10830 = vrsqrt.f32 %v277_v20  ;;  %v357_v32 = vpack.c.bf16 %v344_v10, %v343_v55  ;;  %v324_v33 = vmul.f32 %v11849_v31, %v302_v26 }
 0x176   :  { %v10821_v34 = vpop.eup %10820  ;;  %v278_v14 = vadd.f32 0.0001, %v262_v0  ;;  %v325_v41 = vmul.f32 %v11849_v31, %v303_v30 }
 0x177   :  { %v10823_v38 = vpop.eup %10822  ;;  %9765 = vmatprep.mubr.msk.bf16.mxu0 %vm101_vm0, %v357_v32  ;;  %v346_v40 = vadd.f32 %v11856_v43, %v324_v33  ;;  %v304_v1 = vmul.f32 %v10821_v34, %v11793_v9 }
 0x178   :  { %10832 = vrsqrt.f32 %v278_v14  ;;  %v305_v12 = vmul.f32 %v10823_v38, %v11802_v23  ;;  %v347_v48 = vadd.f32 %v11856_v43, %v325_v41 }
 0x179   :  { %v358_v36 = vpack.c.bf16 %v346_v40, %v345_v39  ;;  %v326_v42 = vmul.f32 %v11849_v31, %v304_v1 }
 0x17a   :  { %v10825_v46 = vpop.eup %10824  ;;  %v327_v9 = vmul.f32 %v11849_v31, %v305_v12 }
 0x17b   :  { %v10827_v24 = vpop.eup %10826  ;;  %9766 = vmatmul.mubr.msk.bf16.gmra.mrb[4].mxu0 %vm101_vm0, %v358_v36  ;;  %v348_v49 = vadd.f32 %v11856_v43, %v326_v42  ;;  %v306_v50 = vmul.f32 %v10825_v46, %v11805_v13 }
 0x17c   :  { %v307_v51 = vmul.f32 %v10827_v24, %v11814_v35  ;;  %v349_v29 = vadd.f32 %v11856_v43, %v327_v9 }
 0x17d   :  { %v359_v44 = vpack.c.bf16 %v348_v49, %v347_v48  ;;  %v328_v23 = vmul.f32 %v11849_v31, %v306_v50 }
 0x17e   :  { %v10829_v52 = vpop.eup %10828  ;;  %v329_v57 = vmul.f32 %v11849_v31, %v307_v51 }
 0x17f   :  { %v10831_v28 = vpop.eup %10830  ;;  %9769 = vmatprep.mubr.msk.bf16.mxu0 %vm101_vm0, %v359_v44  ;;  %v350_v53 = vadd.f32 %v11856_v43, %v328_v23  ;;  %v308_v56 = vmul.f32 %v10829_v52, %v11817_v15 }
 0x180   :  { %v309_v13 = vmul.f32 %v10831_v28, %v11826_v47  ;;  %v351_v59 = vadd.f32 %v11856_v43, %v329_v57 }
 0x181   :  { %v360_v37 = vpack.c.bf16 %v350_v53, %v349_v29  ;;  %v330_v35 = vmul.f32 %v11849_v31, %v308_v56 }
 0x182   :  { %v10833_v58 = vpop.eup %10832  ;;  %v331_v62 = vmul.f32 %v11849_v31, %v309_v13 }
 0x183   :  { %9770 = vmatmul.mubr.msk.bf16.gmra.mrb[8].mxu0 %vm101_vm0, %v360_v37  ;;  %v352_v60 = vadd.f32 %v11856_v43, %v330_v35  ;;  %v310_v61 = vmul.f32 %v10833_v58, %v11829_v25 }
 0x184   :  { %v353_v47 = vadd.f32 %v11856_v43, %v331_v62 }
 0x185   :  { %v361_v63 = vpack.c.bf16 %v352_v60, %v351_v59  ;;  %v332_v15 = vmul.f32 %v11849_v31, %v310_v61 }
 0x187   :  { %9773 = vmatprep.mubr.msk.bf16.mxu0 %vm101_vm0, %v361_v63  ;;  %v354_v2 = vadd.f32 %v11856_v43, %v332_v15 }
 0x189   :  { %v362_v3 = vpack.c.bf16 %v354_v2, %v353_v47 }
 0x18b   :  { %9774 = vmatmul.mubr.msk.bf16.gmra.mrb[12].mxu0 %vm101_vm0, %v362_v3 }
 0x246   :  { %v9763_v4 = vpop.f32.mrb[0].mxu0 }
 0x247   :  { %v437_v45 = vpop.f32.mrb[1].mxu0 }
 0x248   :  { %v9764_v5 = vpop.f32.mrb[2].mxu0 }
 0x249   :  { %v11911_v6 = vpack.c.bf16 %v9764_v5, %v9763_v4  ;;  %v440_v25 = vpop.f32.mrb[3].mxu0 }
 0x24a   :  { %v11913_v7 = vpack.c.bf16 %v440_v25, %v437_v45 }
 0x24b   :  { %512 = vrot.lane.b32.xlu1 %v11911_v6, %s11568_s29 }
 0x24c   :  { %510 = vrot.lane.b32.xlu0 %v11913_v7, %s11568_s29  ;;  %9781 = vmatprep.mubr.msk.bf16.mxu1 %vm514_vm1, %v11913_v7 }
 0x24e   :  { %v9767_v31 = vpop.f32.mrb[4].mxu0 }
 0x24f   :  { %v453_v43 = vpop.f32.mrb[5].mxu0 }
 0x250   :  { %v9768_v11 = vpop.f32.mrb[6].mxu0 }
 0x251   :  { %v11921_v8 = vpack.c.bf16 %v9768_v11, %v9767_v31  ;;  %v456_v54 = vpop.f32.mrb[7].mxu0 }
 0x252   :  { %v11923_v16 = vpack.c.bf16 %v456_v54, %v453_v43 }
 0x254   :  { %578 = vrot.lane.b32.xlu1 %v11923_v16, %s11568_s29 }
 0x256   :  { %v9771_v17 = vpop.f32.mrb[8].mxu0 }
 0x257   :  { %v469_v18 = vpop.f32.mrb[9].mxu0 }
 0x258   :  { %580 = vrot.lane.b32.xlu1 %v11921_v8, %s11568_s29  ;;  %v9772_v19 = vpop.f32.mrb[10].mxu0 }
 0x259   :  { %v11929_v20 = vpack.c.bf16 %v9772_v19, %v9771_v17  ;;  %v472_v21 = vpop.f32.mrb[11].mxu0 }
 0x25a   :  { %v11931_v22 = vpack.c.bf16 %v472_v21, %v469_v18 }
 0x25c   :  { %647 = vrot.lane.b32.xlu1 %v11929_v20, %s11568_s29  ;;  %645 = vrot.lane.b32.xlu0 %v11931_v22, %s11568_s29 }
 0x25d   :  { %9797 = vmatprep.mubr.msk.bf16.mxu0 %vm514_vm1, %v11931_v22 }
 0x25e   :  { %v9775_v55 = vpop.f32.mrb[12].mxu0 }
 0x25f   :  { %v485_v10 = vpop.f32.mrb[13].mxu0 }
 0x260   :  { %v9776_v26 = vpop.f32.mrb[14].mxu0 }
 0x261   :  { %v11939_v27 = vpack.c.bf16 %v9776_v26, %v9775_v55  ;;  %v488_v0 = vpop.f32.mrb[15].mxu0 }
 0x262   :  { %v11941_v30 = vpack.c.bf16 %v488_v0, %v485_v10 }
 0x263   :  { %714 = vrot.lane.b32.xlu1 %v11939_v27, %s11568_s29 }
 0x264   :  { %712 = vrot.lane.b32.xlu0 %v11941_v30, %s11568_s29 }
 0x267   :  { %979 = vrot.lane.b32.xlu1 %v11911_v6, %s11569_s30 }
 0x268   :  { %977 = vrot.lane.b32.xlu0 %v11913_v7, %s11569_s30 }
 0x26b   :  { %1099 = vrot.lane.b32.xlu1 %v11931_v22, %s11569_s30 }
 0x26c   :  { %1038 = vrot.lane.b32.xlu0 %v11923_v16, %s11569_s30 }
 0x26f   :  { %1101 = vrot.lane.b32.xlu1 %v11929_v20, %s11569_s30 }
 0x270   :  { %1040 = vrot.lane.b32.xlu0 %v11921_v8, %s11569_s30 }
 0x2bd   :  { %v513_v34 = vpop.permute.xlu1 %512 }
 0x2be   :  { %v511_v32 = vpop.permute.xlu0 %510  ;;  %v525_v38 = vsel %vm514_vm1, %v513_v34, 0 }
 0x2bf   :  { %10457 = vmatprep.subr.msk.bf16.mxu1 %vm514_vm1, %v511_v32  ;;  %v522_v33 = vsel %vm514_vm1, %v511_v32, 0 }
 0x2c0   :  { %9778 = vmatpush3.bf16.xpose.msra.mxu1 %v522_v33 }
 0x2c1   :  { %10458 = vmatprep.subr.msk.bf16.mxu1 %vm514_vm1, %v513_v34 }
 0x2c6   :  { %v579_v14 = vpop.permute.xlu1 %578 }
 0x2c7   :  { %v589_v1 = vsel %vm514_vm1, %v579_v14, 0 }
 0x2c8   :  { %9780 = vmatpush3.bf16.xpose.msra.mxu1 %v525_v38 }
 0x2c9   :  { %10459 = vmatprep.subr.msk.bf16.mxu1 %vm514_vm1, %v579_v14 }
 0x2ca   :  { %v581_v39 = vpop.permute.xlu1 %580 }
 0x2cb   :  { %v592_v42 = vsel %vm514_vm1, %v581_v39, 0 }
 0x2ce   :  { %v646_v40 = vpop.permute.xlu0 %645  ;;  %v648_v12 = vpop.permute.xlu1 %647 }
 0x2cf   :  { %9782 = vmatmul.mubr.msk.bf16.vlgmr.msra.gmra.mrb[0].mxu1 %vm514_vm1, %v11911_v6  ;;  %10461 = vmatprep.subr.msk.bf16.mxu0 %vm514_vm1, %v646_v40  ;;  %v656_v41 = vsel %vm514_vm1, %v646_v40, 0  ;;  %v659_v46 = vsel %vm514_vm1, %v648_v12, 0 }
 0x2d0   :  { %9786 = vmatpush3.bf16.xpose.msra.mxu1 %v589_v1  ;;  %9789 = vmatprep.mubr.msk.bf16.mxu1 %vm514_vm1, %v11923_v16 }
 0x2d1   :  { %9794 = vmatpush3.bf16.xpose.msra.mxu0 %v656_v41  ;;  %10460 = vmatprep.subr.msk.bf16.mxu1 %vm514_vm1, %v581_v39 }
 0x2d2   :  { %10462 = vmatprep.subr.msk.bf16.mxu0 %vm514_vm1, %v648_v12 }
 0x2d5   :  { %v715_v48 = vpop.permute.xlu1 %714 }
 0x2d6   :  { %v713_v36 = vpop.permute.xlu0 %712  ;;  %v726_v51 = vsel %vm514_vm1, %v715_v48, 0 }
 0x2d7   :  { %v723_v49 = vsel %vm514_vm1, %v713_v36, 0 }
 0x2d8   :  { %9788 = vmatpush3.bf16.xpose.msra.mxu1 %v592_v42 }
 0x2d9   :  { %9796 = vmatpush3.bf16.xpose.msra.mxu0 %v659_v46  ;;  %10463 = vmatprep.subr.msk.bf16.mxu1 %vm514_vm1, %v713_v36  ;;  %v980_v50 = vpop.permute.xlu1 %979 }
 0x2da   :  { %v978_v24 = vpop.permute.xlu0 %977 }
 0x2db   :  { %9809 = vmatprep.subr.bf16.mxu0 %v978_v24 }
 0x2dd   :  { %v1100_v44 = vpop.permute.xlu1 %1099 }
 0x2de   :  { %v11984_v9 = vpop.permute.xlu0 %1038 }
 0x2df   :  { %9790 = vmatmul.mubr.msk.bf16.vlgmr.msra.gmra.mrb[4].mxu1 %vm514_vm1, %v11921_v8 }
 0x2e0   :  { %9798 = vmatmul.mubr.msk.bf16.vlgmr.msra.gmra.mrb[16].mxu0 %vm514_vm1, %v11929_v20  ;;  %9802 = vmatpush3.bf16.xpose.msra.mxu1 %v723_v49 }
 0x2e1   :  { %9805 = vmatprep.mubr.msk.bf16.mxu1 %vm514_vm1, %v11941_v30  ;;  %9810 = vmatpush3.bf16.msra.mxu0 %v978_v24  ;;  %v1102_v23 = vpop.permute.xlu1 %1101 }
 0x2e2   :  { %10464 = vmatprep.subr.msk.bf16.mxu1 %vm514_vm1, %v715_v48  ;;  %9811 = vmatprep.subr.bf16.mxu0 %v980_v50  ;;  %v12058_v24 = vpop.permute.xlu0 %1040 }
 0x2e5   :  { %9812 = vmatpush3.bf16.msra.mxu0 %v980_v50 }
 0x2e6   :  { %9817 = vmatprep.subr.bf16.mxu0 %v11984_v9 }
 0x2e8   :  { %9804 = vmatpush3.bf16.xpose.msra.mxu1 %v726_v51 }
 0x2e9   :  { %9825 = vmatprep.subr.bf16.mxu1 %v1100_v44 }
 0x2ef   :  { %9806 = vmatmul.mubr.msk.bf16.vlgmr.msra.gmra.mrb[8].mxu1 %vm514_vm1, %v11939_v27 }
 0x2f0   :  { %9826 = vmatpush3.bf16.msra.mxu1 %v1100_v44 }
 0x2f1   :  { %9827 = vmatprep.subr.bf16.mxu1 %v1102_v23 }
 0x2f4   :  { %9828 = vmatpush3.bf16.msra.mxu1 %v1102_v23 }
 0x3a2   :  { %v9783_v52 = vpop.f32.mrb[0].mxu1 }
 0x3a3   :  { %v11990_v28 = vmul.f32 0.35355338, %v9783_v52  ;;  %v561_v29 = vpop.f32.mrb[1].mxu1 }
 0x3a4   :  { %v9784_v53 = vpop.f32.mrb[2].mxu1  ;;  %v11992_v56 = vmul.f32 0.35355338, %v561_v29 }
 0x3a5   :  { %v564_v57 = vpop.f32.mrb[3].mxu1  ;;  %v799_v13 = vsel %vm101_vm0, %v11990_v28, -inf  ;;  %v12000_v58 = vmul.f32 0.35355338, %v9784_v53 }
 0x3a6   :  { %v11996_v37 = vmul.f32 0.35355338, %v564_v57  ;;  %800 = vmax.xlane.f32.xlu0 %v799_v13  ;;  %v793_v59 = vsel %vm101_vm0, %v11992_v56, -inf }
 0x3a7   :  { %v802_v60 = vsel %vm101_vm0, %v12000_v58, -inf }
 0x3a8   :  { %v796_v35 = vsel %vm101_vm0, %v11996_v37, -inf }
 0x3a9   :  { %797 = vmax.xlane.f32.xlu1 %v796_v35 }
 0x3aa   :  { %794 = vmax.xlane.f32.xlu0 %v793_v59 }
 0x3ae   :  { %803 = vmax.xlane.f32.xlu0 %v802_v60 }
 0x3b2   :  { %v9791_v61 = vpop.f32.mrb[4].mxu1 }
 0x3b3   :  { %v12006_v62 = vmul.f32 0.35355338, %v9791_v61  ;;  %v9799_v63 = vpop.f32.mrb[16].mxu0  ;;  %v628_v15 = vpop.f32.mrb[5].mxu1 }
 0x3b4   :  { %v695_v47 = vpop.f32.mrb[17].mxu0  ;;  %v9792_v2 = vpop.f32.mrb[6].mxu1  ;;  %v12010_v5 = vmul.f32 0.35355338, %v9799_v63  ;;  %v12018_v54 = vmul.f32 0.35355338, %v628_v15 }
 0x3b5   :  { %v12008_v3 = vmul.f32 0.35355338, %v9792_v2  ;;  %v9800_v4 = vpop.f32.mrb[18].mxu0  ;;  %v631_v45 = vpop.f32.mrb[7].mxu1  ;;  %v811_v31 = vsel %vm101_vm0, %v12006_v62, -inf }
 0x3b6   :  { %v698_v25 = vpop.f32.mrb[19].mxu0  ;;  %v12014_v43 = vmul.f32 0.35355338, %v9800_v4  ;;  %812 = vmax.xlane.f32.xlu0 %v811_v31  ;;  %v823_v17 = vsel %vm101_vm0, %v12010_v5, -inf  ;;  %v12022_v18 = vmul.f32 0.35355338, %v631_v45 }
 0x3b7   :  { %v814_v11 = vsel %vm101_vm0, %v12008_v3, -inf  ;;  %v12026_v21 = vmul.f32 0.35355338, %v695_v47  ;;  %v805_v55 = vsel %vm101_vm0, %v12018_v54, -inf  ;;  %v12030_v10 = vmul.f32 0.35355338, %v698_v25 }
 0x3b8   :  { %815 = vmax.xlane.f32.xlu1 %v814_v11  ;;  %v826_v19 = vsel %vm101_vm0, %v12014_v43, -inf  ;;  %v808_v26 = vsel %vm101_vm0, %v12022_v18, -inf }
 0x3b9   :  { %v817_v0 = vsel %vm101_vm0, %v12026_v21, -inf  ;;  %v820_v14 = vsel %vm101_vm0, %v12030_v10, -inf }
 0x3ba   :  { %824 = vmax.xlane.f32.xlu0 %v823_v17 }
 0x3bc   :  { %827 = vmax.xlane.f32.xlu1 %v826_v19 }
 0x3be   :  { %806 = vmax.xlane.f32.xlu0 %v805_v55 }
 0x3c0   :  { %809 = vmax.xlane.f32.xlu1 %v808_v26 }
 0x3c2   :  { %v9807_v32 = vpop.f32.mrb[8].mxu1  ;;  %818 = vmax.xlane.f32.xlu0 %v817_v0 }
 0x3c3   :  { %v12036_v33 = vmul.f32 0.35355338, %v9807_v32  ;;  %v762_v34 = vpop.f32.mrb[9].mxu1 }
 0x3c4   :  { %821 = vmax.xlane.f32.xlu1 %v820_v14  ;;  %v9808_v38 = vpop.f32.mrb[10].mxu1  ;;  %v12042_v1 = vmul.f32 0.35355338, %v762_v34 }
 0x3c5   :  { %v765_v39 = vpop.f32.mrb[11].mxu1  ;;  %v835_v40 = vsel %vm101_vm0, %v12036_v33, -inf  ;;  %v12050_v12 = vmul.f32 0.35355338, %v9808_v38 }
 0x3c6   :  { %836 = vmax.xlane.f32.xlu0 %v835_v40  ;;  %v829_v41 = vsel %vm101_vm0, %v12042_v1, -inf  ;;  %v12052_v36 = vmul.f32 0.35355338, %v765_v39 }
 0x3c7   :  { %v838_v42 = vsel %vm101_vm0, %v12050_v12, -inf }
 0x3c8   :  { %v832_v46 = vsel %vm101_vm0, %v12052_v36, -inf }
 0x3ca   :  { %830 = vmax.xlane.f32.xlu0 %v829_v41 }
 0x3d5   :  { %1162 = vrot.lane.b32.xlu1 %v11939_v27, %s11569_s30 }
 0x3e0   :  { %1160 = vrot.lane.b32.xlu0 %v11941_v30, %s11569_s30 }
 0x3f9   :  { %839 = vmax.xlane.f32.xlu1 %v838_v42 }
 0x3fd   :  { %833 = vmax.xlane.f32.xlu1 %v832_v46 }
 0x433   :  { %v801_v48 = vpop.xlane.xlu0 %800 }
 0x434   :  { %v843_v49 = vsub.f32 %v11990_v28, %v801_v48 }
 0x436   :  { %v861_v50 = vmul.f32 1.442695, %v843_v49  ;;  %v798_v51 = vpop.xlane.xlu1 %797 }
 0x437   :  { %v795_v44 = vpop.xlane.xlu0 %794  ;;  %v842_v52 = vsub.f32 %v11996_v37, %v798_v51 }
 0x438   :  { %10834 = vpow2.f32 %v861_v50  ;;  %v841_v23 = vsub.f32 %v11992_v56, %v795_v44 }
 0x439   :  { %v859_v13 = vmul.f32 1.442695, %v842_v52 }
 0x43a   :  { %v857_v29 = vmul.f32 1.442695, %v841_v23 }
 0x43b   :  { %v804_v53 = vpop.xlane.xlu0 %803 }
 0x43c   :  { %10836 = vpow2.f32 %v857_v29  ;;  %v844_v57 = vsub.f32 %v12000_v58, %v804_v53 }
 0x43e   :  { %v863_v35 = vmul.f32 1.442695, %v844_v57 }
 0x440   :  { %10838 = vpow2.f32 %v863_v35 }
 0x441   :  { %10840 = vpow2.f32 %v859_v13 }
 0x442   :  { %v12064_v59 = vpop.eup %10834 }
 0x443   :  { %v895_v28 = vsel %vm101_vm0, %v12064_v59, 0.0  ;;  %v813_v60 = vpop.xlane.xlu0 %812 }
 0x444   :  { %896 = vadd.xlane.f32.xlu0 %v895_v28  ;;  %v847_v56 = vsub.f32 %v12006_v62, %v813_v60 }
 0x445   :  { %v816_v38 = vpop.xlane.xlu1 %815 }
 0x446   :  { %v12069_v61 = vpop.eup %10836  ;;  %v869_v37 = vmul.f32 1.442695, %v847_v56  ;;  %v848_v40 = vsub.f32 %v12008_v3, %v816_v38 }
 0x447   :  { %v889_v63 = vsel %vm101_vm0, %v12069_v61, 0.0  ;;  %v825_v58 = vpop.xlane.xlu0 %824 }
 0x448   :  { %890 = vadd.xlane.f32.xlu0 %v889_v63  ;;  %10842 = vpow2.f32 %v869_v37  ;;  %v851_v15 = vsub.f32 %v12010_v5, %v825_v58  ;;  %v871_v42 = vmul.f32 1.442695, %v848_v40 }
 0x449   :  { %v828_v39 = vpop.xlane.xlu1 %827 }
 0x44a   :  { %v12074_v47 = vpop.eup %10838  ;;  %v877_v2 = vmul.f32 1.442695, %v851_v15  ;;  %v852_v46 = vsub.f32 %v12014_v43, %v828_v39 }
 0x44b   :  { %v898_v4 = vsel %vm101_vm0, %v12074_v47, 0.0  ;;  %v12078_v45 = vpop.eup %10840  ;;  %v807_v62 = vpop.xlane.xlu0 %806 }
 0x44c   :  { %899 = vadd.xlane.f32.xlu1 %v898_v4  ;;  %10844 = vpow2.f32 %v877_v2  ;;  %v845_v25 = vsub.f32 %v12018_v54, %v807_v62  ;;  %v892_v11 = vsel %vm101_vm0, %v12078_v45, 0.0  ;;  %v879_v48 = vmul.f32 1.442695, %v852_v46 }
 0x44d   :  { %v810_v41 = vpop.xlane.xlu1 %809 }
 0x44e   :  { %v865_v31 = vmul.f32 1.442695, %v845_v25  ;;  %v846_v49 = vsub.f32 %v12022_v18, %v810_v41 }
 0x44f   :  { %v819_v17 = vpop.xlane.xlu0 %818 }
 0x450   :  { %893 = vadd.xlane.f32.xlu1 %v892_v11  ;;  %10846 = vpow2.f32 %v865_v31  ;;  %v849_v5 = vsub.f32 %v12026_v21, %v819_v17  ;;  %v867_v44 = vmul.f32 1.442695, %v846_v49 }
 0x451   :  { %v822_v51 = vpop.xlane.xlu1 %821 }
 0x452   :  { %v12084_v19 = vpop.eup %10842  ;;  %v873_v55 = vmul.f32 1.442695, %v849_v5  ;;  %v850_v23 = vsub.f32 %v12030_v10, %v822_v51 }
 0x453   :  { %v907_v26 = vsel %vm101_vm0, %v12084_v19, 0.0  ;;  %v837_v50 = vpop.xlane.xlu0 %836 }
 0x454   :  { %10848 = vpow2.f32 %v873_v55  ;;  %908 = vadd.xlane.f32.xlu0 %v907_v26  ;;  %v875_v3 = vmul.f32 1.442695, %v850_v23  ;;  %v855_v29 = vsub.f32 %v12036_v33, %v837_v50 }
 0x455   :  { %10850 = vpow2.f32 %v871_v42  ;;  %v12112_v57 = vpop.permute.xlu1 %1162 }
 0x456   :  { %v12088_v0 = vpop.eup %10844  ;;  %10852 = vpow2.f32 %v879_v48  ;;  %v885_v18 = vmul.f32 1.442695, %v855_v29 }
 0x457   :  { %v919_v54 = vsel %vm101_vm0, %v12088_v0, 0.0  ;;  %v831_v52 = vpop.xlane.xlu0 %830  ;;  %10854 = vpow2.f32 %v867_v44 }
 0x458   :  { %920 = vadd.xlane.f32.xlu0 %v919_v54  ;;  %v853_v43 = vsub.f32 %v12042_v1, %v831_v52  ;;  %10856 = vpow2.f32 %v875_v3 }
 0x459   :  { %10858 = vpow2.f32 %v885_v18 }
 0x45a   :  { %v12092_v32 = vpop.eup %10846  ;;  %v881_v13 = vmul.f32 1.442695, %v853_v43 }
 0x45b   :  { %v901_v34 = vsel %vm101_vm0, %v12092_v32, 0.0  ;;  %v12182_v55 = vpop.permute.xlu0 %1160 }
 0x45c   :  { %902 = vadd.xlane.f32.xlu0 %v901_v34  ;;  %10860 = vpow2.f32 %v881_v13 }
 0x45e   :  { %v12096_v21 = vpop.eup %10848 }
 0x45f   :  { %v913_v14 = vsel %vm101_vm0, %v12096_v21, 0.0  ;;  %v12110_v53 = vpop.eup %10850 }
 0x460   :  { %914 = vadd.xlane.f32.xlu0 %v913_v14  ;;  %v910_v35 = vsel %vm101_vm0, %v12110_v53, 0.0  ;;  %v12116_v28 = vpop.eup %10852 }
 0x461   :  { %1227 = vrot.lane.b32.xlu1 %v11911_v6, %s11570_s0  ;;  %v922_v33 = vsel %vm101_vm0, %v12116_v28, 0.0  ;;  %v12121_v1 = vpop.eup %10854 }
 0x462   :  { %v904_v58 = vsel %vm101_vm0, %v12121_v1, 0.0  ;;  %v12126_v15 = vpop.eup %10856 }
 0x463   :  { %v12130_v4 = vpop.eup %10858 }
 0x464   :  { %v931_v25 = vsel %vm101_vm0, %v12130_v4, 0.0 }
 0x466   :  { %v12132_v62 = vpop.eup %10860 }
 0x467   :  { %v925_v31 = vsel %vm101_vm0, %v12132_v62, 0.0 }
 0x476   :  { %1225 = vrot.lane.b32.xlu0 %v11913_v7, %s11570_s0 }
 0x485   :  { %911 = vadd.xlane.f32.xlu1 %v910_v35 }
 0x486   :  { %v840_v10 = vpop.xlane.xlu1 %839 }
 0x487   :  { %v856_v60 = vsub.f32 %v12050_v12, %v840_v10  ;;  %v916_v12 = vsel %vm101_vm0, %v12126_v15, 0.0 }
 0x489   :  { %v887_v56 = vmul.f32 1.442695, %v856_v60  ;;  %923 = vadd.xlane.f32.xlu1 %v922_v33 }
 0x48a   :  { %v834_v37 = vpop.xlane.xlu1 %833 }
 0x48b   :  { %10862 = vpow2.f32 %v887_v56  ;;  %v854_v63 = vsub.f32 %v12052_v36, %v834_v37 }
 0x48d   :  { %v883_v2 = vmul.f32 1.442695, %v854_v63  ;;  %905 = vadd.xlane.f32.xlu1 %v904_v58 }
 0x48f   :  { %10864 = vpow2.f32 %v883_v2 }
 0x491   :  { %917 = vadd.xlane.f32.xlu1 %v916_v12 }
 0x495   :  { %v12136_v36 = vpop.eup %10862  ;;  %932 = vadd.xlane.f32.xlu1 %v931_v25  ;;  %926 = vadd.xlane.f32.xlu0 %v925_v31 }
 0x496   :  { %v934_v11 = vsel %vm101_vm0, %v12136_v36, 0.0 }
 0x499   :  { %v12142_v17 = vpop.eup %10864  ;;  %935 = vadd.xlane.f32.xlu1 %v934_v11 }
 0x49a   :  { %v928_v5 = vsel %vm101_vm0, %v12142_v17, 0.0 }
 0x49d   :  { %929 = vadd.xlane.f32.xlu1 %v928_v5 }
 0x4ab   :  { %1294 = vrot.lane.b32.xlu0 %v11923_v16, %s11570_s0 }
 0x4ae   :  { %1221 = vrot.lane.b32.xlu1 %v11913_v7, %s11571_s25 }
 0x4af   :  { %1296 = vrot.lane.b32.xlu0 %v11921_v8, %s11570_s0 }
 0x4b2   :  { %1363 = vrot.lane.b32.xlu1 %v11931_v22, %s11570_s0 }
 0x4b3   :  { %1223 = vrot.lane.b32.xlu0 %v11911_v6, %s11571_s25 }
 0x4b6   :  { %1290 = vrot.lane.b32.xlu1 %v11923_v16, %s11571_s25 }
 0x4b7   :  { %1365 = vrot.lane.b32.xlu0 %v11929_v20, %s11570_s0 }
 0x4ba   :  { %1432 = vrot.lane.b32.xlu1 %v11941_v30, %s11570_s0 }
 0x4bb   :  { %1292 = vrot.lane.b32.xlu0 %v11921_v8, %s11571_s25 }
 0x4be   :  { %1359 = vrot.lane.b32.xlu1 %v11931_v22, %s11571_s25 }
 0x4bf   :  { %1361 = vrot.lane.b32.xlu0 %v11929_v20, %s11571_s25 }
 0x4c2   :  { %1434 = vrot.lane.b32.xlu1 %v11939_v27, %s11570_s0 }
 0x4c3   :  { %1428 = vrot.lane.b32.xlu0 %v11941_v30, %s11571_s25 }
 0x4c6   :  { %1430 = vrot.lane.b32.xlu1 %v11939_v27, %s11571_s25 }
 0x4c7   :  { %1697 = vrot.lane.b32.xlu0 %v11913_v7, %s11572_s19 }
 0x4ca   :  { %1699 = vrot.lane.b32.xlu1 %v11911_v6, %s11572_s19 }
 0x4cb   :  { %1758 = vrot.lane.b32.xlu0 %v11923_v16, %s11572_s19 }
 0x4ce   :  { %1819 = vrot.lane.b32.xlu1 %v11931_v22, %s11572_s19 }
 0x4cf   :  { %1760 = vrot.lane.b32.xlu0 %v11921_v8, %s11572_s19 }
 0x4d1   :  { %v897_v26 = vpop.xlane.xlu0 %896 }
 0x4d2   :  { %1821 = vrot.lane.b32.xlu1 %v11929_v20, %s11572_s19 }
 0x4d5   :  { %v891_v54 = vpop.xlane.xlu0 %890 }
 0x4d9   :  { %v900_v34 = vpop.xlane.xlu1 %899 }
 0x4da   :  { %10866 = vrcp.f32 %v900_v34 }
 0x4db   :  { %10868 = vrcp.f32 %v891_v54 }
 0x4dc   :  { %10870 = vrcp.f32 %v897_v26 }
 0x4dd   :  { %v894_v14 = vpop.xlane.xlu1 %893 }
 0x4de   :  { %10872 = vrcp.f32 %v894_v14 }
 0x4e1   :  { %v909_v38 = vpop.xlane.xlu0 %908 }
 0x4e4   :  { %v10867_v39 = vpop.eup %10866 }
 0x4e5   :  { %v10869_v40 = vpop.eup %10868  ;;  %v921_v41 = vpop.xlane.xlu0 %920  ;;  %v956_v48 = vmul.f32 %v10867_v39, %v12074_v47 }
 0x4e6   :  { %v10871_v42 = vpop.eup %10870  ;;  %v953_v49 = vmul.f32 %v10869_v40, %v12069_v61 }
 0x4e7   :  { %v955_v51 = vmul.f32 %v10871_v42, %v12064_v59  ;;  %v12199_v59 = vpop.permute.xlu1 %1227 }
 0x4e8   :  { %v10873_v46 = vpop.eup %10872 }
 0x4e9   :  { %v954_v50 = vmul.f32 %v10873_v46, %v12078_v45  ;;  %v903_v44 = vpop.xlane.xlu0 %902  ;;  %v970_v52 = vpack.c.bf16 %v956_v48, %v955_v51  ;;  %v1239_v51 = vsel %vm514_vm1, %v12199_v59, 0 }
 0x4eb   :  { %v969_v23 = vpack.c.bf16 %v954_v50, %v953_v49 }
 0x4ed   :  { %9813 = vmatprep.mubr.msk.bf16.mxu0 %vm101_vm0, %v969_v23  ;;  %v915_v3 = vpop.xlane.xlu0 %914 }
 0x4ee   :  { %9814 = vmatmul.mubr.msk.bf16.vlgmr.msra.gmra.mrb[20].mxu0 %vm101_vm0, %v970_v52 }
 0x4ef   :  { %9818 = vmatpush3.bf16.msra.mxu0 %v11984_v9 }
 0x4f0   :  { %9819 = vmatprep.subr.bf16.mxu0 %v12058_v24 }
 0x4f1   :  { %v1226_v29 = vpop.permute.xlu0 %1225 }
 0x4f2   :  { %10465 = vmatprep.subr.msk.bf16.mxu1 %vm514_vm1, %v1226_v29 }
 0x4f3   :  { %9820 = vmatpush3.bf16.msra.mxu0 %v12058_v24 }
 0x4f4   :  { %9833 = vmatprep.subr.bf16.mxu0 %v12182_v55 }
 0x512   :  { %v912_v61 = vpop.xlane.xlu1 %911 }
 0x513   :  { %10874 = vrcp.f32 %v912_v61 }
 0x514   :  { %10876 = vrcp.f32 %v903_v44 }
 0x515   :  { %10878 = vrcp.f32 %v909_v38 }
 0x516   :  { %v924_v47 = vpop.xlane.xlu1 %923 }
 0x51a   :  { %v906_v45 = vpop.xlane.xlu1 %905 }
 0x51b   :  { %10880 = vrcp.f32 %v906_v45 }
 0x51c   :  { %10882 = vrcp.f32 %v924_v47 }
 0x51d   :  { %10884 = vrcp.f32 %v915_v3  ;;  %v10875_v43 = vpop.eup %10874 }
 0x51e   :  { %10886 = vrcp.f32 %v921_v41  ;;  %v918_v9 = vpop.xlane.xlu1 %917  ;;  %v10877_v18 = vpop.eup %10876  ;;  %v960_v60 = vmul.f32 %v10875_v43, %v12110_v53 }
 0x51f   :  { %10888 = vrcp.f32 %v918_v9  ;;  %v10879_v35 = vpop.eup %10878  ;;  %v957_v37 = vmul.f32 %v10877_v18, %v12092_v32 }
 0x520   :  { %v959_v2 = vmul.f32 %v10879_v35, %v12084_v19 }
 0x522   :  { %v933_v24 = vpop.xlane.xlu1 %932  ;;  %v927_v13 = vpop.xlane.xlu0 %926  ;;  %v972_v26 = vpack.c.bf16 %v960_v60, %v959_v2 }
 0x525   :  { %v10881_v10 = vpop.eup %10880 }
 0x526   :  { %v10883_v33 = vpop.eup %10882  ;;  %v936_v56 = vpop.xlane.xlu1 %935  ;;  %v958_v63 = vmul.f32 %v10881_v10, %v12121_v1 }
 0x527   :  { %v10885_v58 = vpop.eup %10884  ;;  %v1295_v12 = vpop.permute.xlu0 %1294  ;;  %10890 = vrcp.f32 %v936_v56  ;;  %v964_v5 = vmul.f32 %v10883_v33, %v12116_v28 }
 0x528   :  { %v10887_v25 = vpop.eup %10886  ;;  %v971_v31 = vpack.c.bf16 %v958_v63, %v957_v37  ;;  %10892 = vrcp.f32 %v927_v13  ;;  %v961_v32 = vmul.f32 %v10885_v58, %v12096_v21  ;;  %v1236_v21 = vsel %vm514_vm1, %v1226_v29, 0 }
 0x529   :  { %v10889_v11 = vpop.eup %10888  ;;  %10894 = vrcp.f32 %v933_v24  ;;  %v963_v54 = vmul.f32 %v10887_v25, %v12088_v0 }
 0x52a   :  { %v930_v53 = vpop.xlane.xlu1 %929  ;;  %9821 = vmatprep.mubr.msk.bf16.mxu0 %vm101_vm0, %v971_v31  ;;  %v962_v1 = vmul.f32 %v10889_v11, %v12126_v15 }
 0x52b   :  { %10896 = vrcp.f32 %v930_v53  ;;  %v1297_v19 = vpop.permute.xlu0 %1296  ;;  %9822 = vmatmul.mubr.msk.bf16.vlgmr.msra.gmra.mrb[24].mxu0 %vm101_vm0, %v972_v26  ;;  %v974_v28 = vpack.c.bf16 %v964_v5, %v963_v54 }
 0x52c   :  { %9834 = vmatpush3.bf16.msra.mxu0 %v12182_v55  ;;  %v973_v34 = vpack.c.bf16 %v962_v1, %v961_v32 }
 0x52d   :  { %9835 = vmatprep.subr.bf16.mxu0 %v12112_v57 }
 0x52e   :  { %v1222_v14 = vpop.permute.xlu1 %1221  ;;  %9829 = vmatprep.mubr.msk.bf16.mxu1 %vm101_vm0, %v973_v34 }
 0x52f   :  { %v1224_v38 = vpop.permute.xlu0 %1223  ;;  %9830 = vmatmul.mubr.msk.bf16.vlgmr.msra.gmra.mrb[12].mxu1 %vm101_vm0, %v974_v28 }
 0x530   :  { %9836 = vmatpush3.bf16.msra.mxu0 %v12112_v57  ;;  %9842 = vmatpush3.bf16.xpose.msra.mxu1 %v1236_v21 }
 0x531   :  { %10466 = vmatprep.subr.msk.bf16.mxu1 %vm514_vm1, %v12199_v59  ;;  %9845 = vmatprep.mubr.msk.bf16.mxu1 %vm514_vm1, %v1222_v14  ;;  %v10891_v0 = vpop.eup %10890  ;;  %v1308_v59 = vsel %vm514_vm1, %v1297_v19, 0 }
 0x532   :  { %10467 = vmatprep.subr.msk.bf16.mxu0 %vm514_vm1, %v1295_v12  ;;  %v1364_v15 = vpop.permute.xlu1 %1363  ;;  %v10893_v55 = vpop.eup %10892  ;;  %v968_v42 = vmul.f32 %v10891_v0, %v12136_v36 }
 0x533   :  { %v1366_v39 = vpop.permute.xlu0 %1365  ;;  %v10895_v40 = vpop.eup %10894  ;;  %v965_v48 = vmul.f32 %v10893_v55, %v12132_v62  ;;  %v1305_v62 = vsel %vm514_vm1, %v1295_v12, 0 }
 0x534   :  { %v967_v49 = vmul.f32 %v10895_v40, %v12130_v4  ;;  %v1377_v61 = vsel %vm514_vm1, %v1366_v39, 0 }
 0x535   :  { %v10897_v41 = vpop.eup %10896 }
 0x536   :  { %v1291_v46 = vpop.permute.xlu1 %1290  ;;  %v966_v57 = vmul.f32 %v10897_v41, %v12142_v17  ;;  %v976_v23 = vpack.c.bf16 %v968_v42, %v967_v49  ;;  %v1374_v17 = vsel %vm514_vm1, %v1364_v15, 0 }
 0x537   :  { %v1293_v50 = vpop.permute.xlu0 %1292 }
 0x538   :  { %9844 = vmatpush3.bf16.xpose.msra.mxu1 %v1239_v51  ;;  %v975_v44 = vpack.c.bf16 %v966_v57, %v965_v48 }
 0x539   :  { %10469 = vmatprep.subr.msk.bf16.mxu1 %vm514_vm1, %v1364_v15 }
 0x53a   :  { %v1433_v52 = vpop.permute.xlu1 %1432  ;;  %9837 = vmatprep.mubr.msk.bf16.mxu0 %vm101_vm0, %v975_v44 }
 0x53b   :  { %9838 = vmatmul.mubr.msk.bf16.vlgmr.msra.gmra.mrb[28].mxu0 %vm101_vm0, %v976_v23  ;;  %v1362_v36 = vpop.permute.xlu0 %1361  ;;  %v1443_v9 = vsel %vm514_vm1, %v1433_v52, 0 }
 0x53c   :  { %9850 = vmatpush3.bf16.xpose.msra.mxu0 %v1305_v62  ;;  %9853 = vmatprep.mubr.msk.bf16.mxu0 %vm514_vm1, %v1291_v46 }
 0x53d   :  { %10468 = vmatprep.subr.msk.bf16.mxu0 %vm514_vm1, %v1297_v19 }
 0x53e   :  { %v1360_v4 = vpop.permute.xlu1 %1359 }
 0x53f   :  { %9846 = vmatmul.mubr.msk.bf16.vlgmr.msra.gmra.mrb[16].mxu1 %vm514_vm1, %v1224_v38  ;;  %v1429_v3 = vpop.permute.xlu0 %1428 }
 0x540   :  { %9858 = vmatpush3.bf16.xpose.msra.mxu1 %v1374_v17  ;;  %9861 = vmatprep.mubr.msk.bf16.mxu1 %vm514_vm1, %v1360_v4 }
 0x541   :  { %10470 = vmatprep.subr.msk.bf16.mxu1 %vm514_vm1, %v1366_v39 }
 0x542   :  { %v1435_v29 = vpop.permute.xlu1 %1434 }
 0x543   :  { %v1698_v47 = vpop.permute.xlu0 %1697  ;;  %v1446_v24 = vsel %vm514_vm1, %v1435_v29, 0 }
 0x544   :  { %9852 = vmatpush3.bf16.xpose.msra.mxu0 %v1308_v59 }
 0x545   :  { %10471 = vmatprep.subr.msk.bf16.mxu0 %vm514_vm1, %v1433_v52 }
 0x546   :  { %v1431_v45 = vpop.permute.xlu1 %1430 }
 0x547   :  { %v1759_v18 = vpop.permute.xlu0 %1758 }
 0x548   :  { %9860 = vmatpush3.bf16.xpose.msra.mxu1 %v1377_v61 }
 0x549   :  { %9873 = vmatprep.subr.bf16.mxu1 %v1698_v47 }
 0x54a   :  { %v1700_v43 = vpop.permute.xlu1 %1699 }
 0x54b   :  { %9854 = vmatmul.mubr.msk.bf16.vlgmr.msra.gmra.mrb[32].mxu0 %vm514_vm1, %v1293_v50  ;;  %v1761_v35 = vpop.permute.xlu0 %1760 }
 0x54c   :  { %9866 = vmatpush3.bf16.xpose.msra.mxu0 %v1443_v9  ;;  %9869 = vmatprep.mubr.msk.bf16.mxu0 %vm514_vm1, %v1429_v3 }
 0x54d   :  { %10472 = vmatprep.subr.msk.bf16.mxu0 %vm514_vm1, %v1435_v29 }
 0x54e   :  { %v12246_v13 = vpop.permute.xlu1 %1819 }
 0x54f   :  { %9862 = vmatmul.mubr.msk.bf16.vlgmr.msra.gmra.mrb[20].mxu1 %vm514_vm1, %v1362_v36 }
 0x550   :  { %9874 = vmatpush3.bf16.msra.mxu1 %v1698_v47 }
 0x551   :  { %9875 = vmatprep.subr.bf16.mxu1 %v1700_v43 }
 0x554   :  { %9868 = vmatpush3.bf16.xpose.msra.mxu0 %v1446_v24  ;;  %9876 = vmatpush3.bf16.msra.mxu1 %v1700_v43 }
 0x555   :  { %9881 = vmatprep.subr.bf16.mxu0 %v1759_v18  ;;  %9889 = vmatprep.subr.bf16.mxu1 %v12246_v13 }
 0x55b   :  { %9870 = vmatmul.mubr.msk.bf16.vlgmr.msra.gmra.mrb[36].mxu0 %vm514_vm1, %v1431_v45 }
 0x55c   :  { %9882 = vmatpush3.bf16.msra.mxu0 %v1759_v18 }
 0x55d   :  { %9883 = vmatprep.subr.bf16.mxu0 %v1761_v35 }
 0x560   :  { %9884 = vmatpush3.bf16.msra.mxu0 %v1761_v35 }
 0x5c1   :  { %v12250_v10 = vpop.f32.mrb[20].mxu0 }
 0x5c2   :  { %15701 = vst [vmem:[#allocation11_spill] sm:$0xff] %v12250_v10  ;;  %v12252_v60 = vpop.f32.mrb[21].mxu0 }
 0x5c3   :  { %15702 = vst [vmem:[#allocation12_spill] sm:$0xff] %v12252_v60  ;;  %v12254_v33 = vpop.f32.mrb[22].mxu0 }
 0x5c4   :  { %15703 = vst [vmem:[#allocation13_spill] sm:$0xff] %v12254_v33  ;;  %v12256_v56 = vpop.f32.mrb[23].mxu0 }
 0x5c5   :  { %15704 = vst [vmem:[#allocation14_spill] sm:$0xff] %v12256_v56 }
 0x5fe   :  { %v12258_v37 = vpop.f32.mrb[24].mxu0 }
 0x5ff   :  { %15705 = vst [vmem:[#allocation15_spill] sm:$0xff] %v12258_v37  ;;  %v12260_v63 = vpop.f32.mrb[25].mxu0 }
 0x600   :  { %15706 = vst [vmem:[#allocation16_spill] sm:$0xff] %v12260_v63  ;;  %v12262_v58 = vpop.f32.mrb[26].mxu0 }
 0x601   :  { %15707 = vst [vmem:[#allocation17_spill] sm:$0xff] %v12262_v58  ;;  %v12264_v2 = vpop.f32.mrb[27].mxu0 }
 0x602   :  { %15708 = vst [vmem:[#allocation18_spill] sm:$0xff] %v12264_v2  ;;  %v12266_v12 = vpop.f32.mrb[12].mxu1 }
 0x603   :  { %15709 = vst [vmem:[#allocation19_spill] sm:$0xff] %v12266_v12  ;;  %v12268_v25 = vpop.f32.mrb[13].mxu1 }
 0x604   :  { %15710 = vst [vmem:[#allocation20_spill] sm:$0xff] %v12268_v25  ;;  %v12270_v31 = vpop.f32.mrb[14].mxu1 }
 0x605   :  { %15711 = vst [vmem:[#allocation21_spill] sm:$0xff] %v12270_v31  ;;  %v12272_v11 = vpop.f32.mrb[15].mxu1 }
 0x606   :  { %15712 = vst [vmem:[#allocation22_spill] sm:$0xff] %v12272_v11 }
 0x60e   :  { %v12274_v5 = vpop.f32.mrb[28].mxu0 }
 0x60f   :  { %15713 = vst [vmem:[#allocation23_spill] sm:$0xff] %v12274_v5  ;;  %v12276_v26 = vpop.f32.mrb[29].mxu0 }
 0x610   :  { %15714 = vst [vmem:[#allocation24_spill] sm:$0xff] %v12276_v26  ;;  %v12278_v53 = vpop.f32.mrb[30].mxu0 }
 0x611   :  { %15715 = vst [vmem:[#allocation25_spill] sm:$0xff] %v12278_v53  ;;  %v12280_v32 = vpop.f32.mrb[31].mxu0 }
 0x612   :  { %15716 = vst [vmem:[#allocation26_spill] sm:$0xff] %v12280_v32  ;;  %v9847_v1 = vpop.f32.mrb[16].mxu1 }
 0x613   :  { %v12282_v54 = vmul.f32 0.35355338, %v9847_v1  ;;  %v1275_v19 = vpop.f32.mrb[17].mxu1 }
 0x614   :  { %v9848_v34 = vpop.f32.mrb[18].mxu1  ;;  %v12284_v28 = vmul.f32 0.35355338, %v1275_v19 }
 0x615   :  { %v1278_v14 = vpop.f32.mrb[19].mxu1  ;;  %v1519_v38 = vsel %vm101_vm0, %v12282_v54, -inf  ;;  %v12292_v15 = vmul.f32 0.35355338, %v9848_v34 }
 0x616   :  { %v12288_v21 = vmul.f32 0.35355338, %v1278_v14  ;;  %1520 = vmax.xlane.f32.xlu0 %v1519_v38  ;;  %v1513_v55 = vsel %vm101_vm0, %v12284_v28, -inf }
 0x617   :  { %v1522_v39 = vsel %vm101_vm0, %v12292_v15, -inf }
 0x618   :  { %v1516_v0 = vsel %vm101_vm0, %v12288_v21, -inf }
 0x619   :  { %1517 = vmax.xlane.f32.xlu1 %v1516_v0 }
 0x61a   :  { %1514 = vmax.xlane.f32.xlu0 %v1513_v55 }
 0x61e   :  { %1523 = vmax.xlane.f32.xlu0 %v1522_v39  ;;  %v9855_v40 = vpop.f32.mrb[32].mxu0 }
 0x61f   :  { %v12298_v41 = vmul.f32 0.35355338, %v9855_v40  ;;  %v1344_v42 = vpop.f32.mrb[33].mxu0 }
 0x620   :  { %v9856_v46 = vpop.f32.mrb[34].mxu0  ;;  %v12308_v62 = vmul.f32 0.35355338, %v1344_v42  ;;  %v12350_v42 = vpop.permute.xlu1 %1821 }
 0x621   :  { %v12300_v48 = vmul.f32 0.35355338, %v9856_v46  ;;  %v1347_v57 = vpop.f32.mrb[35].mxu0  ;;  %v1531_v49 = vsel %vm101_vm0, %v12298_v41, -inf }
 0x622   :  { %1532 = vmax.xlane.f32.xlu0 %v1531_v49  ;;  %v9863_v50 = vpop.f32.mrb[20].mxu1  ;;  %v12314_v3 = vmul.f32 0.35355338, %v1347_v57  ;;  %v1525_v61 = vsel %vm101_vm0, %v12308_v62, -inf }
 0x623   :  { %v12304_v51 = vmul.f32 0.35355338, %v9863_v50  ;;  %v1413_v44 = vpop.f32.mrb[21].mxu1  ;;  %v1534_v23 = vsel %vm101_vm0, %v12300_v48, -inf }
 0x624   :  { %1535 = vmax.xlane.f32.xlu1 %v1534_v23  ;;  %v9864_v52 = vpop.f32.mrb[22].mxu1  ;;  %v12318_v59 = vmul.f32 0.35355338, %v1413_v44  ;;  %v1528_v45 = vsel %vm101_vm0, %v12314_v3, -inf }
 0x625   :  { %v12310_v36 = vmul.f32 0.35355338, %v9864_v52  ;;  %v1416_v4 = vpop.f32.mrb[23].mxu1  ;;  %v1543_v17 = vsel %vm101_vm0, %v12304_v51, -inf }
 0x626   :  { %1544 = vmax.xlane.f32.xlu0 %v1543_v17  ;;  %v12322_v47 = vmul.f32 0.35355338, %v1416_v4  ;;  %v1537_v9 = vsel %vm101_vm0, %v12318_v59, -inf }
 0x627   :  { %v1546_v29 = vsel %vm101_vm0, %v12310_v36, -inf }
 0x628   :  { %1547 = vmax.xlane.f32.xlu1 %v1546_v29  ;;  %v1540_v35 = vsel %vm101_vm0, %v12322_v47, -inf }
 0x62a   :  { %1526 = vmax.xlane.f32.xlu0 %v1525_v61 }
 0x62c   :  { %1529 = vmax.xlane.f32.xlu1 %v1528_v45 }
 0x62e   :  { %1538 = vmax.xlane.f32.xlu0 %v1537_v9  ;;  %v9871_v43 = vpop.f32.mrb[36].mxu0 }
 0x62f   :  { %v12328_v24 = vmul.f32 0.35355338, %v9871_v43  ;;  %v1482_v18 = vpop.f32.mrb[37].mxu0 }
 0x630   :  { %1541 = vmax.xlane.f32.xlu1 %v1540_v35  ;;  %v9872_v1 = vpop.f32.mrb[38].mxu0  ;;  %v12332_v19 = vmul.f32 0.35355338, %v1482_v18 }
 0x631   :  { %v1485_v34 = vpop.f32.mrb[39].mxu0  ;;  %v1555_v14 = vsel %vm101_vm0, %v12328_v24, -inf  ;;  %v12342_v0 = vmul.f32 0.35355338, %v9872_v1 }
 0x632   :  { %1556 = vmax.xlane.f32.xlu0 %v1555_v14  ;;  %v1549_v38 = vsel %vm101_vm0, %v12332_v19, -inf  ;;  %v12344_v55 = vmul.f32 0.35355338, %v1485_v34 }
 0x633   :  { %v1558_v39 = vsel %vm101_vm0, %v12342_v0, -inf }
 0x634   :  { %v1552_v40 = vsel %vm101_vm0, %v12344_v55, -inf }
 0x636   :  { %1550 = vmax.xlane.f32.xlu0 %v1549_v38 }
 0x641   :  { %1882 = vrot.lane.b32.xlu1 %v11939_v27, %s11572_s19 }
 0x64c   :  { %1880 = vrot.lane.b32.xlu0 %v11941_v30, %s11572_s19 }
 0x665   :  { %1559 = vmax.xlane.f32.xlu1 %v1558_v39 }
 0x669   :  { %1553 = vmax.xlane.f32.xlu1 %v1552_v40 }
 0x6a3   :  { %v1521_v46 = vpop.xlane.xlu0 %1520 }
 0x6a4   :  { %v1563_v57 = vsub.f32 %v12282_v54, %v1521_v46 }
 0x6a6   :  { %v1581_v49 = vmul.f32 1.442695, %v1563_v57  ;;  %v1518_v50 = vpop.xlane.xlu1 %1517 }
 0x6a7   :  { %v1515_v44 = vpop.xlane.xlu0 %1514  ;;  %v1562_v52 = vsub.f32 %v12288_v21, %v1518_v50 }
 0x6a8   :  { %10898 = vpow2.f32 %v1581_v49  ;;  %v1561_v23 = vsub.f32 %v12284_v28, %v1515_v44 }
 0x6a9   :  { %v1579_v61 = vmul.f32 1.442695, %v1562_v52 }
 0x6aa   :  { %v1577_v4 = vmul.f32 1.442695, %v1561_v23 }
 0x6ab   :  { %v1524_v17 = vpop.xlane.xlu0 %1523 }
 0x6ac   :  { %10900 = vpow2.f32 %v1577_v4  ;;  %v1564_v29 = vsub.f32 %v12292_v15, %v1524_v17 }
 0x6ae   :  { %v1583_v45 = vmul.f32 1.442695, %v1564_v29 }
 0x6af   :  { %v1533_v9 = vpop.xlane.xlu0 %1532 }
 0x6b0   :  { %10902 = vpow2.f32 %v1583_v45  ;;  %v1567_v43 = vsub.f32 %v12298_v41, %v1533_v9 }
 0x6b1   :  { %10904 = vpow2.f32 %v1579_v61 }
 0x6b2   :  { %v12357_v54 = vpop.eup %10898  ;;  %v1589_v18 = vmul.f32 1.442695, %v1567_v43  ;;  %v1536_v43 = vpop.xlane.xlu1 %1535 }
 0x6b3   :  { %v1545_v35 = vpop.xlane.xlu0 %1544  ;;  %v1615_v28 = vsel %vm101_vm0, %v12357_v54, 0.0 }
 0x6b4   :  { %10906 = vpow2.f32 %v1589_v18  ;;  %v1571_v21 = vsub.f32 %v12304_v51, %v1545_v35  ;;  %1616 = vadd.xlane.f32.xlu0 %v1615_v28  ;;  %v1568_v35 = vsub.f32 %v12300_v48, %v1536_v43 }
 0x6b6   :  { %v12362_v1 = vpop.eup %10900  ;;  %v1597_v15 = vmul.f32 1.442695, %v1571_v21  ;;  %v1548_v18 = vpop.xlane.xlu1 %1547  ;;  %v1591_v21 = vmul.f32 1.442695, %v1568_v35 }
 0x6b7   :  { %v1527_v34 = vpop.xlane.xlu0 %1526  ;;  %v1609_v14 = vsel %vm101_vm0, %v12362_v1, 0.0 }
 0x6b8   :  { %10908 = vpow2.f32 %v1597_v15  ;;  %v1565_v41 = vsub.f32 %v12308_v62, %v1527_v34  ;;  %1610 = vadd.xlane.f32.xlu0 %v1609_v14  ;;  %v1572_v15 = vsub.f32 %v12310_v36, %v1548_v18 }
 0x6ba   :  { %v12367_v38 = vpop.eup %10902  ;;  %v1585_v39 = vmul.f32 1.442695, %v1565_v41  ;;  %v1530_v28 = vpop.xlane.xlu1 %1529  ;;  %v1599_v34 = vmul.f32 1.442695, %v1572_v15 }
 0x6bb   :  { %v1539_v40 = vpop.xlane.xlu0 %1538  ;;  %v1618_v46 = vsel %vm101_vm0, %v12367_v38, 0.0  ;;  %v12371_v51 = vpop.eup %10904  ;;  %v1566_v14 = vsub.f32 %v12314_v3, %v1530_v28 }
 0x6bc   :  { %10910 = vpow2.f32 %v1585_v39  ;;  %v1569_v57 = vsub.f32 %v12318_v59, %v1539_v40  ;;  %1619 = vadd.xlane.f32.xlu1 %v1618_v46  ;;  %v1612_v62 = vsel %vm101_vm0, %v12371_v51, 0.0 }
 0x6bd   :  { %v1587_v40 = vmul.f32 1.442695, %v1566_v14 }
 0x6be   :  { %v12374_v49 = vpop.eup %10906  ;;  %v1593_v50 = vmul.f32 1.442695, %v1569_v57  ;;  %v1542_v41 = vpop.xlane.xlu1 %1541 }
 0x6bf   :  { %v1557_v44 = vpop.xlane.xlu0 %1556  ;;  %v1627_v23 = vsel %vm101_vm0, %v12374_v49, 0.0  ;;  %v1570_v39 = vsub.f32 %v12322_v47, %v1542_v41 }
 0x6c0   :  { %10912 = vpow2.f32 %v1593_v50  ;;  %1613 = vadd.xlane.f32.xlu1 %v1612_v62  ;;  %1628 = vadd.xlane.f32.xlu0 %v1627_v23  ;;  %v1575_v50 = vsub.f32 %v12328_v24, %v1557_v44 }
 0x6c1   :  { %10914 = vpow2.f32 %v1591_v21  ;;  %v1595_v57 = vmul.f32 1.442695, %v1570_v39 }
 0x6c2   :  { %v12380_v52 = vpop.eup %10908  ;;  %10916 = vpow2.f32 %v1599_v34  ;;  %v12404_v48 = vpop.permute.xlu1 %1882 }
 0x6c3   :  { %v1551_v4 = vpop.xlane.xlu0 %1550  ;;  %v1639_v59 = vsel %vm101_vm0, %v12380_v52, 0.0  ;;  %10918 = vpow2.f32 %v1587_v40 }
 0x6c4   :  { %1640 = vadd.xlane.f32.xlu0 %v1639_v59  ;;  %v1573_v46 = vsub.f32 %v12332_v19, %v1551_v4  ;;  %10920 = vpow2.f32 %v1595_v57  ;;  %v1605_v59 = vmul.f32 1.442695, %v1575_v50 }
 0x6c6   :  { %v12384_v17 = vpop.eup %10910  ;;  %v1601_v62 = vmul.f32 1.442695, %v1573_v46 }
 0x6c7   :  { %v12386_v29 = vpop.permute.xlu0 %1880  ;;  %v1621_v61 = vsel %vm101_vm0, %v12384_v17, 0.0 }
 0x6c8   :  { %1622 = vadd.xlane.f32.xlu0 %v1621_v61  ;;  %9897 = vmatprep.subr.bf16.mxu0 %v12386_v29  ;;  %10922 = vpow2.f32 %v1601_v62 }
 0x6c9   :  { %10924 = vpow2.f32 %v1605_v59 }
 0x6ca   :  { %v12391_v45 = vpop.eup %10912 }
 0x6cb   :  { %v1633_v9 = vsel %vm101_vm0, %v12391_v45, 0.0  ;;  %v12407_v23 = vpop.eup %10914 }
 0x6cc   :  { %1634 = vadd.xlane.f32.xlu0 %v1633_v9  ;;  %v1630_v47 = vsel %vm101_vm0, %v12407_v23, 0.0  ;;  %v12412_v61 = vpop.eup %10916 }
 0x6cd   :  { %v1642_v44 = vsel %vm101_vm0, %v12412_v61, 0.0  ;;  %v12417_v9 = vpop.eup %10918 }
 0x6ce   :  { %v1624_v18 = vsel %vm101_vm0, %v12417_v9, 0.0 }
 0x6d1   :  { %1947 = vrot.lane.b32.xlu1 %v11911_v6, %s11573_s20 }
 0x6e2   :  { %1945 = vrot.lane.b32.xlu0 %v11913_v7, %s11573_s20 }
 0x6f2   :  { %v1560_v36 = vpop.xlane.xlu1 %1559 }
 0x6f3   :  { %v1576_v3 = vsub.f32 %v12342_v0, %v1560_v36  ;;  %v12419_v0 = vpop.eup %10920 }
 0x6f4   :  { %v12423_v35 = vpop.eup %10922 }
 0x6f5   :  { %1631 = vadd.xlane.f32.xlu1 %v1630_v47  ;;  %v1607_v4 = vmul.f32 1.442695, %v1576_v3  ;;  %v1645_v28 = vsel %vm101_vm0, %v12423_v35, 0.0  ;;  %v12429_v21 = vpop.eup %10924 }
 0x6f6   :  { %v1554_v19 = vpop.xlane.xlu1 %1553  ;;  %v1651_v15 = vsel %vm101_vm0, %v12429_v21, 0.0 }
 0x6f7   :  { %v1574_v24 = vsub.f32 %v12344_v55, %v1554_v19  ;;  %10926 = vpow2.f32 %v1607_v4  ;;  %v1636_v55 = vsel %vm101_vm0, %v12419_v0, 0.0 }
 0x6f9   :  { %1643 = vadd.xlane.f32.xlu1 %v1642_v44  ;;  %v1603_v43 = vmul.f32 1.442695, %v1574_v24 }
 0x6fb   :  { %10928 = vpow2.f32 %v1603_v43 }
 0x6fd   :  { %1625 = vadd.xlane.f32.xlu1 %v1624_v18 }
 0x701   :  { %1637 = vadd.xlane.f32.xlu1 %v1636_v55  ;;  %1646 = vadd.xlane.f32.xlu0 %v1645_v28  ;;  %v12433_v34 = vpop.eup %10926 }
 0x702   :  { %v1654_v14 = vsel %vm101_vm0, %v12433_v34, 0.0 }
 0x705   :  { %1652 = vadd.xlane.f32.xlu1 %v1651_v15  ;;  %v12437_v41 = vpop.eup %10928 }
 0x706   :  { %v1648_v39 = vsel %vm101_vm0, %v12437_v41, 0.0 }
 0x709   :  { %1655 = vadd.xlane.f32.xlu1 %v1654_v14 }
 0x70d   :  { %1649 = vadd.xlane.f32.xlu1 %v1648_v39 }
 0x717   :  { %2014 = vrot.lane.b32.xlu0 %v11923_v16, %s11573_s20 }
 0x71b   :  { %2016 = vrot.lane.b32.xlu0 %v11921_v8, %s11573_s20 }
 0x71e   :  { %1941 = vrot.lane.b32.xlu1 %v11913_v7, %s11574_s5 }
 0x71f   :  { %1943 = vrot.lane.b32.xlu0 %v11911_v6, %s11574_s5 }
 0x722   :  { %2083 = vrot.lane.b32.xlu1 %v11931_v22, %s11573_s20 }
 0x723   :  { %2085 = vrot.lane.b32.xlu0 %v11929_v20, %s11573_s20 }
 0x726   :  { %2010 = vrot.lane.b32.xlu1 %v11923_v16, %s11574_s5 }
 0x727   :  { %2012 = vrot.lane.b32.xlu0 %v11921_v8, %s11574_s5 }
 0x72a   :  { %2152 = vrot.lane.b32.xlu1 %v11941_v30, %s11573_s20 }
 0x72b   :  { %2081 = vrot.lane.b32.xlu0 %v11929_v20, %s11574_s5 }
 0x72e   :  { %2079 = vrot.lane.b32.xlu1 %v11931_v22, %s11574_s5 }
 0x72f   :  { %2148 = vrot.lane.b32.xlu0 %v11941_v30, %s11574_s5 }
 0x732   :  { %2154 = vrot.lane.b32.xlu1 %v11939_v27, %s11573_s20 }
 0x733   :  { %2417 = vrot.lane.b32.xlu0 %v11913_v7, %s11575_s16 }
 0x736   :  { %2150 = vrot.lane.b32.xlu1 %v11939_v27, %s11574_s5 }
 0x737   :  { %2478 = vrot.lane.b32.xlu0 %v11923_v16, %s11575_s16 }
 0x73a   :  { %2419 = vrot.lane.b32.xlu1 %v11911_v6, %s11575_s16 }
 0x73b   :  { %2480 = vrot.lane.b32.xlu0 %v11921_v8, %s11575_s16 }
 0x73e   :  { %2539 = vrot.lane.b32.xlu1 %v11931_v22, %s11575_s16 }
 0x741   :  { %v1617_v40 = vpop.xlane.xlu0 %1616 }
 0x742   :  { %2541 = vrot.lane.b32.xlu1 %v11929_v20, %s11575_s16 }
 0x745   :  { %v1611_v46 = vpop.xlane.xlu0 %1610 }
 0x749   :  { %v1620_v57 = vpop.xlane.xlu1 %1619 }
 0x74a   :  { %10930 = vrcp.f32 %v1620_v57 }
 0x74b   :  { %10932 = vrcp.f32 %v1611_v46 }
 0x74c   :  { %10934 = vrcp.f32 %v1617_v40 }
 0x74d   :  { %v1614_v50 = vpop.xlane.xlu1 %1613  ;;  %v1629_v62 = vpop.xlane.xlu0 %1628 }
 0x74e   :  { %10936 = vrcp.f32 %v1614_v50 }
 0x751   :  { %v1641_v36 = vpop.xlane.xlu0 %1640 }
 0x754   :  { %v10931_v59 = vpop.eup %10930 }
 0x755   :  { %v10933_v3 = vpop.eup %10932  ;;  %v1623_v19 = vpop.xlane.xlu0 %1622  ;;  %v1676_v24 = vmul.f32 %v10931_v59, %v12367_v38 }
 0x756   :  { %v10935_v47 = vpop.eup %10934  ;;  %v1673_v44 = vmul.f32 %v10933_v3, %v12362_v1  ;;  %v12491_v1 = vpop.permute.xlu1 %1947 }
 0x757   :  { %v1675_v18 = vmul.f32 %v10935_v47, %v12357_v54 }
 0x758   :  { %v10937_v4 = vpop.eup %10936 }
 0x759   :  { %v1674_v43 = vmul.f32 %v10937_v4, %v12371_v51  ;;  %v1690_v28 = vpack.c.bf16 %v1676_v24, %v1675_v18  ;;  %v1635_v15 = vpop.xlane.xlu0 %1634 }
 0x75b   :  { %v1689_v55 = vpack.c.bf16 %v1674_v43, %v1673_v44 }
 0x75d   :  { %9877 = vmatprep.mubr.msk.bf16.mxu1 %vm101_vm0, %v1689_v55  ;;  %v1946_v14 = vpop.permute.xlu0 %1945 }
 0x75e   :  { %9878 = vmatmul.mubr.msk.bf16.vlgmr.msra.gmra.mrb[24].mxu1 %vm101_vm0, %v1690_v28 }
 0x75f   :  { %9890 = vmatpush3.bf16.msra.mxu1 %v12246_v13 }
 0x760   :  { %9891 = vmatprep.subr.bf16.mxu1 %v12350_v42 }
 0x763   :  { %9892 = vmatpush3.bf16.msra.mxu1 %v12350_v42 }
 0x764   :  { %10473 = vmatprep.subr.msk.bf16.mxu1 %vm514_vm1, %v1946_v14 }
 0x782   :  { %v1632_v38 = vpop.xlane.xlu1 %1631 }
 0x783   :  { %10938 = vrcp.f32 %v1632_v38 }
 0x784   :  { %10940 = vrcp.f32 %v1623_v19 }
 0x785   :  { %10942 = vrcp.f32 %v1629_v62 }
 0x786   :  { %v1644_v54 = vpop.xlane.xlu1 %1643 }
 0x78a   :  { %v1626_v51 = vpop.xlane.xlu1 %1625 }
 0x78b   :  { %10944 = vrcp.f32 %v1626_v51 }
 0x78c   :  { %10946 = vrcp.f32 %v1644_v54 }
 0x78d   :  { %10948 = vrcp.f32 %v1635_v15  ;;  %v10939_v40 = vpop.eup %10938 }
 0x78e   :  { %10950 = vrcp.f32 %v1641_v36  ;;  %v1638_v13 = vpop.xlane.xlu1 %1637  ;;  %v1647_v39 = vpop.xlane.xlu0 %1646  ;;  %v1680_v3 = vmul.f32 %v10939_v40, %v12407_v23 }
 0x78f   :  { %10952 = vrcp.f32 %v1638_v13  ;;  %v10941_v57 = vpop.eup %10940 }
 0x790   :  { %v10943_v50 = vpop.eup %10942  ;;  %v1677_v62 = vmul.f32 %v10941_v57, %v12384_v17 }
 0x791   :  { %v1679_v44 = vmul.f32 %v10943_v50, %v12374_v49 }
 0x792   :  { %v1653_v46 = vpop.xlane.xlu1 %1652  ;;  %v2015_v42 = vpop.permute.xlu0 %2014 }
 0x793   :  { %v1692_v15 = vpack.c.bf16 %v1680_v3, %v1679_v44  ;;  %v1959_v3 = vsel %vm514_vm1, %v12491_v1, 0 }
 0x795   :  { %v10945_v59 = vpop.eup %10944 }
 0x796   :  { %v10947_v47 = vpop.eup %10946  ;;  %v1656_v4 = vpop.xlane.xlu1 %1655  ;;  %v1678_v24 = vmul.f32 %v10945_v59, %v12417_v9 }
 0x797   :  { %v12494_v19 = vpop.permute.xlu0 %2016  ;;  %v10949_v36 = vpop.eup %10948  ;;  %10954 = vrcp.f32 %v1656_v4  ;;  %v1684_v28 = vmul.f32 %v10947_v47, %v12412_v61 }
 0x798   :  { %v10951_v43 = vpop.eup %10950  ;;  %v1691_v18 = vpack.c.bf16 %v1678_v24, %v1677_v62  ;;  %10956 = vrcp.f32 %v1647_v39  ;;  %v1681_v17 = vmul.f32 %v10949_v36, %v12391_v45  ;;  %v1956_v45 = vsel %vm514_vm1, %v1946_v14, 0 }
 0x799   :  { %v10953_v55 = vpop.eup %10952  ;;  %10958 = vrcp.f32 %v1653_v46  ;;  %v1683_v54 = vmul.f32 %v10951_v43, %v12380_v52 }
 0x79a   :  { %v1650_v23 = vpop.xlane.xlu1 %1649  ;;  %9885 = vmatprep.mubr.msk.bf16.mxu0 %vm101_vm0, %v1691_v18  ;;  %v1682_v9 = vmul.f32 %v10953_v55, %v12419_v0 }
 0x79b   :  { %v1944_v38 = vpop.permute.xlu0 %1943  ;;  %10960 = vrcp.f32 %v1650_v23  ;;  %9886 = vmatmul.mubr.msk.bf16.vlgmr.msra.gmra.mrb[40].mxu0 %vm101_vm0, %v1692_v15  ;;  %v1694_v61 = vpack.c.bf16 %v1684_v28, %v1683_v54 }
 0x79c   :  { %9898 = vmatpush3.bf16.msra.mxu0 %v12386_v29  ;;  %v1693_v49 = vpack.c.bf16 %v1682_v9, %v1681_v17 }
 0x79d   :  { %9899 = vmatprep.subr.bf16.mxu0 %v12404_v48 }
 0x79e   :  { %v1942_v51 = vpop.permute.xlu1 %1941  ;;  %9893 = vmatprep.mubr.msk.bf16.mxu1 %vm101_vm0, %v1693_v49 }
 0x79f   :  { %9894 = vmatmul.mubr.msk.bf16.vlgmr.msra.gmra.mrb[28].mxu1 %vm101_vm0, %v1694_v61  ;;  %v2086_v13 = vpop.permute.xlu0 %2085 }
 0x7a0   :  { %9900 = vmatpush3.bf16.msra.mxu0 %v12404_v48  ;;  %9906 = vmatpush3.bf16.xpose.msra.mxu1 %v1956_v45  ;;  %v2097_v36 = vsel %vm514_vm1, %v2086_v13, 0 }
 0x7a1   :  { %10474 = vmatprep.subr.msk.bf16.mxu1 %vm514_vm1, %v12491_v1  ;;  %9909 = vmatprep.mubr.msk.bf16.mxu1 %vm514_vm1, %v1942_v51  ;;  %v10955_v52 = vpop.eup %10954 }
 0x7a2   :  { %10475 = vmatprep.subr.msk.bf16.mxu0 %vm514_vm1, %v2015_v42  ;;  %v2084_v29 = vpop.permute.xlu1 %2083  ;;  %v10957_v0 = vpop.eup %10956  ;;  %v1688_v46 = vmul.f32 %v10955_v52, %v12433_v34  ;;  %v2025_v34 = vsel %vm514_vm1, %v2015_v42, 0  ;;  %v2028_v42 = vsel %vm514_vm1, %v12494_v19, 0 }
 0x7a3   :  { %v10959_v39 = vpop.eup %10958  ;;  %v2013_v57 = vpop.permute.xlu0 %2012  ;;  %v1685_v50 = vmul.f32 %v10957_v0, %v12423_v35 }
 0x7a4   :  { %v1687_v59 = vmul.f32 %v10959_v39, %v12429_v21 }
 0x7a5   :  { %v10961_v40 = vpop.eup %10960 }
 0x7a6   :  { %v2011_v14 = vpop.permute.xlu1 %2010  ;;  %v1686_v48 = vmul.f32 %v10961_v40, %v12437_v41  ;;  %v1696_v4 = vpack.c.bf16 %v1688_v46, %v1687_v59  ;;  %v2094_v41 = vsel %vm514_vm1, %v2084_v29, 0 }
 0x7a7   :  { %v2082_v35 = vpop.permute.xlu0 %2081 }
 0x7a8   :  { %9908 = vmatpush3.bf16.xpose.msra.mxu1 %v1959_v3  ;;  %v1695_v47 = vpack.c.bf16 %v1686_v48, %v1685_v50 }
 0x7a9   :  { %10477 = vmatprep.subr.msk.bf16.mxu1 %vm514_vm1, %v2084_v29 }
 0x7aa   :  { %v2153_v62 = vpop.permute.xlu1 %2152  ;;  %9901 = vmatprep.mubr.msk.bf16.mxu0 %vm101_vm0, %v1695_v47 }
 0x7ab   :  { %9902 = vmatmul.mubr.msk.bf16.vlgmr.msra.gmra.mrb[44].mxu0 %vm101_vm0, %v1696_v4  ;;  %v2149_v1 = vpop.permute.xlu0 %2148  ;;  %v2163_v18 = vsel %vm514_vm1, %v2153_v62, 0 }
 0x7ac   :  { %9914 = vmatpush3.bf16.xpose.msra.mxu0 %v2025_v34  ;;  %9917 = vmatprep.mubr.msk.bf16.mxu0 %vm514_vm1, %v2011_v14 }
 0x7ad   :  { %10476 = vmatprep.subr.msk.bf16.mxu0 %vm514_vm1, %v12494_v19 }
 0x7ae   :  { %v2080_v21 = vpop.permute.xlu1 %2079 }
 0x7af   :  { %9910 = vmatmul.mubr.msk.bf16.vlgmr.msra.gmra.mrb[32].mxu1 %vm514_vm1, %v1944_v38  ;;  %v2418_v44 = vpop.permute.xlu0 %2417 }
 0x7b0   :  { %9922 = vmatpush3.bf16.xpose.msra.mxu1 %v2094_v41  ;;  %9925 = vmatprep.mubr.msk.bf16.mxu1 %vm514_vm1, %v2080_v21 }
 0x7b1   :  { %10478 = vmatprep.subr.msk.bf16.mxu1 %vm514_vm1, %v2086_v13 }
 0x7b2   :  { %v2155_v24 = vpop.permute.xlu1 %2154 }
 0x7b3   :  { %v2166_v19 = vsel %vm514_vm1, %v2155_v24, 0  ;;  %v2479_v28 = vpop.permute.xlu0 %2478 }
 0x7b4   :  { %9916 = vmatpush3.bf16.xpose.msra.mxu0 %v2028_v42 }
 0x7b5   :  { %10479 = vmatprep.subr.msk.bf16.mxu0 %vm514_vm1, %v2153_v62 }
 0x7b6   :  { %v2151_v43 = vpop.permute.xlu1 %2150 }
 0x7b7   :  { %v2481_v23 = vpop.permute.xlu0 %2480 }
 0x7b8   :  { %9924 = vmatpush3.bf16.xpose.msra.mxu1 %v2097_v36 }
 0x7b9   :  { %9937 = vmatprep.subr.bf16.mxu1 %v2418_v44 }
 0x7ba   :  { %v2420_v55 = vpop.permute.xlu1 %2419 }
 0x7bb   :  { %9918 = vmatmul.mubr.msk.bf16.vlgmr.msra.gmra.mrb[48].mxu0 %vm514_vm1, %v2013_v57 }
 0x7bc   :  { %9930 = vmatpush3.bf16.xpose.msra.mxu0 %v2163_v18  ;;  %9933 = vmatprep.mubr.msk.bf16.mxu0 %vm514_vm1, %v2149_v1 }
 0x7bd   :  { %10480 = vmatprep.subr.msk.bf16.mxu0 %vm514_vm1, %v2155_v24 }
 0x7be   :  { %v12542_v15 = vpop.permute.xlu1 %2539 }
 0x7bf   :  { %9926 = vmatmul.mubr.msk.bf16.vlgmr.msra.gmra.mrb[36].mxu1 %vm514_vm1, %v2082_v35 }
 0x7c0   :  { %9938 = vmatpush3.bf16.msra.mxu1 %v2418_v44 }
 0x7c1   :  { %9939 = vmatprep.subr.bf16.mxu1 %v2420_v55 }
 0x7c4   :  { %9932 = vmatpush3.bf16.xpose.msra.mxu0 %v2166_v19  ;;  %9940 = vmatpush3.bf16.msra.mxu1 %v2420_v55 }
 0x7c5   :  { %9945 = vmatprep.subr.bf16.mxu0 %v2479_v28  ;;  %9953 = vmatprep.subr.bf16.mxu1 %v12542_v15 }
 0x7cb   :  { %9934 = vmatmul.mubr.msk.bf16.vlgmr.msra.gmra.mrb[52].mxu0 %vm514_vm1, %v2151_v43 }
 0x7cc   :  { %9946 = vmatpush3.bf16.msra.mxu0 %v2479_v28 }
 0x7cd   :  { %9947 = vmatprep.subr.bf16.mxu0 %v2481_v23 }
 0x7d0   :  { %9948 = vmatpush3.bf16.msra.mxu0 %v2481_v23 }
 0x831   :  { %v12546_v38 = vpop.f32.mrb[24].mxu1 }
 0x832   :  { %v12548_v17 = vpop.f32.mrb[25].mxu1 }
 0x833   :  { %v12550_v9 = vpop.f32.mrb[26].mxu1 }
 0x834   :  { %v12554_v49 = vpop.f32.mrb[27].mxu1 }
 0x86e   :  { %v12558_v51 = vpop.f32.mrb[40].mxu0 }
 0x86f   :  { %v12560_v45 = vpop.f32.mrb[41].mxu0 }
 0x870   :  { %v12562_v13 = vpop.f32.mrb[42].mxu0 }
 0x871   :  { %v12566_v29 = vpop.f32.mrb[43].mxu0 }
 0x872   :  { %v12570_v39 = vpop.f32.mrb[28].mxu1 }
 0x873   :  { %v12572_v40 = vpop.f32.mrb[29].mxu1 }
 0x874   :  { %v12574_v46 = vpop.f32.mrb[30].mxu1 }
 0x875   :  { %v12578_v14 = vpop.f32.mrb[31].mxu1 }
 0x87e   :  { %v12582_v48 = vpop.f32.mrb[44].mxu0 }
 0x87f   :  { %v12584_v59 = vpop.f32.mrb[45].mxu0 }
 0x880   :  { %v12586_v3 = vpop.f32.mrb[46].mxu0 }
 0x881   :  { %v12590_v4 = vpop.f32.mrb[47].mxu0 }
 0x882   :  { %v9911_v34 = vpop.f32.mrb[32].mxu1 }
 0x883   :  { %v12594_v35 = vmul.f32 0.35355338, %v9911_v34  ;;  %v1995_v21 = vpop.f32.mrb[33].mxu1 }
 0x884   :  { %v9912_v41 = vpop.f32.mrb[34].mxu1  ;;  %v12596_v1 = vmul.f32 0.35355338, %v1995_v21 }
 0x885   :  { %v1998_v24 = vpop.f32.mrb[35].mxu1  ;;  %v2239_v42 = vsel %vm101_vm0, %v12594_v35, -inf  ;;  %v12604_v43 = vmul.f32 0.35355338, %v9912_v41 }
 0x886   :  { %v12600_v36 = vmul.f32 0.35355338, %v1998_v24  ;;  %2240 = vmax.xlane.f32.xlu0 %v2239_v42  ;;  %v2233_v18 = vsel %vm101_vm0, %v12596_v1, -inf }
 0x887   :  { %v2242_v55 = vsel %vm101_vm0, %v12604_v43, -inf }
 0x888   :  { %v2236_v44 = vsel %vm101_vm0, %v12600_v36, -inf }
 0x889   :  { %2237 = vmax.xlane.f32.xlu1 %v2236_v44 }
 0x88a   :  { %2234 = vmax.xlane.f32.xlu0 %v2233_v18 }
 0x88e   :  { %2243 = vmax.xlane.f32.xlu0 %v2242_v55  ;;  %v9919_v19 = vpop.f32.mrb[48].mxu0 }
 0x88f   :  { %v12610_v28 = vmul.f32 0.35355338, %v9919_v19  ;;  %v2064_v23 = vpop.f32.mrb[49].mxu0 }
 0x890   :  { %v9920_v34 = vpop.f32.mrb[50].mxu0  ;;  %v12620_v19 = vmul.f32 0.35355338, %v2064_v23 }
 0x891   :  { %v12612_v21 = vmul.f32 0.35355338, %v9920_v34  ;;  %v2067_v24 = vpop.f32.mrb[51].mxu0  ;;  %v2251_v41 = vsel %vm101_vm0, %v12610_v28, -inf }
 0x892   :  { %2252 = vmax.xlane.f32.xlu0 %v2251_v41  ;;  %v9927_v42 = vpop.f32.mrb[36].mxu1  ;;  %v12626_v52 = vmul.f32 0.35355338, %v2067_v24 }
 0x893   :  { %v12616_v44 = vmul.f32 0.35355338, %v9927_v42  ;;  %v2133_v18 = vpop.f32.mrb[37].mxu1  ;;  %v2254_v47 = vsel %vm101_vm0, %v12612_v21, -inf }
 0x894   :  { %2255 = vmax.xlane.f32.xlu1 %v2254_v47  ;;  %v9928_v55 = vpop.f32.mrb[38].mxu1  ;;  %v12630_v42 = vmul.f32 0.35355338, %v2133_v18  ;;  %v2245_v47 = vsel %vm101_vm0, %v12620_v19, -inf }
 0x895   :  { %v12622_v62 = vmul.f32 0.35355338, %v9928_v55  ;;  %v2136_v34 = vpop.f32.mrb[39].mxu1  ;;  %v2263_v57 = vsel %vm101_vm0, %v12616_v44, -inf  ;;  %v2248_v55 = vsel %vm101_vm0, %v12626_v52, -inf }
 0x896   :  { %2264 = vmax.xlane.f32.xlu0 %v2263_v57  ;;  %v12634_v23 = vmul.f32 0.35355338, %v2136_v34  ;;  %v2257_v57 = vsel %vm101_vm0, %v12630_v42, -inf }
 0x897   :  { %v2266_v41 = vsel %vm101_vm0, %v12622_v62, -inf }
 0x898   :  { %2267 = vmax.xlane.f32.xlu1 %v2266_v41  ;;  %v2260_v18 = vsel %vm101_vm0, %v12634_v23, -inf }
 0x89a   :  { %2246 = vmax.xlane.f32.xlu0 %v2245_v47 }
 0x89c   :  { %2249 = vmax.xlane.f32.xlu1 %v2248_v55 }
 0x89e   :  { %2258 = vmax.xlane.f32.xlu0 %v2257_v57  ;;  %v9935_v24 = vpop.f32.mrb[52].mxu0 }
 0x89f   :  { %v12640_v50 = vmul.f32 0.35355338, %v9935_v24  ;;  %v2202_v41 = vpop.f32.mrb[53].mxu0 }
 0x8a0   :  { %2261 = vmax.xlane.f32.xlu1 %v2260_v18  ;;  %v9936_v54 = vpop.f32.mrb[54].mxu0  ;;  %v12644_v47 = vmul.f32 0.35355338, %v2202_v41  ;;  %v12662_v18 = vpop.permute.xlu1 %2541 }
 0x8a1   :  { %v2205_v34 = vpop.f32.mrb[55].mxu0  ;;  %v2275_v0 = vsel %vm101_vm0, %v12640_v50, -inf  ;;  %v12654_v57 = vmul.f32 0.35355338, %v9936_v54 }
 0x8a2   :  { %2276 = vmax.xlane.f32.xlu0 %v2275_v0  ;;  %v2269_v55 = vsel %vm101_vm0, %v12644_v47, -inf  ;;  %v12656_v24 = vmul.f32 0.35355338, %v2205_v34 }
 0x8a3   :  { %v2278_v41 = vsel %vm101_vm0, %v12654_v57, -inf }
 0x8a4   :  { %v2272_v0 = vsel %vm101_vm0, %v12656_v24, -inf }
 0x8a6   :  { %2270 = vmax.xlane.f32.xlu0 %v2269_v55 }
 0x8b1   :  { %2602 = vrot.lane.b32.xlu1 %v11939_v27, %s11575_s16 }
 0x8bc   :  { %2600 = vrot.lane.b32.xlu0 %v11941_v30, %s11575_s16 }
 0x8d5   :  { %2279 = vmax.xlane.f32.xlu1 %v2278_v41 }
 0x8d9   :  { %2273 = vmax.xlane.f32.xlu1 %v2272_v0 }
 0x913   :  { %v2241_v55 = vpop.xlane.xlu0 %2240 }
 0x914   :  { %v2283_v61 = vsub.f32 %v12594_v35, %v2241_v55 }
 0x916   :  { %v2301_v5 = vmul.f32 1.442695, %v2283_v61  ;;  %v2238_v53 = vpop.xlane.xlu1 %2237 }
 0x917   :  { %v2235_v26 = vpop.xlane.xlu0 %2234  ;;  %v2282_v34 = vsub.f32 %v12600_v36, %v2238_v53 }
 0x918   :  { %10962 = vpow2.f32 %v2301_v5  ;;  %v2281_v54 = vsub.f32 %v12596_v1, %v2235_v26 }
 0x919   :  { %v2299_v11 = vmul.f32 1.442695, %v2282_v34 }
 0x91a   :  { %v2297_v32 = vmul.f32 1.442695, %v2281_v54 }
 0x91b   :  { %v2244_v25 = vpop.xlane.xlu0 %2243 }
 0x91c   :  { %10964 = vpow2.f32 %v2297_v32  ;;  %v2284_v41 = vsub.f32 %v12604_v43, %v2244_v25 }
 0x91e   :  { %v2303_v0 = vmul.f32 1.442695, %v2284_v41 }
 0x91f   :  { %v2253_v12 = vpop.xlane.xlu0 %2252 }
 0x920   :  { %10966 = vpow2.f32 %v2303_v0  ;;  %v2287_v31 = vsub.f32 %v12610_v28, %v2253_v12 }
 0x921   :  { %10968 = vpow2.f32 %v2299_v11 }
 0x922   :  { %v12669_v35 = vpop.eup %10962  ;;  %v2309_v61 = vmul.f32 1.442695, %v2287_v31 }
 0x923   :  { %v2265_v5 = vpop.xlane.xlu0 %2264  ;;  %v2335_v26 = vsel %vm101_vm0, %v12669_v35, 0.0 }
 0x924   :  { %10970 = vpow2.f32 %v2309_v61  ;;  %v2291_v53 = vsub.f32 %v12616_v44, %v2265_v5  ;;  %2336 = vadd.xlane.f32.xlu0 %v2335_v26 }
 0x926   :  { %v12674_v32 = vpop.eup %10964  ;;  %v2317_v25 = vmul.f32 1.442695, %v2291_v53 }
 0x927   :  { %v2247_v1 = vpop.xlane.xlu0 %2246  ;;  %v2329_v36 = vsel %vm101_vm0, %v12674_v32, 0.0 }
 0x928   :  { %10972 = vpow2.f32 %v2317_v25  ;;  %v2285_v12 = vsub.f32 %v12620_v19, %v2247_v1  ;;  %2330 = vadd.xlane.f32.xlu0 %v2329_v36 }
 0x92a   :  { %v12679_v31 = vpop.eup %10966  ;;  %v2305_v11 = vmul.f32 1.442695, %v2285_v12  ;;  %v2256_v12 = vpop.xlane.xlu1 %2255 }
 0x92b   :  { %v2259_v43 = vpop.xlane.xlu0 %2258  ;;  %v2338_v28 = vsel %vm101_vm0, %v12679_v31, 0.0  ;;  %v12683_v44 = vpop.eup %10968 }
 0x92c   :  { %10974 = vpow2.f32 %v2305_v11  ;;  %v2289_v55 = vsub.f32 %v12630_v42, %v2259_v43  ;;  %2339 = vadd.xlane.f32.xlu1 %v2338_v28  ;;  %v2332_v19 = vsel %vm101_vm0, %v12683_v44, 0.0  ;;  %v2288_v43 = vsub.f32 %v12612_v21, %v2256_v12 }
 0x92e   :  { %v12686_v54 = vpop.eup %10970  ;;  %v2313_v34 = vmul.f32 1.442695, %v2289_v55  ;;  %v2268_v11 = vpop.xlane.xlu1 %2267  ;;  %v2311_v55 = vmul.f32 1.442695, %v2288_v43 }
 0x92f   :  { %v2277_v41 = vpop.xlane.xlu0 %2276  ;;  %v2347_v0 = vsel %vm101_vm0, %v12686_v54, 0.0 }
 0x930   :  { %10976 = vpow2.f32 %v2313_v34  ;;  %2333 = vadd.xlane.f32.xlu1 %v2332_v19  ;;  %2348 = vadd.xlane.f32.xlu0 %v2347_v0  ;;  %v2292_v34 = vsub.f32 %v12622_v62, %v2268_v11  ;;  %v2295_v12 = vsub.f32 %v12640_v50, %v2277_v41 }
 0x931   :  { %10978 = vpow2.f32 %v2311_v55 }
 0x932   :  { %v12692_v61 = vpop.eup %10972  ;;  %v2250_v28 = vpop.xlane.xlu1 %2249  ;;  %v2319_v19 = vmul.f32 1.442695, %v2292_v34  ;;  %v2325_v11 = vmul.f32 1.442695, %v2295_v12 }
 0x933   :  { %v2271_v5 = vpop.xlane.xlu0 %2270  ;;  %v2359_v42 = vsel %vm101_vm0, %v12692_v61, 0.0  ;;  %v2286_v0 = vsub.f32 %v12626_v52, %v2250_v28 }
 0x934   :  { %2360 = vadd.xlane.f32.xlu0 %v2359_v42  ;;  %10980 = vpow2.f32 %v2319_v19  ;;  %v2293_v58 = vsub.f32 %v12644_v47, %v2271_v5 }
 0x936   :  { %v12696_v26 = vpop.eup %10974  ;;  %v2262_v42 = vpop.xlane.xlu1 %2261  ;;  %v2321_v43 = vmul.f32 1.442695, %v2293_v58 }
 0x937   :  { %v12698_v53 = vpop.permute.xlu0 %2600  ;;  %v2341_v25 = vsel %vm101_vm0, %v12696_v26, 0.0 }
 0x938   :  { %2342 = vadd.xlane.f32.xlu0 %v2341_v25  ;;  %9961 = vmatprep.subr.bf16.mxu0 %v12698_v53  ;;  %v2290_v25 = vsub.f32 %v12634_v23, %v2262_v42 }
 0x93a   :  { %v12703_v1 = vpop.eup %10976  ;;  %v2315_v63 = vmul.f32 1.442695, %v2290_v25  ;;  %v12716_v21 = vpop.permute.xlu1 %2602 }
 0x93b   :  { %v2353_v36 = vsel %vm101_vm0, %v12703_v1, 0.0  ;;  %v12719_v37 = vpop.eup %10978 }
 0x93c   :  { %2354 = vadd.xlane.f32.xlu0 %v2353_v36  ;;  %v2307_v36 = vmul.f32 1.442695, %v2286_v0  ;;  %v2350_v23 = vsel %vm101_vm0, %v12719_v37, 0.0 }
 0x93e   :  { %10982 = vpow2.f32 %v2307_v36  ;;  %v12724_v28 = vpop.eup %10980 }
 0x93f   :  { %10984 = vpow2.f32 %v2315_v63  ;;  %v2362_v58 = vsel %vm101_vm0, %v12724_v28, 0.0 }
 0x940   :  { %10986 = vpow2.f32 %v2321_v43 }
 0x941   :  { %2667 = vrot.lane.b32.xlu1 %v11911_v6, %s11576_s21  ;;  %10988 = vpow2.f32 %v2325_v11 }
 0x948   :  { %v12729_v63 = vpop.eup %10982 }
 0x949   :  { %v2344_v55 = vsel %vm101_vm0, %v12729_v63, 0.0 }
 0x952   :  { %2665 = vrot.lane.b32.xlu0 %v11913_v7, %s11576_s21 }
 0x962   :  { %v2280_v62 = vpop.xlane.xlu1 %2279 }
 0x963   :  { %v2296_v52 = vsub.f32 %v12654_v57, %v2280_v62  ;;  %v12731_v57 = vpop.eup %10984 }
 0x964   :  { %v12735_v34 = vpop.eup %10986 }
 0x965   :  { %2351 = vadd.xlane.f32.xlu1 %v2350_v23  ;;  %v2327_v5 = vmul.f32 1.442695, %v2296_v52  ;;  %v2365_v19 = vsel %vm101_vm0, %v12735_v34, 0.0  ;;  %v12741_v0 = vpop.eup %10988 }
 0x966   :  { %v2274_v47 = vpop.xlane.xlu1 %2273  ;;  %v2371_v42 = vsel %vm101_vm0, %v12741_v0, 0.0 }
 0x967   :  { %v2294_v50 = vsub.f32 %v12656_v24, %v2274_v47  ;;  %10990 = vpow2.f32 %v2327_v5  ;;  %v2356_v24 = vsel %vm101_vm0, %v12731_v57, 0.0 }
 0x969   :  { %2363 = vadd.xlane.f32.xlu1 %v2362_v58  ;;  %v2323_v41 = vmul.f32 1.442695, %v2294_v50 }
 0x96b   :  { %10992 = vpow2.f32 %v2323_v41 }
 0x96d   :  { %2345 = vadd.xlane.f32.xlu1 %v2344_v55 }
 0x971   :  { %2357 = vadd.xlane.f32.xlu1 %v2356_v24  ;;  %2366 = vadd.xlane.f32.xlu0 %v2365_v19  ;;  %v12745_v25 = vpop.eup %10990 }
 0x972   :  { %v2374_v36 = vsel %vm101_vm0, %v12745_v25, 0.0 }
 0x975   :  { %2372 = vadd.xlane.f32.xlu1 %v2371_v42  ;;  %v12749_v12 = vpop.eup %10992 }
 0x976   :  { %v2368_v43 = vsel %vm101_vm0, %v12749_v12, 0.0 }
 0x979   :  { %2375 = vadd.xlane.f32.xlu1 %v2374_v36 }
 0x97d   :  { %2369 = vadd.xlane.f32.xlu1 %v2368_v43 }
 0x987   :  { %2734 = vrot.lane.b32.xlu0 %v11923_v16, %s11576_s21 }
 0x98b   :  { %2663 = vrot.lane.b32.xlu0 %v11911_v6, %s11577_s23 }
 0x98e   :  { %2661 = vrot.lane.b32.xlu1 %v11913_v7, %s11577_s23 }
 0x98f   :  { %2803 = vrot.lane.b32.xlu0 %v11931_v22, %s11576_s21 }
 0x992   :  { %2736 = vrot.lane.b32.xlu1 %v11921_v8, %s11576_s21 }
 0x993   :  { %2732 = vrot.lane.b32.xlu0 %v11921_v8, %s11577_s23 }
 0x996   :  { %2730 = vrot.lane.b32.xlu1 %v11923_v16, %s11577_s23 }
 0x997   :  { %2872 = vrot.lane.b32.xlu0 %v11941_v30, %s11576_s21 }
 0x99a   :  { %2805 = vrot.lane.b32.xlu1 %v11929_v20, %s11576_s21 }
 0x99b   :  { %2801 = vrot.lane.b32.xlu0 %v11929_v20, %s11577_s23 }
 0x99e   :  { %2799 = vrot.lane.b32.xlu1 %v11931_v22, %s11577_s23 }
 0x99f   :  { %2868 = vrot.lane.b32.xlu0 %v11941_v30, %s11577_s23 }
 0x9a2   :  { %2874 = vrot.lane.b32.xlu1 %v11939_v27, %s11576_s21 }
 0x9a3   :  { %3137 = vrot.lane.b32.xlu0 %v11913_v7, %s15680_s24 }
 0x9a6   :  { %2870 = vrot.lane.b32.xlu1 %v11939_v27, %s11577_s23 }
 0x9a7   :  { %3198 = vrot.lane.b32.xlu0 %v11923_v16, %s15680_s24 }
 0x9aa   :  { %3139 = vrot.lane.b32.xlu1 %v11911_v6, %s15680_s24 }
 0x9b1   :  { %v2337_v62 = vpop.xlane.xlu0 %2336 }
 0x9b5   :  { %v2331_v11 = vpop.xlane.xlu0 %2330 }
 0x9b9   :  { %v2340_v52 = vpop.xlane.xlu1 %2339 }
 0x9ba   :  { %10994 = vrcp.f32 %v2340_v52 }
 0x9bb   :  { %10996 = vrcp.f32 %v2331_v11 }
 0x9bc   :  { %10998 = vrcp.f32 %v2337_v62 }
 0x9bd   :  { %v2334_v23 = vpop.xlane.xlu1 %2333  ;;  %v2349_v47 = vpop.xlane.xlu0 %2348 }
 0x9be   :  { %11000 = vrcp.f32 %v2334_v23 }
 0x9c1   :  { %v2361_v5 = vpop.xlane.xlu0 %2360 }
 0x9c4   :  { %v10995_v7 = vpop.eup %10994 }
 0x9c5   :  { %v10997_v50 = vpop.eup %10996  ;;  %v2343_v41 = vpop.xlane.xlu0 %2342  ;;  %v2396_v16 = vmul.f32 %v10995_v7, %v12679_v31 }
 0x9c6   :  { %v10999_v58 = vpop.eup %10998  ;;  %v2393_v24 = vmul.f32 %v10997_v50, %v12674_v32  ;;  %v12797_v32 = vpop.permute.xlu1 %2667 }
 0x9c7   :  { %v2395_v19 = vmul.f32 %v10999_v58, %v12669_v35 }
 0x9c8   :  { %v11001_v55 = vpop.eup %11000 }
 0x9c9   :  { %v2394_v6 = vmul.f32 %v11001_v55, %v12683_v44  ;;  %v2410_v36 = vpack.c.bf16 %v2396_v16, %v2395_v19  ;;  %v2355_v43 = vpop.xlane.xlu0 %2354 }
 0x9cb   :  { %v2409_v42 = vpack.c.bf16 %v2394_v6, %v2393_v24 }
 0x9cd   :  { %9941 = vmatprep.mubr.msk.bf16.mxu1 %vm101_vm0, %v2409_v42  ;;  %v2666_v62 = vpop.permute.xlu0 %2665 }
 0x9ce   :  { %9942 = vmatmul.mubr.msk.bf16.vlgmr.msra.gmra.mrb[40].mxu1 %vm101_vm0, %v2410_v36 }
 0x9cf   :  { %9954 = vmatpush3.bf16.msra.mxu1 %v12542_v15 }
 0x9d0   :  { %9955 = vmatprep.subr.bf16.mxu1 %v12662_v18 }
 0x9d3   :  { %9956 = vmatpush3.bf16.msra.mxu1 %v12662_v18 }
 0x9d4   :  { %10481 = vmatprep.subr.msk.bf16.mxu1 %vm514_vm1, %v2666_v62 }
 0x9f2   :  { %v2352_v31 = vpop.xlane.xlu1 %2351 }
 0x9f3   :  { %11002 = vrcp.f32 %v2352_v31 }
 0x9f4   :  { %11004 = vrcp.f32 %v2343_v41 }
 0x9f5   :  { %11006 = vrcp.f32 %v2349_v47 }
 0x9f6   :  { %v2364_v35 = vpop.xlane.xlu1 %2363 }
 0x9fa   :  { %v2346_v44 = vpop.xlane.xlu1 %2345 }
 0x9fb   :  { %11008 = vrcp.f32 %v2346_v44 }
 0x9fc   :  { %11010 = vrcp.f32 %v2364_v35 }
 0x9fd   :  { %11012 = vrcp.f32 %v2355_v43  ;;  %v11003_v52 = vpop.eup %11002 }
 0x9fe   :  { %11014 = vrcp.f32 %v2361_v5  ;;  %v2358_v15 = vpop.xlane.xlu1 %2357  ;;  %v2367_v11 = vpop.xlane.xlu0 %2366  ;;  %v2400_v55 = vmul.f32 %v11003_v52, %v12719_v37 }
 0x9ff   :  { %11016 = vrcp.f32 %v2358_v15  ;;  %v11005_v7 = vpop.eup %11004 }
 0xa00   :  { %v11007_v50 = vpop.eup %11006  ;;  %v2397_v47 = vmul.f32 %v11005_v7, %v12696_v26 }
 0xa01   :  { %v2399_v5 = vmul.f32 %v11007_v50, %v12686_v54 }
 0xa02   :  { %v2373_v23 = vpop.xlane.xlu1 %2372  ;;  %v2735_v18 = vpop.permute.xlu0 %2734 }
 0xa03   :  { %v2412_v35 = vpack.c.bf16 %v2400_v55, %v2399_v5 }
 0xa05   :  { %v11009_v58 = vpop.eup %11008 }
 0xa06   :  { %v11011_v16 = vpop.eup %11010  ;;  %v2376_v24 = vpop.xlane.xlu1 %2375  ;;  %v2398_v6 = vmul.f32 %v11009_v58, %v12729_v63 }
 0xa07   :  { %v2664_v41 = vpop.permute.xlu0 %2663  ;;  %v11013_v19 = vpop.eup %11012  ;;  %11018 = vrcp.f32 %v2376_v24  ;;  %v2404_v31 = vmul.f32 %v11011_v16, %v12724_v28  ;;  %v2679_v24 = vsel %vm514_vm1, %v12797_v32, 0 }
 0xa08   :  { %v11015_v42 = vpop.eup %11014  ;;  %v2411_v36 = vpack.c.bf16 %v2398_v6, %v2397_v47  ;;  %11020 = vrcp.f32 %v2367_v11  ;;  %v2401_v26 = vmul.f32 %v11013_v19, %v12703_v1  ;;  %v2676_v1 = vsel %vm514_vm1, %v2666_v62, 0 }
 0xa09   :  { %v11017_v43 = vpop.eup %11016  ;;  %11022 = vrcp.f32 %v2373_v23  ;;  %v2403_v15 = vmul.f32 %v11015_v42, %v12692_v61 }
 0xa0a   :  { %v2370_v37 = vpop.xlane.xlu1 %2369  ;;  %9949 = vmatprep.mubr.msk.bf16.mxu0 %vm101_vm0, %v2411_v36  ;;  %v2402_v63 = vmul.f32 %v11017_v43, %v12731_v57 }
 0xa0b   :  { %v2804_v44 = vpop.permute.xlu0 %2803  ;;  %11024 = vrcp.f32 %v2370_v37  ;;  %9950 = vmatmul.mubr.msk.bf16.vlgmr.msra.gmra.mrb[56].mxu0 %vm101_vm0, %v2412_v35  ;;  %v2414_v28 = vpack.c.bf16 %v2404_v31, %v2403_v15 }
 0xa0c   :  { %9962 = vmatpush3.bf16.msra.mxu0 %v12698_v53  ;;  %v2413_v54 = vpack.c.bf16 %v2402_v63, %v2401_v26 }
 0xa0d   :  { %9963 = vmatprep.subr.bf16.mxu0 %v12716_v21 }
 0xa0e   :  { %v2662_v11 = vpop.permute.xlu1 %2661  ;;  %9957 = vmatprep.mubr.msk.bf16.mxu1 %vm101_vm0, %v2413_v54 }
 0xa0f   :  { %9958 = vmatmul.mubr.msk.bf16.vlgmr.msra.gmra.mrb[44].mxu1 %vm101_vm0, %v2414_v28  ;;  %v2733_v52 = vpop.permute.xlu0 %2732 }
 0xa10   :  { %9964 = vmatpush3.bf16.msra.mxu0 %v12716_v21  ;;  %9970 = vmatpush3.bf16.xpose.msra.mxu1 %v2676_v1 }
 0xa11   :  { %10482 = vmatprep.subr.msk.bf16.mxu1 %vm514_vm1, %v12797_v32  ;;  %9973 = vmatprep.mubr.msk.bf16.mxu1 %vm514_vm1, %v2662_v11  ;;  %v11019_v61 = vpop.eup %11018 }
 0xa12   :  { %10483 = vmatprep.subr.msk.bf16.mxu0 %vm514_vm1, %v2735_v18  ;;  %v2737_v53 = vpop.permute.xlu1 %2736  ;;  %v11021_v57 = vpop.eup %11020  ;;  %v2408_v50 = vmul.f32 %v11019_v61, %v12745_v25  ;;  %v2745_v25 = vsel %vm514_vm1, %v2735_v18, 0 }
 0xa13   :  { %v11023_v23 = vpop.eup %11022  ;;  %v2873_v58 = vpop.permute.xlu0 %2872  ;;  %v2405_v55 = vmul.f32 %v11021_v57, %v12735_v34  ;;  %v2748_v5 = vsel %vm514_vm1, %v2737_v53, 0 }
 0xa14   :  { %v2407_v16 = vmul.f32 %v11023_v23, %v12741_v0  ;;  %v2883_v43 = vsel %vm514_vm1, %v2873_v58, 0 }
 0xa15   :  { %v11025_v7 = vpop.eup %11024 }
 0xa16   :  { %v2731_v62 = vpop.permute.xlu1 %2730  ;;  %v2406_v21 = vmul.f32 %v11025_v7, %v12749_v12  ;;  %v2416_v6 = vpack.c.bf16 %v2408_v50, %v2407_v16  ;;  %v2814_v12 = vsel %vm514_vm1, %v2804_v44, 0 }
 0xa17   :  { %v2802_v34 = vpop.permute.xlu0 %2801 }
 0xa18   :  { %9972 = vmatpush3.bf16.xpose.msra.mxu1 %v2679_v24  ;;  %v2415_v47 = vpack.c.bf16 %v2406_v21, %v2405_v55 }
 0xa19   :  { %10485 = vmatprep.subr.msk.bf16.mxu1 %vm514_vm1, %v2804_v44 }
 0xa1a   :  { %v2806_v19 = vpop.permute.xlu1 %2805  ;;  %9965 = vmatprep.mubr.msk.bf16.mxu0 %vm101_vm0, %v2415_v47 }
 0xa1b   :  { %9966 = vmatmul.mubr.msk.bf16.vlgmr.msra.gmra.mrb[60].mxu0 %vm101_vm0, %v2416_v6  ;;  %v2869_v32 = vpop.permute.xlu0 %2868  ;;  %v2817_v42 = vsel %vm514_vm1, %v2806_v19, 0 }
 0xa1c   :  { %9978 = vmatpush3.bf16.xpose.msra.mxu0 %v2745_v25  ;;  %9981 = vmatprep.mubr.msk.bf16.mxu0 %vm514_vm1, %v2731_v62 }
 0xa1d   :  { %10484 = vmatprep.subr.msk.bf16.mxu0 %vm514_vm1, %v2737_v53 }
 0xa1e   :  { %v2800_v0 = vpop.permute.xlu1 %2799 }
 0xa1f   :  { %9974 = vmatmul.mubr.msk.bf16.vlgmr.msra.gmra.mrb[48].mxu1 %vm514_vm1, %v2664_v41  ;;  %v3138_v36 = vpop.permute.xlu0 %3137 }
 0xa20   :  { %9986 = vmatpush3.bf16.xpose.msra.mxu1 %v2814_v12  ;;  %9989 = vmatprep.mubr.msk.bf16.mxu1 %vm514_vm1, %v2800_v0 }
 0xa21   :  { %10486 = vmatprep.subr.msk.bf16.mxu1 %vm514_vm1, %v2806_v19 }
 0xa22   :  { %v2875_v18 = vpop.permute.xlu1 %2874 }
 0xa23   :  { %v2886_v35 = vsel %vm514_vm1, %v2875_v18, 0  ;;  %v3199_v37 = vpop.permute.xlu0 %3198 }
 0xa24   :  { %9980 = vmatpush3.bf16.xpose.msra.mxu0 %v2748_v5 }
 0xa25   :  { %10487 = vmatprep.subr.msk.bf16.mxu0 %vm514_vm1, %v2873_v58 }
 0xa26   :  { %v2871_v41 = vpop.permute.xlu1 %2870 }
 0xa28   :  { %9988 = vmatpush3.bf16.xpose.msra.mxu1 %v2817_v42 }
 0xa29   :  { %10001 = vmatprep.subr.bf16.mxu1 %v3138_v36 }
 0xa2a   :  { %v3140_v31 = vpop.permute.xlu1 %3139 }
 0xa2b   :  { %9982 = vmatmul.mubr.msk.bf16.vlgmr.msra.gmra.mrb[64].mxu0 %vm514_vm1, %v2733_v52 }
 0xa2c   :  { %9994 = vmatpush3.bf16.xpose.msra.mxu0 %v2883_v43  ;;  %9997 = vmatprep.mubr.msk.bf16.mxu0 %vm514_vm1, %v2869_v32 }
 0xa2d   :  { %10488 = vmatprep.subr.msk.bf16.mxu0 %vm514_vm1, %v2875_v18 }
 0xa2f   :  { %9990 = vmatmul.mubr.msk.bf16.vlgmr.msra.gmra.mrb[52].mxu1 %vm514_vm1, %v2802_v34 }
 0xa30   :  { %10002 = vmatpush3.bf16.msra.mxu1 %v3138_v36 }
 0xa31   :  { %10003 = vmatprep.subr.bf16.mxu1 %v3140_v31 }
 0xa34   :  { %9996 = vmatpush3.bf16.xpose.msra.mxu0 %v2886_v35  ;;  %10004 = vmatpush3.bf16.msra.mxu1 %v3140_v31 }
 0xa35   :  { %10009 = vmatprep.subr.bf16.mxu0 %v3199_v37 }
 0xa3b   :  { %9998 = vmatmul.mubr.msk.bf16.vlgmr.msra.gmra.mrb[68].mxu0 %vm514_vm1, %v2871_v41 }
 0xa3c   :  { %10010 = vmatpush3.bf16.msra.mxu0 %v3199_v37 }
 0xaa1   :  { %v12845_v44 = vpop.f32.mrb[40].mxu1 }
 0xaa2   :  { %v12847_v26 = vpop.f32.mrb[41].mxu1 }
 0xaa3   :  { %v12849_v63 = vpop.f32.mrb[42].mxu1 }
 0xaa4   :  { %v12853_v54 = vpop.f32.mrb[43].mxu1 }
 0xade   :  { %v12857_v11 = vpop.f32.mrb[56].mxu0 }
 0xadf   :  { %v12859_v1 = vpop.f32.mrb[57].mxu0 }
 0xae0   :  { %v12861_v52 = vpop.f32.mrb[58].mxu0 }
 0xae1   :  { %v12865_v53 = vpop.f32.mrb[59].mxu0 }
 0xae2   :  { %v12869_v23 = vpop.f32.mrb[44].mxu1 }
 0xae3   :  { %v12871_v7 = vpop.f32.mrb[45].mxu1 }
 0xae4   :  { %v12873_v50 = vpop.f32.mrb[46].mxu1 }
 0xae5   :  { %v12877_v62 = vpop.f32.mrb[47].mxu1 }
 0xaee   :  { %v12881_v21 = vpop.f32.mrb[60].mxu0 }
 0xaef   :  { %15717 = vst [vmem:[#allocation27_spill] sm:$0xff] %v12881_v21  ;;  %v12883_v16 = vpop.f32.mrb[61].mxu0 }
 0xaf0   :  { %15718 = vst [vmem:[#allocation28_spill] sm:$0xff] %v12883_v16  ;;  %v12885_v24 = vpop.f32.mrb[62].mxu0 }
 0xaf1   :  { %v12889_v6 = vpop.f32.mrb[63].mxu0 }
 0xaf2   :  { %15719 = vst [vmem:[#allocation29_spill] sm:$0xff] %v12889_v6  ;;  %v9975_v25 = vpop.f32.mrb[48].mxu1 }
 0xaf3   :  { %v12893_v34 = vmul.f32 0.35355338, %v9975_v25  ;;  %v2715_v0 = vpop.f32.mrb[49].mxu1 }
 0xaf4   :  { %v9976_v12 = vpop.f32.mrb[50].mxu1  ;;  %v12895_v32 = vmul.f32 0.35355338, %v2715_v0 }
 0xaf5   :  { %v2718_v5 = vpop.f32.mrb[51].mxu1  ;;  %v2959_v18 = vsel %vm101_vm0, %v12893_v34, -inf  ;;  %v12903_v41 = vmul.f32 0.35355338, %v9976_v12 }
 0xaf6   :  { %v12899_v42 = vmul.f32 0.35355338, %v2718_v5  ;;  %2960 = vmax.xlane.f32.xlu0 %v2959_v18  ;;  %v2953_v43 = vsel %vm101_vm0, %v12895_v32, -inf }
 0xaf7   :  { %v2962_v31 = vsel %vm101_vm0, %v12903_v41, -inf }
 0xaf8   :  { %v2956_v36 = vsel %vm101_vm0, %v12899_v42, -inf }
 0xaf9   :  { %2957 = vmax.xlane.f32.xlu1 %v2956_v36 }
 0xafa   :  { %2954 = vmax.xlane.f32.xlu0 %v2953_v43 }
 0xafe   :  { %2963 = vmax.xlane.f32.xlu0 %v2962_v31  ;;  %v9983_v35 = vpop.f32.mrb[64].mxu0 }
 0xaff   :  { %v12909_v37 = vmul.f32 0.35355338, %v9983_v35  ;;  %v2784_v25 = vpop.f32.mrb[65].mxu0 }
 0xb00   :  { %v9984_v0 = vpop.f32.mrb[66].mxu0  ;;  %v12919_v35 = vmul.f32 0.35355338, %v2784_v25 }
 0xb01   :  { %v12911_v5 = vmul.f32 0.35355338, %v9984_v0  ;;  %v2787_v18 = vpop.f32.mrb[67].mxu0  ;;  %v2971_v12 = vsel %vm101_vm0, %v12909_v37, -inf }
 0xb02   :  { %2972 = vmax.xlane.f32.xlu0 %v2971_v12  ;;  %v9991_v36 = vpop.f32.mrb[52].mxu1  ;;  %v12925_v61 = vmul.f32 0.35355338, %v2787_v18 }
 0xb03   :  { %v12915_v19 = vmul.f32 0.35355338, %v9991_v36  ;;  %v2853_v43 = vpop.f32.mrb[53].mxu1  ;;  %v2974_v47 = vsel %vm101_vm0, %v12911_v5, -inf }
 0xb04   :  { %2975 = vmax.xlane.f32.xlu1 %v2974_v47  ;;  %v9992_v31 = vpop.f32.mrb[54].mxu1  ;;  %v12929_v36 = vmul.f32 0.35355338, %v2853_v43  ;;  %v2965_v47 = vsel %vm101_vm0, %v12919_v35, -inf }
 0xb05   :  { %v12921_v55 = vmul.f32 0.35355338, %v9992_v31  ;;  %v2856_v0 = vpop.f32.mrb[55].mxu1  ;;  %v2983_v58 = vsel %vm101_vm0, %v12915_v19, -inf  ;;  %v2968_v31 = vsel %vm101_vm0, %v12925_v61, -inf }
 0xb06   :  { %2984 = vmax.xlane.f32.xlu0 %v2983_v58  ;;  %v12933_v25 = vmul.f32 0.35355338, %v2856_v0  ;;  %v2977_v58 = vsel %vm101_vm0, %v12929_v36, -inf }
 0xb07   :  { %v2986_v12 = vsel %vm101_vm0, %v12921_v55, -inf }
 0xb08   :  { %2987 = vmax.xlane.f32.xlu1 %v2986_v12  ;;  %v2980_v43 = vsel %vm101_vm0, %v12933_v25, -inf }
 0xb0a   :  { %2966 = vmax.xlane.f32.xlu0 %v2965_v47 }
 0xb0c   :  { %2969 = vmax.xlane.f32.xlu1 %v2968_v31 }
 0xb0e   :  { %2978 = vmax.xlane.f32.xlu0 %v2977_v58  ;;  %v9999_v18 = vpop.f32.mrb[68].mxu0 }
 0xb0f   :  { %v12939_v15 = vmul.f32 0.35355338, %v9999_v18  ;;  %v2922_v12 = vpop.f32.mrb[69].mxu0 }
 0xb10   :  { %2981 = vmax.xlane.f32.xlu1 %v2980_v43  ;;  %v10000_v57 = vpop.f32.mrb[70].mxu0  ;;  %v12943_v47 = vmul.f32 0.35355338, %v2922_v12 }
 0xb11   :  { %v12945_v0 = vmul.f32 0.35355338, %v10000_v57  ;;  %v2925_v28 = vpop.f32.mrb[71].mxu0  ;;  %v2995_v31 = vsel %vm101_vm0, %v12939_v15, -inf }
 0xb12   :  { %2996 = vmax.xlane.f32.xlu0 %v2995_v31  ;;  %v12949_v2 = vmul.f32 0.35355338, %v2925_v28  ;;  %v2989_v18 = vsel %vm101_vm0, %v12943_v47, -inf }
 0xb13   :  { %v2998_v58 = vsel %vm101_vm0, %v12945_v0, -inf }
 0xb14   :  { %2999 = vmax.xlane.f32.xlu1 %v2998_v58  ;;  %v2992_v12 = vsel %vm101_vm0, %v12949_v2, -inf }
 0xb16   :  { %2990 = vmax.xlane.f32.xlu0 %v2989_v18 }
 0xb18   :  { %2993 = vmax.xlane.f32.xlu1 %v2992_v12 }
 0xb2c   :  { %3200 = vrot.lane.b32.xlu0 %v11921_v8, %s15680_s24 }
 0xb83   :  { %v2961_v57 = vpop.xlane.xlu0 %2960 }
 0xb84   :  { %v3003_v43 = vsub.f32 %v12893_v34, %v2961_v57 }
 0xb86   :  { %v3021_v28 = vmul.f32 1.442695, %v3003_v43  ;;  %v2958_v31 = vpop.xlane.xlu1 %2957 }
 0xb87   :  { %v2955_v10 = vpop.xlane.xlu0 %2954  ;;  %v3002_v33 = vsub.f32 %v12899_v42, %v2958_v31 }
 0xb88   :  { %11026 = vpow2.f32 %v3021_v28  ;;  %v3001_v58 = vsub.f32 %v12895_v32, %v2955_v10 }
 0xb89   :  { %v3019_v12 = vmul.f32 1.442695, %v3002_v33 }
 0xb8a   :  { %v3017_v60 = vmul.f32 1.442695, %v3001_v58 }
 0xb8b   :  { %v2964_v18 = vpop.xlane.xlu0 %2963 }
 0xb8c   :  { %11028 = vpow2.f32 %v3017_v60  ;;  %v3004_v56 = vsub.f32 %v12903_v41, %v2964_v18 }
 0xb8e   :  { %v3023_v16 = vmul.f32 1.442695, %v3004_v56 }
 0xb8f   :  { %v2973_v6 = vpop.xlane.xlu0 %2972 }
 0xb90   :  { %11030 = vpow2.f32 %v3023_v16  ;;  %v3007_v8 = vsub.f32 %v12909_v37, %v2973_v6 }
 0xb91   :  { %11032 = vpow2.f32 %v3019_v12 }
 0xb92   :  { %v12964_v34 = vpop.eup %11026  ;;  %v3029_v57 = vmul.f32 1.442695, %v3007_v8 }
 0xb93   :  { %v2985_v43 = vpop.xlane.xlu0 %2984  ;;  %v3055_v10 = vsel %vm101_vm0, %v12964_v34, 0.0 }
 0xb94   :  { %11034 = vpow2.f32 %v3029_v57  ;;  %v3011_v32 = vsub.f32 %v12915_v19, %v2985_v43  ;;  %3056 = vadd.xlane.f32.xlu0 %v3055_v10 }
 0xb96   :  { %v12969_v60 = vpop.eup %11028  ;;  %v3037_v33 = vmul.f32 1.442695, %v3011_v32 }
 0xb97   :  { %v2967_v56 = vpop.xlane.xlu0 %2966  ;;  %v3049_v16 = vsel %vm101_vm0, %v12969_v60, 0.0 }
 0xb98   :  { %11036 = vpow2.f32 %v3037_v33  ;;  %v3005_v6 = vsub.f32 %v12919_v35, %v2967_v56  ;;  %3050 = vadd.xlane.f32.xlu0 %v3049_v16  ;;  %v2976_v33 = vpop.xlane.xlu1 %2975 }
 0xb99   :  { %v3008_v16 = vsub.f32 %v12911_v5, %v2976_v33 }
 0xb9a   :  { %v12974_v42 = vpop.eup %11030  ;;  %v3025_v41 = vmul.f32 1.442695, %v3005_v6 }
 0xb9b   :  { %v2979_v37 = vpop.xlane.xlu0 %2978  ;;  %v3058_v28 = vsel %vm101_vm0, %v12974_v42, 0.0  ;;  %v12978_v19 = vpop.eup %11032 }
 0xb9c   :  { %11038 = vpow2.f32 %v3025_v41  ;;  %3059 = vadd.xlane.f32.xlu1 %v3058_v28  ;;  %v3052_v18 = vsel %vm101_vm0, %v12978_v19, 0.0  ;;  %v2988_v56 = vpop.xlane.xlu1 %2987  ;;  %v3031_v41 = vmul.f32 1.442695, %v3008_v16 }
 0xb9d   :  { %v3012_v28 = vsub.f32 %v12921_v55, %v2988_v56 }
 0xb9e   :  { %v12980_v31 = vpop.eup %11034  ;;  %11040 = vpow2.f32 %v3031_v41 }
 0xb9f   :  { %v2997_v58 = vpop.xlane.xlu0 %2996  ;;  %v3067_v35 = vsel %vm101_vm0, %v12980_v31, 0.0 }
 0xba0   :  { %3053 = vadd.xlane.f32.xlu1 %v3052_v18  ;;  %3068 = vadd.xlane.f32.xlu0 %v3067_v35  ;;  %v2970_v6 = vpop.xlane.xlu1 %2969  ;;  %v3039_v35 = vmul.f32 1.442695, %v3012_v28  ;;  %v3015_v5 = vsub.f32 %v12939_v15, %v2997_v58 }
 0xba1   :  { %v3006_v18 = vsub.f32 %v12925_v61, %v2970_v6 }
 0xba2   :  { %v12986_v12 = vpop.eup %11036  ;;  %11042 = vpow2.f32 %v3039_v35  ;;  %v3045_v61 = vmul.f32 1.442695, %v3015_v5 }
 0xba3   :  { %v2991_v8 = vpop.xlane.xlu0 %2990  ;;  %v3079_v57 = vsel %vm101_vm0, %v12986_v12, 0.0 }
 0xba4   :  { %3080 = vadd.xlane.f32.xlu0 %v3079_v57  ;;  %v3009_v57 = vsub.f32 %v12929_v36, %v2979_v37  ;;  %v3013_v56 = vsub.f32 %v12943_v47, %v2991_v8 }
 0xba6   :  { %v12990_v43 = vpop.eup %11038  ;;  %v3041_v16 = vmul.f32 1.442695, %v3013_v56  ;;  %v15721_v56 = vpack.i.bf16 %v12853_v54, %v12847_v26 }
 0xba7   :  { %v3201_v10 = vpop.permute.xlu0 %3200  ;;  %v3061_v32 = vsel %vm101_vm0, %v12990_v43, 0.0 }
 0xba8   :  { %3062 = vadd.xlane.f32.xlu0 %v3061_v32  ;;  %10011 = vmatprep.subr.bf16.mxu0 %v3201_v10  ;;  %v3027_v32 = vmul.f32 1.442695, %v3006_v18  ;;  %v13004_v33 = vpop.eup %11040 }
 0xba9   :  { %10012 = vmatpush3.bf16.msra.mxu0 %v3201_v10  ;;  %v2982_v10 = vpop.xlane.xlu1 %2981  ;;  %v3070_v36 = vsel %vm101_vm0, %v13004_v33, 0.0 }
 0xbaa   :  { %v3010_v21 = vsub.f32 %v12933_v25, %v2982_v10  ;;  %11044 = vpow2.f32 %v3027_v32 }
 0xbac   :  { %v13009_v37 = vpop.eup %11042 }
 0xbad   :  { %v3000_v55 = vpop.xlane.xlu1 %2999  ;;  %v3082_v58 = vsel %vm101_vm0, %v13009_v37, 0.0 }
 0xbae   :  { %v3016_v25 = vsub.f32 %v12945_v0, %v3000_v55 }
 0xbb0   :  { %v3047_v47 = vmul.f32 1.442695, %v3016_v25 }
 0xbb1   :  { %3261 = vrot.lane.b32.xlu1 %v11929_v20, %s15680_s24  ;;  %v3033_v20 = vmul.f32 1.442695, %v3009_v57  ;;  %v2994_v15 = vpop.xlane.xlu1 %2993 }
 0xbb2   :  { %v3014_v8 = vsub.f32 %v12949_v2, %v2994_v15 }
 0xbb3   :  { %11046 = vpow2.f32 %v3033_v20 }
 0xbb4   :  { %v3043_v18 = vmul.f32 1.442695, %v3014_v8 }
 0xbbe   :  { %3259 = vrot.lane.b32.xlu0 %v11931_v22, %s15680_s24  ;;  %v3035_v22 = vmul.f32 1.442695, %v3010_v21  ;;  %v13012_v21 = vpop.eup %11044 }
 0xbbf   :  { %v13016_v6 = vpop.eup %11046  ;;  %v3064_v41 = vsel %vm101_vm0, %v13012_v21, 0.0 }
 0xbc0   :  { %11048 = vpow2.f32 %v3035_v22  ;;  %v3073_v0 = vsel %vm101_vm0, %v13016_v6, 0.0 }
 0xbc1   :  { %11050 = vpow2.f32 %v3045_v61  ;;  %v15720_v61 = vpack.i.bf16 %v12554_v49, %v12548_v17  ;;  %v15724_v17 = vpack.i.bf16 %v12550_v9, %v12546_v38  ;;  %v15725_v49 = vpack.i.bf16 %v12578_v14, %v12572_v40 }
 0xbc2   :  { %11052 = vpow2.f32 %v3041_v16  ;;  %v15728_v38 = vpack.i.bf16 %v12861_v52, %v12857_v11  ;;  %v15729_v9 = vpack.i.bf16 %v12574_v46, %v12570_v39 }
 0xbc3   :  { %11054 = vpow2.f32 %v3047_v47 }
 0xbc4   :  { %11056 = vpow2.f32 %v3043_v18 }
 0xbca   :  { %v13023_v28 = vpop.eup %11048 }
 0xbcb   :  { %v3076_v35 = vsel %vm101_vm0, %v13023_v28, 0.0  ;;  %v13027_v57 = vpop.eup %11050 }
 0xbcc   :  { %v3091_v2 = vsel %vm101_vm0, %v13027_v57, 0.0  ;;  %v13031_v10 = vpop.eup %11052 }
 0xbcd   :  { %v3085_v32 = vsel %vm101_vm0, %v13031_v10, 0.0  ;;  %v13035_v20 = vpop.eup %11054 }
 0xbce   :  { %v3094_v22 = vsel %vm101_vm0, %v13035_v20, 0.0  ;;  %v13039_v5 = vpop.eup %11056 }
 0xbcf   :  { %v3088_v55 = vsel %vm101_vm0, %v13039_v5, 0.0 }
 0xbd5   :  { %3071 = vadd.xlane.f32.xlu1 %v3070_v36  ;;  %v15722_v36 = vpack.i.bf16 %v12566_v29, %v12560_v45  ;;  %v15726_v45 = vpack.i.bf16 %v12849_v63, %v12845_v44 }
 0xbd9   :  { %3083 = vadd.xlane.f32.xlu1 %v3082_v58 }
 0xbdd   :  { %3065 = vadd.xlane.f32.xlu1 %v3064_v41  ;;  %3074 = vadd.xlane.f32.xlu0 %v3073_v0 }
 0xbe1   :  { %3077 = vadd.xlane.f32.xlu1 %v3076_v35 }
 0xbe5   :  { %3092 = vadd.xlane.f32.xlu1 %v3091_v2 }
 0xbe9   :  { %3086 = vadd.xlane.f32.xlu1 %v3085_v32 }
 0xbed   :  { %3095 = vadd.xlane.f32.xlu1 %v3094_v22 }
 0xbf1   :  { %3089 = vadd.xlane.f32.xlu1 %v3088_v55 }
 0xbf3   :  { %3320 = vrot.lane.b32.xlu0 %v11941_v30, %s15680_s24  ;;  %v15723_v30 = vpack.i.bf16 %v12865_v53, %v12859_v1 }
 0xbf7   :  { %10541 = vrot.lane.b32.xlu0 %v15720_v61, %s11564_s18 }
 0xbfb   :  { %10551 = vrot.lane.b32.xlu0 %v15721_v56, %s11566_s22 }
 0xbff   :  { %10561 = vrot.lane.b32.xlu0 %v15722_v36, %s11564_s18 }
 0xc02   :  { %3322 = vrot.lane.b32.xlu1 %v11939_v27, %s15680_s24  ;;  %v15727_v27 = vpack.i.bf16 %v12562_v13, %v12558_v51  ;;  %s11579_s24 = smov 24  }
 0xc03   :  { %10571 = vrot.lane.b32.xlu0 %v15723_v30, %s11566_s22 }
 0xc06   :  { %10546 = vrot.lane.b32.xlu1 %v15724_v17, %s11564_s18 }
 0xc07   :  { %10581 = vrot.lane.b32.xlu0 %v15725_v49, %s11564_s18 }
 0xc0a   :  { %10556 = vrot.lane.b32.xlu1 %v15726_v45, %s11566_s22 }
 0xc0e   :  { %10566 = vrot.lane.b32.xlu1 %v15727_v27, %s11564_s18 }
 0xc12   :  { %10576 = vrot.lane.b32.xlu1 %v15728_v38, %s11566_s22 }
 0xc16   :  { %10586 = vrot.lane.b32.xlu1 %v15729_v9, %s11564_s18 }
 0xc21   :  { %v3057_v29 = vpop.xlane.xlu0 %3056 }
 0xc25   :  { %v3051_v40 = vpop.xlane.xlu0 %3050 }
 0xc29   :  { %v3060_v14 = vpop.xlane.xlu1 %3059 }
 0xc2a   :  { %11058 = vrcp.f32 %v3060_v14 }
 0xc2b   :  { %11060 = vrcp.f32 %v3051_v40 }
 0xc2c   :  { %11062 = vrcp.f32 %v3057_v29 }
 0xc2d   :  { %v3054_v44 = vpop.xlane.xlu1 %3053  ;;  %v3069_v26 = vpop.xlane.xlu0 %3068 }
 0xc2e   :  { %11064 = vrcp.f32 %v3054_v44 }
 0xc31   :  { %v3081_v51 = vpop.xlane.xlu0 %3080  ;;  %v3262_v58 = vpop.permute.xlu1 %3261 }
 0xc34   :  { %v11059_v13 = vpop.eup %11058 }
 0xc35   :  { %v3063_v63 = vpop.xlane.xlu0 %3062  ;;  %v11061_v54 = vpop.eup %11060  ;;  %v3116_v52 = vmul.f32 %v11059_v13, %v12974_v42 }
 0xc36   :  { %v11063_v11 = vpop.eup %11062  ;;  %v3113_v39 = vmul.f32 %v11061_v54, %v12969_v60 }
 0xc37   :  { %v3115_v25 = vmul.f32 %v11063_v11, %v12964_v34  ;;  %v10782_v11 = vld [vmem:[%s15659_s2] sm:$0xff]  }
 0xc38   :  { %v11065_v1 = vpop.eup %11064 }
 0xc39   :  { %v3260_v53 = vpop.permute.xlu0 %3259  ;;  %v3114_v46 = vmul.f32 %v11065_v1, %v12978_v19  ;;  %v3130_v15 = vpack.c.bf16 %v3116_v52, %v3115_v25 }
 0xc3a   :  { %10017 = vmatprep.subr.bf16.mxu1 %v3260_v53 }
 0xc3b   :  { %v3129_v16 = vpack.c.bf16 %v3114_v46, %v3113_v39  ;;  %v15730_v39 = vpack.i.bf16 %v12873_v50, %v12869_v23  ;;  %v15731_v46 = vpack.i.bf16 %v12877_v62, %v12871_v7  ;;  %v15732_v7 = vpack.i.bf16 %v12590_v4, %v12584_v59 }
 0xc3c   :  { %v15733_v62 = vpack.i.bf16 %v12586_v3, %v12582_v48 }
 0xc3d   :  { %10005 = vmatprep.mubr.msk.bf16.mxu1 %vm101_vm0, %v3129_v16 }
 0xc3e   :  { %10006 = vmatmul.mubr.msk.bf16.vlgmr.msra.gmra.mrb[56].mxu1 %vm101_vm0, %v3130_v15 }
 0xc3f   :  { %10018 = vmatpush3.bf16.msra.mxu1 %v3260_v53 }
 0xc40   :  { %10019 = vmatprep.subr.bf16.mxu1 %v3262_v58 }
 0xc43   :  { %10020 = vmatpush3.bf16.msra.mxu1 %v3262_v58 }
 0xc44   :  { %10033 = vmatprep.subr.bf16.mxu1 %v10782_v11 }
 0xc62   :  { %v3072_v47 = vpop.xlane.xlu1 %3071 }
 0xc63   :  { %11066 = vrcp.f32 %v3072_v47 }
 0xc64   :  { %11068 = vrcp.f32 %v3063_v63 }
 0xc65   :  { %11070 = vrcp.f32 %v3069_v26 }
 0xc66   :  { %v3084_v42 = vpop.xlane.xlu1 %3083 }
 0xc6a   :  { %v3066_v60 = vpop.xlane.xlu1 %3065  ;;  %v3075_v19 = vpop.xlane.xlu0 %3074 }
 0xc6b   :  { %11072 = vrcp.f32 %v3066_v60 }
 0xc6c   :  { %11074 = vrcp.f32 %v3084_v42 }
 0xc6d   :  { %11076 = vrcp.f32 %v3075_v19  ;;  %v11067_v41 = vpop.eup %11066 }
 0xc6e   :  { %11078 = vrcp.f32 %v3081_v51  ;;  %v3078_v34 = vpop.xlane.xlu1 %3077  ;;  %v3321_v8 = vpop.permute.xlu0 %3320  ;;  %v3120_v32 = vmul.f32 %v11067_v41, %v13004_v33  ;;  %v15734_v41 = vld [vmem:[#allocation27_spill] sm:$0xff] }
 0xc6f   :  { %11080 = vrcp.f32 %v3078_v34  ;;  %10025 = vmatprep.subr.bf16.mxu0 %v3321_v8  ;;  %v11069_v18 = vpop.eup %11068 }
 0xc70   :  { %v11071_v35 = vpop.eup %11070  ;;  %v3117_v61 = vmul.f32 %v11069_v18, %v12990_v43  ;;  %v15736_v18 = vld [vmem:[#allocation29_spill] sm:$0xff] }
 0xc71   :  { %v3119_v30 = vmul.f32 %v11071_v35, %v12980_v31  ;;  %v15737_v35 = vld [vmem:[#allocation28_spill] sm:$0xff] }
 0xc72   :  { %v3093_v0 = vpop.xlane.xlu1 %3092  ;;  %v10542_v3 = vpop.permute.xlu0 %10541 }
 0xc73   :  { %v3132_v38 = vpack.c.bf16 %v3120_v32, %v3119_v30 }
 0xc75   :  { %v11073_v2 = vpop.eup %11072 }
 0xc76   :  { %v11075_v22 = vpop.eup %11074  ;;  %v3087_v55 = vpop.xlane.xlu1 %3086  ;;  %v3118_v56 = vmul.f32 %v11073_v2, %v13012_v21  ;;  %v15738_v2 = vpack.i.bf16 %v15736_v18, %v15737_v35  ;;  %v15745_v35 = vld [vmem:[#allocation16_spill] sm:$0xff] }
 0xc77   :  { %v11077_v36 = vpop.eup %11076  ;;  %v3124_v27 = vmul.f32 %v11075_v22, %v13009_v37 }
 0xc78   :  { %v11079_v17 = vpop.eup %11078  ;;  %v3131_v49 = vpack.c.bf16 %v3118_v56, %v3117_v61  ;;  %v3121_v33 = vmul.f32 %v11077_v36, %v13016_v6 }
 0xc79   :  { %v11081_v45 = vpop.eup %11080  ;;  %v3123_v43 = vmul.f32 %v11079_v17, %v12986_v12 }
 0xc7a   :  { %v3096_v9 = vpop.xlane.xlu1 %3095  ;;  %10013 = vmatprep.mubr.msk.bf16.mxu0 %vm101_vm0, %v3131_v49  ;;  %v3122_v29 = vmul.f32 %v11081_v45, %v13023_v28  ;;  %v10544_v45 = vunpack.i.h.bf16 %v10542_v3 }
 0xc7b   :  { %10014 = vmatmul.mubr.msk.bf16.vlgmr.msra.gmra.mrb[72].mxu0 %vm101_vm0, %v3132_v38  ;;  %11082 = vrcp.f32 %v3096_v9  ;;  %v3134_v21 = vpack.c.bf16 %v3124_v27, %v3123_v43  ;;  %v10543_v27 = vunpack.i.l.bf16 %v10542_v3 }
 0xc7c   :  { %10026 = vmatpush3.bf16.msra.mxu0 %v3321_v8  ;;  %v3133_v31 = vpack.c.bf16 %v3122_v29, %v3121_v33  ;;  %11084 = vrcp.f32 %v3087_v55 }
 0xc7d   :  { %11086 = vrcp.f32 %v3093_v0  ;;  %v15735_v0 = vpack.i.bf16 %v12885_v24, %v15734_v41  ;;  %v10552_v24 = vpop.permute.xlu0 %10551 }
 0xc7e   :  { %v3090_v40 = vpop.xlane.xlu1 %3089  ;;  %10021 = vmatprep.mubr.msk.bf16.mxu1 %vm101_vm0, %v3133_v31 }
 0xc7f   :  { %11088 = vrcp.f32 %v3090_v40  ;;  %10022 = vmatmul.mubr.msk.bf16.vlgmr.msra.gmra.mrb[60].mxu1 %vm101_vm0, %v3134_v21  ;;  %v10554_v21 = vunpack.i.h.bf16 %v10552_v24  ;;  %v10553_v40 = vunpack.i.l.bf16 %v10552_v24 }
 0xc80   :  { %10034 = vmatpush3.bf16.msra.mxu1 %v10782_v11 }
 0xc81   :  { %v10562_v30 = vpop.permute.xlu0 %10561 }
 0xc82   :  { %v3323_v37 = vpop.permute.xlu1 %3322 }
 0xc83   :  { %10027 = vmatprep.subr.bf16.mxu0 %v3323_v37 }
 0xc84   :  { %10028 = vmatpush3.bf16.msra.mxu0 %v3323_v37  ;;  %v15739_v37 = vld [vmem:[#allocation14_spill] sm:$0xff] }
 0xc85   :  { %v11083_v6 = vpop.eup %11082  ;;  %v13149_v49 = vpop.permute.xlu0 %10571 }
 0xc86   :  { %v11085_v28 = vpop.eup %11084  ;;  %v3128_v44 = vmul.f32 %v11083_v6, %v13035_v20  ;;  %v10547_v48 = vpop.permute.xlu1 %10546  ;;  %v3574_v6 = vsel %vm514_vm1, %v15739_v37, %v10544_v45  ;;  %v10573_v41 = vunpack.i.l.bf16 %v13149_v49 }
 0xc87   :  { %v11087_v12 = vpop.eup %11086  ;;  %v3125_v26 = vmul.f32 %v11085_v28, %v13031_v10  ;;  %v10783_v10 = vld [vmem:[%s15659_s2 + $0x8] sm:$0xff]   ;;  %v10549_v33 = vunpack.i.h.bf16 %v10547_v48  ;;  %v10548_v29 = vunpack.i.l.bf16 %v10547_v48 }
 0xc88   :  { %v3127_v13 = vmul.f32 %v11087_v12, %v13027_v57  ;;  %10035 = vmatprep.subr.bf16.mxu1 %v10783_v10  ;;  %v15740_v28 = vld [vmem:[#allocation12_spill] sm:$0xff] }
 0xc89   :  { %v11089_v14 = vpop.eup %11088  ;;  %10036 = vmatpush3.bf16.msra.mxu1 %v10783_v10  ;;  %v13153_v9 = vpop.permute.xlu0 %10581  ;;  %v3573_v12 = vsel %vm514_vm1, %v15740_v28, %v10543_v27 }
 0xc8a   :  { %v3126_v51 = vmul.f32 %v11089_v14, %v13039_v5  ;;  %v3136_v54 = vpack.c.bf16 %v3128_v44, %v3127_v13  ;;  %v10557_v56 = vpop.permute.xlu1 %10556  ;;  %v15741_v44 = vld [vmem:[#allocation13_spill] sm:$0xff] }
 0xc8b   :  { %v10559_v43 = vunpack.i.h.bf16 %v10557_v56  ;;  %v10558_v31 = vunpack.i.l.bf16 %v10557_v56 }
 0xc8c   :  { %v3135_v63 = vpack.c.bf16 %v3126_v51, %v3125_v26  ;;  %v3576_v26 = vsel %vm514_vm1, %v15741_v44, %v10549_v33  ;;  %v15742_v51 = vld [vmem:[#allocation11_spill] sm:$0xff] }
 0xc8d   :  { %v3575_v13 = vsel %vm514_vm1, %v15742_v51, %v10548_v29  ;;  %v10584_v51 = vunpack.i.h.bf16 %v13153_v9 }
 0xc8e   :  { %10029 = vmatprep.mubr.msk.bf16.mxu0 %vm101_vm0, %v3135_v63  ;;  %v10567_v36 = vpop.permute.xlu1 %10566  ;;  %v3592_v10 = vsel %vm3589_vm2, %v3575_v13, %v10558_v31  ;;  %v10583_v13 = vunpack.i.l.bf16 %v13153_v9 }
 0xc8f   :  { %10030 = vmatmul.mubr.msk.bf16.vlgmr.msra.gmra.mrb[76].mxu0 %vm101_vm0, %v3136_v54 }
 0xc92   :  { %v10577_v17 = vpop.permute.xlu1 %10576 }
 0xc96   :  { %v13151_v38 = vpop.permute.xlu1 %10586 }
 0xc97   :  { %v10588_v48 = vunpack.i.l.bf16 %v13151_v38 }
 0xd11   :  { %v10007_v20 = vpop.f32.mrb[56].mxu1 }
 0xd12   :  { %v3183_v57 = vpop.f32.mrb[57].mxu1 }
 0xd13   :  { %v10008_v5 = vpop.f32.mrb[58].mxu1 }
 0xd14   :  { %v10590_v1 = vpack.i.bf16 %v10008_v5, %v10007_v20  ;;  %v3186_v52 = vpop.f32.mrb[59].mxu1  ;;  %v3593_v20 = vsel %vm3589_vm2, %v3576_v26, %v10559_v43  ;;  %v15747_v43 = vld [vmem:[#allocation21_spill] sm:$0xff] }
 0xd15   :  { %v10595_v53 = vpack.i.bf16 %v3186_v52, %v3183_v57  ;;  %v3591_v52 = vsel %vm3589_vm2, %v3574_v6, %v10554_v21  ;;  %v15748_v6 = vld [vmem:[#allocation19_spill] sm:$0xff] }
 0xd16   :  { %10591 = vrot.lane.b32.xlu1 %v10590_v1, %s11579_s24  ;;  %v3590_v1 = vsel %vm3589_vm2, %v3573_v12, %v10553_v40  ;;  %v3583_v28 = vsel %vm514_vm1, %v15748_v6, %v10588_v48 }
 0xd17   :  { %10596 = vrot.lane.b32.xlu0 %v10595_v53, %s11579_s24 }
 0xd1a   :  { %10606 = vrot.lane.b32.xlu1 %v15730_v39, %s11566_s22 }
 0xd1b   :  { %10601 = vrot.lane.b32.xlu0 %v15731_v46, %s11566_s22 }
 0xd4e   :  { %v10015_v25 = vpop.f32.mrb[72].mxu0 }
 0xd4f   :  { %v3244_v16 = vpop.f32.mrb[73].mxu0 }
 0xd50   :  { %v10016_v15 = vpop.f32.mrb[74].mxu0 }
 0xd51   :  { %v10610_v58 = vpack.i.bf16 %v10016_v15, %v10015_v25  ;;  %v3247_v47 = vpop.f32.mrb[75].mxu0 }
 0xd52   :  { %v10620_v42 = vpack.i.bf16 %v3247_v47, %v3244_v16  ;;  %v10023_v60 = vpop.f32.mrb[60].mxu1  ;;  %v10568_v47 = vunpack.i.l.bf16 %v10567_v36 }
 0xd53   :  { %10611 = vrot.lane.b32.xlu1 %v10610_v58, %s11579_s24  ;;  %v3305_v19 = vpop.f32.mrb[61].mxu1  ;;  %v10564_v58 = vunpack.i.h.bf16 %v10562_v30 }
 0xd54   :  { %10621 = vrot.lane.b32.xlu0 %v10620_v42, %s11579_s24  ;;  %v10024_v34 = vpop.f32.mrb[62].mxu1  ;;  %v10563_v42 = vunpack.i.l.bf16 %v10562_v30 }
 0xd55   :  { %v10615_v23 = vpack.i.bf16 %v10024_v34, %v10023_v60  ;;  %v3308_v50 = vpop.f32.mrb[63].mxu1  ;;  %v10569_v60 = vunpack.i.h.bf16 %v10567_v36 }
 0xd56   :  { %v10635_v8 = vpack.i.bf16 %v3308_v50, %v3305_v19  ;;  %v10578_v19 = vunpack.i.l.bf16 %v10577_v17 }
 0xd57   :  { %10616 = vrot.lane.b32.xlu1 %v10615_v23, %s11579_s24  ;;  %v10579_v23 = vunpack.i.h.bf16 %v10577_v17 }
 0xd58   :  { %10626 = vrot.lane.b32.xlu0 %v15732_v7, %s11564_s18 }
 0xd5b   :  { %10631 = vrot.lane.b32.xlu1 %v15733_v62, %s11564_s18  ;;  %v10574_v62 = vunpack.i.h.bf16 %v13149_v49 }
 0xd5c   :  { %10636 = vrot.lane.b32.xlu0 %v10635_v8, %s11579_s24  ;;  %v15743_v8 = vld [vmem:[#allocation18_spill] sm:$0xff] }
 0xd5d   :  { %v3578_v7 = vsel %vm514_vm1, %v15743_v8, %v10564_v58 }
 0xd5e   :  { %v3595_v27 = vsel %vm3589_vm2, %v3578_v7, %v10574_v62 }
 0xd5f   :  { %10646 = vrot.lane.b32.xlu1 %v15735_v0, %s11566_s22  ;;  %v15744_v0 = vld [vmem:[#allocation15_spill] sm:$0xff] }
 0xd60   :  { %10641 = vrot.lane.b32.xlu0 %v15738_v2, %s11566_s22  ;;  %v3579_v18 = vsel %vm514_vm1, %v15744_v0, %v10568_v47  ;;  %v3577_v2 = vsel %vm514_vm1, %v15745_v35, %v10563_v42  ;;  %v15751_v35 = vld [vmem:[#allocation26_spill] sm:$0xff] }
 0xd61   :  { %v3594_v45 = vsel %vm3589_vm2, %v3577_v2, %v10573_v41 }
 0xd62   :  { %v10031_v32 = vpop.f32.mrb[76].mxu0 }
 0xd63   :  { %v3366_v59 = vpop.f32.mrb[77].mxu0 }
 0xd64   :  { %v10032_v4 = vpop.f32.mrb[78].mxu0 }
 0xd65   :  { %v10655_v22 = vpack.i.bf16 %v10032_v4, %v10031_v32  ;;  %v3369_v55 = vpop.f32.mrb[79].mxu0  ;;  %v15746_v32 = vld [vmem:[#allocation17_spill] sm:$0xff]  ;;  %v3596_v4 = vsel %vm3589_vm2, %v3579_v18, %v10578_v19 }
 0xd66   :  { %v10650_v61 = vpack.i.bf16 %v3369_v55, %v3366_v59  ;;  %v3580_v59 = vsel %vm514_vm1, %v15746_v32, %v10569_v60  ;;  %v15752_v32 = vld [vmem:[#allocation24_spill] sm:$0xff] }
 0xd67   :  { %10656 = vrot.lane.b32.xlu1 %v10655_v22, %s11579_s24  ;;  %v10589_v22 = vunpack.i.h.bf16 %v13151_v38 }
 0xd68   :  { %10651 = vrot.lane.b32.xlu0 %v10650_v61, %s11579_s24  ;;  %v3597_v61 = vsel %vm3589_vm2, %v3580_v59, %v10579_v23 }
 0xd69   :  { %v3584_v31 = vsel %vm514_vm1, %v15747_v43, %v10589_v22  ;;  %v15753_v22 = vld [vmem:[#allocation25_spill] sm:$0xff] }
 0xd88   :  { %v10592_v14 = vpop.permute.xlu1 %10591 }
 0xd89   :  { %v10594_v63 = vunpack.i.h.bf16 %v10592_v14  ;;  %v10593_v54 = vunpack.i.l.bf16 %v10592_v14  ;;  %v10597_v11 = vpop.permute.xlu0 %10596 }
 0xd8a   :  { %v10599_v57 = vunpack.i.h.bf16 %v10597_v11  ;;  %v10598_v5 = vunpack.i.l.bf16 %v10597_v11 }
 0xd8b   :  { %v3610_v53 = vsel %vm3606_vm3, %v3593_v20, %v10594_v63  ;;  %v3609_v39 = vsel %vm3606_vm3, %v3592_v10, %v10593_v54 }
 0xd8c   :  { %v3624_v46 = vpack.c.bf16 %v3610_v53, %v3609_v39  ;;  %v3607_v25 = vsel %vm3606_vm3, %v3590_v1, %v10598_v5  ;;  %v3608_v16 = vsel %vm3606_vm3, %v3591_v52, %v10599_v57  ;;  %v10607_v34 = vpop.permute.xlu1 %10606  ;;  %v15749_v53 = vld [vmem:[#allocation22_spill] sm:$0xff]  ;;  %v15750_v39 = vld [vmem:[#allocation20_spill] sm:$0xff] }
 0xd8d   :  { %v3623_v15 = vpack.c.bf16 %v3608_v16, %v3607_v25  ;;  %v10602_v50 = vpop.permute.xlu0 %10601  ;;  %v10609_v36 = vunpack.i.h.bf16 %v10607_v34  ;;  %v10608_v30 = vunpack.i.l.bf16 %v10607_v34  ;;  %v3582_v9 = vsel %vm514_vm1, %v15749_v53, %v10584_v51 }
 0xd8e   :  { %v10604_v11 = vunpack.i.h.bf16 %v10602_v50  ;;  %v10603_v10 = vunpack.i.l.bf16 %v10602_v50 }
 0xd8f   :  { %10037 = vmatprep.mubr.msk.bf16.mxu1 %vm101_vm0, %v3623_v15  ;;  %v3601_v63 = vsel %vm3589_vm2, %v3584_v31, %v10609_v36  ;;  %v3600_v54 = vsel %vm3589_vm2, %v3583_v28, %v10608_v30 }
 0xd90   :  { %10038 = vmatmul.mubr.msk.bf16.vlgmr.msra.gmra.mrb[64].mxu1 %vm101_vm0, %v3624_v46  ;;  %v3581_v46 = vsel %vm514_vm1, %v15750_v39, %v10583_v13  ;;  %v3599_v58 = vsel %vm3589_vm2, %v3582_v9, %v10604_v11 }
 0xd91   :  { %v3598_v15 = vsel %vm3589_vm2, %v3581_v46, %v10603_v10  ;;  %v11476_v10 = vld [vmem:[#allocation2 + $0x8] sm:$0xff] }
 0xdc5   :  { %v10612_v55 = vpop.permute.xlu1 %10611 }
 0xdc6   :  { %v10614_v3 = vunpack.i.h.bf16 %v10612_v55  ;;  %v10613_v56 = vunpack.i.l.bf16 %v10612_v55  ;;  %v10622_v24 = vpop.permute.xlu0 %10621 }
 0xdc7   :  { %v10624_v17 = vunpack.i.h.bf16 %v10622_v24  ;;  %v10623_v49 = vunpack.i.l.bf16 %v10622_v24 }
 0xdc8   :  { %v3614_v33 = vsel %vm3606_vm3, %v3597_v61, %v10614_v3  ;;  %v3613_v29 = vsel %vm3606_vm3, %v3596_v4, %v10613_v56  ;;  %v15754_v61 = vld [vmem:[#allocation23_spill] sm:$0xff] }
 0xdc9   :  { %v3611_v38 = vsel %vm3606_vm3, %v3594_v45, %v10623_v49  ;;  %v3612_v21 = vsel %vm3606_vm3, %v3595_v27, %v10624_v17  ;;  %v10617_v40 = vpop.permute.xlu1 %10616  ;;  %v3626_v37 = vpack.c.bf16 %v3614_v33, %v3613_v29 }
 0xdca   :  { %v10619_v12 = vunpack.i.h.bf16 %v10617_v40  ;;  %v10618_v14 = vunpack.i.l.bf16 %v10617_v40  ;;  %v10627_v44 = vpop.permute.xlu0 %10626  ;;  %v3625_v26 = vpack.c.bf16 %v3612_v21, %v3611_v38  ;;  %v13236_v40 = vld [vmem:[%s15660_s3] ss:$0 sm:$0xff] }
 0xdcb   :  { %v10629_v34 = vunpack.i.h.bf16 %v10627_v44  ;;  %v10628_v23 = vunpack.i.l.bf16 %v10627_v44 }
 0xdcc   :  { %v3618_v20 = vsel %vm3606_vm3, %v3601_v63, %v10619_v12  ;;  %v3617_v57 = vsel %vm3606_vm3, %v3600_v54, %v10618_v14  ;;  %10041 = vmatprep.mubr.msk.bf16.mxu1 %vm101_vm0, %v3625_v26  ;;  %v11474_v26 = vld [vmem:[#allocation2] sm:$0xff]  ;;  %v11475_v63 = vld [vmem:[#allocation2 + $0x10] sm:$0xff] }
 0xdcd   :  { %10042 = vmatmul.mubr.msk.bf16.gmra.mrb[68].mxu1 %vm101_vm0, %v3626_v37  ;;  %v3628_v5 = vpack.c.bf16 %v3618_v20, %v3617_v57  ;;  %v10632_v1 = vpop.permute.xlu1 %10631  ;;  %v3586_v2 = vsel %vm514_vm1, %v15751_v35, %v10629_v34  ;;  %v3585_v59 = vsel %vm514_vm1, %v15752_v32, %v10628_v23  ;;  %v11479_v34 = vld [vmem:[#allocation2 + $0x30] sm:$0xff] }
 0xdce   :  { %v10637_v52 = vpop.permute.xlu0 %10636  ;;  %v10634_v8 = vunpack.i.h.bf16 %v10632_v1  ;;  %v10633_v7 = vunpack.i.l.bf16 %v10632_v1  ;;  %v11477_v1 = vld [vmem:[#allocation2 + $0x18] sm:$0xff] }
 0xdcf   :  { %v10639_v25 = vunpack.i.h.bf16 %v10637_v52  ;;  %v10638_v16 = vunpack.i.l.bf16 %v10637_v52 }
 0xdd0   :  { %v3588_v55 = vsel %vm514_vm1, %v15753_v22, %v10634_v8  ;;  %v3587_v48 = vsel %vm514_vm1, %v15754_v61, %v10633_v7 }
 0xdd1   :  { %v3615_v47 = vsel %vm3606_vm3, %v3598_v15, %v10638_v16  ;;  %v3616_v42 = vsel %vm3606_vm3, %v3599_v58, %v10639_v25  ;;  %v10647_v19 = vpop.permute.xlu1 %10646 }
 0xdd2   :  { %v3627_v60 = vpack.c.bf16 %v3616_v42, %v3615_v47  ;;  %v10642_v50 = vpop.permute.xlu0 %10641  ;;  %v10649_v62 = vunpack.i.h.bf16 %v10647_v19  ;;  %v10648_v41 = vunpack.i.l.bf16 %v10647_v19  ;;  %v11478_v47 = vld [vmem:[#allocation2 + $0x20] sm:$0xff] }
 0xdd3   :  { %v10644_v0 = vunpack.i.h.bf16 %v10642_v50  ;;  %v10643_v18 = vunpack.i.l.bf16 %v10642_v50  ;;  %v11480_v50 = vld [vmem:[#allocation2 + $0x28] sm:$0xff] }
 0xdd4   :  { %10045 = vmatprep.mubr.msk.bf16.mxu1 %vm101_vm0, %v3627_v60  ;;  %v3604_v36 = vsel %vm3589_vm2, %v3587_v48, %v10648_v41  ;;  %v3605_v30 = vsel %vm3589_vm2, %v3588_v55, %v10649_v62  ;;  %v11481_v62 = vld [vmem:[#allocation2 + $0x38] sm:$0xff]  ;;  %v11482_v55 = vld [vmem:[#allocation2 + $0x40] sm:$0xff] }
 0xdd5   :  { %10046 = vmatmul.mubr.msk.bf16.gmra.mrb[72].mxu1 %vm101_vm0, %v3628_v5  ;;  %v3602_v45 = vsel %vm3589_vm2, %v3585_v59, %v10643_v18  ;;  %v3603_v27 = vsel %vm3589_vm2, %v3586_v2, %v10644_v0 }
 0xdd9   :  { %v10657_v4 = vpop.permute.xlu1 %10656 }
 0xdda   :  { %v10659_v3 = vunpack.i.h.bf16 %v10657_v4  ;;  %v10658_v56 = vunpack.i.l.bf16 %v10657_v4  ;;  %v10652_v24 = vpop.permute.xlu0 %10651 }
 0xddb   :  { %v10654_v17 = vunpack.i.h.bf16 %v10652_v24  ;;  %v10653_v49 = vunpack.i.l.bf16 %v10652_v24  ;;  %v11483_v24 = vld [vmem:[#allocation2 + $0x50] sm:$0xff] }
 0xddc   :  { %v3622_v33 = vsel %vm3606_vm3, %v3605_v30, %v10659_v3  ;;  %v3621_v29 = vsel %vm3606_vm3, %v3604_v36, %v10658_v56  ;;  %v11484_v30 = vld [vmem:[#allocation2 + $0x48] sm:$0xff] }
 0xddd   :  { %v3619_v43 = vsel %vm3606_vm3, %v3602_v45, %v10653_v49  ;;  %v3620_v31 = vsel %vm3606_vm3, %v3603_v27, %v10654_v17  ;;  %v3630_v38 = vpack.c.bf16 %v3622_v33, %v3621_v29  ;;  %v11485_v45 = vld [vmem:[#allocation2 + $0x58] sm:$0xff] }
 0xdde   :  { %v3629_v21 = vpack.c.bf16 %v3620_v31, %v3619_v43 }
 0xde0   :  { %10049 = vmatprep.mubr.msk.bf16.mxu1 %vm101_vm0, %v3629_v21 }
 0xde1   :  { %10050 = vmatmul.mubr.msk.bf16.gmra.mrb[76].mxu1 %vm101_vm0, %v3630_v38 }
 0xe63   :  { %v10039_v37 = vpop.f32.mrb[64].mxu1 }
 0xe64   :  { %v3712_v6 = vpop.f32.mrb[65].mxu1  ;;  %v3721_v28 = vadd.f32 %v10039_v37, %v13236_v40 }
 0xe65   :  { %v3713_v12 = vadd.f32 %v13236_v40, %v3712_v6  ;;  %v10040_v14 = vpop.f32.mrb[66].mxu1 }
 0xe66   :  { %v3715_v44 = vpop.f32.mrb[67].mxu1  ;;  %v13243_v54 = vadd.f32 %v11475_v63, %v3721_v28  ;;  %v3724_v11 = vadd.f32 %v10040_v14, %v13236_v40 }
 0xe67   :  { %v13240_v51 = vadd.f32 %v11474_v26, %v3713_v12  ;;  %v3716_v13 = vadd.f32 %v13236_v40, %v3715_v44  ;;  %v11486_v12 = vld [vmem:[#allocation2 + $0x60] sm:$0xff] }
 0xe68   :  { %v13252_v52 = vadd.f32 %v11477_v1, %v3724_v11  ;;  %v3799_v53 = vsel %vm101_vm0, %v13243_v54, 0.0  ;;  %v11488_v11 = vld [vmem:[#allocation2 + $0x68] sm:$0xff] }
 0xe69   :  { %v13246_v20 = vadd.f32 %v11476_v10, %v3716_v13  ;;  %v3793_v57 = vsel %vm101_vm0, %v13240_v51, 0.0  ;;  %v11487_v13 = vld [vmem:[#allocation2 + $0x70] sm:$0xff] }
 0xe6a   :  { %3794 = vadd.xlane.f32.xlu0 %v3793_v57  ;;  %v3802_v9 = vsel %vm101_vm0, %v13252_v52, 0.0 }
 0xe6b   :  { %v3796_v5 = vsel %vm101_vm0, %v13246_v20, 0.0 }
 0xe6c   :  { %3797 = vadd.xlane.f32.xlu1 %v3796_v5  ;;  %v11489_v5 = vld [vmem:[#allocation2 + $0x78] sm:$0xff] }
 0xe6e   :  { %3800 = vadd.xlane.f32.xlu0 %v3799_v53 }
 0xe72   :  { %3803 = vadd.xlane.f32.xlu0 %v3802_v9 }
 0xea0   :  { %v10043_v39 = vpop.f32.mrb[68].mxu1 }
 0xea1   :  { %v3728_v46 = vpop.f32.mrb[69].mxu1  ;;  %v3737_v25 = vadd.f32 %v10043_v39, %v13236_v40 }
 0xea2   :  { %v3729_v16 = vadd.f32 %v13236_v40, %v3728_v46  ;;  %v10044_v15 = vpop.f32.mrb[70].mxu1 }
 0xea3   :  { %v3731_v58 = vpop.f32.mrb[71].mxu1  ;;  %v3740_v60 = vadd.f32 %v10044_v15, %v13236_v40  ;;  %v13264_v23 = vadd.f32 %v11479_v34, %v3737_v25 }
 0xea4   :  { %v13260_v42 = vadd.f32 %v11478_v47, %v3729_v16  ;;  %v3732_v19 = vadd.f32 %v13236_v40, %v3731_v58 }
 0xea5   :  { %v13270_v41 = vadd.f32 %v11481_v62, %v3740_v60  ;;  %v3811_v4 = vsel %vm101_vm0, %v13264_v23, 0.0 }
 0xea6   :  { %v13266_v8 = vadd.f32 %v11480_v50, %v3732_v19  ;;  %v3805_v7 = vsel %vm101_vm0, %v13260_v42, 0.0 }
 0xea7   :  { %3806 = vadd.xlane.f32.xlu0 %v3805_v7  ;;  %v3814_v56 = vsel %vm101_vm0, %v13270_v41, 0.0 }
 0xea8   :  { %v10047_v0 = vpop.f32.mrb[72].mxu1  ;;  %v3808_v18 = vsel %vm101_vm0, %v13266_v8, 0.0 }
 0xea9   :  { %v3744_v35 = vpop.f32.mrb[73].mxu1  ;;  %3809 = vadd.xlane.f32.xlu1 %v3808_v18  ;;  %v3753_v2 = vadd.f32 %v10047_v0, %v13236_v40 }
 0xeaa   :  { %v3745_v32 = vadd.f32 %v13236_v40, %v3744_v35  ;;  %v10048_v59 = vpop.f32.mrb[74].mxu1 }
 0xeab   :  { %v3747_v22 = vpop.f32.mrb[75].mxu1  ;;  %3812 = vadd.xlane.f32.xlu0 %v3811_v4  ;;  %v3756_v48 = vadd.f32 %v10048_v59, %v13236_v40  ;;  %v13284_v36 = vadd.f32 %v11483_v24, %v3753_v2 }
 0xeac   :  { %v13278_v61 = vadd.f32 %v11482_v55, %v3745_v32  ;;  %v3748_v3 = vadd.f32 %v13236_v40, %v3747_v22  ;;  %v10784_v22 = vld [vmem:[%s15661_s4] sm:$0xff]   ;;  %v10785_v55 = vld [vmem:[%s15661_s4 + $0x8] sm:$0xff]  }
 0xead   :  { %3815 = vadd.xlane.f32.xlu1 %v3814_v56  ;;  %v13290_v27 = vadd.f32 %v11485_v45, %v3756_v48  ;;  %v3823_v29 = vsel %vm101_vm0, %v13284_v36, 0.0  ;;  %10053 = vmatprep.subr.bf16.mxu0 %v10784_v22 }
 0xeae   :  { %v13286_v17 = vadd.f32 %v11484_v30, %v3748_v3  ;;  %v3817_v49 = vsel %vm101_vm0, %v13278_v61, 0.0  ;;  %10054 = vmatpush3.bf16.msra.mxu0 %v10784_v22 }
 0xeaf   :  { %3818 = vadd.xlane.f32.xlu0 %v3817_v49  ;;  %v3826_v31 = vsel %vm101_vm0, %v13290_v27, 0.0  ;;  %10055 = vmatprep.subr.bf16.mxu0 %v10785_v55 }
 0xeb0   :  { %v3820_v33 = vsel %vm101_vm0, %v13286_v17, 0.0 }
 0xeb1   :  { %3821 = vadd.xlane.f32.xlu1 %v3820_v33 }
 0xeb2   :  { %10056 = vmatpush3.bf16.msra.mxu0 %v10785_v55 }
 0xeb3   :  { %3824 = vadd.xlane.f32.xlu0 %v3823_v29 }
 0xeb4   :  { %v10051_v43 = vpop.f32.mrb[76].mxu1 }
 0xeb5   :  { %v3760_v38 = vpop.f32.mrb[77].mxu1  ;;  %3827 = vadd.xlane.f32.xlu1 %v3826_v31  ;;  %v3769_v21 = vadd.f32 %v10051_v43, %v13236_v40 }
 0xeb6   :  { %v3761_v37 = vadd.f32 %v13236_v40, %v3760_v38  ;;  %v10052_v6 = vpop.f32.mrb[78].mxu1 }
 0xeb7   :  { %v3763_v28 = vpop.f32.mrb[79].mxu1  ;;  %v3772_v44 = vadd.f32 %v10052_v6, %v13236_v40  ;;  %v13304_v63 = vadd.f32 %v11487_v13, %v3769_v21 }
 0xeb8   :  { %v13300_v14 = vadd.f32 %v11486_v12, %v3761_v37  ;;  %v3764_v26 = vadd.f32 %v13236_v40, %v3763_v28 }
 0xeb9   :  { %v13310_v1 = vadd.f32 %v11489_v5, %v3772_v44  ;;  %v3835_v40 = vsel %vm101_vm0, %v13304_v63, 0.0 }
 0xeba   :  { %v13306_v10 = vadd.f32 %v11488_v11, %v3764_v26  ;;  %v3829_v57 = vsel %vm101_vm0, %v13300_v14, 0.0 }
 0xebb   :  { %3830 = vadd.xlane.f32.xlu0 %v3829_v57  ;;  %v3838_v9 = vsel %vm101_vm0, %v13310_v1, 0.0 }
 0xebc   :  { %v3832_v53 = vsel %vm101_vm0, %v13306_v10, 0.0 }
 0xebd   :  { %3833 = vadd.xlane.f32.xlu1 %v3832_v53 }
 0xebf   :  { %3836 = vadd.xlane.f32.xlu0 %v3835_v40 }
 0xec1   :  { %3839 = vadd.xlane.f32.xlu1 %v3838_v9 }
 0xef7   :  { %v3795_v39 = vpop.xlane.xlu0 %3794 }
 0xef8   :  { %v3841_v46 = vmul.f32 0.03125, %v3795_v39 }
 0xef9   :  { %v3798_v25 = vpop.xlane.xlu1 %3797 }
 0xefa   :  { %v13319_v16 = vsub.f32 %v13240_v51, %v3841_v46  ;;  %v3842_v15 = vmul.f32 0.03125, %v3798_v25 }
 0xefb   :  { %v3801_v58 = vpop.xlane.xlu0 %3800 }
 0xefc   :  { %v13322_v47 = vsub.f32 %v13246_v20, %v3842_v15  ;;  %v3843_v60 = vmul.f32 0.03125, %v3801_v58  ;;  %v3873_v19 = vmul.f32 %v13319_v16, %v13319_v16 }
 0xefe   :  { %v13327_v34 = vsub.f32 %v13243_v54, %v3843_v60  ;;  %v3889_v50 = vsel %vm101_vm0, %v3873_v19, 0.0  ;;  %v3874_v7 = vmul.f32 %v13322_v47, %v13322_v47 }
 0xeff   :  { %3890 = vadd.xlane.f32.xlu0 %v3889_v50  ;;  %v3804_v62 = vpop.xlane.xlu0 %3803 }
 0xf00   :  { %v3844_v0 = vmul.f32 0.03125, %v3804_v62  ;;  %v3892_v18 = vsel %vm101_vm0, %v3874_v7, 0.0  ;;  %v3875_v35 = vmul.f32 %v13327_v34, %v13327_v34 }
 0xf01   :  { %3893 = vadd.xlane.f32.xlu1 %v3892_v18 }
 0xf02   :  { %v13336_v2 = vsub.f32 %v13252_v52, %v3844_v0  ;;  %v3895_v32 = vsel %vm101_vm0, %v3875_v35, 0.0 }
 0xf03   :  { %3896 = vadd.xlane.f32.xlu0 %v3895_v32 }
 0xf04   :  { %v3876_v59 = vmul.f32 %v13336_v2, %v13336_v2 }
 0xf06   :  { %v3898_v4 = vsel %vm101_vm0, %v3876_v59, 0.0 }
 0xf07   :  { %3899 = vadd.xlane.f32.xlu1 %v3898_v4 }
 0xf34   :  { %v3807_v48 = vpop.xlane.xlu0 %3806 }
 0xf35   :  { %v3845_v3 = vmul.f32 0.03125, %v3807_v48 }
 0xf36   :  { %v3810_v56 = vpop.xlane.xlu1 %3809 }
 0xf37   :  { %v13349_v24 = vsub.f32 %v13260_v42, %v3845_v3  ;;  %v3846_v30 = vmul.f32 0.03125, %v3810_v56 }
 0xf38   :  { %v3813_v49 = vpop.xlane.xlu0 %3812 }
 0xf39   :  { %v13352_v45 = vsub.f32 %v13266_v8, %v3846_v30  ;;  %v3847_v33 = vmul.f32 0.03125, %v3813_v49  ;;  %v3877_v29 = vmul.f32 %v13349_v24, %v13349_v24 }
 0xf3a   :  { %v3816_v43 = vpop.xlane.xlu1 %3815 }
 0xf3b   :  { %v13357_v31 = vsub.f32 %v13264_v23, %v3847_v33  ;;  %v3848_v38 = vmul.f32 0.03125, %v3816_v43  ;;  %v3901_v21 = vsel %vm101_vm0, %v3877_v29, 0.0  ;;  %v3878_v37 = vmul.f32 %v13352_v45, %v13352_v45 }
 0xf3c   :  { %3902 = vadd.xlane.f32.xlu0 %v3901_v21  ;;  %v3819_v6 = vpop.xlane.xlu0 %3818 }
 0xf3d   :  { %v13363_v28 = vsub.f32 %v13270_v41, %v3848_v38  ;;  %v3849_v12 = vmul.f32 0.03125, %v3819_v6  ;;  %v3904_v44 = vsel %vm101_vm0, %v3878_v37, 0.0  ;;  %v3879_v26 = vmul.f32 %v13357_v31, %v13357_v31 }
 0xf3e   :  { %v3822_v13 = vpop.xlane.xlu1 %3821  ;;  %3905 = vadd.xlane.f32.xlu1 %v3904_v44 }
 0xf3f   :  { %v13369_v11 = vsub.f32 %v13278_v61, %v3849_v12  ;;  %v3850_v57 = vmul.f32 0.03125, %v3822_v13  ;;  %v3907_v5 = vsel %vm101_vm0, %v3879_v26, 0.0  ;;  %v3880_v53 = vmul.f32 %v13363_v28, %v13363_v28 }
 0xf40   :  { %3908 = vadd.xlane.f32.xlu0 %v3907_v5  ;;  %v3825_v40 = vpop.xlane.xlu0 %3824  ;;  %v10787_v5 = vld [vmem:[%s15663_s6 + $0x8] sm:$0xff]  }
 0xf41   :  { %v13375_v9 = vsub.f32 %v13286_v17, %v3850_v57  ;;  %v3851_v39 = vmul.f32 0.03125, %v3825_v40  ;;  %v3910_v46 = vsel %vm101_vm0, %v3880_v53, 0.0  ;;  %v3881_v25 = vmul.f32 %v13369_v11, %v13369_v11  ;;  %v10786_v57 = vld [vmem:[%s15663_s6] sm:$0xff]  }
 0xf42   :  { %v3828_v15 = vpop.xlane.xlu1 %3827  ;;  %3911 = vadd.xlane.f32.xlu1 %v3910_v46  ;;  %10073 = vmatprep.subr.bf16.mxu1 %v10786_v57 }
 0xf43   :  { %v13381_v58 = vsub.f32 %v13284_v36, %v3851_v39  ;;  %v3852_v60 = vmul.f32 0.03125, %v3828_v15  ;;  %v3913_v19 = vsel %vm101_vm0, %v3881_v25, 0.0  ;;  %v3882_v50 = vmul.f32 %v13375_v9, %v13375_v9  ;;  %10074 = vmatpush3.bf16.msra.mxu1 %v10786_v57 }
 0xf44   :  { %3914 = vadd.xlane.f32.xlu0 %v3913_v19  ;;  %10075 = vmatprep.subr.bf16.mxu1 %v10787_v5 }
 0xf45   :  { %v13387_v7 = vsub.f32 %v13290_v27, %v3852_v60  ;;  %v3916_v62 = vsel %vm101_vm0, %v3882_v50, 0.0  ;;  %v3883_v0 = vmul.f32 %v13381_v58, %v13381_v58 }
 0xf46   :  { %3917 = vadd.xlane.f32.xlu1 %v3916_v62 }
 0xf47   :  { %v3919_v18 = vsel %vm101_vm0, %v3883_v0, 0.0  ;;  %v3884_v35 = vmul.f32 %v13387_v7, %v13387_v7  ;;  %10076 = vmatpush3.bf16.msra.mxu1 %v10787_v5 }
 0xf48   :  { %3920 = vadd.xlane.f32.xlu0 %v3919_v18  ;;  %v3831_v32 = vpop.xlane.xlu0 %3830 }
 0xf49   :  { %v3853_v59 = vmul.f32 0.03125, %v3831_v32  ;;  %v3922_v4 = vsel %vm101_vm0, %v3884_v35, 0.0  ;;  %v13429_v32 = vld [vmem:[%s15667_s10] ss:$0 sm:$0xff] }
 0xf4a   :  { %v3834_v22 = vpop.xlane.xlu1 %3833  ;;  %3923 = vadd.xlane.f32.xlu1 %v3922_v4 }
 0xf4b   :  { %v13397_v55 = vsub.f32 %v13300_v14, %v3853_v59  ;;  %v3854_v48 = vmul.f32 0.03125, %v3834_v22 }
 0xf4c   :  { %v3837_v3 = vpop.xlane.xlu0 %3836 }
 0xf4d   :  { %v13400_v56 = vsub.f32 %v13306_v10, %v3854_v48  ;;  %v3855_v30 = vmul.f32 0.03125, %v3837_v3  ;;  %v3885_v49 = vmul.f32 %v13397_v55, %v13397_v55 }
 0xf4e   :  { %v3840_v33 = vpop.xlane.xlu1 %3839 }
 0xf4f   :  { %v13405_v29 = vsub.f32 %v13304_v63, %v3855_v30  ;;  %v3856_v43 = vmul.f32 0.03125, %v3840_v33  ;;  %v3925_v38 = vsel %vm101_vm0, %v3885_v49, 0.0  ;;  %v3886_v21 = vmul.f32 %v13400_v56, %v13400_v56  ;;  %v13437_v30 = vld [vmem:[%s15668_s11] ss:$0 sm:$0xff] }
 0xf50   :  { %3926 = vadd.xlane.f32.xlu0 %v3925_v38 }
 0xf51   :  { %v13411_v37 = vsub.f32 %v13310_v1, %v3856_v43  ;;  %v3928_v6 = vsel %vm101_vm0, %v3886_v21, 0.0  ;;  %v3887_v12 = vmul.f32 %v13405_v29, %v13405_v29 }
 0xf52   :  { %3929 = vadd.xlane.f32.xlu1 %v3928_v6 }
 0xf53   :  { %v3931_v44 = vsel %vm101_vm0, %v3887_v12, 0.0  ;;  %v3888_v26 = vmul.f32 %v13411_v37, %v13411_v37 }
 0xf54   :  { %3932 = vadd.xlane.f32.xlu0 %v3931_v44 }
 0xf55   :  { %v3934_v13 = vsel %vm101_vm0, %v3888_v26, 0.0 }
 0xf56   :  { %3935 = vadd.xlane.f32.xlu1 %v3934_v13 }
 0xf8c   :  { %v3891_v53 = vpop.xlane.xlu0 %3890 }
 0xf8d   :  { %v3937_v40 = vmul.f32 0.03125, %v3891_v53 }
 0xf8e   :  { %v3894_v39 = vpop.xlane.xlu1 %3893 }
 0xf8f   :  { %v3953_v46 = vadd.f32 0.0001, %v3937_v40  ;;  %v3938_v25 = vmul.f32 0.03125, %v3894_v39 }
 0xf90   :  { %v3897_v15 = vpop.xlane.xlu0 %3896 }
 0xf91   :  { %11090 = vrsqrt.f32 %v3953_v46  ;;  %v3954_v60 = vadd.f32 0.0001, %v3938_v25  ;;  %v3939_v19 = vmul.f32 0.03125, %v3897_v15 }
 0xf93   :  { %11092 = vrsqrt.f32 %v3954_v60  ;;  %v3955_v50 = vadd.f32 0.0001, %v3939_v19 }
 0xf94   :  { %v3900_v62 = vpop.xlane.xlu1 %3899 }
 0xf95   :  { %11094 = vrsqrt.f32 %v3955_v50  ;;  %v3940_v0 = vmul.f32 0.03125, %v3900_v62 }
 0xf97   :  { %v3956_v18 = vadd.f32 0.0001, %v3940_v0 }
 0xf99   :  { %11096 = vrsqrt.f32 %v3956_v18 }
 0xf9b   :  { %v11091_v35 = vpop.eup %11090 }
 0xf9c   :  { %v3985_v59 = vmul.f32 %v11091_v35, %v13319_v16 }
 0xf9d   :  { %v11093_v4 = vpop.eup %11092 }
 0xf9e   :  { %v3986_v22 = vmul.f32 %v11093_v4, %v13322_v47  ;;  %v4007_v48 = vmul.f32 %v13429_v32, %v3985_v59 }
 0xf9f   :  { %v11095_v3 = vpop.eup %11094 }
 0xfa0   :  { %v3987_v49 = vmul.f32 %v11095_v3, %v13327_v34  ;;  %v4008_v33 = vmul.f32 %v13429_v32, %v3986_v22  ;;  %v4029_v43 = vadd.f32 %v13437_v30, %v4007_v48 }
 0xfa2   :  { %v4030_v38 = vadd.f32 %v13437_v30, %v4008_v33  ;;  %v4009_v21 = vmul.f32 %v13429_v32, %v3987_v49 }
 0xfa3   :  { %v11097_v16 = vpop.eup %11096 }
 0xfa4   :  { %v3988_v47 = vmul.f32 %v11097_v16, %v13336_v2  ;;  %v4045_v6 = vpack.c.bf16 %v4030_v38, %v4029_v43  ;;  %v4031_v44 = vadd.f32 %v13437_v30, %v4009_v21 }
 0xfa6   :  { %v4010_v12 = vmul.f32 %v13429_v32, %v3988_v47  ;;  %10057 = vmatprep.mubr.msk.bf16.mxu0 %vm101_vm0, %v4045_v6 }
 0xfa8   :  { %v4032_v34 = vadd.f32 %v13437_v30, %v4010_v12 }
 0xfaa   :  { %v4046_v26 = vpack.c.bf16 %v4032_v34, %v4031_v44 }
 0xfac   :  { %10058 = vmatmul.mubr.msk.bf16.vlgmr.msra.gmra.mrb[80].mxu0 %vm101_vm0, %v4046_v26 }
 0xfc9   :  { %v3903_v13 = vpop.xlane.xlu0 %3902 }
 0xfca   :  { %v3941_v57 = vmul.f32 0.03125, %v3903_v13 }
 0xfcb   :  { %v3906_v5 = vpop.xlane.xlu1 %3905 }
 0xfcc   :  { %v3957_v53 = vadd.f32 0.0001, %v3941_v57  ;;  %v3942_v40 = vmul.f32 0.03125, %v3906_v5 }
 0xfcd   :  { %v3909_v39 = vpop.xlane.xlu0 %3908 }
 0xfce   :  { %11098 = vrsqrt.f32 %v3957_v53  ;;  %v3958_v2 = vadd.f32 0.0001, %v3942_v40  ;;  %v3943_v46 = vmul.f32 0.03125, %v3909_v39 }
 0xfcf   :  { %v3912_v25 = vpop.xlane.xlu1 %3911 }
 0xfd0   :  { %11100 = vrsqrt.f32 %v3958_v2  ;;  %v3959_v15 = vadd.f32 0.0001, %v3943_v46  ;;  %v3944_v60 = vmul.f32 0.03125, %v3912_v25 }
 0xfd1   :  { %v3915_v19 = vpop.xlane.xlu0 %3914 }
 0xfd2   :  { %11102 = vrsqrt.f32 %v3959_v15  ;;  %v3960_v50 = vadd.f32 0.0001, %v3944_v60  ;;  %v3945_v62 = vmul.f32 0.03125, %v3915_v19 }
 0xfd3   :  { %v3918_v0 = vpop.xlane.xlu1 %3917 }
 0xfd4   :  { %11104 = vrsqrt.f32 %v3960_v50  ;;  %v3961_v18 = vadd.f32 0.0001, %v3945_v62  ;;  %v3946_v35 = vmul.f32 0.03125, %v3918_v0 }
 0xfd5   :  { %v3921_v59 = vpop.xlane.xlu0 %3920 }
 0xfd6   :  { %11106 = vrsqrt.f32 %v3961_v18  ;;  %v3962_v4 = vadd.f32 0.0001, %v3946_v35  ;;  %v3947_v22 = vmul.f32 0.03125, %v3921_v59 }
 0xfd7   :  { %v3924_v48 = vpop.xlane.xlu1 %3923 }
 0xfd8   :  { %v11099_v3 = vpop.eup %11098  ;;  %11108 = vrsqrt.f32 %v3962_v4  ;;  %v3963_v49 = vadd.f32 0.0001, %v3947_v22  ;;  %v3948_v33 = vmul.f32 0.03125, %v3924_v48 }
 0xfd9   :  { %v3989_v43 = vmul.f32 %v11099_v3, %v13349_v24 }
 0xfda   :  { %v11101_v38 = vpop.eup %11100  ;;  %11110 = vrsqrt.f32 %v3963_v49  ;;  %v3964_v16 = vadd.f32 0.0001, %v3948_v33 }
 0xfdb   :  { %v3990_v21 = vmul.f32 %v11101_v38, %v13352_v45  ;;  %v4011_v47 = vmul.f32 %v13429_v32, %v3989_v43 }
 0xfdc   :  { %v11103_v6 = vpop.eup %11102  ;;  %11112 = vrsqrt.f32 %v3964_v16 }
 0xfdd   :  { %v3927_v12 = vpop.xlane.xlu0 %3926  ;;  %v4012_v44 = vmul.f32 %v13429_v32, %v3990_v21  ;;  %v3991_v34 = vmul.f32 %v11103_v6, %v13357_v31  ;;  %v4033_v5 = vadd.f32 %v13437_v30, %v4011_v47 }
 0xfde   :  { %v11105_v26 = vpop.eup %11104  ;;  %v3949_v13 = vmul.f32 0.03125, %v3927_v12 }
 0xfdf   :  { %v3930_v57 = vpop.xlane.xlu1 %3929  ;;  %v4034_v24 = vadd.f32 %v13437_v30, %v4012_v44  ;;  %v3992_v53 = vmul.f32 %v11105_v26, %v13363_v28  ;;  %v4013_v45 = vmul.f32 %v13429_v32, %v3991_v34 }
 0xfe0   :  { %v11107_v40 = vpop.eup %11106  ;;  %v3965_v39 = vadd.f32 0.0001, %v3949_v13  ;;  %v3950_v2 = vmul.f32 0.03125, %v3930_v57 }
 0xfe1   :  { %v3933_v46 = vpop.xlane.xlu0 %3932  ;;  %v4047_v25 = vpack.c.bf16 %v4034_v24, %v4033_v5  ;;  %v4014_v15 = vmul.f32 %v13429_v32, %v3992_v53  ;;  %v3993_v31 = vmul.f32 %v11107_v40, %v13369_v11  ;;  %v4035_v28 = vadd.f32 %v13437_v30, %v4013_v45 }
 0xfe2   :  { %v11109_v60 = vpop.eup %11108  ;;  %11114 = vrsqrt.f32 %v3965_v39  ;;  %v3966_v19 = vadd.f32 0.0001, %v3950_v2  ;;  %v3951_v50 = vmul.f32 0.03125, %v3933_v46 }
 0xfe3   :  { %v3936_v62 = vpop.xlane.xlu1 %3935  ;;  %10061 = vmatprep.mubr.msk.bf16.mxu0 %vm101_vm0, %v4047_v25  ;;  %v4036_v0 = vadd.f32 %v13437_v30, %v4014_v15  ;;  %v3994_v18 = vmul.f32 %v11109_v60, %v13375_v9  ;;  %v4015_v35 = vmul.f32 %v13429_v32, %v3993_v31 }
 0xfe4   :  { %v11111_v59 = vpop.eup %11110  ;;  %11116 = vrsqrt.f32 %v3966_v19  ;;  %v3967_v4 = vadd.f32 0.0001, %v3951_v50  ;;  %v3952_v22 = vmul.f32 0.03125, %v3936_v62 }
 0xfe5   :  { %v4048_v11 = vpack.c.bf16 %v4036_v0, %v4035_v28  ;;  %v4016_v48 = vmul.f32 %v13429_v32, %v3994_v18  ;;  %v3995_v3 = vmul.f32 %v11111_v59, %v13381_v58  ;;  %v4037_v43 = vadd.f32 %v13437_v30, %v4015_v35 }
 0xfe6   :  { %v11113_v49 = vpop.eup %11112  ;;  %11118 = vrsqrt.f32 %v3967_v4  ;;  %v3968_v33 = vadd.f32 0.0001, %v3952_v22 }
 0xfe7   :  { %10062 = vmatmul.mubr.msk.bf16.gmra.mrb[84].mxu0 %vm101_vm0, %v4048_v11  ;;  %v4038_v9 = vadd.f32 %v13437_v30, %v4016_v48  ;;  %v3996_v38 = vmul.f32 %v11113_v49, %v13387_v7  ;;  %v4017_v16 = vmul.f32 %v13429_v32, %v3995_v3 }
 0xfe8   :  { %11120 = vrsqrt.f32 %v3968_v33 }
 0xfe9   :  { %v4049_v21 = vpack.c.bf16 %v4038_v9, %v4037_v43  ;;  %v4018_v47 = vmul.f32 %v13429_v32, %v3996_v38  ;;  %v4039_v58 = vadd.f32 %v13437_v30, %v4017_v16 }
 0xfeb   :  { %10065 = vmatprep.mubr.msk.bf16.mxu0 %vm101_vm0, %v4049_v21  ;;  %v4040_v6 = vadd.f32 %v13437_v30, %v4018_v47 }
 0xfec   :  { %v11115_v12 = vpop.eup %11114 }
 0xfed   :  { %v4050_v44 = vpack.c.bf16 %v4040_v6, %v4039_v58  ;;  %v3997_v34 = vmul.f32 %v11115_v12, %v13397_v55 }
 0xfee   :  { %v11117_v26 = vpop.eup %11116 }
 0xfef   :  { %10066 = vmatmul.mubr.msk.bf16.gmra.mrb[88].mxu0 %vm101_vm0, %v4050_v44  ;;  %v3998_v7 = vmul.f32 %v11117_v26, %v13400_v56  ;;  %v4019_v13 = vmul.f32 %v13429_v32, %v3997_v34 }
 0xff0   :  { %v11119_v57 = vpop.eup %11118 }
 0xff1   :  { %v4020_v5 = vmul.f32 %v13429_v32, %v3998_v7  ;;  %v3999_v24 = vmul.f32 %v11119_v57, %v13405_v29  ;;  %v4041_v45 = vadd.f32 %v13437_v30, %v4019_v13  ;;  %v10788_v29 = vld [vmem:[%s15663_s6 + $0x10] sm:$0xff]  }
 0xff2   :  { %v11121_v53 = vpop.eup %11120  ;;  %10077 = vmatprep.subr.bf16.mxu1 %v10788_v29 }
 0xff3   :  { %v4042_v40 = vadd.f32 %v13437_v30, %v4020_v5  ;;  %v4000_v39 = vmul.f32 %v11121_v53, %v13411_v37  ;;  %v4021_v55 = vmul.f32 %v13429_v32, %v3999_v24  ;;  %10078 = vmatpush3.bf16.msra.mxu1 %v10788_v29  ;;  %v10789_v37 = vld [vmem:[%s15663_s6 + $0x18] sm:$0xff]  }
 0xff4   :  { %10079 = vmatprep.subr.bf16.mxu1 %v10789_v37 }
 0xff5   :  { %v4051_v2 = vpack.c.bf16 %v4042_v40, %v4041_v45  ;;  %v4022_v46 = vmul.f32 %v13429_v32, %v4000_v39  ;;  %v4043_v56 = vadd.f32 %v13437_v30, %v4021_v55  ;;  %v9231_v32 = vld [vmem:[#allocation5] ss:$0 sm:$0xff] }
 0xff7   :  { %10069 = vmatprep.mubr.msk.bf16.mxu0 %vm101_vm0, %v4051_v2  ;;  %v4044_v25 = vadd.f32 %v13437_v30, %v4022_v46  ;;  %10080 = vmatpush3.bf16.msra.mxu1 %v10789_v37 }
 0xff9   :  { %v4052_v15 = vpack.c.bf16 %v4044_v25, %v4043_v56 }
 0xffb   :  { %10070 = vmatmul.mubr.msk.bf16.gmra.mrb[92].mxu0 %vm101_vm0, %v4052_v15 }
0x107f   :  { %v10059_v31 = vpop.f32.mrb[80].mxu0 }
0x1080   :  { %v4143_v60 = vadd.f32 %v10059_v31, %v9231_v32  ;;  %v4134_v19 = vpop.f32.mrb[81].mxu0 }
0x1081   :  { %v4135_v30 = vadd.f32 %v9231_v32, %v4134_v19  ;;  %v10060_v50 = vpop.f32.mrb[82].mxu0 }
0x1082   :  { %v4146_v62 = vadd.f32 %v10060_v50, %v9231_v32  ;;  %v4137_v28 = vpop.f32.mrb[83].mxu0  ;;  %v4199_v18 = vmax.f32 %v4143_v60, 0.0 }
0x1083   :  { %v4138_v0 = vadd.f32 %v9231_v32, %v4137_v28  ;;  %v4197_v59 = vmax.f32 %v4135_v30, 0.0 }
0x1084   :  { %v4200_v35 = vmax.f32 %v4146_v62, 0.0 }
0x1085   :  { %v4198_v4 = vmax.f32 %v4138_v0, 0.0 }
0x1086   :  { %v4214_v22 = vpack.c.bf16 %v4200_v35, %v4199_v18  ;;  %v13509_v35 = vld [vmem:[%s15664_s7] ss:$0 sm:$0xff] }
0x1087   :  { %v4213_v11 = vpack.c.bf16 %v4198_v4, %v4197_v59 }
0x1089   :  { %10081 = vmatprep.mubr.msk.bf16.mxu1 %vm4260_vm4, %v4213_v11 }
0x108a   :  { %10082 = vmatmul.mubr.msk.bf16.vlgmr.msra.gmra.mrb[80].mxu1 %vm4260_vm4, %v4214_v22 }
0x10ba   :  { %v10063_v48 = vpop.f32.mrb[84].mxu0 }
0x10bb   :  { %v4159_v3 = vadd.f32 %v10063_v48, %v9231_v32  ;;  %v4150_v49 = vpop.f32.mrb[85].mxu0 }
0x10bc   :  { %v4151_v33 = vadd.f32 %v9231_v32, %v4150_v49  ;;  %v10064_v43 = vpop.f32.mrb[86].mxu0 }
0x10bd   :  { %v4162_v9 = vadd.f32 %v10064_v43, %v9231_v32  ;;  %v4153_v38 = vpop.f32.mrb[87].mxu0  ;;  %v4203_v21 = vmax.f32 %v4159_v3, 0.0 }
0x10be   :  { %v4154_v16 = vadd.f32 %v9231_v32, %v4153_v38  ;;  %v4201_v58 = vmax.f32 %v4151_v33, 0.0 }
0x10bf   :  { %v4204_v47 = vmax.f32 %v4162_v9, 0.0 }
0x10c0   :  { %v4202_v6 = vmax.f32 %v4154_v16, 0.0 }
0x10c1   :  { %v4216_v12 = vpack.c.bf16 %v4204_v47, %v4203_v21 }
0x10c2   :  { %v4215_v44 = vpack.c.bf16 %v4202_v6, %v4201_v58  ;;  %v10067_v34 = vpop.f32.mrb[88].mxu0 }
0x10c3   :  { %v4175_v26 = vadd.f32 %v10067_v34, %v9231_v32  ;;  %v4166_v7 = vpop.f32.mrb[89].mxu0 }
0x10c4   :  { %v4167_v13 = vadd.f32 %v9231_v32, %v4166_v7  ;;  %v10068_v57 = vpop.f32.mrb[90].mxu0  ;;  %10085 = vmatprep.mubr.msk.bf16.mxu1 %vm4260_vm4, %v4215_v44 }
0x10c5   :  { %v4178_v5 = vadd.f32 %v10068_v57, %v9231_v32  ;;  %v4169_v24 = vpop.f32.mrb[91].mxu0  ;;  %10086 = vmatmul.mubr.msk.bf16.gmra.mrb[84].mxu1 %vm4260_vm4, %v4216_v12  ;;  %v4207_v45 = vmax.f32 %v4175_v26, 0.0 }
0x10c6   :  { %v4170_v53 = vadd.f32 %v9231_v32, %v4169_v24  ;;  %v4205_v39 = vmax.f32 %v4167_v13, 0.0 }
0x10c7   :  { %v4208_v40 = vmax.f32 %v4178_v5, 0.0 }
0x10c8   :  { %v4206_v55 = vmax.f32 %v4170_v53, 0.0 }
0x10c9   :  { %v4218_v2 = vpack.c.bf16 %v4208_v40, %v4207_v45 }
0x10ca   :  { %v4217_v46 = vpack.c.bf16 %v4206_v55, %v4205_v39 }
0x10cc   :  { %10089 = vmatprep.mubr.msk.bf16.mxu1 %vm4260_vm4, %v4217_v46 }
0x10cd   :  { %10090 = vmatmul.mubr.msk.bf16.gmra.mrb[88].mxu1 %vm4260_vm4, %v4218_v2 }
0x10ce   :  { %v10071_v56 = vpop.f32.mrb[92].mxu0 }
0x10cf   :  { %v4191_v25 = vadd.f32 %v10071_v56, %v9231_v32  ;;  %v4182_v15 = vpop.f32.mrb[93].mxu0 }
0x10d0   :  { %v4183_v29 = vadd.f32 %v9231_v32, %v4182_v15  ;;  %v10072_v37 = vpop.f32.mrb[94].mxu0 }
0x10d1   :  { %v4194_v31 = vadd.f32 %v10072_v37, %v9231_v32  ;;  %v4185_v60 = vpop.f32.mrb[95].mxu0  ;;  %v4211_v30 = vmax.f32 %v4191_v25, 0.0 }
0x10d2   :  { %v4186_v19 = vadd.f32 %v9231_v32, %v4185_v60  ;;  %v4209_v62 = vmax.f32 %v4183_v29, 0.0 }
0x10d3   :  { %v4212_v50 = vmax.f32 %v4194_v31, 0.0 }
0x10d4   :  { %v4210_v28 = vmax.f32 %v4186_v19, 0.0 }
0x10d5   :  { %v4220_v0 = vpack.c.bf16 %v4212_v50, %v4211_v30 }
0x10d6   :  { %v4219_v18 = vpack.c.bf16 %v4210_v28, %v4209_v62 }
0x10d8   :  { %10093 = vmatprep.mubr.msk.bf16.mxu1 %vm4260_vm4, %v4219_v18 }
0x10d9   :  { %10094 = vmatmul.mubr.msk.bf16.gmra.mrb[92].mxu1 %vm4260_vm4, %v4220_v0 }
0x115d   :  { %v10083_v59 = vpop.f32.mrb[80].mxu1 }
0x115e   :  { %v4319_v4 = vpop.f32.mrb[81].mxu1  ;;  %v4328_v22 = vadd.f32 %v10083_v59, %v13509_v35 }
0x115f   :  { %v4320_v32 = vadd.f32 %v13509_v35, %v4319_v4  ;;  %v10084_v11 = vpop.f32.mrb[82].mxu1 }
0x1160   :  { %v4322_v48 = vpop.f32.mrb[83].mxu1  ;;  %v4331_v49 = vadd.f32 %v10084_v11, %v13509_v35  ;;  %v13519_v43 = vadd.f32 %v4328_v22, %v13243_v54 }
0x1161   :  { %v13514_v3 = vadd.f32 %v4320_v32, %v13240_v51  ;;  %v4323_v33 = vadd.f32 %v13509_v35, %v4322_v48 }
0x1162   :  { %15756 = vst [vmem:[#allocation29_spill] sm:$0xff] %v13519_v43  ;;  %v13527_v16 = vadd.f32 %v4331_v49, %v13252_v52  ;;  %v4408_v21 = vsel %vm101_vm0, %v13519_v43, 0.0 }
0x1163   :  { %15755 = vst [vmem:[#allocation27_spill] sm:$0xff] %v13514_v3  ;;  %v13522_v9 = vadd.f32 %v4323_v33, %v13246_v20  ;;  %v4402_v38 = vsel %vm101_vm0, %v13514_v3, 0.0 }
0x1164   :  { %4403 = vadd.xlane.f32.xlu0 %v4402_v38  ;;  %15758 = vst [vmem:[#allocation14_spill] sm:$0xff] %v13527_v16  ;;  %v4411_v54 = vsel %vm101_vm0, %v13527_v16, 0.0 }
0x1165   :  { %15757 = vst [vmem:[#allocation28_spill] sm:$0xff] %v13522_v9  ;;  %v4405_v51 = vsel %vm101_vm0, %v13522_v9, 0.0 }
0x1166   :  { %4406 = vadd.xlane.f32.xlu1 %v4405_v51 }
0x1168   :  { %4409 = vadd.xlane.f32.xlu0 %v4408_v21 }
0x116a   :  { %4412 = vadd.xlane.f32.xlu1 %v4411_v54 }
0x1198   :  { %v10087_v20 = vpop.f32.mrb[84].mxu1 }
0x1199   :  { %v4335_v47 = vpop.f32.mrb[85].mxu1  ;;  %v4344_v58 = vadd.f32 %v10087_v20, %v13509_v35 }
0x119a   :  { %v4336_v6 = vadd.f32 %v13509_v35, %v4335_v47  ;;  %v10088_v52 = vpop.f32.mrb[86].mxu1 }
0x119b   :  { %v4338_v12 = vpop.f32.mrb[87].mxu1  ;;  %v4347_v34 = vadd.f32 %v10088_v52, %v13509_v35  ;;  %v13543_v7 = vadd.f32 %v4344_v58, %v13264_v23 }
0x119c   :  { %v13538_v44 = vadd.f32 %v4336_v6, %v13260_v42  ;;  %v4339_v26 = vadd.f32 %v13509_v35, %v4338_v12 }
0x119d   :  { %15760 = vst [vmem:[#allocation13_spill] sm:$0xff] %v13543_v7  ;;  %v13551_v5 = vadd.f32 %v4347_v34, %v13270_v41 }
0x119e   :  { %15759 = vst [vmem:[#allocation12_spill] sm:$0xff] %v13538_v44  ;;  %v13546_v13 = vadd.f32 %v4339_v26, %v13266_v8  ;;  %v4414_v57 = vsel %vm101_vm0, %v13538_v44, 0.0  ;;  %v4420_v8 = vsel %vm101_vm0, %v13543_v7, 0.0 }
0x119f   :  { %4415 = vadd.xlane.f32.xlu0 %v4414_v57  ;;  %15762 = vst [vmem:[#allocation18_spill] sm:$0xff] %v13551_v5  ;;  %v4423_v46 = vsel %vm101_vm0, %v13551_v5, 0.0  ;;  %v10790_v57 = vld [vmem:[%s15658_s1 + $0x10] sm:$0xff]  }
0x11a0   :  { %15761 = vst [vmem:[#allocation11_spill] sm:$0xff] %v13546_v13  ;;  %v10091_v24 = vpop.f32.mrb[88].mxu1  ;;  %v4417_v42 = vsel %vm101_vm0, %v13546_v13, 0.0  ;;  %10097 = vmatprep.subr.bf16.mxu0 %v10790_v57 }
0x11a1   :  { %4418 = vadd.xlane.f32.xlu1 %v4417_v42  ;;  %v4351_v53 = vpop.f32.mrb[89].mxu1  ;;  %v4360_v45 = vadd.f32 %v10091_v24, %v13509_v35  ;;  %10098 = vmatpush3.bf16.msra.mxu0 %v10790_v57  ;;  %v10791_v24 = vld [vmem:[%s15658_s1 + $0x18] sm:$0xff]  }
0x11a2   :  { %v4352_v23 = vadd.f32 %v13509_v35, %v4351_v53  ;;  %v10092_v40 = vpop.f32.mrb[90].mxu1  ;;  %10099 = vmatprep.subr.bf16.mxu0 %v10791_v24 }
0x11a3   :  { %4421 = vadd.xlane.f32.xlu0 %v4420_v8  ;;  %v4354_v39 = vpop.f32.mrb[91].mxu1  ;;  %v4363_v41 = vadd.f32 %v10092_v40, %v13509_v35  ;;  %v13567_v56 = vadd.f32 %v4360_v45, %v13284_v36 }
0x11a4   :  { %v13560_v55 = vadd.f32 %v4352_v23, %v13278_v61  ;;  %v4355_v2 = vadd.f32 %v13509_v35, %v4354_v39 }
0x11a5   :  { %4424 = vadd.xlane.f32.xlu1 %v4423_v46  ;;  %15764 = vst [vmem:[#allocation16_spill] sm:$0xff] %v13567_v56  ;;  %v13575_v61 = vadd.f32 %v4363_v41, %v13290_v27  ;;  %v4432_v37 = vsel %vm101_vm0, %v13567_v56, 0.0  ;;  %10100 = vmatpush3.bf16.msra.mxu0 %v10791_v24 }
0x11a6   :  { %15763 = vst [vmem:[#allocation15_spill] sm:$0xff] %v13560_v55  ;;  %v13570_v25 = vadd.f32 %v4355_v2, %v13286_v17  ;;  %v4426_v15 = vsel %vm101_vm0, %v13560_v55, 0.0 }
0x11a7   :  { %4427 = vadd.xlane.f32.xlu0 %v4426_v15  ;;  %15766 = vst [vmem:[#allocation21_spill] sm:$0xff] %v13575_v61  ;;  %v4435_v17 = vsel %vm101_vm0, %v13575_v61, 0.0 }
0x11a8   :  { %15765 = vst [vmem:[#allocation17_spill] sm:$0xff] %v13570_v25  ;;  %v4429_v29 = vsel %vm101_vm0, %v13570_v25, 0.0 }
0x11a9   :  { %4430 = vadd.xlane.f32.xlu1 %v4429_v29 }
0x11ab   :  { %4433 = vadd.xlane.f32.xlu0 %v4432_v37 }
0x11ac   :  { %v10095_v36 = vpop.f32.mrb[92].mxu1 }
0x11ad   :  { %4436 = vadd.xlane.f32.xlu1 %v4435_v17  ;;  %v4367_v31 = vpop.f32.mrb[93].mxu1  ;;  %v4376_v60 = vadd.f32 %v10095_v36, %v13509_v35 }
0x11ae   :  { %v4368_v19 = vadd.f32 %v13509_v35, %v4367_v31  ;;  %v10096_v27 = vpop.f32.mrb[94].mxu1 }
0x11af   :  { %v4370_v30 = vpop.f32.mrb[95].mxu1  ;;  %v4379_v62 = vadd.f32 %v10096_v27, %v13509_v35  ;;  %v13591_v0 = vadd.f32 %v4376_v60, %v13304_v63 }
0x11b0   :  { %v13586_v50 = vadd.f32 %v4368_v19, %v13300_v14  ;;  %v4371_v28 = vadd.f32 %v13509_v35, %v4370_v30 }
0x11b1   :  { %15768 = vst [vmem:[#allocation22_spill] sm:$0xff] %v13591_v0  ;;  %v13599_v4 = vadd.f32 %v4379_v62, %v13310_v1  ;;  %v4444_v35 = vsel %vm101_vm0, %v13591_v0, 0.0 }
0x11b2   :  { %15767 = vst [vmem:[#allocation19_spill] sm:$0xff] %v13586_v50  ;;  %v13594_v18 = vadd.f32 %v4371_v28, %v13306_v10  ;;  %v4438_v59 = vsel %vm101_vm0, %v13586_v50, 0.0 }
0x11b3   :  { %4439 = vadd.xlane.f32.xlu0 %v4438_v59  ;;  %15770 = vst [vmem:[#allocation26_spill] sm:$0xff] %v13599_v4  ;;  %v4447_v63 = vsel %vm101_vm0, %v13599_v4, 0.0 }
0x11b4   :  { %15769 = vst [vmem:[#allocation20_spill] sm:$0xff] %v13594_v18  ;;  %v4441_v14 = vsel %vm101_vm0, %v13594_v18, 0.0 }
0x11b5   :  { %4442 = vadd.xlane.f32.xlu1 %v4441_v14 }
0x11b7   :  { %4445 = vadd.xlane.f32.xlu0 %v4444_v35 }
0x11b9   :  { %4448 = vadd.xlane.f32.xlu1 %v4447_v63 }
0x11f1   :  { %v4404_v10 = vpop.xlane.xlu0 %4403 }
0x11f2   :  { %v4450_v22 = vmul.f32 0.03125, %v4404_v10 }
0x11f3   :  { %v4407_v32 = vpop.xlane.xlu1 %4406 }
0x11f4   :  { %v13608_v11 = vsub.f32 %v13514_v3, %v4450_v22  ;;  %v4451_v1 = vmul.f32 0.03125, %v4407_v32 }
0x11f5   :  { %v4410_v48 = vpop.xlane.xlu0 %4409 }
0x11f6   :  { %v13611_v49 = vsub.f32 %v13522_v9, %v4451_v1  ;;  %v4452_v33 = vmul.f32 0.03125, %v4410_v48  ;;  %v4482_v38 = vmul.f32 %v13608_v11, %v13608_v11 }
0x11f7   :  { %v4413_v51 = vpop.xlane.xlu1 %4412 }
0x11f8   :  { %v13616_v21 = vsub.f32 %v13519_v43, %v4452_v33  ;;  %v4453_v54 = vmul.f32 0.03125, %v4413_v51  ;;  %v4498_v20 = vsel %vm101_vm0, %v4482_v38, 0.0  ;;  %v4483_v47 = vmul.f32 %v13611_v49, %v13611_v49 }
0x11f9   :  { %4499 = vadd.xlane.f32.xlu0 %v4498_v20 }
0x11fa   :  { %v13622_v58 = vsub.f32 %v13527_v16, %v4453_v54  ;;  %v4501_v6 = vsel %vm101_vm0, %v4483_v47, 0.0  ;;  %v4484_v52 = vmul.f32 %v13616_v21, %v13616_v21 }
0x11fb   :  { %4502 = vadd.xlane.f32.xlu1 %v4501_v6 }
0x11fc   :  { %v4504_v12 = vsel %vm101_vm0, %v4484_v52, 0.0  ;;  %v4485_v34 = vmul.f32 %v13622_v58, %v13622_v58 }
0x11fd   :  { %4505 = vadd.xlane.f32.xlu0 %v4504_v12 }
0x11fe   :  { %v4507_v26 = vsel %vm101_vm0, %v4485_v34, 0.0 }
0x11ff   :  { %4508 = vadd.xlane.f32.xlu1 %v4507_v26 }
0x122c   :  { %v4416_v42 = vpop.xlane.xlu0 %4415 }
0x122d   :  { %v4454_v53 = vmul.f32 0.03125, %v4416_v42 }
0x122e   :  { %v4419_v45 = vpop.xlane.xlu1 %4418 }
0x122f   :  { %v13638_v23 = vsub.f32 %v13538_v44, %v4454_v53  ;;  %v4455_v40 = vmul.f32 0.03125, %v4419_v45 }
0x1230   :  { %v4422_v8 = vpop.xlane.xlu0 %4421 }
0x1231   :  { %v13641_v39 = vsub.f32 %v13546_v13, %v4455_v40  ;;  %v4456_v41 = vmul.f32 0.03125, %v4422_v8  ;;  %v4486_v2 = vmul.f32 %v13638_v23, %v13638_v23 }
0x1232   :  { %v4425_v46 = vpop.xlane.xlu1 %4424 }
0x1233   :  { %v13646_v15 = vsub.f32 %v13543_v7, %v4456_v41  ;;  %v4457_v29 = vmul.f32 0.03125, %v4425_v46  ;;  %v4510_v37 = vsel %vm101_vm0, %v4486_v2, 0.0  ;;  %v4487_v36 = vmul.f32 %v13641_v39, %v13641_v39 }
0x1234   :  { %4511 = vadd.xlane.f32.xlu0 %v4510_v37  ;;  %v4428_v17 = vpop.xlane.xlu0 %4427 }
0x1235   :  { %v13652_v31 = vsub.f32 %v13551_v5, %v4457_v29  ;;  %v4458_v60 = vmul.f32 0.03125, %v4428_v17  ;;  %v4513_v19 = vsel %vm101_vm0, %v4487_v36, 0.0  ;;  %v4488_v27 = vmul.f32 %v13646_v15, %v13646_v15 }
0x1236   :  { %v4431_v30 = vpop.xlane.xlu1 %4430  ;;  %4514 = vadd.xlane.f32.xlu1 %v4513_v19 }
0x1237   :  { %v13658_v62 = vsub.f32 %v13560_v55, %v4458_v60  ;;  %v4459_v28 = vmul.f32 0.03125, %v4431_v30  ;;  %v4516_v59 = vsel %vm101_vm0, %v4488_v27, 0.0  ;;  %v4489_v14 = vmul.f32 %v13652_v31, %v13652_v31 }
0x1238   :  { %4517 = vadd.xlane.f32.xlu0 %v4516_v59  ;;  %v4434_v35 = vpop.xlane.xlu0 %4433 }
0x1239   :  { %v13664_v63 = vsub.f32 %v13570_v25, %v4459_v28  ;;  %v4460_v10 = vmul.f32 0.03125, %v4434_v35  ;;  %v4519_v22 = vsel %vm101_vm0, %v4489_v14, 0.0  ;;  %v4490_v32 = vmul.f32 %v13658_v62, %v13658_v62 }
0x123a   :  { %v4437_v1 = vpop.xlane.xlu1 %4436  ;;  %4520 = vadd.xlane.f32.xlu1 %v4519_v22 }
0x123b   :  { %v13670_v48 = vsub.f32 %v13567_v56, %v4460_v10  ;;  %v4461_v33 = vmul.f32 0.03125, %v4437_v1  ;;  %v4522_v38 = vsel %vm101_vm0, %v4490_v32, 0.0  ;;  %v4491_v51 = vmul.f32 %v13664_v63, %v13664_v63 }
0x123c   :  { %4523 = vadd.xlane.f32.xlu0 %v4522_v38 }
0x123d   :  { %v13676_v54 = vsub.f32 %v13575_v61, %v4461_v33  ;;  %v4525_v20 = vsel %vm101_vm0, %v4491_v51, 0.0  ;;  %v4492_v47 = vmul.f32 %v13670_v48, %v13670_v48 }
0x123e   :  { %4526 = vadd.xlane.f32.xlu1 %v4525_v20 }
0x123f   :  { %v4528_v6 = vsel %vm101_vm0, %v4492_v47, 0.0  ;;  %v4493_v52 = vmul.f32 %v13676_v54, %v13676_v54 }
0x1240   :  { %4529 = vadd.xlane.f32.xlu0 %v4528_v6  ;;  %v4440_v12 = vpop.xlane.xlu0 %4439  ;;  %v13712_v6 = vld [vmem:[%s15665_s8 + $0x1] ss:$0 sm:$0xff]  ;;  %s15787_s8 = smov 40  }
0x1241   :  { %v4462_v34 = vmul.f32 0.03125, %v4440_v12  ;;  %v4531_v26 = vsel %vm101_vm0, %v4493_v52, 0.0 }
0x1242   :  { %4532 = vadd.xlane.f32.xlu1 %v4531_v26  ;;  %v4443_v57 = vpop.xlane.xlu1 %4442 }
0x1243   :  { %v13686_v24 = vsub.f32 %v13586_v50, %v4462_v34  ;;  %v4463_v42 = vmul.f32 0.03125, %v4443_v57 }
0x1244   :  { %v4446_v53 = vpop.xlane.xlu0 %4445 }
0x1245   :  { %v13689_v45 = vsub.f32 %v13594_v18, %v4463_v42  ;;  %v4464_v40 = vmul.f32 0.03125, %v4446_v53  ;;  %v4494_v8 = vmul.f32 %v13686_v24, %v13686_v24  ;;  %v13720_v42 = vld [vmem:[%s15666_s9 + $0x1] ss:$0 sm:$0xff] }
0x1246   :  { %v4449_v41 = vpop.xlane.xlu1 %4448 }
0x1247   :  { %v13694_v2 = vsub.f32 %v13591_v0, %v4464_v40  ;;  %v4465_v46 = vmul.f32 0.03125, %v4449_v41  ;;  %v4534_v29 = vsel %vm101_vm0, %v4494_v8, 0.0  ;;  %v4495_v37 = vmul.f32 %v13689_v45, %v13689_v45 }
0x1248   :  { %4535 = vadd.xlane.f32.xlu0 %v4534_v29 }
0x1249   :  { %v13700_v36 = vsub.f32 %v13599_v4, %v4465_v46  ;;  %v4537_v17 = vsel %vm101_vm0, %v4495_v37, 0.0  ;;  %v4496_v60 = vmul.f32 %v13694_v2, %v13694_v2 }
0x124a   :  { %4538 = vadd.xlane.f32.xlu1 %v4537_v17 }
0x124b   :  { %v4540_v19 = vsel %vm101_vm0, %v4496_v60, 0.0  ;;  %v4497_v27 = vmul.f32 %v13700_v36, %v13700_v36 }
0x124c   :  { %4541 = vadd.xlane.f32.xlu0 %v4540_v19 }
0x124d   :  { %v4543_v30 = vsel %vm101_vm0, %v4497_v27, 0.0 }
0x124e   :  { %4544 = vadd.xlane.f32.xlu1 %v4543_v30 }
0x1286   :  { %v4500_v28 = vpop.xlane.xlu0 %4499 }
0x1287   :  { %v4546_v59 = vmul.f32 0.03125, %v4500_v28 }
0x1288   :  { %v4503_v14 = vpop.xlane.xlu1 %4502 }
0x1289   :  { %v4562_v35 = vadd.f32 0.0001, %v4546_v59  ;;  %v4547_v10 = vmul.f32 0.03125, %v4503_v14 }
0x128a   :  { %v4506_v22 = vpop.xlane.xlu0 %4505 }
0x128b   :  { %11122 = vrsqrt.f32 %v4562_v35  ;;  %v4563_v32 = vadd.f32 0.0001, %v4547_v10  ;;  %v4548_v1 = vmul.f32 0.03125, %v4506_v22 }
0x128c   :  { %v4509_v33 = vpop.xlane.xlu1 %4508 }
0x128d   :  { %11124 = vrsqrt.f32 %v4563_v32  ;;  %v4564_v38 = vadd.f32 0.0001, %v4548_v1  ;;  %v4549_v51 = vmul.f32 0.03125, %v4509_v33 }
0x128f   :  { %11126 = vrsqrt.f32 %v4564_v38  ;;  %v4565_v20 = vadd.f32 0.0001, %v4549_v51 }
0x1291   :  { %11128 = vrsqrt.f32 %v4565_v20 }
0x1295   :  { %v11123_v47 = vpop.eup %11122 }
0x1296   :  { %v4594_v52 = vmul.f32 %v11123_v47, %v13608_v11 }
0x1297   :  { %v11125_v12 = vpop.eup %11124 }
0x1298   :  { %v4595_v34 = vmul.f32 %v11125_v12, %v13611_v49  ;;  %v4616_v26 = vmul.f32 %v13712_v6, %v4594_v52 }
0x1299   :  { %v11127_v57 = vpop.eup %11126 }
0x129a   :  { %v4596_v53 = vmul.f32 %v11127_v57, %v13616_v21  ;;  %v4617_v40 = vmul.f32 %v13712_v6, %v4595_v34  ;;  %v4638_v46 = vadd.f32 %v13720_v42, %v4616_v26 }
0x129b   :  { %v11129_v8 = vpop.eup %11128 }
0x129c   :  { %v4618_v41 = vmul.f32 %v13712_v6, %v4596_v53  ;;  %v4597_v11 = vmul.f32 %v11129_v8, %v13622_v58  ;;  %v4639_v49 = vadd.f32 %v13720_v42, %v4617_v40 }
0x129e   :  { %v4619_v29 = vmul.f32 %v13712_v6, %v4597_v11  ;;  %v4654_v37 = vpack.c.bf16 %v4639_v49, %v4638_v46  ;;  %v4640_v17 = vadd.f32 %v13720_v42, %v4618_v41 }
0x12a0   :  { %v4641_v60 = vadd.f32 %v13720_v42, %v4619_v29  ;;  %10101 = vmatprep.mubr.msk.bf16.mxu0 %vm101_vm0, %v4654_v37 }
0x12a2   :  { %v4655_v21 = vpack.c.bf16 %v4641_v60, %v4640_v17 }
0x12a4   :  { %10102 = vmatmul.mubr.msk.bf16.vlgmr.msra.gmra.mrb[96].mxu0 %vm101_vm0, %v4655_v21 }
0x12c1   :  { %v4512_v19 = vpop.xlane.xlu0 %4511 }
0x12c2   :  { %v4550_v27 = vmul.f32 0.03125, %v4512_v19 }
0x12c3   :  { %v4515_v30 = vpop.xlane.xlu1 %4514 }
0x12c4   :  { %v4566_v58 = vadd.f32 0.0001, %v4550_v27  ;;  %v4551_v28 = vmul.f32 0.03125, %v4515_v30 }
0x12c5   :  { %v4518_v59 = vpop.xlane.xlu0 %4517 }
0x12c6   :  { %11130 = vrsqrt.f32 %v4566_v58  ;;  %v4567_v14 = vadd.f32 0.0001, %v4551_v28  ;;  %v4552_v35 = vmul.f32 0.03125, %v4518_v59 }
0x12c7   :  { %v4521_v10 = vpop.xlane.xlu1 %4520 }
0x12c8   :  { %11132 = vrsqrt.f32 %v4567_v14  ;;  %v4568_v22 = vadd.f32 0.0001, %v4552_v35  ;;  %v4553_v32 = vmul.f32 0.03125, %v4521_v10 }
0x12c9   :  { %v4524_v1 = vpop.xlane.xlu0 %4523 }
0x12ca   :  { %11134 = vrsqrt.f32 %v4568_v22  ;;  %v4569_v33 = vadd.f32 0.0001, %v4553_v32  ;;  %v4554_v38 = vmul.f32 0.03125, %v4524_v1 }
0x12cb   :  { %v4527_v51 = vpop.xlane.xlu1 %4526 }
0x12cc   :  { %11136 = vrsqrt.f32 %v4569_v33  ;;  %v4570_v20 = vadd.f32 0.0001, %v4554_v38  ;;  %v4555_v47 = vmul.f32 0.03125, %v4527_v51 }
0x12cd   :  { %v4530_v52 = vpop.xlane.xlu0 %4529 }
0x12ce   :  { %11138 = vrsqrt.f32 %v4570_v20  ;;  %v4571_v12 = vadd.f32 0.0001, %v4555_v47  ;;  %v4556_v34 = vmul.f32 0.03125, %v4530_v52 }
0x12cf   :  { %v4533_v26 = vpop.xlane.xlu1 %4532 }
0x12d0   :  { %v11131_v57 = vpop.eup %11130  ;;  %11140 = vrsqrt.f32 %v4571_v12  ;;  %v4572_v53 = vadd.f32 0.0001, %v4556_v34  ;;  %v4557_v40 = vmul.f32 0.03125, %v4533_v26 }
0x12d1   :  { %v4598_v8 = vmul.f32 %v11131_v57, %v13638_v23 }
0x12d2   :  { %v11133_v41 = vpop.eup %11132  ;;  %11142 = vrsqrt.f32 %v4572_v53  ;;  %v4573_v11 = vadd.f32 0.0001, %v4557_v40 }
0x12d3   :  { %v4599_v46 = vmul.f32 %v11133_v41, %v13641_v39  ;;  %v4620_v49 = vmul.f32 %v13712_v6, %v4598_v8 }
0x12d4   :  { %v11135_v29 = vpop.eup %11134  ;;  %11144 = vrsqrt.f32 %v4573_v11 }
0x12d5   :  { %v4536_v37 = vpop.xlane.xlu0 %4535  ;;  %v4621_v17 = vmul.f32 %v13712_v6, %v4599_v46  ;;  %v4600_v60 = vmul.f32 %v11135_v29, %v13646_v15  ;;  %v4642_v30 = vadd.f32 %v13720_v42, %v4620_v49 }
0x12d6   :  { %v11137_v21 = vpop.eup %11136  ;;  %v4558_v19 = vmul.f32 0.03125, %v4536_v37 }
0x12d7   :  { %v4539_v27 = vpop.xlane.xlu1 %4538  ;;  %v4643_v23 = vadd.f32 %v13720_v42, %v4621_v17  ;;  %v4601_v58 = vmul.f32 %v11137_v21, %v13652_v31  ;;  %v4622_v39 = vmul.f32 %v13712_v6, %v4600_v60 }
0x12d8   :  { %v11139_v28 = vpop.eup %11138  ;;  %v4574_v59 = vadd.f32 0.0001, %v4558_v19  ;;  %v4559_v14 = vmul.f32 0.03125, %v4539_v27 }
0x12d9   :  { %v4542_v35 = vpop.xlane.xlu0 %4541  ;;  %v4656_v10 = vpack.c.bf16 %v4643_v23, %v4642_v30  ;;  %v4623_v22 = vmul.f32 %v13712_v6, %v4601_v58  ;;  %v4602_v15 = vmul.f32 %v11139_v28, %v13658_v62  ;;  %v4644_v31 = vadd.f32 %v13720_v42, %v4622_v39 }
0x12da   :  { %v11141_v32 = vpop.eup %11140  ;;  %11146 = vrsqrt.f32 %v4574_v59  ;;  %v4575_v1 = vadd.f32 0.0001, %v4559_v14  ;;  %v4560_v33 = vmul.f32 0.03125, %v4542_v35 }
0x12db   :  { %v4545_v38 = vpop.xlane.xlu1 %4544  ;;  %10105 = vmatprep.mubr.msk.bf16.mxu0 %vm101_vm0, %v4656_v10  ;;  %v4645_v51 = vadd.f32 %v13720_v42, %v4623_v22  ;;  %v4603_v20 = vmul.f32 %v11141_v32, %v13664_v63  ;;  %v4624_v47 = vmul.f32 %v13712_v6, %v4602_v15 }
0x12dc   :  { %v11143_v52 = vpop.eup %11142  ;;  %11148 = vrsqrt.f32 %v4575_v1  ;;  %v4576_v12 = vadd.f32 0.0001, %v4560_v33  ;;  %v4561_v34 = vmul.f32 0.03125, %v4545_v38 }
0x12dd   :  { %v4657_v62 = vpack.c.bf16 %v4645_v51, %v4644_v31  ;;  %v4625_v26 = vmul.f32 %v13712_v6, %v4603_v20  ;;  %v4604_v57 = vmul.f32 %v11143_v52, %v13670_v48  ;;  %v4646_v8 = vadd.f32 %v13720_v42, %v4624_v47 }
0x12de   :  { %v11145_v53 = vpop.eup %11144  ;;  %11150 = vrsqrt.f32 %v4576_v12  ;;  %v4577_v40 = vadd.f32 0.0001, %v4561_v34 }
0x12df   :  { %10106 = vmatmul.mubr.msk.bf16.gmra.mrb[100].mxu0 %vm101_vm0, %v4657_v62  ;;  %v4647_v63 = vadd.f32 %v13720_v42, %v4625_v26  ;;  %v4605_v41 = vmul.f32 %v11145_v53, %v13676_v54  ;;  %v4626_v11 = vmul.f32 %v13712_v6, %v4604_v57 }
0x12e0   :  { %11152 = vrsqrt.f32 %v4577_v40 }
0x12e1   :  { %v4658_v46 = vpack.c.bf16 %v4647_v63, %v4646_v8  ;;  %v4627_v49 = vmul.f32 %v13712_v6, %v4605_v41  ;;  %v4648_v48 = vadd.f32 %v13720_v42, %v4626_v11 }
0x12e3   :  { %10109 = vmatprep.mubr.msk.bf16.mxu0 %vm101_vm0, %v4658_v46  ;;  %v4649_v29 = vadd.f32 %v13720_v42, %v4627_v49 }
0x12e4   :  { %v11147_v37 = vpop.eup %11146 }
0x12e5   :  { %v4659_v17 = vpack.c.bf16 %v4649_v29, %v4648_v48  ;;  %v4606_v60 = vmul.f32 %v11147_v37, %v13686_v24 }
0x12e6   :  { %v11149_v21 = vpop.eup %11148 }
0x12e7   :  { %10110 = vmatmul.mubr.msk.bf16.gmra.mrb[104].mxu0 %vm101_vm0, %v4659_v17  ;;  %v4607_v54 = vmul.f32 %v11149_v21, %v13689_v45  ;;  %v4628_v19 = vmul.f32 %v13712_v6, %v4606_v60 }
0x12e8   :  { %v11151_v27 = vpop.eup %11150 }
0x12e9   :  { %v4629_v30 = vmul.f32 %v13712_v6, %v4607_v54  ;;  %v4608_v23 = vmul.f32 %v11151_v27, %v13694_v2  ;;  %v4650_v39 = vadd.f32 %v13720_v42, %v4628_v19 }
0x12ea   :  { %v11153_v58 = vpop.eup %11152 }
0x12eb   :  { %v4651_v28 = vadd.f32 %v13720_v42, %v4629_v30  ;;  %v4609_v59 = vmul.f32 %v11153_v58, %v13700_v36  ;;  %v4630_v24 = vmul.f32 %v13712_v6, %v4608_v23 }
0x12ed   :  { %v4660_v14 = vpack.c.bf16 %v4651_v28, %v4650_v39  ;;  %v4631_v35 = vmul.f32 %v13712_v6, %v4609_v59  ;;  %v4652_v45 = vadd.f32 %v13720_v42, %v4630_v24 }
0x12ef   :  { %10113 = vmatprep.mubr.msk.bf16.mxu0 %vm101_vm0, %v4660_v14  ;;  %v4653_v10 = vadd.f32 %v13720_v42, %v4631_v35 }
0x12f1   :  { %v4661_v22 = vpack.c.bf16 %v4653_v10, %v4652_v45 }
0x12f3   :  { %10114 = vmatmul.mubr.msk.bf16.gmra.mrb[108].mxu0 %vm101_vm0, %v4661_v22 }
0x1377   :  { %v10103_v2 = vpop.f32.mrb[96].mxu0 }
0x1378   :  { %v4737_v15 = vpop.f32.mrb[97].mxu0 }
0x1379   :  { %v10104_v32 = vpop.f32.mrb[98].mxu0 }
0x137a   :  { %v13775_v1 = vpack.c.bf16 %v10104_v32, %v10103_v2  ;;  %v4740_v36 = vpop.f32.mrb[99].mxu0 }
0x137b   :  { %v13777_v33 = vpack.c.bf16 %v4740_v36, %v4737_v15 }
0x137c   :  { %4812 = vrot.lane.b32.xlu1 %v13775_v1, %s11568_s29 }
0x137d   :  { %4810 = vrot.lane.b32.xlu0 %v13777_v33, %s11568_s29  ;;  %10121 = vmatprep.mubr.msk.bf16.mxu1 %vm514_vm1, %v13777_v33 }
0x13b2   :  { %v10107_v6 = vpop.f32.mrb[100].mxu0 }
0x13b3   :  { %v4753_v42 = vpop.f32.mrb[101].mxu0 }
0x13b4   :  { %v10108_v38 = vpop.f32.mrb[102].mxu0 }
0x13b5   :  { %v13785_v31 = vpack.c.bf16 %v10108_v38, %v10107_v6  ;;  %v4756_v51 = vpop.f32.mrb[103].mxu0 }
0x13b6   :  { %v13787_v20 = vpack.c.bf16 %v4756_v51, %v4753_v42 }
0x13b8   :  { %4877 = vrot.lane.b32.xlu1 %v13787_v20, %s11568_s29  ;;  %10129 = vmatprep.mubr.msk.bf16.mxu0 %vm514_vm1, %v13787_v20 }
0x13ba   :  { %v10111_v47 = vpop.f32.mrb[104].mxu0 }
0x13bb   :  { %v4769_v52 = vpop.f32.mrb[105].mxu0 }
0x13bc   :  { %4879 = vrot.lane.b32.xlu1 %v13785_v31, %s11568_s29  ;;  %v10112_v12 = vpop.f32.mrb[106].mxu0 }
0x13bd   :  { %v13795_v34 = vpack.c.bf16 %v10112_v12, %v10111_v47  ;;  %v4772_v62 = vpop.f32.mrb[107].mxu0 }
0x13be   :  { %v13797_v26 = vpack.c.bf16 %v4772_v62, %v4769_v52 }
0x13c0   :  { %4946 = vrot.lane.b32.xlu1 %v13795_v34, %s11568_s29  ;;  %4944 = vrot.lane.b32.xlu0 %v13797_v26, %s11568_s29 }
0x13c6   :  { %v10115_v57 = vpop.f32.mrb[108].mxu0 }
0x13c7   :  { %v4785_v53 = vpop.f32.mrb[109].mxu0 }
0x13c8   :  { %v10116_v40 = vpop.f32.mrb[110].mxu0 }
0x13c9   :  { %v13803_v8 = vpack.c.bf16 %v10116_v40, %v10115_v57  ;;  %v4788_v63 = vpop.f32.mrb[111].mxu0 }
0x13ca   :  { %v13805_v41 = vpack.c.bf16 %v4788_v63, %v4785_v53 }
0x13cb   :  { %5013 = vrot.lane.b32.xlu1 %v13803_v8, %s11568_s29 }
0x13cc   :  { %5011 = vrot.lane.b32.xlu0 %v13805_v41, %s11568_s29 }
0x13cf   :  { %5278 = vrot.lane.b32.xlu1 %v13775_v1, %s11569_s30 }
0x13d0   :  { %5276 = vrot.lane.b32.xlu0 %v13777_v33, %s11569_s30 }
0x13d3   :  { %5398 = vrot.lane.b32.xlu1 %v13797_v26, %s11569_s30 }
0x13d4   :  { %5337 = vrot.lane.b32.xlu0 %v13787_v20, %s11569_s30 }
0x13d7   :  { %5400 = vrot.lane.b32.xlu1 %v13795_v34, %s11569_s30 }
0x13d8   :  { %5339 = vrot.lane.b32.xlu0 %v13785_v31, %s11569_s30 }
0x13ee   :  { %v4813_v49 = vpop.permute.xlu1 %4812 }
0x13ef   :  { %v4811_v11 = vpop.permute.xlu0 %4810  ;;  %v4824_v48 = vsel %vm514_vm1, %v4813_v49, 0 }
0x13f0   :  { %10489 = vmatprep.subr.msk.bf16.mxu1 %vm514_vm1, %v4811_v11  ;;  %v4821_v46 = vsel %vm514_vm1, %v4811_v11, 0 }
0x13f1   :  { %10118 = vmatpush3.bf16.xpose.msra.mxu1 %v4821_v46 }
0x13f2   :  { %10490 = vmatprep.subr.msk.bf16.mxu1 %vm514_vm1, %v4813_v49 }
0x13f9   :  { %10120 = vmatpush3.bf16.xpose.msra.mxu1 %v4824_v48 }
0x1400   :  { %10122 = vmatmul.mubr.msk.bf16.vlgmr.msra.gmra.mrb[96].mxu1 %vm514_vm1, %v13775_v1 }
0x1401   :  { %10137 = vmatprep.mubr.msk.bf16.mxu1 %vm514_vm1, %v13797_v26 }
0x142a   :  { %v4878_v29 = vpop.permute.xlu1 %4877 }
0x142b   :  { %10491 = vmatprep.subr.msk.bf16.mxu0 %vm514_vm1, %v4878_v29  ;;  %v4888_v37 = vsel %vm514_vm1, %v4878_v29, 0 }
0x142c   :  { %10126 = vmatpush3.bf16.xpose.msra.mxu0 %v4888_v37 }
0x142e   :  { %v4880_v17 = vpop.permute.xlu1 %4879 }
0x142f   :  { %10492 = vmatprep.subr.msk.bf16.mxu0 %vm514_vm1, %v4880_v17  ;;  %v4891_v21 = vsel %vm514_vm1, %v4880_v17, 0 }
0x1432   :  { %v4945_v60 = vpop.permute.xlu0 %4944  ;;  %v4947_v19 = vpop.permute.xlu1 %4946 }
0x1433   :  { %10493 = vmatprep.subr.msk.bf16.mxu1 %vm514_vm1, %v4945_v60  ;;  %v4955_v54 = vsel %vm514_vm1, %v4945_v60, 0  ;;  %v4958_v27 = vsel %vm514_vm1, %v4947_v19, 0 }
0x1434   :  { %10128 = vmatpush3.bf16.xpose.msra.mxu0 %v4891_v21  ;;  %10134 = vmatpush3.bf16.xpose.msra.mxu1 %v4955_v54 }
0x1435   :  { %10494 = vmatprep.subr.msk.bf16.mxu1 %vm514_vm1, %v4947_v19 }
0x143b   :  { %10130 = vmatmul.mubr.msk.bf16.vlgmr.msra.gmra.mrb[112].mxu0 %vm514_vm1, %v13785_v31 }
0x143c   :  { %10136 = vmatpush3.bf16.xpose.msra.mxu1 %v4958_v27  ;;  %10145 = vmatprep.mubr.msk.bf16.mxu0 %vm514_vm1, %v13805_v41 }
0x143d   :  { %v5014_v30 = vpop.permute.xlu1 %5013 }
0x143e   :  { %v5012_v23 = vpop.permute.xlu0 %5011  ;;  %v5025_v59 = vsel %vm514_vm1, %v5014_v30, 0 }
0x143f   :  { %10495 = vmatprep.subr.msk.bf16.mxu0 %vm514_vm1, %v5012_v23  ;;  %v5022_v58 = vsel %vm514_vm1, %v5012_v23, 0 }
0x1440   :  { %10142 = vmatpush3.bf16.xpose.msra.mxu0 %v5022_v58 }
0x1441   :  { %10496 = vmatprep.subr.msk.bf16.mxu0 %vm514_vm1, %v5014_v30  ;;  %v5279_v39 = vpop.permute.xlu1 %5278 }
0x1442   :  { %v5277_v28 = vpop.permute.xlu0 %5276 }
0x1443   :  { %10138 = vmatmul.mubr.msk.bf16.vlgmr.msra.gmra.mrb[100].mxu1 %vm514_vm1, %v13795_v34  ;;  %10149 = vmatprep.subr.bf16.mxu1 %v5277_v28 }
0x1444   :  { %10150 = vmatpush3.bf16.msra.mxu1 %v5277_v28 }
0x1445   :  { %10151 = vmatprep.subr.bf16.mxu1 %v5279_v39  ;;  %v13849_v24 = vpop.permute.xlu1 %5398 }
0x1446   :  { %v5338_v14 = vpop.permute.xlu0 %5337 }
0x1448   :  { %10144 = vmatpush3.bf16.xpose.msra.mxu0 %v5025_v59  ;;  %10152 = vmatpush3.bf16.msra.mxu1 %v5279_v39 }
0x1449   :  { %10157 = vmatprep.subr.bf16.mxu0 %v5338_v14  ;;  %10165 = vmatprep.subr.bf16.mxu1 %v13849_v24 }
0x144a   :  { %v5340_v35 = vpop.permute.xlu0 %5339 }
0x144f   :  { %10146 = vmatmul.mubr.msk.bf16.vlgmr.msra.gmra.mrb[116].mxu0 %vm514_vm1, %v13803_v8 }
0x1450   :  { %10158 = vmatpush3.bf16.msra.mxu0 %v5338_v14 }
0x1451   :  { %10159 = vmatprep.subr.bf16.mxu0 %v5340_v35 }
0x1454   :  { %10160 = vmatpush3.bf16.msra.mxu0 %v5340_v35 }
0x14d3   :  { %v10123_v45 = vpop.f32.mrb[96].mxu1 }
0x14d4   :  { %v13854_v10 = vmul.f32 0.35355338, %v10123_v45  ;;  %v4860_v22 = vpop.f32.mrb[97].mxu1 }
0x14d5   :  { %v10124_v2 = vpop.f32.mrb[98].mxu1  ;;  %v13856_v15 = vmul.f32 0.35355338, %v4860_v22 }
0x14d6   :  { %v4863_v32 = vpop.f32.mrb[99].mxu1  ;;  %v5098_v36 = vsel %vm101_vm0, %v13854_v10, -inf  ;;  %v13864_v38 = vmul.f32 0.35355338, %v10124_v2 }
0x14d7   :  { %v13860_v6 = vmul.f32 0.35355338, %v4863_v32  ;;  %5099 = vmax.xlane.f32.xlu0 %v5098_v36  ;;  %v5092_v51 = vsel %vm101_vm0, %v13856_v15, -inf }
0x14d8   :  { %v5101_v47 = vsel %vm101_vm0, %v13864_v38, -inf }
0x14d9   :  { %v5095_v42 = vsel %vm101_vm0, %v13860_v6, -inf }
0x14da   :  { %5096 = vmax.xlane.f32.xlu1 %v5095_v42 }
0x14db   :  { %5093 = vmax.xlane.f32.xlu0 %v5092_v51 }
0x14df   :  { %5102 = vmax.xlane.f32.xlu0 %v5101_v47 }
0x150e   :  { %v10131_v52 = vpop.f32.mrb[112].mxu0 }
0x150f   :  { %v13870_v12 = vmul.f32 0.35355338, %v10131_v52  ;;  %v4927_v62 = vpop.f32.mrb[113].mxu0 }
0x1510   :  { %v10132_v57 = vpop.f32.mrb[114].mxu0  ;;  %v13872_v53 = vmul.f32 0.35355338, %v4927_v62  ;;  %v13922_v62 = vpop.permute.xlu1 %5400 }
0x1511   :  { %v13874_v40 = vmul.f32 0.35355338, %v10132_v57  ;;  %v4930_v63 = vpop.f32.mrb[115].mxu0  ;;  %v5110_v11 = vsel %vm101_vm0, %v13870_v12, -inf }
0x1512   :  { %5111 = vmax.xlane.f32.xlu0 %v5110_v11  ;;  %v13878_v46 = vmul.f32 0.35355338, %v4930_v63  ;;  %v5104_v48 = vsel %vm101_vm0, %v13872_v53, -inf }
0x1513   :  { %v5113_v49 = vsel %vm101_vm0, %v13874_v40, -inf }
0x1514   :  { %5114 = vmax.xlane.f32.xlu1 %v5113_v49  ;;  %v5107_v60 = vsel %vm101_vm0, %v13878_v46, -inf }
0x1516   :  { %5105 = vmax.xlane.f32.xlu0 %v5104_v48  ;;  %v10139_v29 = vpop.f32.mrb[100].mxu1 }
0x1517   :  { %v13884_v37 = vmul.f32 0.35355338, %v10139_v29  ;;  %v4994_v17 = vpop.f32.mrb[101].mxu1 }
0x1518   :  { %5108 = vmax.xlane.f32.xlu1 %v5107_v60  ;;  %v10140_v21 = vpop.f32.mrb[102].mxu1  ;;  %v13888_v54 = vmul.f32 0.35355338, %v4994_v17 }
0x1519   :  { %v13890_v19 = vmul.f32 0.35355338, %v10140_v21  ;;  %v4997_v27 = vpop.f32.mrb[103].mxu1  ;;  %v5122_v30 = vsel %vm101_vm0, %v13884_v37, -inf }
0x151a   :  { %5123 = vmax.xlane.f32.xlu0 %v5122_v30  ;;  %v13894_v23 = vmul.f32 0.35355338, %v4997_v27  ;;  %v5116_v39 = vsel %vm101_vm0, %v13888_v54, -inf }
0x151b   :  { %v5125_v58 = vsel %vm101_vm0, %v13890_v19, -inf }
0x151c   :  { %5126 = vmax.xlane.f32.xlu1 %v5125_v58  ;;  %v5119_v28 = vsel %vm101_vm0, %v13894_v23, -inf }
0x151e   :  { %5117 = vmax.xlane.f32.xlu0 %v5116_v39 }
0x1520   :  { %5120 = vmax.xlane.f32.xlu1 %v5119_v28 }
0x1522   :  { %v10147_v59 = vpop.f32.mrb[116].mxu0 }
0x1523   :  { %v13902_v14 = vmul.f32 0.35355338, %v10147_v59  ;;  %v5061_v35 = vpop.f32.mrb[117].mxu0 }
0x1524   :  { %v10148_v45 = vpop.f32.mrb[118].mxu0  ;;  %v13904_v22 = vmul.f32 0.35355338, %v5061_v35 }
0x1525   :  { %v5064_v2 = vpop.f32.mrb[119].mxu0  ;;  %v5134_v32 = vsel %vm101_vm0, %v13902_v14, -inf  ;;  %v13914_v42 = vmul.f32 0.35355338, %v10148_v45 }
0x1526   :  { %5135 = vmax.xlane.f32.xlu0 %v5134_v32  ;;  %v5128_v36 = vsel %vm101_vm0, %v13904_v22, -inf  ;;  %v13916_v51 = vmul.f32 0.35355338, %v5064_v2 }
0x1527   :  { %v5137_v47 = vsel %vm101_vm0, %v13914_v42, -inf }
0x1528   :  { %v5131_v52 = vsel %vm101_vm0, %v13916_v51, -inf }
0x152a   :  { %5129 = vmax.xlane.f32.xlu0 %v5128_v36 }
0x1531   :  { %5461 = vrot.lane.b32.xlu1 %v13803_v8, %s11569_s30 }
0x1540   :  { %5459 = vrot.lane.b32.xlu0 %v13805_v41, %s11569_s30 }
0x1555   :  { %5138 = vmax.xlane.f32.xlu1 %v5137_v47 }
0x1559   :  { %5132 = vmax.xlane.f32.xlu1 %v5131_v52 }
0x1564   :  { %v5100_v57 = vpop.xlane.xlu0 %5099 }
0x1565   :  { %v5142_v63 = vsub.f32 %v13854_v10, %v5100_v57 }
0x1567   :  { %v5160_v11 = vmul.f32 1.442695, %v5142_v63  ;;  %v5097_v49 = vpop.xlane.xlu1 %5096 }
0x1568   :  { %v5094_v48 = vpop.xlane.xlu0 %5093  ;;  %v5141_v17 = vsub.f32 %v13860_v6, %v5097_v49 }
0x1569   :  { %11154 = vpow2.f32 %v5160_v11  ;;  %v5140_v29 = vsub.f32 %v13856_v15, %v5094_v48 }
0x156a   :  { %v5158_v30 = vmul.f32 1.442695, %v5141_v17 }
0x156b   :  { %v5156_v60 = vmul.f32 1.442695, %v5140_v29 }
0x156c   :  { %v5103_v21 = vpop.xlane.xlu0 %5102 }
0x156d   :  { %11156 = vpow2.f32 %v5156_v60  ;;  %v5143_v27 = vsub.f32 %v13864_v38, %v5103_v21 }
0x156f   :  { %v5162_v58 = vmul.f32 1.442695, %v5143_v27 }
0x1571   :  { %11158 = vpow2.f32 %v5162_v58 }
0x1572   :  { %11160 = vpow2.f32 %v5158_v30 }
0x1573   :  { %v13928_v39 = vpop.eup %11154 }
0x1574   :  { %v5194_v10 = vsel %vm101_vm0, %v13928_v39, 0.0 }
0x1575   :  { %5195 = vadd.xlane.f32.xlu0 %v5194_v10 }
0x1577   :  { %v13932_v28 = vpop.eup %11156 }
0x1578   :  { %v5188_v15 = vsel %vm101_vm0, %v13932_v28, 0.0 }
0x1579   :  { %5189 = vadd.xlane.f32.xlu0 %v5188_v15 }
0x157b   :  { %v13936_v6 = vpop.eup %11158 }
0x157c   :  { %v5197_v38 = vsel %vm101_vm0, %v13936_v6, 0.0  ;;  %v13940_v59 = vpop.eup %11160 }
0x157d   :  { %5198 = vadd.xlane.f32.xlu1 %v5197_v38  ;;  %v5191_v35 = vsel %vm101_vm0, %v13940_v59, 0.0 }
0x1581   :  { %5192 = vadd.xlane.f32.xlu1 %v5191_v35 }
0x159f   :  { %v5112_v45 = vpop.xlane.xlu0 %5111 }
0x15a0   :  { %v5146_v2 = vsub.f32 %v13870_v12, %v5112_v45 }
0x15a1   :  { %v5115_v32 = vpop.xlane.xlu1 %5114 }
0x15a2   :  { %v5168_v36 = vmul.f32 1.442695, %v5146_v2  ;;  %v5147_v47 = vsub.f32 %v13874_v40, %v5115_v32 }
0x15a3   :  { %v5106_v52 = vpop.xlane.xlu0 %5105 }
0x15a4   :  { %11162 = vpow2.f32 %v5168_v36  ;;  %v5170_v57 = vmul.f32 1.442695, %v5147_v47  ;;  %v5144_v63 = vsub.f32 %v13872_v53, %v5106_v52 }
0x15a5   :  { %v5109_v11 = vpop.xlane.xlu1 %5108 }
0x15a6   :  { %11164 = vpow2.f32 %v5170_v57  ;;  %v5164_v49 = vmul.f32 1.442695, %v5144_v63  ;;  %v5145_v48 = vsub.f32 %v13878_v46, %v5109_v11 }
0x15a7   :  { %v5124_v29 = vpop.xlane.xlu0 %5123 }
0x15a8   :  { %11166 = vpow2.f32 %v5164_v49  ;;  %v5166_v17 = vmul.f32 1.442695, %v5145_v48  ;;  %v5150_v60 = vsub.f32 %v13884_v37, %v5124_v29 }
0x15a9   :  { %v5127_v52 = vpop.xlane.xlu1 %5126 }
0x15aa   :  { %11168 = vpow2.f32 %v5166_v17  ;;  %v5176_v12 = vmul.f32 1.442695, %v5150_v60  ;;  %v5151_v57 = vsub.f32 %v13890_v19, %v5127_v52 }
0x15ab   :  { %v5118_v21 = vpop.xlane.xlu0 %5117 }
0x15ac   :  { %11170 = vpow2.f32 %v5176_v12  ;;  %v5148_v40 = vsub.f32 %v13888_v54, %v5118_v21  ;;  %v5178_v11 = vmul.f32 1.442695, %v5151_v57 }
0x15ad   :  { %v5121_v63 = vpop.xlane.xlu1 %5120 }
0x15ae   :  { %v13950_v27 = vpop.eup %11162  ;;  %v5172_v30 = vmul.f32 1.442695, %v5148_v40  ;;  %v5149_v49 = vsub.f32 %v13894_v23, %v5121_v63 }
0x15af   :  { %v5206_v53 = vsel %vm101_vm0, %v13950_v27, 0.0 }
0x15b0   :  { %v13954_v58 = vpop.eup %11164  ;;  %11172 = vpow2.f32 %v5172_v30  ;;  %5207 = vadd.xlane.f32.xlu0 %v5206_v53  ;;  %v5174_v29 = vmul.f32 1.442695, %v5149_v49 }
0x15b1   :  { %v5209_v46 = vsel %vm101_vm0, %v13954_v58, 0.0  ;;  %11174 = vpow2.f32 %v5178_v11  ;;  %v13985_v60 = vpop.permute.xlu1 %5461 }
0x15b2   :  { %v13958_v37 = vpop.eup %11166  ;;  %5210 = vadd.xlane.f32.xlu1 %v5209_v46  ;;  %11176 = vpow2.f32 %v5174_v29 }
0x15b3   :  { %v5136_v10 = vpop.xlane.xlu0 %5135  ;;  %v5200_v54 = vsel %vm101_vm0, %v13958_v37, 0.0 }
0x15b4   :  { %v13962_v15 = vpop.eup %11168  ;;  %5201 = vadd.xlane.f32.xlu0 %v5200_v54  ;;  %v5154_v17 = vsub.f32 %v13902_v14, %v5136_v10 }
0x15b5   :  { %v5203_v38 = vsel %vm101_vm0, %v13962_v15, 0.0 }
0x15b6   :  { %v13966_v35 = vpop.eup %11170  ;;  %5204 = vadd.xlane.f32.xlu1 %v5203_v38  ;;  %v5184_v21 = vmul.f32 1.442695, %v5154_v17 }
0x15b7   :  { %v5130_v45 = vpop.xlane.xlu0 %5129  ;;  %v5218_v2 = vsel %vm101_vm0, %v13966_v35, 0.0 }
0x15b8   :  { %5219 = vadd.xlane.f32.xlu0 %v5218_v2  ;;  %v5152_v48 = vsub.f32 %v13904_v22, %v5130_v45 }
0x15ba   :  { %v13970_v32 = vpop.eup %11172  ;;  %v5180_v12 = vmul.f32 1.442695, %v5152_v48 }
0x15bb   :  { %v13972_v36 = vpop.permute.xlu0 %5459  ;;  %v5212_v47 = vsel %vm101_vm0, %v13970_v32, 0.0  ;;  %v13988_v46 = vpop.eup %11174 }
0x15bc   :  { %5213 = vadd.xlane.f32.xlu0 %v5212_v47  ;;  %10173 = vmatprep.subr.bf16.mxu0 %v13972_v36  ;;  %11178 = vpow2.f32 %v5180_v12  ;;  %v5221_v14 = vsel %vm101_vm0, %v13988_v46, 0.0  ;;  %v13993_v10 = vpop.eup %11176 }
0x15bd   :  { %11180 = vpow2.f32 %v5184_v21 }
0x15c6   :  { %v13995_v54 = vpop.eup %11178 }
0x15c7   :  { %5526 = vrot.lane.b32.xlu1 %v13775_v1, %s11570_s0  ;;  %v13999_v38 = vpop.eup %11180 }
0x15c8   :  { %v5230_v45 = vsel %vm101_vm0, %v13999_v38, 0.0 }
0x15d2   :  { %5524 = vrot.lane.b32.xlu0 %v13777_v33, %s11570_s0 }
0x15e2   :  { %v5139_v40 = vpop.xlane.xlu1 %5138 }
0x15e3   :  { %v5155_v30 = vsub.f32 %v13914_v42, %v5139_v40  ;;  %v5215_v42 = vsel %vm101_vm0, %v13993_v10, 0.0 }
0x15e5   :  { %v5186_v19 = vmul.f32 1.442695, %v5155_v30 }
0x15e6   :  { %v5133_v53 = vpop.xlane.xlu1 %5132 }
0x15e7   :  { %v5153_v23 = vsub.f32 %v13916_v51, %v5133_v53  ;;  %11182 = vpow2.f32 %v5186_v19  ;;  %v5224_v51 = vsel %vm101_vm0, %v13995_v54, 0.0 }
0x15e9   :  { %v5182_v22 = vmul.f32 1.442695, %v5153_v23 }
0x15eb   :  { %5222 = vadd.xlane.f32.xlu1 %v5221_v14  ;;  %11184 = vpow2.f32 %v5182_v22 }
0x15ef   :  { %5216 = vadd.xlane.f32.xlu1 %v5215_v42 }
0x15f1   :  { %5225 = vadd.xlane.f32.xlu0 %v5224_v51  ;;  %v14005_v2 = vpop.eup %11182 }
0x15f2   :  { %v5233_v47 = vsel %vm101_vm0, %v14005_v2, 0.0 }
0x15f3   :  { %5231 = vadd.xlane.f32.xlu1 %v5230_v45 }
0x15f5   :  { %v14009_v52 = vpop.eup %11184 }
0x15f6   :  { %v5227_v57 = vsel %vm101_vm0, %v14009_v52, 0.0 }
0x15f7   :  { %5234 = vadd.xlane.f32.xlu1 %v5233_v47 }
0x15fb   :  { %5228 = vadd.xlane.f32.xlu1 %v5227_v57 }
0x1602   :  { %v5196_v63 = vpop.xlane.xlu0 %5195 }
0x1606   :  { %v5190_v11 = vpop.xlane.xlu0 %5189 }
0x1607   :  { %5593 = vrot.lane.b32.xlu0 %v13787_v20, %s11570_s0 }
0x160a   :  { %v5199_v49 = vpop.xlane.xlu1 %5198 }
0x160b   :  { %5595 = vrot.lane.b32.xlu0 %v13785_v31, %s11570_s0  ;;  %11186 = vrcp.f32 %v5199_v49 }
0x160c   :  { %5520 = vrot.lane.b32.xlu1 %v13777_v33, %s11571_s25  ;;  %11188 = vrcp.f32 %v5190_v11 }
0x160d   :  { %11190 = vrcp.f32 %v5196_v63 }
0x160e   :  { %v5193_v48 = vpop.xlane.xlu1 %5192 }
0x160f   :  { %11192 = vrcp.f32 %v5193_v48  ;;  %5522 = vrot.lane.b32.xlu0 %v13775_v1, %s11571_s25 }
0x1610   :  { %5662 = vrot.lane.b32.xlu1 %v13797_v26, %s11570_s0 }
0x1613   :  { %5664 = vrot.lane.b32.xlu0 %v13795_v34, %s11570_s0 }
0x1614   :  { %5589 = vrot.lane.b32.xlu1 %v13787_v20, %s11571_s25 }
0x1615   :  { %v11187_v29 = vpop.eup %11186 }
0x1616   :  { %v11189_v17 = vpop.eup %11188  ;;  %v5255_v40 = vmul.f32 %v11187_v29, %v13936_v6 }
0x1617   :  { %5591 = vrot.lane.b32.xlu0 %v13785_v31, %s11571_s25  ;;  %v11191_v12 = vpop.eup %11190  ;;  %v5252_v30 = vmul.f32 %v11189_v17, %v13932_v28 }
0x1618   :  { %5731 = vrot.lane.b32.xlu1 %v13805_v41, %s11570_s0  ;;  %v5254_v53 = vmul.f32 %v11191_v12, %v13928_v39 }
0x1619   :  { %v11193_v21 = vpop.eup %11192 }
0x161a   :  { %v5253_v19 = vmul.f32 %v11193_v21, %v13940_v59  ;;  %v5269_v22 = vpack.c.bf16 %v5255_v40, %v5254_v53 }
0x161b   :  { %5660 = vrot.lane.b32.xlu0 %v13795_v34, %s11571_s25 }
0x161c   :  { %5658 = vrot.lane.b32.xlu1 %v13797_v26, %s11571_s25  ;;  %v5268_v23 = vpack.c.bf16 %v5253_v19, %v5252_v30 }
0x161e   :  { %10153 = vmatprep.mubr.msk.bf16.mxu1 %vm101_vm0, %v5268_v23 }
0x161f   :  { %5727 = vrot.lane.b32.xlu0 %v13805_v41, %s11571_s25  ;;  %10154 = vmatmul.mubr.msk.bf16.vlgmr.msra.gmra.mrb[104].mxu1 %vm101_vm0, %v5269_v22 }
0x1620   :  { %10166 = vmatpush3.bf16.msra.mxu1 %v13849_v24  ;;  %5733 = vrot.lane.b32.xlu1 %v13803_v8, %s11570_s0 }
0x1621   :  { %10167 = vmatprep.subr.bf16.mxu1 %v13922_v62 }
0x1623   :  { %5996 = vrot.lane.b32.xlu0 %v13777_v33, %s11572_s19 }
0x1624   :  { %10168 = vmatpush3.bf16.msra.mxu1 %v13922_v62  ;;  %5729 = vrot.lane.b32.xlu1 %v13803_v8, %s11571_s25 }
0x1627   :  { %6057 = vrot.lane.b32.xlu0 %v13787_v20, %s11572_s19 }
0x1628   :  { %5998 = vrot.lane.b32.xlu1 %v13775_v1, %s11572_s19 }
0x162b   :  { %6059 = vrot.lane.b32.xlu0 %v13785_v31, %s11572_s19 }
0x162c   :  { %6118 = vrot.lane.b32.xlu1 %v13797_v26, %s11572_s19 }
0x1630   :  { %6120 = vrot.lane.b32.xlu1 %v13795_v34, %s11572_s19 }
0x163d   :  { %v5208_v24 = vpop.xlane.xlu0 %5207 }
0x163f   :  { %v5211_v62 = vpop.xlane.xlu1 %5210 }
0x1640   :  { %11194 = vrcp.f32 %v5211_v62 }
0x1641   :  { %v5202_v39 = vpop.xlane.xlu0 %5201 }
0x1642   :  { %11196 = vrcp.f32 %v5202_v39 }
0x1643   :  { %11198 = vrcp.f32 %v5208_v24  ;;  %v5205_v28 = vpop.xlane.xlu1 %5204 }
0x1644   :  { %11200 = vrcp.f32 %v5205_v28 }
0x1645   :  { %v5220_v6 = vpop.xlane.xlu0 %5219 }
0x1649   :  { %v5214_v59 = vpop.xlane.xlu0 %5213 }
0x164a   :  { %v11195_v14 = vpop.eup %11194 }
0x164b   :  { %v5259_v57 = vmul.f32 %v11195_v14, %v13954_v58  ;;  %v5527_v58 = vpop.permute.xlu1 %5526 }
0x164c   :  { %v11197_v42 = vpop.eup %11196 }
0x164d   :  { %v11199_v51 = vpop.eup %11198  ;;  %v5525_v45 = vpop.permute.xlu0 %5524  ;;  %v5256_v63 = vmul.f32 %v11197_v42, %v13958_v37 }
0x164e   :  { %v11201_v47 = vpop.eup %11200  ;;  %10497 = vmatprep.subr.msk.bf16.mxu1 %vm514_vm1, %v5525_v45  ;;  %v5258_v49 = vmul.f32 %v11199_v51, %v13950_v27 }
0x164f   :  { %v5257_v11 = vmul.f32 %v11201_v47, %v13962_v15 }
0x1650   :  { %v5271_v29 = vpack.c.bf16 %v5259_v57, %v5258_v49 }
0x1651   :  { %v5270_v48 = vpack.c.bf16 %v5257_v11, %v5256_v63 }
0x1653   :  { %10161 = vmatprep.mubr.msk.bf16.mxu0 %vm101_vm0, %v5270_v48  ;;  %v5538_v48 = vsel %vm514_vm1, %v5527_v58, 0 }
0x1654   :  { %10162 = vmatmul.mubr.msk.bf16.vlgmr.msra.gmra.mrb[120].mxu0 %vm101_vm0, %v5271_v29 }
0x1655   :  { %10174 = vmatpush3.bf16.msra.mxu0 %v13972_v36 }
0x1656   :  { %10175 = vmatprep.subr.bf16.mxu0 %v13985_v60 }
0x1659   :  { %10176 = vmatpush3.bf16.msra.mxu0 %v13985_v60 }
0x1678   :  { %v5223_v17 = vpop.xlane.xlu1 %5222 }
0x1679   :  { %11202 = vrcp.f32 %v5223_v17 }
0x167a   :  { %11204 = vrcp.f32 %v5214_v59 }
0x167b   :  { %11206 = vrcp.f32 %v5220_v6 }
0x167c   :  { %v5217_v37 = vpop.xlane.xlu1 %5216 }
0x167d   :  { %11208 = vrcp.f32 %v5217_v37 }
0x167e   :  { %v5226_v27 = vpop.xlane.xlu0 %5225 }
0x1680   :  { %v5232_v15 = vpop.xlane.xlu1 %5231 }
0x1682   :  { %v5594_v12 = vpop.permute.xlu0 %5593 }
0x1683   :  { %10499 = vmatprep.subr.msk.bf16.mxu0 %vm514_vm1, %v5594_v12  ;;  %v11203_v21 = vpop.eup %11202 }
0x1684   :  { %v5235_v40 = vpop.xlane.xlu1 %5234  ;;  %v11205_v30 = vpop.eup %11204  ;;  %v5263_v60 = vmul.f32 %v11203_v21, %v13988_v46  ;;  %v5535_v46 = vsel %vm514_vm1, %v5525_v45, 0 }
0x1685   :  { %v11207_v36 = vpop.eup %11206  ;;  %11210 = vrcp.f32 %v5235_v40  ;;  %v5260_v22 = vmul.f32 %v11205_v30, %v13970_v32 }
0x1686   :  { %v5596_v19 = vpop.permute.xlu0 %5595  ;;  %11212 = vrcp.f32 %v5226_v27  ;;  %v5262_v62 = vmul.f32 %v11207_v36, %v13966_v35 }
0x1687   :  { %v11209_v53 = vpop.eup %11208  ;;  %11214 = vrcp.f32 %v5232_v15  ;;  %v5607_v15 = vsel %vm514_vm1, %v5596_v19, 0 }
0x1688   :  { %v5229_v23 = vpop.xlane.xlu1 %5228  ;;  %v5261_v24 = vmul.f32 %v11209_v53, %v13993_v10  ;;  %v5273_v6 = vpack.c.bf16 %v5263_v60, %v5262_v62 }
0x1689   :  { %11216 = vrcp.f32 %v5229_v23 }
0x168a   :  { %v5523_v39 = vpop.permute.xlu0 %5522  ;;  %v5272_v28 = vpack.c.bf16 %v5261_v24, %v5260_v22 }
0x168c   :  { %v5521_v59 = vpop.permute.xlu1 %5520  ;;  %10169 = vmatprep.mubr.msk.bf16.mxu1 %vm101_vm0, %v5272_v28 }
0x168d   :  { %10170 = vmatmul.mubr.msk.bf16.vlgmr.msra.gmra.mrb[108].mxu1 %vm101_vm0, %v5273_v6 }
0x168e   :  { %10182 = vmatpush3.bf16.xpose.msra.mxu1 %v5535_v46  ;;  %10185 = vmatprep.mubr.msk.bf16.mxu1 %vm514_vm1, %v5521_v59  ;;  %v5665_v14 = vpop.permute.xlu0 %5664 }
0x168f   :  { %10498 = vmatprep.subr.msk.bf16.mxu1 %vm514_vm1, %v5527_v58  ;;  %v11211_v32 = vpop.eup %11210 }
0x1690   :  { %v5663_v10 = vpop.permute.xlu1 %5662  ;;  %v11213_v35 = vpop.eup %11212  ;;  %v5267_v47 = vmul.f32 %v11211_v32, %v14005_v2  ;;  %v5604_v2 = vsel %vm514_vm1, %v5594_v12, 0  ;;  %v5676_v12 = vsel %vm514_vm1, %v5665_v14, 0 }
0x1691   :  { %v11215_v42 = vpop.eup %11214  ;;  %v5264_v11 = vmul.f32 %v11213_v35, %v13995_v54 }
0x1692   :  { %v5592_v57 = vpop.permute.xlu0 %5591  ;;  %v5266_v45 = vmul.f32 %v11215_v42, %v13999_v38  ;;  %v5673_v38 = vsel %vm514_vm1, %v5663_v10, 0 }
0x1693   :  { %v11217_v51 = vpop.eup %11216 }
0x1694   :  { %v5590_v63 = vpop.permute.xlu1 %5589  ;;  %v5265_v49 = vmul.f32 %v11217_v51, %v14009_v52  ;;  %v5275_v17 = vpack.c.bf16 %v5267_v47, %v5266_v45 }
0x1696   :  { %10184 = vmatpush3.bf16.xpose.msra.mxu1 %v5538_v48  ;;  %v5274_v29 = vpack.c.bf16 %v5265_v49, %v5264_v11  ;;  %v5661_v27 = vpop.permute.xlu0 %5660 }
0x1697   :  { %10501 = vmatprep.subr.msk.bf16.mxu1 %vm514_vm1, %v5663_v10 }
0x1698   :  { %v5732_v37 = vpop.permute.xlu1 %5731  ;;  %10177 = vmatprep.mubr.msk.bf16.mxu0 %vm101_vm0, %v5274_v29 }
0x1699   :  { %10178 = vmatmul.mubr.msk.bf16.vlgmr.msra.gmra.mrb[124].mxu0 %vm101_vm0, %v5275_v17  ;;  %v5742_v30 = vsel %vm514_vm1, %v5732_v37, 0 }
0x169a   :  { %10190 = vmatpush3.bf16.xpose.msra.mxu0 %v5604_v2  ;;  %10193 = vmatprep.mubr.msk.bf16.mxu0 %vm514_vm1, %v5590_v63  ;;  %v5728_v52 = vpop.permute.xlu0 %5727 }
0x169b   :  { %10500 = vmatprep.subr.msk.bf16.mxu0 %vm514_vm1, %v5596_v19 }
0x169c   :  { %v5659_v54 = vpop.permute.xlu1 %5658 }
0x169d   :  { %10186 = vmatmul.mubr.msk.bf16.vlgmr.msra.gmra.mrb[112].mxu1 %vm514_vm1, %v5523_v39 }
0x169e   :  { %10198 = vmatpush3.bf16.xpose.msra.mxu1 %v5673_v38  ;;  %10201 = vmatprep.mubr.msk.bf16.mxu1 %vm514_vm1, %v5659_v54  ;;  %v5997_v21 = vpop.permute.xlu0 %5996 }
0x169f   :  { %10502 = vmatprep.subr.msk.bf16.mxu1 %vm514_vm1, %v5665_v14 }
0x16a0   :  { %v5734_v58 = vpop.permute.xlu1 %5733 }
0x16a1   :  { %v5745_v19 = vsel %vm514_vm1, %v5734_v58, 0 }
0x16a2   :  { %10192 = vmatpush3.bf16.xpose.msra.mxu0 %v5607_v15  ;;  %v6058_v53 = vpop.permute.xlu0 %6057 }
0x16a3   :  { %10503 = vmatprep.subr.msk.bf16.mxu0 %vm514_vm1, %v5732_v37 }
0x16a4   :  { %v5730_v40 = vpop.permute.xlu1 %5729 }
0x16a6   :  { %10200 = vmatpush3.bf16.xpose.msra.mxu1 %v5676_v12  ;;  %v6060_v23 = vpop.permute.xlu0 %6059 }
0x16a7   :  { %10213 = vmatprep.subr.bf16.mxu1 %v5997_v21 }
0x16a8   :  { %v5999_v36 = vpop.permute.xlu1 %5998 }
0x16a9   :  { %10194 = vmatmul.mubr.msk.bf16.vlgmr.msra.gmra.mrb[128].mxu0 %vm514_vm1, %v5592_v57 }
0x16aa   :  { %10206 = vmatpush3.bf16.xpose.msra.mxu0 %v5742_v30  ;;  %10209 = vmatprep.mubr.msk.bf16.mxu0 %vm514_vm1, %v5728_v52 }
0x16ab   :  { %10504 = vmatprep.subr.msk.bf16.mxu0 %vm514_vm1, %v5734_v58 }
0x16ac   :  { %v14106_v60 = vpop.permute.xlu1 %6118 }
0x16ad   :  { %10202 = vmatmul.mubr.msk.bf16.vlgmr.msra.gmra.mrb[116].mxu1 %vm514_vm1, %v5661_v27 }
0x16ae   :  { %10214 = vmatpush3.bf16.msra.mxu1 %v5997_v21 }
0x16af   :  { %10215 = vmatprep.subr.bf16.mxu1 %v5999_v36 }
0x16b2   :  { %10208 = vmatpush3.bf16.xpose.msra.mxu0 %v5745_v19  ;;  %10216 = vmatpush3.bf16.msra.mxu1 %v5999_v36 }
0x16b3   :  { %10221 = vmatprep.subr.bf16.mxu0 %v6058_v53  ;;  %10229 = vmatprep.subr.bf16.mxu1 %v14106_v60 }
0x16b9   :  { %10210 = vmatmul.mubr.msk.bf16.vlgmr.msra.gmra.mrb[132].mxu0 %vm514_vm1, %v5730_v40 }
0x16ba   :  { %10222 = vmatpush3.bf16.msra.mxu0 %v6058_v53 }
0x16bb   :  { %10223 = vmatprep.subr.bf16.mxu0 %v6060_v23 }
0x16be   :  { %10224 = vmatpush3.bf16.msra.mxu0 %v6060_v23 }
0x16f2   :  { %v14110_v22 = vpop.f32.mrb[104].mxu1 }
0x16f3   :  { %15771 = vst [vmem:[#allocation24_spill] sm:$0xff] %v14110_v22  ;;  %v14112_v24 = vpop.f32.mrb[105].mxu1 }
0x16f4   :  { %15772 = vst [vmem:[#allocation25_spill] sm:$0xff] %v14112_v24  ;;  %v14114_v62 = vpop.f32.mrb[106].mxu1 }
0x16f5   :  { %15773 = vst [vmem:[#allocation23_spill] sm:$0xff] %v14114_v62  ;;  %v14116_v39 = vpop.f32.mrb[107].mxu1 }
0x16f6   :  { %15774 = vst [vmem:[#allocation30_spill] sm:$0xff] %v14116_v39 }
0x1727   :  { %v14118_v28 = vpop.f32.mrb[120].mxu0 }
0x1728   :  { %15775 = vst [vmem:[#allocation31_spill] sm:$0xff] %v14118_v28  ;;  %v14120_v6 = vpop.f32.mrb[121].mxu0 }
0x1729   :  { %15776 = vst [vmem:[#allocation32_spill] sm:$0xff] %v14120_v6  ;;  %v14122_v59 = vpop.f32.mrb[122].mxu0 }
0x172a   :  { %15777 = vst [vmem:[#allocation33_spill] sm:$0xff] %v14122_v59  ;;  %v14124_v46 = vpop.f32.mrb[123].mxu0 }
0x172b   :  { %15778 = vst [vmem:[#allocation34_spill] sm:$0xff] %v14124_v46 }
0x1760   :  { %v14126_v14 = vpop.f32.mrb[108].mxu1 }
0x1761   :  { %15779 = vst [vmem:[#allocation35_spill] sm:$0xff] %v14126_v14  ;;  %v14128_v32 = vpop.f32.mrb[109].mxu1 }
0x1762   :  { %15780 = vst [vmem:[#allocation36_spill] sm:$0xff] %v14128_v32  ;;  %v14130_v10 = vpop.f32.mrb[110].mxu1 }
0x1763   :  { %15781 = vst [vmem:[#allocation37_spill] sm:$0xff] %v14130_v10  ;;  %v14132_v35 = vpop.f32.mrb[111].mxu1 }
0x1764   :  { %15782 = vst [vmem:[#allocation38_spill] sm:$0xff] %v14132_v35 }
0x176c   :  { %v14134_v42 = vpop.f32.mrb[124].mxu0 }
0x176d   :  { %15783 = vst [vmem:[#allocation39_spill] sm:$0xff] %v14134_v42  ;;  %v14136_v51 = vpop.f32.mrb[125].mxu0 }
0x176e   :  { %15784 = vst [vmem:[#allocation40_spill] sm:$0xff] %v14136_v51  ;;  %v14138_v47 = vpop.f32.mrb[126].mxu0 }
0x176f   :  { %15785 = vst [vmem:[#allocation41_spill] sm:$0xff] %v14138_v47  ;;  %v14140_v57 = vpop.f32.mrb[127].mxu0 }
0x1770   :  { %15786 = vst [vmem:[#allocation42_spill] sm:$0xff] %v14140_v57  ;;  %v10187_v63 = vpop.f32.mrb[112].mxu1 }
0x1771   :  { %v14142_v11 = vmul.f32 0.35355338, %v10187_v63  ;;  %v5574_v49 = vpop.f32.mrb[113].mxu1 }
0x1772   :  { %v10188_v45 = vpop.f32.mrb[114].mxu1  ;;  %v14144_v48 = vmul.f32 0.35355338, %v5574_v49 }
0x1773   :  { %v5577_v29 = vpop.f32.mrb[115].mxu1  ;;  %v5818_v17 = vsel %vm101_vm0, %v14142_v11, -inf  ;;  %v14152_v27 = vmul.f32 0.35355338, %v10188_v45 }
0x1774   :  { %v14148_v37 = vmul.f32 0.35355338, %v5577_v29  ;;  %5819 = vmax.xlane.f32.xlu0 %v5818_v17  ;;  %v5812_v54 = vsel %vm101_vm0, %v14144_v48, -inf }
0x1775   :  { %v5821_v38 = vsel %vm101_vm0, %v14152_v27, -inf }
0x1776   :  { %v5815_v2 = vsel %vm101_vm0, %v14148_v37, -inf }
0x1777   :  { %5816 = vmax.xlane.f32.xlu1 %v5815_v2 }
0x1778   :  { %5813 = vmax.xlane.f32.xlu0 %v5812_v54 }
0x177c   :  { %5822 = vmax.xlane.f32.xlu0 %v5821_v38  ;;  %v10195_v52 = vpop.f32.mrb[128].mxu0 }
0x177d   :  { %v14158_v58 = vmul.f32 0.35355338, %v10195_v52  ;;  %v5643_v15 = vpop.f32.mrb[129].mxu0 }
0x177e   :  { %v10196_v12 = vpop.f32.mrb[130].mxu0  ;;  %v14160_v21 = vmul.f32 0.35355338, %v5643_v15 }
0x177f   :  { %v14162_v40 = vmul.f32 0.35355338, %v10196_v12  ;;  %v5646_v30 = vpop.f32.mrb[131].mxu0  ;;  %v5830_v36 = vsel %vm101_vm0, %v14158_v58, -inf }
0x1780   :  { %5831 = vmax.xlane.f32.xlu0 %v5830_v36  ;;  %v10203_v19 = vpop.f32.mrb[116].mxu1  ;;  %v14166_v53 = vmul.f32 0.35355338, %v5646_v30  ;;  %v5824_v17 = vsel %vm101_vm0, %v14160_v21, -inf }
0x1781   :  { %v5712_v23 = vpop.f32.mrb[117].mxu1  ;;  %v5833_v63 = vsel %vm101_vm0, %v14162_v40, -inf  ;;  %v14170_v45 = vmul.f32 0.35355338, %v10203_v19 }
0x1782   :  { %5834 = vmax.xlane.f32.xlu1 %v5833_v63  ;;  %v10204_v49 = vpop.f32.mrb[118].mxu1  ;;  %v5827_v54 = vsel %vm101_vm0, %v14166_v53, -inf  ;;  %v14178_v38 = vmul.f32 0.35355338, %v5712_v23 }
0x1783   :  { %v5715_v29 = vpop.f32.mrb[119].mxu1  ;;  %v14174_v2 = vmul.f32 0.35355338, %v10204_v49  ;;  %v5842_v52 = vsel %vm101_vm0, %v14170_v45, -inf }
0x1784   :  { %5825 = vmax.xlane.f32.xlu0 %v5824_v17  ;;  %v14182_v15 = vmul.f32 0.35355338, %v5715_v29  ;;  %v5836_v30 = vsel %vm101_vm0, %v14178_v38, -inf }
0x1785   :  { %v5845_v12 = vsel %vm101_vm0, %v14174_v2, -inf }
0x1786   :  { %5828 = vmax.xlane.f32.xlu1 %v5827_v54  ;;  %v5839_v23 = vsel %vm101_vm0, %v14182_v15, -inf }
0x1788   :  { %5843 = vmax.xlane.f32.xlu0 %v5842_v52 }
0x178a   :  { %5846 = vmax.xlane.f32.xlu1 %v5845_v12 }
0x178c   :  { %5837 = vmax.xlane.f32.xlu0 %v5836_v30  ;;  %v10211_v36 = vpop.f32.mrb[132].mxu0 }
0x178d   :  { %v14188_v19 = vmul.f32 0.35355338, %v10211_v36  ;;  %v5781_v63 = vpop.f32.mrb[133].mxu0 }
0x178e   :  { %5840 = vmax.xlane.f32.xlu1 %v5839_v23  ;;  %v10212_v49 = vpop.f32.mrb[134].mxu0  ;;  %v14192_v17 = vmul.f32 0.35355338, %v5781_v63  ;;  %v14210_v23 = vpop.permute.xlu1 %6120 }
0x178f   :  { %v5784_v29 = vpop.f32.mrb[135].mxu0  ;;  %v5854_v54 = vsel %vm101_vm0, %v14188_v19, -inf  ;;  %v14202_v12 = vmul.f32 0.35355338, %v10212_v49 }
0x1790   :  { %5855 = vmax.xlane.f32.xlu0 %v5854_v54  ;;  %v5848_v52 = vsel %vm101_vm0, %v14192_v17, -inf  ;;  %v14204_v30 = vmul.f32 0.35355338, %v5784_v29 }
0x1791   :  { %v5857_v36 = vsel %vm101_vm0, %v14202_v12, -inf }
0x1792   :  { %v5851_v63 = vsel %vm101_vm0, %v14204_v30, -inf }
0x1794   :  { %5849 = vmax.xlane.f32.xlu0 %v5848_v52 }
0x179f   :  { %6181 = vrot.lane.b32.xlu1 %v13803_v8, %s11572_s19 }
0x17aa   :  { %6179 = vrot.lane.b32.xlu0 %v13805_v41, %s11572_s19 }
0x17c3   :  { %5858 = vmax.xlane.f32.xlu1 %v5857_v36 }
0x17c7   :  { %5852 = vmax.xlane.f32.xlu1 %v5851_v63 }
0x1801   :  { %v5820_v54 = vpop.xlane.xlu0 %5819 }
0x1802   :  { %v5862_v52 = vsub.f32 %v14142_v11, %v5820_v54 }
0x1804   :  { %v5880_v4 = vmul.f32 1.442695, %v5862_v52  ;;  %v5817_v18 = vpop.xlane.xlu1 %5816 }
0x1805   :  { %v5814_v0 = vpop.xlane.xlu0 %5813  ;;  %v5861_v29 = vsub.f32 %v14148_v37, %v5817_v18 }
0x1806   :  { %11218 = vpow2.f32 %v5880_v4  ;;  %v5860_v49 = vsub.f32 %v14144_v48, %v5814_v0 }
0x1807   :  { %v5878_v61 = vmul.f32 1.442695, %v5861_v29 }
0x1808   :  { %v5876_v50 = vmul.f32 1.442695, %v5860_v49 }
0x1809   :  { %v5823_v56 = vpop.xlane.xlu0 %5822 }
0x180a   :  { %11220 = vpow2.f32 %v5876_v50  ;;  %v5863_v36 = vsub.f32 %v14152_v27, %v5823_v56 }
0x180c   :  { %v5882_v63 = vmul.f32 1.442695, %v5863_v36 }
0x180d   :  { %v5832_v25 = vpop.xlane.xlu0 %5831 }
0x180e   :  { %11222 = vpow2.f32 %v5882_v63  ;;  %v5866_v55 = vsub.f32 %v14158_v58, %v5832_v25 }
0x180f   :  { %v5835_v11 = vpop.xlane.xlu1 %5834  ;;  %11224 = vpow2.f32 %v5878_v61 }
0x1810   :  { %v14217_v54 = vpop.eup %11218  ;;  %v5888_v4 = vmul.f32 1.442695, %v5866_v55  ;;  %v5867_v0 = vsub.f32 %v14162_v40, %v5835_v11 }
0x1811   :  { %v5826_v48 = vpop.xlane.xlu0 %5825  ;;  %v5914_v18 = vsel %vm101_vm0, %v14217_v54, 0.0 }
0x1812   :  { %11226 = vpow2.f32 %v5888_v4  ;;  %v5890_v50 = vmul.f32 1.442695, %v5867_v0  ;;  %v5864_v56 = vsub.f32 %v14160_v21, %v5826_v48  ;;  %5915 = vadd.xlane.f32.xlu0 %v5914_v18 }
0x1813   :  { %v5829_v37 = vpop.xlane.xlu1 %5828 }
0x1814   :  { %v14223_v27 = vpop.eup %11220  ;;  %11228 = vpow2.f32 %v5890_v50  ;;  %v5884_v25 = vmul.f32 1.442695, %v5864_v56  ;;  %v5865_v58 = vsub.f32 %v14166_v53, %v5829_v37 }
0x1815   :  { %v5844_v61 = vpop.xlane.xlu0 %5843  ;;  %v5908_v55 = vsel %vm101_vm0, %v14223_v27, 0.0 }
0x1816   :  { %11230 = vpow2.f32 %v5884_v25  ;;  %v5886_v40 = vmul.f32 1.442695, %v5865_v58  ;;  %v5870_v52 = vsub.f32 %v14170_v45, %v5844_v61  ;;  %5909 = vadd.xlane.f32.xlu0 %v5908_v55 }
0x1818   :  { %v14229_v49 = vpop.eup %11222  ;;  %11232 = vpow2.f32 %v5886_v40  ;;  %v5896_v21 = vmul.f32 1.442695, %v5870_v52 }
0x1819   :  { %v5838_v29 = vpop.xlane.xlu0 %5837  ;;  %v5917_v36 = vsel %vm101_vm0, %v14229_v49, 0.0  ;;  %v14233_v63 = vpop.eup %11224 }
0x181a   :  { %11234 = vpow2.f32 %v5896_v21  ;;  %v5868_v53 = vsub.f32 %v14178_v38, %v5838_v29  ;;  %5918 = vadd.xlane.f32.xlu1 %v5917_v36  ;;  %v5911_v45 = vsel %vm101_vm0, %v14233_v63, 0.0  ;;  %v5847_v29 = vpop.xlane.xlu1 %5846 }
0x181b   :  { %v5871_v36 = vsub.f32 %v14174_v2, %v5847_v29 }
0x181c   :  { %v14236_v11 = vpop.eup %11226  ;;  %v5892_v4 = vmul.f32 1.442695, %v5868_v53 }
0x181d   :  { %v5856_v0 = vpop.xlane.xlu0 %5855  ;;  %v5926_v48 = vsel %vm101_vm0, %v14236_v11, 0.0 }
0x181e   :  { %v14242_v18 = vpop.eup %11228  ;;  %11236 = vpow2.f32 %v5892_v4  ;;  %5912 = vadd.xlane.f32.xlu1 %v5911_v45  ;;  %5927 = vadd.xlane.f32.xlu0 %v5926_v48  ;;  %v5841_v53 = vpop.xlane.xlu1 %5840  ;;  %v5898_v45 = vmul.f32 1.442695, %v5871_v36 }
0x181f   :  { %v5929_v38 = vsel %vm101_vm0, %v14242_v18, 0.0  ;;  %v5869_v4 = vsub.f32 %v14182_v15, %v5841_v53 }
0x1820   :  { %v14244_v50 = vpop.eup %11230  ;;  %11238 = vpow2.f32 %v5898_v45 }
0x1821   :  { %v5850_v56 = vpop.xlane.xlu0 %5849  ;;  %v5920_v37 = vsel %vm101_vm0, %v14244_v50, 0.0 }
0x1822   :  { %v14250_v25 = vpop.eup %11232  ;;  %5930 = vadd.xlane.f32.xlu1 %v5929_v38  ;;  %5921 = vadd.xlane.f32.xlu0 %v5920_v37  ;;  %v5872_v48 = vsub.f32 %v14192_v17, %v5850_v56  ;;  %v5894_v38 = vmul.f32 1.442695, %v5869_v4  ;;  %v14272_v37 = vpop.permute.xlu1 %6181 }
0x1823   :  { %v5923_v55 = vsel %vm101_vm0, %v14250_v25, 0.0 }
0x1824   :  { %v14252_v58 = vpop.eup %11234  ;;  %11240 = vpow2.f32 %v5894_v38 }
0x1825   :  { %v14254_v61 = vpop.permute.xlu0 %6179  ;;  %v5938_v40 = vsel %vm101_vm0, %v14252_v58, 0.0 }
0x1826   :  { %5924 = vadd.xlane.f32.xlu1 %v5923_v55  ;;  %5939 = vadd.xlane.f32.xlu0 %v5938_v40  ;;  %v5874_v55 = vsub.f32 %v14188_v19, %v5856_v0  ;;  %v5900_v40 = vmul.f32 1.442695, %v5872_v48 }
0x1827   :  { %10237 = vmatprep.subr.bf16.mxu0 %v14254_v61 }
0x1828   :  { %v14261_v52 = vpop.eup %11236  ;;  %v5904_v7 = vmul.f32 1.442695, %v5874_v55  ;;  %11242 = vpow2.f32 %v5900_v40 }
0x1829   :  { %v5932_v21 = vsel %vm101_vm0, %v14261_v52, 0.0 }
0x182a   :  { %5933 = vadd.xlane.f32.xlu0 %v5932_v21  ;;  %11244 = vpow2.f32 %v5904_v7  ;;  %v14277_v36 = vpop.eup %11238 }
0x182b   :  { %v5941_v19 = vsel %vm101_vm0, %v14277_v36, 0.0 }
0x182e   :  { %v14279_v56 = vpop.eup %11240 }
0x1832   :  { %v14283_v0 = vpop.eup %11242 }
0x1833   :  { %v5944_v7 = vsel %vm101_vm0, %v14283_v0, 0.0 }
0x1837   :  { %6246 = vrot.lane.b32.xlu1 %v13775_v1, %s11573_s20 }
0x1840   :  { %6244 = vrot.lane.b32.xlu0 %v13777_v33, %s11573_s20 }
0x1850   :  { %v5859_v21 = vpop.xlane.xlu1 %5858 }
0x1851   :  { %v5875_v5 = vsub.f32 %v14202_v12, %v5859_v21  ;;  %v5935_v12 = vsel %vm101_vm0, %v14279_v56, 0.0 }
0x1853   :  { %v5906_v29 = vmul.f32 1.442695, %v5875_v5  ;;  %v14289_v5 = vpop.eup %11244 }
0x1854   :  { %v5853_v2 = vpop.xlane.xlu1 %5852 }
0x1855   :  { %v5873_v15 = vsub.f32 %v14204_v30, %v5853_v2  ;;  %11246 = vpow2.f32 %v5906_v29  ;;  %v5950_v30 = vsel %vm101_vm0, %v14289_v5, 0.0 }
0x1857   :  { %v5902_v17 = vmul.f32 1.442695, %v5873_v15 }
0x1859   :  { %11248 = vpow2.f32 %v5902_v17 }
0x185b   :  { %5942 = vadd.xlane.f32.xlu1 %v5941_v19 }
0x185f   :  { %5936 = vadd.xlane.f32.xlu1 %v5935_v12  ;;  %5945 = vadd.xlane.f32.xlu0 %v5944_v7  ;;  %v14293_v53 = vpop.eup %11246 }
0x1860   :  { %v5953_v4 = vsel %vm101_vm0, %v14293_v53, 0.0 }
0x1863   :  { %5951 = vadd.xlane.f32.xlu1 %v5950_v30  ;;  %v14297_v45 = vpop.eup %11248 }
0x1864   :  { %v5947_v48 = vsel %vm101_vm0, %v14297_v45, 0.0 }
0x1867   :  { %5954 = vadd.xlane.f32.xlu1 %v5953_v4 }
0x186b   :  { %5948 = vadd.xlane.f32.xlu1 %v5947_v48 }
0x1875   :  { %6313 = vrot.lane.b32.xlu0 %v13787_v20, %s11573_s20 }
0x1879   :  { %6315 = vrot.lane.b32.xlu0 %v13785_v31, %s11573_s20 }
0x187c   :  { %6240 = vrot.lane.b32.xlu1 %v13777_v33, %s11574_s5 }
0x187d   :  { %6242 = vrot.lane.b32.xlu0 %v13775_v1, %s11574_s5 }
0x1880   :  { %6382 = vrot.lane.b32.xlu1 %v13797_v26, %s11573_s20 }
0x1881   :  { %6384 = vrot.lane.b32.xlu0 %v13795_v34, %s11573_s20 }
0x1884   :  { %6309 = vrot.lane.b32.xlu1 %v13787_v20, %s11574_s5 }
0x1885   :  { %6311 = vrot.lane.b32.xlu0 %v13785_v31, %s11574_s5 }
0x1888   :  { %6451 = vrot.lane.b32.xlu1 %v13805_v41, %s11573_s20 }
0x1889   :  { %6380 = vrot.lane.b32.xlu0 %v13795_v34, %s11574_s5 }
0x188c   :  { %6378 = vrot.lane.b32.xlu1 %v13797_v26, %s11574_s5 }
0x188d   :  { %6447 = vrot.lane.b32.xlu0 %v13805_v41, %s11574_s5 }
0x1890   :  { %6453 = vrot.lane.b32.xlu1 %v13803_v8, %s11573_s20 }
0x1891   :  { %6716 = vrot.lane.b32.xlu0 %v13777_v33, %s11575_s16 }
0x1894   :  { %6449 = vrot.lane.b32.xlu1 %v13803_v8, %s11574_s5 }
0x1895   :  { %6777 = vrot.lane.b32.xlu0 %v13787_v20, %s11575_s16 }
0x1898   :  { %6718 = vrot.lane.b32.xlu1 %v13775_v1, %s11575_s16 }
0x1899   :  { %6779 = vrot.lane.b32.xlu0 %v13785_v31, %s11575_s16 }
0x189c   :  { %6838 = vrot.lane.b32.xlu1 %v13797_v26, %s11575_s16 }
0x189f   :  { %v5916_v38 = vpop.xlane.xlu0 %5915 }
0x18a0   :  { %6840 = vrot.lane.b32.xlu1 %v13795_v34, %s11575_s16 }
0x18a3   :  { %v5910_v55 = vpop.xlane.xlu0 %5909 }
0x18a7   :  { %v5919_v40 = vpop.xlane.xlu1 %5918 }
0x18a8   :  { %11250 = vrcp.f32 %v5919_v40 }
0x18a9   :  { %11252 = vrcp.f32 %v5910_v55 }
0x18aa   :  { %11254 = vrcp.f32 %v5916_v38 }
0x18ab   :  { %v5913_v21 = vpop.xlane.xlu1 %5912  ;;  %v5928_v2 = vpop.xlane.xlu0 %5927 }
0x18ac   :  { %11256 = vrcp.f32 %v5913_v21 }
0x18af   :  { %v5931_v29 = vpop.xlane.xlu1 %5930  ;;  %v5922_v15 = vpop.xlane.xlu0 %5921 }
0x18b0   :  { %11258 = vrcp.f32 %v5931_v29 }
0x18b1   :  { %11260 = vrcp.f32 %v5922_v15 }
0x18b2   :  { %v11251_v17 = vpop.eup %11250  ;;  %11262 = vrcp.f32 %v5928_v2 }
0x18b3   :  { %v5925_v19 = vpop.xlane.xlu1 %5924  ;;  %v11253_v12 = vpop.eup %11252  ;;  %v5975_v48 = vmul.f32 %v11251_v17, %v14229_v49 }
0x18b4   :  { %11264 = vrcp.f32 %v5925_v19  ;;  %v11255_v7 = vpop.eup %11254  ;;  %v5940_v30 = vpop.xlane.xlu0 %5939  ;;  %v5972_v55 = vmul.f32 %v11253_v12, %v14223_v27 }
0x18b5   :  { %v5974_v40 = vmul.f32 %v11255_v7, %v14217_v54 }
0x18b6   :  { %v11257_v4 = vpop.eup %11256 }
0x18b7   :  { %v5973_v38 = vmul.f32 %v11257_v4, %v14233_v63  ;;  %v5989_v13 = vpack.c.bf16 %v5975_v48, %v5974_v40 }
0x18b8   :  { %v5934_v15 = vpop.xlane.xlu0 %5933 }
0x18b9   :  { %v5988_v21 = vpack.c.bf16 %v5973_v38, %v5972_v55 }
0x18ba   :  { %v11259_v29 = vpop.eup %11258 }
0x18bb   :  { %10217 = vmatprep.mubr.msk.bf16.mxu1 %vm101_vm0, %v5988_v21  ;;  %v11261_v2 = vpop.eup %11260  ;;  %v5979_v49 = vmul.f32 %v11259_v29, %v14242_v18 }
0x18bc   :  { %10218 = vmatmul.mubr.msk.bf16.vlgmr.msra.gmra.mrb[120].mxu1 %vm101_vm0, %v5989_v13  ;;  %v11263_v19 = vpop.eup %11262  ;;  %v5976_v27 = vmul.f32 %v11261_v2, %v14244_v50  ;;  %v6245_v17 = vpop.permute.xlu0 %6244 }
0x18bd   :  { %10230 = vmatpush3.bf16.msra.mxu1 %v14106_v60  ;;  %v5978_v63 = vmul.f32 %v11263_v19, %v14236_v11 }
0x18be   :  { %v11265_v44 = vpop.eup %11264  ;;  %10231 = vmatprep.subr.bf16.mxu1 %v14210_v23 }
0x18bf   :  { %v5977_v54 = vmul.f32 %v11265_v44, %v14250_v25  ;;  %v5991_v13 = vpack.c.bf16 %v5979_v49, %v5978_v63  ;;  %v6247_v44 = vpop.permute.xlu1 %6246 }
0x18c1   :  { %10232 = vmatpush3.bf16.msra.mxu1 %v14210_v23  ;;  %v5990_v12 = vpack.c.bf16 %v5977_v54, %v5976_v27 }
0x18c2   :  { %10505 = vmatprep.subr.msk.bf16.mxu1 %vm514_vm1, %v6245_v17 }
0x18c3   :  { %10225 = vmatprep.mubr.msk.bf16.mxu0 %vm101_vm0, %v5990_v12 }
0x18c4   :  { %10226 = vmatmul.mubr.msk.bf16.vlgmr.msra.gmra.mrb[136].mxu0 %vm101_vm0, %v5991_v13 }
0x18c5   :  { %10238 = vmatpush3.bf16.msra.mxu0 %v14254_v61 }
0x18c6   :  { %10239 = vmatprep.subr.bf16.mxu0 %v14272_v37 }
0x18c9   :  { %10240 = vmatpush3.bf16.msra.mxu0 %v14272_v37 }
0x18e8   :  { %v5943_v60 = vpop.xlane.xlu1 %5942 }
0x18e9   :  { %11266 = vrcp.f32 %v5943_v60 }
0x18ea   :  { %11268 = vrcp.f32 %v5934_v15 }
0x18eb   :  { %11270 = vrcp.f32 %v5940_v30 }
0x18ec   :  { %v5937_v23 = vpop.xlane.xlu1 %5936  ;;  %v5946_v11 = vpop.xlane.xlu0 %5945 }
0x18ed   :  { %11272 = vrcp.f32 %v5937_v23 }
0x18f0   :  { %v5952_v18 = vpop.xlane.xlu1 %5951  ;;  %v6314_v50 = vpop.permute.xlu0 %6313 }
0x18f1   :  { %10507 = vmatprep.subr.msk.bf16.mxu0 %vm514_vm1, %v6314_v50 }
0x18f3   :  { %v11267_v25 = vpop.eup %11266 }
0x18f4   :  { %v5955_v7 = vpop.xlane.xlu1 %5954  ;;  %v6316_v4 = vpop.permute.xlu0 %6315  ;;  %v5983_v37 = vmul.f32 %v11267_v25, %v14277_v36  ;;  %v6255_v36 = vsel %vm514_vm1, %v6245_v17, 0 }
0x18f5   :  { %v11269_v61 = vpop.eup %11268  ;;  %11274 = vrcp.f32 %v5955_v7 }
0x18f6   :  { %v11271_v48 = vpop.eup %11270  ;;  %11276 = vrcp.f32 %v5946_v11  ;;  %v5980_v40 = vmul.f32 %v11269_v61, %v14261_v52  ;;  %v6258_v11 = vsel %vm514_vm1, %v6247_v44, 0 }
0x18f7   :  { %v11273_v55 = vpop.eup %11272  ;;  %11278 = vrcp.f32 %v5952_v18  ;;  %v5982_v29 = vmul.f32 %v11271_v48, %v14252_v58 }
0x18f8   :  { %v5949_v38 = vpop.xlane.xlu1 %5948  ;;  %v6243_v30 = vpop.permute.xlu0 %6242  ;;  %v5981_v21 = vmul.f32 %v11273_v55, %v14279_v56 }
0x18f9   :  { %11280 = vrcp.f32 %v5949_v38  ;;  %v5993_v2 = vpack.c.bf16 %v5983_v37, %v5982_v29 }
0x18fa   :  { %v5992_v15 = vpack.c.bf16 %v5981_v21, %v5980_v40 }
0x18fc   :  { %v6241_v19 = vpop.permute.xlu1 %6240  ;;  %10233 = vmatprep.mubr.msk.bf16.mxu1 %vm101_vm0, %v5992_v15  ;;  %v6385_v49 = vpop.permute.xlu0 %6384 }
0x18fd   :  { %10234 = vmatmul.mubr.msk.bf16.vlgmr.msra.gmra.mrb[124].mxu1 %vm101_vm0, %v5993_v2  ;;  %v6396_v48 = vsel %vm514_vm1, %v6385_v49, 0 }
0x18fe   :  { %10246 = vmatpush3.bf16.xpose.msra.mxu1 %v6255_v36  ;;  %10249 = vmatprep.mubr.msk.bf16.mxu1 %vm514_vm1, %v6241_v19 }
0x18ff   :  { %10506 = vmatprep.subr.msk.bf16.mxu1 %vm514_vm1, %v6247_v44  ;;  %v11275_v52 = vpop.eup %11274 }
0x1900   :  { %v6383_v56 = vpop.permute.xlu1 %6382  ;;  %v11277_v27 = vpop.eup %11276  ;;  %v5987_v63 = vmul.f32 %v11275_v52, %v14293_v53  ;;  %v6324_v53 = vsel %vm514_vm1, %v6314_v50, 0  ;;  %v6327_v50 = vsel %vm514_vm1, %v6316_v4, 0 }
0x1901   :  { %v11279_v58 = vpop.eup %11278  ;;  %v6312_v12 = vpop.permute.xlu0 %6311  ;;  %v5984_v60 = vmul.f32 %v11277_v27, %v14283_v0 }
0x1902   :  { %v5986_v17 = vmul.f32 %v11279_v58, %v14289_v5  ;;  %v6393_v5 = vsel %vm514_vm1, %v6383_v56, 0 }
0x1903   :  { %v11281_v54 = vpop.eup %11280 }
0x1904   :  { %v6310_v13 = vpop.permute.xlu1 %6309  ;;  %v5985_v23 = vmul.f32 %v11281_v54, %v14297_v45  ;;  %v5995_v25 = vpack.c.bf16 %v5987_v63, %v5986_v17 }
0x1905   :  { %v6381_v61 = vpop.permute.xlu0 %6380 }
0x1906   :  { %10248 = vmatpush3.bf16.xpose.msra.mxu1 %v6258_v11  ;;  %v5994_v18 = vpack.c.bf16 %v5985_v23, %v5984_v60 }
0x1907   :  { %10509 = vmatprep.subr.msk.bf16.mxu1 %vm514_vm1, %v6383_v56 }
0x1908   :  { %v6452_v7 = vpop.permute.xlu1 %6451  ;;  %10241 = vmatprep.mubr.msk.bf16.mxu0 %vm101_vm0, %v5994_v18 }
0x1909   :  { %10242 = vmatmul.mubr.msk.bf16.vlgmr.msra.gmra.mrb[140].mxu0 %vm101_vm0, %v5995_v25  ;;  %v6448_v45 = vpop.permute.xlu0 %6447  ;;  %v6462_v38 = vsel %vm514_vm1, %v6452_v7, 0 }
0x190a   :  { %10254 = vmatpush3.bf16.xpose.msra.mxu0 %v6324_v53  ;;  %10257 = vmatprep.mubr.msk.bf16.mxu0 %vm514_vm1, %v6310_v13 }
0x190b   :  { %10508 = vmatprep.subr.msk.bf16.mxu0 %vm514_vm1, %v6316_v4 }
0x190c   :  { %v6379_v0 = vpop.permute.xlu1 %6378 }
0x190d   :  { %10250 = vmatmul.mubr.msk.bf16.vlgmr.msra.gmra.mrb[128].mxu1 %vm514_vm1, %v6243_v30  ;;  %v6717_v55 = vpop.permute.xlu0 %6716 }
0x190e   :  { %10262 = vmatpush3.bf16.xpose.msra.mxu1 %v6393_v5  ;;  %10265 = vmatprep.mubr.msk.bf16.mxu1 %vm514_vm1, %v6379_v0 }
0x190f   :  { %10510 = vmatprep.subr.msk.bf16.mxu1 %vm514_vm1, %v6385_v49 }
0x1910   :  { %v6454_v44 = vpop.permute.xlu1 %6453 }
0x1911   :  { %v6465_v4 = vsel %vm514_vm1, %v6454_v44, 0  ;;  %v6778_v40 = vpop.permute.xlu0 %6777 }
0x1912   :  { %10256 = vmatpush3.bf16.xpose.msra.mxu0 %v6327_v50 }
0x1913   :  { %10511 = vmatprep.subr.msk.bf16.mxu0 %vm514_vm1, %v6452_v7 }
0x1914   :  { %v6450_v37 = vpop.permute.xlu1 %6449 }
0x1915   :  { %v6780_v29 = vpop.permute.xlu0 %6779 }
0x1916   :  { %10264 = vmatpush3.bf16.xpose.msra.mxu1 %v6396_v48 }
0x1917   :  { %10277 = vmatprep.subr.bf16.mxu1 %v6717_v55 }
0x1918   :  { %v6719_v30 = vpop.permute.xlu1 %6718 }
0x1919   :  { %10258 = vmatmul.mubr.msk.bf16.vlgmr.msra.gmra.mrb[144].mxu0 %vm514_vm1, %v6312_v12 }
0x191a   :  { %10270 = vmatpush3.bf16.xpose.msra.mxu0 %v6462_v38  ;;  %10273 = vmatprep.mubr.msk.bf16.mxu0 %vm514_vm1, %v6448_v45 }
0x191b   :  { %10512 = vmatprep.subr.msk.bf16.mxu0 %vm514_vm1, %v6454_v44 }
0x191c   :  { %v14394_v21 = vpop.permute.xlu1 %6838 }
0x191d   :  { %10266 = vmatmul.mubr.msk.bf16.vlgmr.msra.gmra.mrb[132].mxu1 %vm514_vm1, %v6381_v61 }
0x191e   :  { %10278 = vmatpush3.bf16.msra.mxu1 %v6717_v55 }
0x191f   :  { %10279 = vmatprep.subr.bf16.mxu1 %v6719_v30 }
0x1922   :  { %10272 = vmatpush3.bf16.xpose.msra.mxu0 %v6465_v4  ;;  %10280 = vmatpush3.bf16.msra.mxu1 %v6719_v30 }
0x1923   :  { %10285 = vmatprep.subr.bf16.mxu0 %v6778_v40  ;;  %10293 = vmatprep.subr.bf16.mxu1 %v14394_v21 }
0x1929   :  { %10274 = vmatmul.mubr.msk.bf16.vlgmr.msra.gmra.mrb[148].mxu0 %vm514_vm1, %v6450_v37 }
0x192a   :  { %10286 = vmatpush3.bf16.msra.mxu0 %v6778_v40 }
0x192b   :  { %10287 = vmatprep.subr.bf16.mxu0 %v6780_v29 }
0x192e   :  { %10288 = vmatpush3.bf16.msra.mxu0 %v6780_v29 }
0x198f   :  { %v14398_v15 = vpop.f32.mrb[120].mxu1 }
0x1990   :  { %v14400_v2 = vpop.f32.mrb[121].mxu1 }
0x1991   :  { %v14402_v19 = vpop.f32.mrb[122].mxu1 }
0x1992   :  { %v14406_v49 = vpop.f32.mrb[123].mxu1 }
0x1997   :  { %v14410_v56 = vpop.f32.mrb[136].mxu0 }
0x1998   :  { %v14412_v27 = vpop.f32.mrb[137].mxu0 }
0x1999   :  { %v14414_v58 = vpop.f32.mrb[138].mxu0 }
0x199a   :  { %v14418_v63 = vpop.f32.mrb[139].mxu0 }
0x19d0   :  { %v14422_v13 = vpop.f32.mrb[124].mxu1 }
0x19d1   :  { %v14424_v60 = vpop.f32.mrb[125].mxu1 }
0x19d2   :  { %v14426_v23 = vpop.f32.mrb[126].mxu1 }
0x19d3   :  { %v14430_v11 = vpop.f32.mrb[127].mxu1 }
0x19dc   :  { %v14434_v25 = vpop.f32.mrb[140].mxu0 }
0x19dd   :  { %v14436_v7 = vpop.f32.mrb[141].mxu0 }
0x19de   :  { %v14438_v53 = vpop.f32.mrb[142].mxu0 }
0x19df   :  { %v14442_v0 = vpop.f32.mrb[143].mxu0 }
0x19e0   :  { %v10251_v45 = vpop.f32.mrb[128].mxu1 }
0x19e1   :  { %v14446_v44 = vmul.f32 0.35355338, %v10251_v45  ;;  %v6294_v50 = vpop.f32.mrb[129].mxu1 }
0x19e2   :  { %v10252_v48 = vpop.f32.mrb[130].mxu1  ;;  %v14448_v55 = vmul.f32 0.35355338, %v6294_v50 }
0x19e3   :  { %v6297_v37 = vpop.f32.mrb[131].mxu1  ;;  %v6538_v38 = vsel %vm101_vm0, %v14446_v44, -inf  ;;  %v14456_v40 = vmul.f32 0.35355338, %v10252_v48 }
0x19e4   :  { %v14452_v30 = vmul.f32 0.35355338, %v6297_v37  ;;  %6539 = vmax.xlane.f32.xlu0 %v6538_v38  ;;  %v6532_v29 = vsel %vm101_vm0, %v14448_v55, -inf }
0x19e5   :  { %v6541_v45 = vsel %vm101_vm0, %v14456_v40, -inf }
0x19e6   :  { %v6535_v4 = vsel %vm101_vm0, %v14452_v30, -inf }
0x19e7   :  { %6536 = vmax.xlane.f32.xlu1 %v6535_v4 }
0x19e8   :  { %6533 = vmax.xlane.f32.xlu0 %v6532_v29 }
0x19ec   :  { %6542 = vmax.xlane.f32.xlu0 %v6541_v45  ;;  %v10259_v50 = vpop.f32.mrb[144].mxu0 }
0x19ed   :  { %v14462_v5 = vmul.f32 0.35355338, %v10259_v50  ;;  %v6363_v37 = vpop.f32.mrb[145].mxu0 }
0x19ee   :  { %v10260_v61 = vpop.f32.mrb[146].mxu0  ;;  %v14464_v38 = vmul.f32 0.35355338, %v6363_v37 }
0x19ef   :  { %v14466_v17 = vmul.f32 0.35355338, %v10260_v61  ;;  %v6366_v48 = vpop.f32.mrb[147].mxu0  ;;  %v6550_v4 = vsel %vm101_vm0, %v14462_v5, -inf }
0x19f0   :  { %6551 = vmax.xlane.f32.xlu0 %v6550_v4  ;;  %v10267_v54 = vpop.f32.mrb[132].mxu1  ;;  %v14470_v29 = vmul.f32 0.35355338, %v6366_v48  ;;  %v6544_v61 = vsel %vm101_vm0, %v14464_v38, -inf }
0x19f1   :  { %v6432_v18 = vpop.f32.mrb[133].mxu1  ;;  %v6553_v45 = vsel %vm101_vm0, %v14466_v17, -inf  ;;  %v14474_v36 = vmul.f32 0.35355338, %v10267_v54 }
0x19f2   :  { %6554 = vmax.xlane.f32.xlu1 %v6553_v45  ;;  %v10268_v50 = vpop.f32.mrb[134].mxu1  ;;  %v6547_v4 = vsel %vm101_vm0, %v14470_v29, -inf  ;;  %v14482_v48 = vmul.f32 0.35355338, %v6432_v18 }
0x19f3   :  { %v6435_v37 = vpop.f32.mrb[135].mxu1  ;;  %v14478_v12 = vmul.f32 0.35355338, %v10268_v50  ;;  %v6562_v52 = vsel %vm101_vm0, %v14474_v36, -inf }
0x19f4   :  { %6545 = vmax.xlane.f32.xlu0 %v6544_v61  ;;  %v14486_v45 = vmul.f32 0.35355338, %v6435_v37  ;;  %v6556_v50 = vsel %vm101_vm0, %v14482_v48, -inf }
0x19f5   :  { %v6565_v54 = vsel %vm101_vm0, %v14478_v12, -inf }
0x19f6   :  { %6548 = vmax.xlane.f32.xlu1 %v6547_v4  ;;  %v6559_v18 = vsel %vm101_vm0, %v14486_v45, -inf }
0x19f8   :  { %6563 = vmax.xlane.f32.xlu0 %v6562_v52 }
0x19fa   :  { %6566 = vmax.xlane.f32.xlu1 %v6565_v54 }
0x19fc   :  { %6557 = vmax.xlane.f32.xlu0 %v6556_v50  ;;  %v10275_v61 = vpop.f32.mrb[148].mxu0 }
0x19fd   :  { %v14492_v16 = vmul.f32 0.35355338, %v10275_v61  ;;  %v6501_v4 = vpop.f32.mrb[149].mxu0 }
0x19fe   :  { %6560 = vmax.xlane.f32.xlu1 %v6559_v18  ;;  %v10276_v9 = vpop.f32.mrb[150].mxu0  ;;  %v14496_v52 = vmul.f32 0.35355338, %v6501_v4  ;;  %v14514_v18 = vpop.permute.xlu1 %6840 }
0x19ff   :  { %v6504_v37 = vpop.f32.mrb[151].mxu0  ;;  %v6574_v43 = vsel %vm101_vm0, %v14492_v16, -inf  ;;  %v14506_v50 = vmul.f32 0.35355338, %v10276_v9 }
0x1a00   :  { %6575 = vmax.xlane.f32.xlu0 %v6574_v43  ;;  %v6568_v54 = vsel %vm101_vm0, %v14496_v52, -inf  ;;  %v14508_v61 = vmul.f32 0.35355338, %v6504_v37 }
0x1a01   :  { %v6577_v4 = vsel %vm101_vm0, %v14506_v50, -inf }
0x1a02   :  { %v6571_v43 = vsel %vm101_vm0, %v14508_v61, -inf }
0x1a04   :  { %6569 = vmax.xlane.f32.xlu0 %v6568_v54 }
0x1a0f   :  { %6901 = vrot.lane.b32.xlu1 %v13803_v8, %s11575_s16 }
0x1a1a   :  { %6899 = vrot.lane.b32.xlu0 %v13805_v41, %s11575_s16 }
0x1a33   :  { %6578 = vmax.xlane.f32.xlu1 %v6577_v4 }
0x1a37   :  { %6572 = vmax.xlane.f32.xlu1 %v6571_v43 }
0x1a71   :  { %v6540_v54 = vpop.xlane.xlu0 %6539 }
0x1a72   :  { %v6582_v3 = vsub.f32 %v14446_v44, %v6540_v54 }
0x1a74   :  { %v6600_v51 = vmul.f32 1.442695, %v6582_v3  ;;  %v6537_v57 = vpop.xlane.xlu1 %6536 }
0x1a75   :  { %v6534_v42 = vpop.xlane.xlu0 %6533  ;;  %v6581_v37 = vsub.f32 %v14452_v30, %v6537_v57 }
0x1a76   :  { %11282 = vpow2.f32 %v6600_v51  ;;  %v6580_v9 = vsub.f32 %v14448_v55, %v6534_v42 }
0x1a77   :  { %v6598_v10 = vmul.f32 1.442695, %v6581_v37 }
0x1a78   :  { %v6596_v47 = vmul.f32 1.442695, %v6580_v9 }
0x1a79   :  { %v6543_v14 = vpop.xlane.xlu0 %6542 }
0x1a7a   :  { %11284 = vpow2.f32 %v6596_v47  ;;  %v6583_v4 = vsub.f32 %v14456_v40, %v6543_v14 }
0x1a7c   :  { %v6602_v43 = vmul.f32 1.442695, %v6583_v4 }
0x1a7d   :  { %v6552_v32 = vpop.xlane.xlu0 %6551 }
0x1a7e   :  { %11286 = vpow2.f32 %v6602_v43  ;;  %v6586_v35 = vsub.f32 %v14462_v5, %v6552_v32 }
0x1a7f   :  { %v6555_v44 = vpop.xlane.xlu1 %6554  ;;  %11288 = vpow2.f32 %v6598_v10 }
0x1a80   :  { %v14521_v3 = vpop.eup %11282  ;;  %v6608_v51 = vmul.f32 1.442695, %v6586_v35  ;;  %v6587_v42 = vsub.f32 %v14466_v17, %v6555_v44 }
0x1a81   :  { %v6546_v55 = vpop.xlane.xlu0 %6545  ;;  %v6634_v57 = vsel %vm101_vm0, %v14521_v3, 0.0 }
0x1a82   :  { %11290 = vpow2.f32 %v6608_v51  ;;  %v6610_v47 = vmul.f32 1.442695, %v6587_v42  ;;  %v6584_v14 = vsub.f32 %v14464_v38, %v6546_v55  ;;  %6635 = vadd.xlane.f32.xlu0 %v6634_v57 }
0x1a83   :  { %v6549_v30 = vpop.xlane.xlu1 %6548 }
0x1a84   :  { %v14527_v40 = vpop.eup %11284  ;;  %11292 = vpow2.f32 %v6610_v47  ;;  %v6604_v32 = vmul.f32 1.442695, %v6584_v14  ;;  %v6585_v5 = vsub.f32 %v14470_v29, %v6549_v30 }
0x1a85   :  { %v6564_v10 = vpop.xlane.xlu0 %6563  ;;  %v6628_v35 = vsel %vm101_vm0, %v14527_v40, 0.0 }
0x1a86   :  { %11294 = vpow2.f32 %v6604_v32  ;;  %v6606_v17 = vmul.f32 1.442695, %v6585_v5  ;;  %v6590_v54 = vsub.f32 %v14474_v36, %v6564_v10  ;;  %6629 = vadd.xlane.f32.xlu0 %v6628_v35 }
0x1a88   :  { %v14533_v9 = vpop.eup %11286  ;;  %11296 = vpow2.f32 %v6606_v17  ;;  %v6616_v38 = vmul.f32 1.442695, %v6590_v54 }
0x1a89   :  { %v6558_v37 = vpop.xlane.xlu0 %6557  ;;  %v6637_v4 = vsel %vm101_vm0, %v14533_v9, 0.0  ;;  %v14537_v43 = vpop.eup %11288 }
0x1a8a   :  { %11298 = vpow2.f32 %v6616_v38  ;;  %v6588_v29 = vsub.f32 %v14482_v48, %v6558_v37  ;;  %6638 = vadd.xlane.f32.xlu1 %v6637_v4  ;;  %v6631_v36 = vsel %vm101_vm0, %v14537_v43, 0.0  ;;  %v6567_v37 = vpop.xlane.xlu1 %6566 }
0x1a8b   :  { %v6591_v4 = vsub.f32 %v14478_v12, %v6567_v37 }
0x1a8c   :  { %v14540_v44 = vpop.eup %11290  ;;  %v6612_v51 = vmul.f32 1.442695, %v6588_v29 }
0x1a8d   :  { %v6576_v42 = vpop.xlane.xlu0 %6575  ;;  %v6646_v55 = vsel %vm101_vm0, %v14540_v44, 0.0 }
0x1a8e   :  { %v14546_v57 = vpop.eup %11292  ;;  %11300 = vpow2.f32 %v6612_v51  ;;  %6632 = vadd.xlane.f32.xlu1 %v6631_v36  ;;  %6647 = vadd.xlane.f32.xlu0 %v6646_v55  ;;  %v6561_v29 = vpop.xlane.xlu1 %6560  ;;  %v6618_v36 = vmul.f32 1.442695, %v6591_v4 }
0x1a8f   :  { %v6649_v48 = vsel %vm101_vm0, %v14546_v57, 0.0  ;;  %v6589_v51 = vsub.f32 %v14486_v45, %v6561_v29 }
0x1a90   :  { %v14548_v47 = vpop.eup %11294  ;;  %11302 = vpow2.f32 %v6618_v36 }
0x1a91   :  { %v6570_v14 = vpop.xlane.xlu0 %6569  ;;  %v6640_v30 = vsel %vm101_vm0, %v14548_v47, 0.0 }
0x1a92   :  { %v14554_v32 = vpop.eup %11296  ;;  %6650 = vadd.xlane.f32.xlu1 %v6649_v48  ;;  %6641 = vadd.xlane.f32.xlu0 %v6640_v30  ;;  %v6592_v55 = vsub.f32 %v14496_v52, %v6570_v14  ;;  %v6614_v48 = vmul.f32 1.442695, %v6589_v51  ;;  %v14576_v30 = vpop.permute.xlu1 %6901 }
0x1a93   :  { %v6643_v35 = vsel %vm101_vm0, %v14554_v32, 0.0 }
0x1a94   :  { %v14556_v5 = vpop.eup %11298  ;;  %11304 = vpow2.f32 %v6614_v48 }
0x1a95   :  { %v14558_v10 = vpop.permute.xlu0 %6899  ;;  %v6658_v17 = vsel %vm101_vm0, %v14556_v5, 0.0 }
0x1a96   :  { %6644 = vadd.xlane.f32.xlu1 %v6643_v35  ;;  %6659 = vadd.xlane.f32.xlu0 %v6658_v17  ;;  %v6594_v35 = vsub.f32 %v14492_v16, %v6576_v42  ;;  %v6620_v17 = vmul.f32 1.442695, %v6592_v55 }
0x1a97   :  { %10301 = vmatprep.subr.bf16.mxu0 %v14558_v10 }
0x1a98   :  { %v14565_v54 = vpop.eup %11300  ;;  %v6624_v28 = vmul.f32 1.442695, %v6594_v35  ;;  %11306 = vpow2.f32 %v6620_v17 }
0x1a99   :  { %v6652_v38 = vsel %vm101_vm0, %v14565_v54, 0.0 }
0x1a9a   :  { %6653 = vadd.xlane.f32.xlu0 %v6652_v38  ;;  %11308 = vpow2.f32 %v6624_v28  ;;  %v14581_v4 = vpop.eup %11302 }
0x1a9b   :  { %v6661_v16 = vsel %vm101_vm0, %v14581_v4, 0.0 }
0x1a9e   :  { %v14583_v14 = vpop.eup %11304 }
0x1aa2   :  { %v14587_v42 = vpop.eup %11306 }
0x1aa3   :  { %v6664_v28 = vsel %vm101_vm0, %v14587_v42, 0.0 }
0x1aa7   :  { %6966 = vrot.lane.b32.xlu1 %v13775_v1, %s11576_s21 }
0x1ab0   :  { %6964 = vrot.lane.b32.xlu0 %v13777_v33, %s11576_s21 }
0x1ac0   :  { %v6579_v38 = vpop.xlane.xlu1 %6578 }
0x1ac1   :  { %v6595_v59 = vsub.f32 %v14506_v50, %v6579_v38  ;;  %v6655_v50 = vsel %vm101_vm0, %v14583_v14, 0.0 }
0x1ac3   :  { %v6626_v37 = vmul.f32 1.442695, %v6595_v59  ;;  %v14593_v59 = vpop.eup %11308 }
0x1ac4   :  { %v6573_v12 = vpop.xlane.xlu1 %6572 }
0x1ac5   :  { %v6593_v45 = vsub.f32 %v14508_v61, %v6573_v12  ;;  %11310 = vpow2.f32 %v6626_v37  ;;  %v6670_v61 = vsel %vm101_vm0, %v14593_v59, 0.0 }
0x1ac7   :  { %v6622_v52 = vmul.f32 1.442695, %v6593_v45 }
0x1ac9   :  { %11312 = vpow2.f32 %v6622_v52 }
0x1acb   :  { %6662 = vadd.xlane.f32.xlu1 %v6661_v16 }
0x1acf   :  { %6656 = vadd.xlane.f32.xlu1 %v6655_v50  ;;  %6665 = vadd.xlane.f32.xlu0 %v6664_v28  ;;  %v14597_v29 = vpop.eup %11310 }
0x1ad0   :  { %v6673_v51 = vsel %vm101_vm0, %v14597_v29, 0.0 }
0x1ad3   :  { %6671 = vadd.xlane.f32.xlu1 %v6670_v61  ;;  %v14601_v36 = vpop.eup %11312 }
0x1ad4   :  { %v6667_v55 = vsel %vm101_vm0, %v14601_v36, 0.0 }
0x1ad7   :  { %6674 = vadd.xlane.f32.xlu1 %v6673_v51 }
0x1adb   :  { %6668 = vadd.xlane.f32.xlu1 %v6667_v55 }
0x1ae5   :  { %7033 = vrot.lane.b32.xlu0 %v13787_v20, %s11576_s21 }
0x1ae9   :  { %6962 = vrot.lane.b32.xlu0 %v13775_v1, %s11577_s23 }
0x1aec   :  { %6960 = vrot.lane.b32.xlu1 %v13777_v33, %s11577_s23 }
0x1aed   :  { %7102 = vrot.lane.b32.xlu0 %v13797_v26, %s11576_s21 }
0x1af0   :  { %7035 = vrot.lane.b32.xlu1 %v13785_v31, %s11576_s21 }
0x1af1   :  { %7031 = vrot.lane.b32.xlu0 %v13785_v31, %s11577_s23 }
0x1af4   :  { %7029 = vrot.lane.b32.xlu1 %v13787_v20, %s11577_s23 }
0x1af5   :  { %7171 = vrot.lane.b32.xlu0 %v13805_v41, %s11576_s21 }
0x1af8   :  { %7104 = vrot.lane.b32.xlu1 %v13795_v34, %s11576_s21 }
0x1af9   :  { %7100 = vrot.lane.b32.xlu0 %v13795_v34, %s11577_s23 }
0x1afc   :  { %7098 = vrot.lane.b32.xlu1 %v13797_v26, %s11577_s23 }
0x1afd   :  { %7167 = vrot.lane.b32.xlu0 %v13805_v41, %s11577_s23 }
0x1b00   :  { %7173 = vrot.lane.b32.xlu1 %v13803_v8, %s11576_s21 }
0x1b01   :  { %7436 = vrot.lane.b32.xlu0 %v13777_v33, %s15787_s8 }
0x1b04   :  { %7169 = vrot.lane.b32.xlu1 %v13803_v8, %s11577_s23 }
0x1b08   :  { %7438 = vrot.lane.b32.xlu1 %v13775_v1, %s15787_s8 }
0x1b0f   :  { %v6636_v48 = vpop.xlane.xlu0 %6635 }
0x1b13   :  { %v6630_v35 = vpop.xlane.xlu0 %6629 }
0x1b17   :  { %v6639_v17 = vpop.xlane.xlu1 %6638 }
0x1b18   :  { %11314 = vrcp.f32 %v6639_v17 }
0x1b19   :  { %11316 = vrcp.f32 %v6630_v35 }
0x1b1a   :  { %11318 = vrcp.f32 %v6636_v48 }
0x1b1b   :  { %v6633_v38 = vpop.xlane.xlu1 %6632  ;;  %v6648_v12 = vpop.xlane.xlu0 %6647 }
0x1b1c   :  { %11320 = vrcp.f32 %v6633_v38 }
0x1b1f   :  { %v6651_v37 = vpop.xlane.xlu1 %6650  ;;  %v6642_v45 = vpop.xlane.xlu0 %6641 }
0x1b20   :  { %11322 = vrcp.f32 %v6651_v37 }
0x1b21   :  { %11324 = vrcp.f32 %v6642_v45 }
0x1b22   :  { %v11315_v33 = vpop.eup %11314  ;;  %11326 = vrcp.f32 %v6648_v12 }
0x1b23   :  { %v6645_v52 = vpop.xlane.xlu1 %6644  ;;  %v11317_v16 = vpop.eup %11316  ;;  %v6695_v61 = vmul.f32 %v11315_v33, %v14533_v9 }
0x1b24   :  { %11328 = vrcp.f32 %v6645_v52  ;;  %v11319_v50 = vpop.eup %11318  ;;  %v6660_v1 = vpop.xlane.xlu0 %6659  ;;  %v6692_v51 = vmul.f32 %v11317_v16, %v14527_v40 }
0x1b25   :  { %v6694_v48 = vmul.f32 %v11319_v50, %v14521_v3 }
0x1b26   :  { %v11321_v28 = vpop.eup %11320 }
0x1b27   :  { %v6693_v55 = vmul.f32 %v11321_v28, %v14537_v43  ;;  %v6709_v17 = vpack.c.bf16 %v6695_v61, %v6694_v48 }
0x1b28   :  { %v6654_v37 = vpop.xlane.xlu0 %6653 }
0x1b29   :  { %v6708_v35 = vpack.c.bf16 %v6693_v55, %v6692_v51 }
0x1b2a   :  { %v11323_v38 = vpop.eup %11322 }
0x1b2b   :  { %10281 = vmatprep.mubr.msk.bf16.mxu1 %vm101_vm0, %v6708_v35  ;;  %v11325_v12 = vpop.eup %11324  ;;  %v6699_v9 = vmul.f32 %v11323_v38, %v14546_v57 }
0x1b2c   :  { %10282 = vmatmul.mubr.msk.bf16.vlgmr.msra.gmra.mrb[136].mxu1 %vm101_vm0, %v6709_v17  ;;  %v11327_v45 = vpop.eup %11326  ;;  %v6696_v40 = vmul.f32 %v11325_v12, %v14548_v47  ;;  %v6965_v33 = vpop.permute.xlu0 %6964 }
0x1b2d   :  { %10294 = vmatpush3.bf16.msra.mxu1 %v14394_v21  ;;  %v6698_v43 = vmul.f32 %v11327_v45, %v14540_v44  ;;  %v6967_v21 = vpop.permute.xlu1 %6966 }
0x1b2e   :  { %v11329_v52 = vpop.eup %11328  ;;  %10295 = vmatprep.subr.bf16.mxu1 %v14514_v18 }
0x1b2f   :  { %v6697_v3 = vmul.f32 %v11329_v52, %v14554_v32  ;;  %v6711_v50 = vpack.c.bf16 %v6699_v9, %v6698_v43 }
0x1b31   :  { %10296 = vmatpush3.bf16.msra.mxu1 %v14514_v18  ;;  %v6710_v16 = vpack.c.bf16 %v6697_v3, %v6696_v40 }
0x1b32   :  { %10513 = vmatprep.subr.msk.bf16.mxu1 %vm514_vm1, %v6965_v33 }
0x1b33   :  { %10289 = vmatprep.mubr.msk.bf16.mxu0 %vm101_vm0, %v6710_v16 }
0x1b34   :  { %10290 = vmatmul.mubr.msk.bf16.vlgmr.msra.gmra.mrb[152].mxu0 %vm101_vm0, %v6711_v50 }
0x1b35   :  { %10302 = vmatpush3.bf16.msra.mxu0 %v14558_v10 }
0x1b36   :  { %10303 = vmatprep.subr.bf16.mxu0 %v14576_v30 }
0x1b39   :  { %10304 = vmatpush3.bf16.msra.mxu0 %v14576_v30 }
0x1b58   :  { %v6663_v57 = vpop.xlane.xlu1 %6662 }
0x1b59   :  { %11330 = vrcp.f32 %v6663_v57 }
0x1b5a   :  { %11332 = vrcp.f32 %v6654_v37 }
0x1b5b   :  { %11334 = vrcp.f32 %v6660_v1 }
0x1b5c   :  { %v6657_v18 = vpop.xlane.xlu1 %6656  ;;  %v6666_v44 = vpop.xlane.xlu0 %6665 }
0x1b5d   :  { %11336 = vrcp.f32 %v6657_v18 }
0x1b60   :  { %v6672_v47 = vpop.xlane.xlu1 %6671  ;;  %v7034_v32 = vpop.permute.xlu0 %7033 }
0x1b61   :  { %10515 = vmatprep.subr.msk.bf16.mxu0 %vm514_vm1, %v7034_v32 }
0x1b63   :  { %v11331_v28 = vpop.eup %11330 }
0x1b64   :  { %v6675_v61 = vpop.xlane.xlu1 %6674  ;;  %v6963_v51 = vpop.permute.xlu0 %6962  ;;  %v6703_v30 = vmul.f32 %v11331_v28, %v14581_v4  ;;  %v6975_v4 = vsel %vm514_vm1, %v6965_v33, 0 }
0x1b65   :  { %v11333_v10 = vpop.eup %11332  ;;  %11338 = vrcp.f32 %v6675_v61 }
0x1b66   :  { %v11335_v55 = vpop.eup %11334  ;;  %11340 = vrcp.f32 %v6666_v44  ;;  %v6700_v17 = vmul.f32 %v11333_v10, %v14565_v54  ;;  %v6978_v44 = vsel %vm514_vm1, %v6967_v21, 0 }
0x1b67   :  { %v11337_v48 = vpop.eup %11336  ;;  %11342 = vrcp.f32 %v6672_v47  ;;  %v6702_v37 = vmul.f32 %v11335_v55, %v14556_v5 }
0x1b68   :  { %v6669_v35 = vpop.xlane.xlu1 %6668  ;;  %v7103_v1 = vpop.permute.xlu0 %7102  ;;  %v6701_v38 = vmul.f32 %v11337_v48, %v14583_v14 }
0x1b69   :  { %11344 = vrcp.f32 %v6669_v35  ;;  %v6713_v45 = vpack.c.bf16 %v6703_v30, %v6702_v37 }
0x1b6a   :  { %v6712_v12 = vpack.c.bf16 %v6701_v38, %v6700_v17 }
0x1b6c   :  { %v6961_v52 = vpop.permute.xlu1 %6960  ;;  %10297 = vmatprep.mubr.msk.bf16.mxu1 %vm101_vm0, %v6712_v12  ;;  %v7032_v9 = vpop.permute.xlu0 %7031 }
0x1b6d   :  { %10298 = vmatmul.mubr.msk.bf16.vlgmr.msra.gmra.mrb[140].mxu1 %vm101_vm0, %v6713_v45 }
0x1b6e   :  { %10310 = vmatpush3.bf16.xpose.msra.mxu1 %v6975_v4  ;;  %10313 = vmatprep.mubr.msk.bf16.mxu1 %vm514_vm1, %v6961_v52 }
0x1b6f   :  { %10514 = vmatprep.subr.msk.bf16.mxu1 %vm514_vm1, %v6967_v21  ;;  %v11339_v54 = vpop.eup %11338 }
0x1b70   :  { %v7036_v14 = vpop.permute.xlu1 %7035  ;;  %v11341_v40 = vpop.eup %11340  ;;  %v6707_v43 = vmul.f32 %v11339_v54, %v14597_v29  ;;  %v7044_v29 = vsel %vm514_vm1, %v7034_v32, 0 }
0x1b71   :  { %v11343_v5 = vpop.eup %11342  ;;  %v7172_v16 = vpop.permute.xlu0 %7171  ;;  %v6704_v57 = vmul.f32 %v11341_v40, %v14587_v42  ;;  %v7047_v21 = vsel %vm514_vm1, %v7036_v14, 0 }
0x1b72   :  { %v6706_v33 = vmul.f32 %v11343_v5, %v14593_v59  ;;  %v7113_v59 = vsel %vm514_vm1, %v7103_v1, 0  ;;  %v7182_v30 = vsel %vm514_vm1, %v7172_v16, 0 }
0x1b73   :  { %v11345_v3 = vpop.eup %11344 }
0x1b74   :  { %v7030_v50 = vpop.permute.xlu1 %7029  ;;  %v6705_v18 = vmul.f32 %v11345_v3, %v14601_v36  ;;  %v6715_v28 = vpack.c.bf16 %v6707_v43, %v6706_v33 }
0x1b75   :  { %v7101_v10 = vpop.permute.xlu0 %7100 }
0x1b76   :  { %10312 = vmatpush3.bf16.xpose.msra.mxu1 %v6978_v44  ;;  %v6714_v47 = vpack.c.bf16 %v6705_v18, %v6704_v57 }
0x1b77   :  { %10517 = vmatprep.subr.msk.bf16.mxu1 %vm514_vm1, %v7103_v1 }
0x1b78   :  { %v7105_v61 = vpop.permute.xlu1 %7104  ;;  %10305 = vmatprep.mubr.msk.bf16.mxu0 %vm101_vm0, %v6714_v47 }
0x1b79   :  { %10306 = vmatmul.mubr.msk.bf16.vlgmr.msra.gmra.mrb[156].mxu0 %vm101_vm0, %v6715_v28  ;;  %v7168_v36 = vpop.permute.xlu0 %7167  ;;  %v7116_v55 = vsel %vm514_vm1, %v7105_v61, 0 }
0x1b7a   :  { %10318 = vmatpush3.bf16.xpose.msra.mxu0 %v7044_v29  ;;  %10321 = vmatprep.mubr.msk.bf16.mxu0 %vm514_vm1, %v7030_v50 }
0x1b7b   :  { %10516 = vmatprep.subr.msk.bf16.mxu0 %vm514_vm1, %v7036_v14 }
0x1b7c   :  { %v7099_v42 = vpop.permute.xlu1 %7098 }
0x1b7d   :  { %10314 = vmatmul.mubr.msk.bf16.vlgmr.msra.gmra.mrb[144].mxu1 %vm514_vm1, %v6963_v51  ;;  %v7437_v48 = vpop.permute.xlu0 %7436 }
0x1b7e   :  { %10326 = vmatpush3.bf16.xpose.msra.mxu1 %v7113_v59  ;;  %10329 = vmatprep.mubr.msk.bf16.mxu1 %vm514_vm1, %v7099_v42 }
0x1b7f   :  { %10518 = vmatprep.subr.msk.bf16.mxu1 %vm514_vm1, %v7105_v61 }
0x1b80   :  { %v7174_v32 = vpop.permute.xlu1 %7173 }
0x1b81   :  { %v7185_v1 = vsel %vm514_vm1, %v7174_v32, 0 }
0x1b82   :  { %10320 = vmatpush3.bf16.xpose.msra.mxu0 %v7047_v21 }
0x1b83   :  { %10519 = vmatprep.subr.msk.bf16.mxu0 %vm514_vm1, %v7172_v16 }
0x1b84   :  { %v7170_v51 = vpop.permute.xlu1 %7169 }
0x1b86   :  { %10328 = vmatpush3.bf16.xpose.msra.mxu1 %v7116_v55 }
0x1b87   :  { %10341 = vmatprep.subr.bf16.mxu1 %v7437_v48 }
0x1b88   :  { %v7439_v35 = vpop.permute.xlu1 %7438 }
0x1b89   :  { %10322 = vmatmul.mubr.msk.bf16.vlgmr.msra.gmra.mrb[160].mxu0 %vm514_vm1, %v7032_v9 }
0x1b8a   :  { %10334 = vmatpush3.bf16.xpose.msra.mxu0 %v7182_v30  ;;  %10337 = vmatprep.mubr.msk.bf16.mxu0 %vm514_vm1, %v7168_v36 }
0x1b8b   :  { %10520 = vmatprep.subr.msk.bf16.mxu0 %vm514_vm1, %v7174_v32 }
0x1b8d   :  { %10330 = vmatmul.mubr.msk.bf16.vlgmr.msra.gmra.mrb[148].mxu1 %vm514_vm1, %v7101_v10 }
0x1b8e   :  { %10342 = vmatpush3.bf16.msra.mxu1 %v7437_v48 }
0x1b8f   :  { %10343 = vmatprep.subr.bf16.mxu1 %v7439_v35 }
0x1b92   :  { %10336 = vmatpush3.bf16.xpose.msra.mxu0 %v7185_v1  ;;  %10344 = vmatpush3.bf16.msra.mxu1 %v7439_v35 }
0x1b99   :  { %10338 = vmatmul.mubr.msk.bf16.vlgmr.msra.gmra.mrb[164].mxu0 %vm514_vm1, %v7170_v51 }
0x1bff   :  { %v14691_v17 = vpop.f32.mrb[136].mxu1 }
0x1c00   :  { %v14693_v38 = vpop.f32.mrb[137].mxu1 }
0x1c01   :  { %v14695_v37 = vpop.f32.mrb[138].mxu1 }
0x1c02   :  { %v14699_v45 = vpop.f32.mrb[139].mxu1 }
0x1c07   :  { %v14703_v4 = vpop.f32.mrb[152].mxu0 }
0x1c08   :  { %v14705_v9 = vpop.f32.mrb[153].mxu0 }
0x1c09   :  { %v14707_v54 = vpop.f32.mrb[154].mxu0 }
0x1c0a   :  { %v14711_v40 = vpop.f32.mrb[155].mxu0 }
0x1c40   :  { %v14715_v3 = vpop.f32.mrb[140].mxu1 }
0x1c41   :  { %v14717_v43 = vpop.f32.mrb[141].mxu1 }
0x1c42   :  { %v14719_v16 = vpop.f32.mrb[142].mxu1 }
0x1c43   :  { %v14723_v57 = vpop.f32.mrb[143].mxu1 }
0x1c4c   :  { %v14727_v33 = vpop.f32.mrb[156].mxu0 }
0x1c4d   :  { %v14729_v44 = vpop.f32.mrb[157].mxu0 }
0x1c4e   :  { %v14731_v47 = vpop.f32.mrb[158].mxu0 }
0x1c4f   :  { %v14735_v61 = vpop.f32.mrb[159].mxu0 }
0x1c50   :  { %v10315_v10 = vpop.f32.mrb[144].mxu1 }
0x1c51   :  { %v14739_v42 = vmul.f32 0.35355338, %v10315_v10  ;;  %v7014_v59 = vpop.f32.mrb[145].mxu1 }
0x1c52   :  { %v10316_v36 = vpop.f32.mrb[146].mxu1  ;;  %v14741_v21 = vmul.f32 0.35355338, %v7014_v59 }
0x1c53   :  { %v7017_v32 = vpop.f32.mrb[147].mxu1  ;;  %v7258_v55 = vsel %vm101_vm0, %v14739_v42, -inf  ;;  %v14749_v30 = vmul.f32 0.35355338, %v10316_v36 }
0x1c54   :  { %v14745_v48 = vmul.f32 0.35355338, %v7017_v32  ;;  %7259 = vmax.xlane.f32.xlu0 %v7258_v55  ;;  %v7252_v35 = vsel %vm101_vm0, %v14741_v21, -inf }
0x1c55   :  { %v7261_v1 = vsel %vm101_vm0, %v14749_v30, -inf }
0x1c56   :  { %v7255_v51 = vsel %vm101_vm0, %v14745_v48, -inf }
0x1c57   :  { %7256 = vmax.xlane.f32.xlu1 %v7255_v51 }
0x1c58   :  { %7253 = vmax.xlane.f32.xlu0 %v7252_v35 }
0x1c5c   :  { %7262 = vmax.xlane.f32.xlu0 %v7261_v1  ;;  %v10323_v10 = vpop.f32.mrb[160].mxu0 }
0x1c5d   :  { %v14755_v59 = vmul.f32 0.35355338, %v10323_v10  ;;  %v7083_v32 = vpop.f32.mrb[161].mxu0 }
0x1c5e   :  { %v10324_v29 = vpop.f32.mrb[162].mxu0  ;;  %v14757_v55 = vmul.f32 0.35355338, %v7083_v32 }
0x1c5f   :  { %v14759_v28 = vmul.f32 0.35355338, %v10324_v29  ;;  %v7086_v36 = vpop.f32.mrb[163].mxu0  ;;  %v7270_v51 = vsel %vm101_vm0, %v14755_v59, -inf }
0x1c60   :  { %7271 = vmax.xlane.f32.xlu0 %v7270_v51  ;;  %v10331_v18 = vpop.f32.mrb[148].mxu1  ;;  %v14763_v35 = vmul.f32 0.35355338, %v7086_v36  ;;  %v7264_v29 = vsel %vm101_vm0, %v14757_v55, -inf }
0x1c61   :  { %v7152_v50 = vpop.f32.mrb[149].mxu1  ;;  %v7273_v1 = vsel %vm101_vm0, %v14759_v28, -inf  ;;  %v14767_v14 = vmul.f32 0.35355338, %v10331_v18 }
0x1c62   :  { %7274 = vmax.xlane.f32.xlu1 %v7273_v1  ;;  %v10332_v10 = vpop.f32.mrb[150].mxu1  ;;  %v7267_v51 = vsel %vm101_vm0, %v14763_v35, -inf  ;;  %v14775_v36 = vmul.f32 0.35355338, %v7152_v50 }
0x1c63   :  { %v7155_v32 = vpop.f32.mrb[151].mxu1  ;;  %v14771_v12 = vmul.f32 0.35355338, %v10332_v10  ;;  %v7282_v5 = vsel %vm101_vm0, %v14767_v14, -inf }
0x1c64   :  { %7265 = vmax.xlane.f32.xlu0 %v7264_v29  ;;  %v14779_v1 = vmul.f32 0.35355338, %v7155_v32  ;;  %v7276_v10 = vsel %vm101_vm0, %v14775_v36, -inf }
0x1c65   :  { %v7285_v18 = vsel %vm101_vm0, %v14771_v12, -inf }
0x1c66   :  { %7268 = vmax.xlane.f32.xlu1 %v7267_v51  ;;  %v7279_v50 = vsel %vm101_vm0, %v14779_v1, -inf }
0x1c68   :  { %7283 = vmax.xlane.f32.xlu0 %v7282_v5 }
0x1c6a   :  { %7286 = vmax.xlane.f32.xlu1 %v7285_v18 }
0x1c6c   :  { %7277 = vmax.xlane.f32.xlu0 %v7276_v10  ;;  %v10339_v29 = vpop.f32.mrb[164].mxu0 }
0x1c6d   :  { %v14785_v52 = vmul.f32 0.35355338, %v10339_v29  ;;  %v7221_v51 = vpop.f32.mrb[165].mxu0 }
0x1c6e   :  { %7280 = vmax.xlane.f32.xlu1 %v7279_v50  ;;  %v10340_v46 = vpop.f32.mrb[166].mxu0  ;;  %v14789_v5 = vmul.f32 0.35355338, %v7221_v51 }
0x1c6f   :  { %v14791_v32 = vmul.f32 0.35355338, %v10340_v46  ;;  %v7224_v6 = vpop.f32.mrb[167].mxu0  ;;  %v7294_v18 = vsel %vm101_vm0, %v14785_v52, -inf }
0x1c70   :  { %7295 = vmax.xlane.f32.xlu0 %v7294_v18  ;;  %v14795_v22 = vmul.f32 0.35355338, %v7224_v6  ;;  %v7288_v29 = vsel %vm101_vm0, %v14789_v5, -inf }
0x1c71   :  { %v7297_v10 = vsel %vm101_vm0, %v14791_v32, -inf }
0x1c72   :  { %7298 = vmax.xlane.f32.xlu1 %v7297_v10  ;;  %v7291_v51 = vsel %vm101_vm0, %v14795_v22, -inf }
0x1c74   :  { %7289 = vmax.xlane.f32.xlu0 %v7288_v29 }
0x1c76   :  { %7292 = vmax.xlane.f32.xlu1 %v7291_v51 }
0x1c87   :  { %7560 = vrot.lane.b32.xlu1 %v13795_v34, %s15787_s8 }
0x1c8a   :  { %7497 = vrot.lane.b32.xlu0 %v13787_v20, %s15787_s8 }
0x1c8e   :  { %7499 = vrot.lane.b32.xlu0 %v13785_v31, %s15787_s8 }
0x1c92   :  { %7558 = vrot.lane.b32.xlu0 %v13797_v26, %s15787_s8 }
0x1ce1   :  { %v7260_v6 = vpop.xlane.xlu0 %7259 }
0x1ce2   :  { %v7302_v46 = vsub.f32 %v14739_v42, %v7260_v6 }
0x1ce4   :  { %v7320_v50 = vmul.f32 1.442695, %v7302_v46  ;;  %v7257_v18 = vpop.xlane.xlu1 %7256 }
0x1ce5   :  { %v7254_v10 = vpop.xlane.xlu0 %7253  ;;  %v7301_v34 = vsub.f32 %v14745_v48, %v7257_v18 }
0x1ce6   :  { %11346 = vpow2.f32 %v7320_v50  ;;  %v7300_v29 = vsub.f32 %v14741_v21, %v7254_v10 }
0x1ce7   :  { %v7318_v31 = vmul.f32 1.442695, %v7301_v34 }
0x1ce8   :  { %v7316_v51 = vmul.f32 1.442695, %v7300_v29 }
0x1ce9   :  { %v7263_v62 = vpop.xlane.xlu0 %7262 }
0x1cea   :  { %11348 = vpow2.f32 %v7316_v51  ;;  %v7303_v20 = vsub.f32 %v14749_v30, %v7263_v62 }
0x1cec   :  { %v7322_v24 = vmul.f32 1.442695, %v7303_v20 }
0x1ced   :  { %v7272_v39 = vpop.xlane.xlu0 %7271 }
0x1cee   :  { %11350 = vpow2.f32 %v7322_v24  ;;  %v7306_v26 = vsub.f32 %v14755_v59, %v7272_v39 }
0x1cef   :  { %v7275_v42 = vpop.xlane.xlu1 %7274  ;;  %11352 = vpow2.f32 %v7318_v31 }
0x1cf0   :  { %v14816_v6 = vpop.eup %11346  ;;  %v7328_v46 = vmul.f32 1.442695, %v7306_v26  ;;  %v7307_v21 = vsub.f32 %v14759_v28, %v7275_v42 }
0x1cf1   :  { %v7266_v50 = vpop.xlane.xlu0 %7265  ;;  %v7354_v48 = vsel %vm101_vm0, %v14816_v6, 0.0 }
0x1cf2   :  { %11354 = vpow2.f32 %v7328_v46  ;;  %v7330_v18 = vmul.f32 1.442695, %v7307_v21  ;;  %v7304_v62 = vsub.f32 %v14757_v55, %v7266_v50  ;;  %7355 = vadd.xlane.f32.xlu0 %v7354_v48 }
0x1cf3   :  { %v7269_v30 = vpop.xlane.xlu1 %7268 }
0x1cf4   :  { %v14822_v24 = vpop.eup %11348  ;;  %11356 = vpow2.f32 %v7330_v18  ;;  %v7324_v39 = vmul.f32 1.442695, %v7304_v62  ;;  %v7305_v59 = vsub.f32 %v14763_v35, %v7269_v30 }
0x1cf5   :  { %v7284_v10 = vpop.xlane.xlu0 %7283  ;;  %v7348_v28 = vsel %vm101_vm0, %v14822_v24, 0.0 }
0x1cf6   :  { %11358 = vpow2.f32 %v7324_v39  ;;  %v7326_v29 = vmul.f32 1.442695, %v7305_v59  ;;  %v7310_v34 = vsub.f32 %v14767_v14, %v7284_v10  ;;  %7349 = vadd.xlane.f32.xlu0 %v7348_v28 }
0x1cf7   :  { %v7287_v51 = vpop.xlane.xlu1 %7286 }
0x1cf8   :  { %v14828_v20 = vpop.eup %11350  ;;  %11360 = vpow2.f32 %v7326_v29  ;;  %v7336_v55 = vmul.f32 1.442695, %v7310_v34  ;;  %v7311_v31 = vsub.f32 %v14771_v12, %v7287_v51 }
0x1cf9   :  { %v7278_v26 = vpop.xlane.xlu0 %7277  ;;  %v7357_v35 = vsel %vm101_vm0, %v14828_v20, 0.0  ;;  %v14833_v42 = vpop.eup %11352 }
0x1cfa   :  { %11362 = vpow2.f32 %v7336_v55  ;;  %v7338_v46 = vmul.f32 1.442695, %v7311_v31  ;;  %v7308_v21 = vsub.f32 %v14775_v36, %v7278_v26  ;;  %7358 = vadd.xlane.f32.xlu1 %v7357_v35  ;;  %v7351_v12 = vsel %vm101_vm0, %v14833_v42, 0.0 }
0x1cfb   :  { %v7281_v14 = vpop.xlane.xlu1 %7280 }
0x1cfc   :  { %v14836_v50 = vpop.eup %11354  ;;  %11364 = vpow2.f32 %v7338_v46  ;;  %v7332_v48 = vmul.f32 1.442695, %v7308_v21  ;;  %v7309_v18 = vsub.f32 %v14779_v1, %v7281_v14 }
0x1cfd   :  { %v7296_v62 = vpop.xlane.xlu0 %7295  ;;  %v7366_v30 = vsel %vm101_vm0, %v14836_v50, 0.0 }
0x1cfe   :  { %v14843_v39 = vpop.eup %11356  ;;  %11366 = vpow2.f32 %v7332_v48  ;;  %v7334_v59 = vmul.f32 1.442695, %v7309_v18  ;;  %v7314_v36 = vsub.f32 %v14785_v52, %v7296_v62  ;;  %7352 = vadd.xlane.f32.xlu1 %v7351_v12  ;;  %7367 = vadd.xlane.f32.xlu0 %v7366_v30 }
0x1cff   :  { %v7299_v10 = vpop.xlane.xlu1 %7298  ;;  %v7369_v34 = vsel %vm101_vm0, %v14843_v39, 0.0 }
0x1d00   :  { %v14846_v28 = vpop.eup %11358  ;;  %11368 = vpow2.f32 %v7334_v59  ;;  %v7344_v1 = vmul.f32 1.442695, %v7314_v36  ;;  %v7315_v26 = vsub.f32 %v14791_v32, %v7299_v10 }
0x1d01   :  { %v7290_v29 = vpop.xlane.xlu0 %7289  ;;  %v7360_v51 = vsel %vm101_vm0, %v14846_v28, 0.0 }
0x1d02   :  { %v14852_v55 = vpop.eup %11360  ;;  %v7312_v31 = vsub.f32 %v14789_v5, %v7290_v29  ;;  %7370 = vadd.xlane.f32.xlu1 %v7369_v34  ;;  %7361 = vadd.xlane.f32.xlu0 %v7360_v51  ;;  %11370 = vpow2.f32 %v7344_v1  ;;  %v7346_v62 = vmul.f32 1.442695, %v7315_v26 }
0x1d03   :  { %v7293_v46 = vpop.xlane.xlu1 %7292  ;;  %v7363_v14 = vsel %vm101_vm0, %v14852_v55, 0.0 }
0x1d04   :  { %v14855_v52 = vpop.eup %11362  ;;  %v7340_v35 = vmul.f32 1.442695, %v7312_v31  ;;  %v7313_v32 = vsub.f32 %v14795_v22, %v7293_v46 }
0x1d05   :  { %v7498_v21 = vpop.permute.xlu0 %7497  ;;  %v7378_v48 = vsel %vm101_vm0, %v14855_v52, 0.0 }
0x1d06   :  { %v14862_v18 = vpop.eup %11364  ;;  %7364 = vadd.xlane.f32.xlu1 %v7363_v14  ;;  %7379 = vadd.xlane.f32.xlu0 %v7378_v48  ;;  %11372 = vpow2.f32 %v7340_v35  ;;  %v7342_v10 = vmul.f32 1.442695, %v7313_v32  ;;  %v15788_v14 = vpack.i.bf16 %v14406_v49, %v14400_v2  ;;  %v15789_v48 = vpack.i.bf16 %v14699_v45, %v14693_v38 }
0x1d07   :  { %10349 = vmatprep.subr.bf16.mxu0 %v7498_v21  ;;  %v7381_v30 = vsel %vm101_vm0, %v14862_v18, 0.0  ;;  %11374 = vpow2.f32 %v7346_v62  ;;  %v15790_v62 = vpack.i.bf16 %v14418_v63, %v14412_v27  ;;  %v15792_v2 = vpack.i.bf16 %v14402_v19, %v14398_v15 }
0x1d08   :  { %v14864_v5 = vpop.eup %11366  ;;  %10350 = vmatpush3.bf16.msra.mxu0 %v7498_v21  ;;  %11376 = vpow2.f32 %v7342_v10  ;;  %v15793_v49 = vpack.i.bf16 %v14430_v11, %v14424_v60  ;;  %v15794_v27 = vpack.i.bf16 %v14695_v37, %v14691_v17  ;;  %v15796_v15 = vpack.i.bf16 %v14707_v54, %v14703_v4  ;;  %v7561_v60 = vpop.permute.xlu1 %7560 }
0x1d09   :  { %v7500_v12 = vpop.permute.xlu0 %7499  ;;  %v7372_v59 = vsel %vm101_vm0, %v14864_v5, 0.0  ;;  %v15797_v19 = vpack.i.bf16 %v14426_v23, %v14422_v13 }
0x1d0a   :  { %v14871_v36 = vpop.eup %11368  ;;  %7382 = vadd.xlane.f32.xlu1 %v7381_v30  ;;  %7373 = vadd.xlane.f32.xlu0 %v7372_v59 }
0x1d0b   :  { %10351 = vmatprep.subr.bf16.mxu0 %v7500_v12  ;;  %v7375_v22 = vsel %vm101_vm0, %v14871_v36, 0.0 }
0x1d0c   :  { %10352 = vmatpush3.bf16.msra.mxu0 %v7500_v12  ;;  %v14877_v29 = vpop.eup %11370 }
0x1d0d   :  { %v14873_v1 = vpop.permute.xlu0 %7558  ;;  %v7390_v34 = vsel %vm101_vm0, %v14877_v29, 0.0 }
0x1d0e   :  { %7376 = vadd.xlane.f32.xlu1 %v7375_v22  ;;  %10357 = vmatprep.subr.bf16.mxu1 %v14873_v1 }
0x1d10   :  { %v14882_v51 = vpop.eup %11372 }
0x1d11   :  { %v7384_v31 = vsel %vm101_vm0, %v14882_v51, 0.0  ;;  %v14886_v26 = vpop.eup %11374 }
0x1d12   :  { %7391 = vadd.xlane.f32.xlu1 %v7390_v34  ;;  %v7393_v35 = vsel %vm101_vm0, %v14886_v26, 0.0  ;;  %v14890_v46 = vpop.eup %11376 }
0x1d13   :  { %v7387_v21 = vsel %vm101_vm0, %v14890_v46, 0.0 }
0x1d16   :  { %7385 = vadd.xlane.f32.xlu1 %v7384_v31 }
0x1d1a   :  { %7394 = vadd.xlane.f32.xlu1 %v7393_v35 }
0x1d1e   :  { %7388 = vadd.xlane.f32.xlu1 %v7387_v21 }
0x1d20   :  { %7619 = vrot.lane.b32.xlu0 %v13805_v41, %s15787_s8  ;;  %v15791_v41 = vpack.i.bf16 %v14711_v40, %v14705_v9 }
0x1d24   :  { %10661 = vrot.lane.b32.xlu0 %v15788_v14, %s11564_s18 }
0x1d28   :  { %10671 = vrot.lane.b32.xlu0 %v15789_v48, %s11566_s22 }
0x1d2c   :  { %10681 = vrot.lane.b32.xlu0 %v15790_v62, %s11564_s18 }
0x1d2f   :  { %7621 = vrot.lane.b32.xlu1 %v13803_v8, %s15787_s8  ;;  %v15795_v8 = vpack.i.bf16 %v14414_v58, %v14410_v56 }
0x1d30   :  { %10691 = vrot.lane.b32.xlu0 %v15791_v41, %s11566_s22 }
0x1d33   :  { %10666 = vrot.lane.b32.xlu1 %v15792_v2, %s11564_s18 }
0x1d34   :  { %10701 = vrot.lane.b32.xlu0 %v15793_v49, %s11564_s18 }
0x1d37   :  { %10676 = vrot.lane.b32.xlu1 %v15794_v27, %s11566_s22 }
0x1d3b   :  { %10686 = vrot.lane.b32.xlu1 %v15795_v8, %s11564_s18 }
0x1d3f   :  { %10696 = vrot.lane.b32.xlu1 %v15796_v15, %s11566_s22 }
0x1d43   :  { %10706 = vrot.lane.b32.xlu1 %v15797_v19, %s11564_s18 }
0x1d7f   :  { %v7356_v63 = vpop.xlane.xlu0 %7355 }
0x1d83   :  { %v7350_v11 = vpop.xlane.xlu0 %7349 }
0x1d87   :  { %v7359_v17 = vpop.xlane.xlu1 %7358 }
0x1d88   :  { %11378 = vrcp.f32 %v7359_v17 }
0x1d89   :  { %11380 = vrcp.f32 %v7350_v11 }
0x1d8a   :  { %11382 = vrcp.f32 %v7356_v63 }
0x1d8b   :  { %v7353_v38 = vpop.xlane.xlu1 %7352  ;;  %v7368_v56 = vpop.xlane.xlu0 %7367 }
0x1d8c   :  { %11384 = vrcp.f32 %v7353_v38 }
0x1d8f   :  { %v7371_v58 = vpop.xlane.xlu1 %7370  ;;  %v7362_v37 = vpop.xlane.xlu0 %7361 }
0x1d90   :  { %11386 = vrcp.f32 %v7371_v58 }
0x1d91   :  { %11388 = vrcp.f32 %v7362_v37 }
0x1d92   :  { %v11379_v45 = vpop.eup %11378  ;;  %11390 = vrcp.f32 %v7368_v56 }
0x1d93   :  { %v7365_v4 = vpop.xlane.xlu1 %7364  ;;  %v7380_v9 = vpop.xlane.xlu0 %7379  ;;  %v7415_v40 = vmul.f32 %v11379_v45, %v14828_v20 }
0x1d94   :  { %v11381_v13 = vpop.eup %11380  ;;  %11392 = vrcp.f32 %v7365_v4 }
0x1d95   :  { %v11383_v23 = vpop.eup %11382  ;;  %v7412_v30 = vmul.f32 %v11381_v13, %v14822_v24  ;;  %v10792_v13 = vld [vmem:[%s15659_s2 + $0x10] sm:$0xff]  }
0x1d96   :  { %v11385_v54 = vpop.eup %11384  ;;  %v7414_v10 = vmul.f32 %v11383_v23, %v14816_v6 }
0x1d97   :  { %v7383_v32 = vpop.xlane.xlu1 %7382  ;;  %v7374_v12 = vpop.xlane.xlu0 %7373  ;;  %v7413_v59 = vmul.f32 %v11385_v54, %v14833_v42 }
0x1d98   :  { %11394 = vrcp.f32 %v7383_v32  ;;  %v7429_v34 = vpack.c.bf16 %v7415_v40, %v7414_v10 }
0x1d99   :  { %v7428_v22 = vpack.c.bf16 %v7413_v59, %v7412_v30  ;;  %11396 = vrcp.f32 %v7374_v12  ;;  %v15798_v12 = vpack.i.bf16 %v14719_v16, %v14715_v3  ;;  %v15799_v59 = vpack.i.bf16 %v14723_v57, %v14717_v43 }
0x1d9a   :  { %v11387_v31 = vpop.eup %11386  ;;  %11398 = vrcp.f32 %v7380_v9  ;;  %v15800_v3 = vpack.i.bf16 %v14438_v53, %v14434_v25  ;;  %v15801_v43 = vpack.i.bf16 %v14442_v0, %v14436_v7  ;;  %v15803_v25 = vpack.i.bf16 %v14735_v61, %v14729_v44 }
0x1d9b   :  { %v7377_v35 = vpop.xlane.xlu1 %7376  ;;  %10345 = vmatprep.mubr.msk.bf16.mxu1 %vm101_vm0, %v7428_v22  ;;  %v7620_v21 = vpop.permute.xlu0 %7619  ;;  %v7419_v6 = vmul.f32 %v11387_v31, %v14843_v39 }
0x1d9c   :  { %v11389_v14 = vpop.eup %11388  ;;  %11400 = vrcp.f32 %v7377_v35  ;;  %10346 = vmatmul.mubr.msk.bf16.vlgmr.msra.gmra.mrb[152].mxu1 %vm101_vm0, %v7429_v34  ;;  %10365 = vmatprep.subr.bf16.mxu0 %v7620_v21 }
0x1d9d   :  { %v11391_v24 = vpop.eup %11390  ;;  %10358 = vmatpush3.bf16.msra.mxu1 %v14873_v1  ;;  %v7416_v48 = vmul.f32 %v11389_v14, %v14846_v28 }
0x1d9e   :  { %v11393_v20 = vpop.eup %11392  ;;  %10359 = vmatprep.subr.bf16.mxu1 %v7561_v60  ;;  %v7418_v41 = vmul.f32 %v11391_v24, %v14836_v50 }
0x1d9f   :  { %v7392_v42 = vpop.xlane.xlu1 %7391  ;;  %v7417_v62 = vmul.f32 %v11393_v20, %v14852_v55  ;;  %v15802_v20 = vpack.i.bf16 %v14731_v47, %v14727_v33 }
0x1da0   :  { %v7431_v49 = vpack.c.bf16 %v7419_v6, %v7418_v41  ;;  %v10662_v41 = vpop.permute.xlu0 %10661 }
0x1da1   :  { %10360 = vmatpush3.bf16.msra.mxu1 %v7561_v60  ;;  %v7430_v2 = vpack.c.bf16 %v7417_v62, %v7416_v48  ;;  %v10664_v44 = vunpack.i.h.bf16 %v10662_v41  ;;  %v10663_v61 = vunpack.i.l.bf16 %v10662_v41 }
0x1da2   :  { %v11395_v27 = vpop.eup %11394  ;;  %10373 = vmatprep.subr.bf16.mxu1 %v10792_v13 }
0x1da3   :  { %v7386_v8 = vpop.xlane.xlu1 %7385  ;;  %10353 = vmatprep.mubr.msk.bf16.mxu0 %vm101_vm0, %v7430_v2  ;;  %v11397_v15 = vpop.eup %11396  ;;  %v7423_v19 = vmul.f32 %v11395_v27, %v14862_v18 }
0x1da4   :  { %10354 = vmatmul.mubr.msk.bf16.vlgmr.msra.gmra.mrb[168].mxu0 %vm101_vm0, %v7431_v49  ;;  %v11399_v1 = vpop.eup %11398  ;;  %v7420_v55 = vmul.f32 %v11397_v15, %v14864_v5  ;;  %v10672_v33 = vpop.permute.xlu0 %10671 }
0x1da5   :  { %10366 = vmatpush3.bf16.msra.mxu0 %v7620_v21  ;;  %v7422_v63 = vmul.f32 %v11399_v1, %v14855_v52  ;;  %v10674_v15 = vunpack.i.h.bf16 %v10672_v33  ;;  %v10673_v1 = vunpack.i.l.bf16 %v10672_v33 }
0x1da6   :  { %v11401_v39 = vpop.eup %11400 }
0x1da7   :  { %v7395_v28 = vpop.xlane.xlu1 %7394  ;;  %v7421_v50 = vmul.f32 %v11401_v39, %v14871_v36  ;;  %v7433_v11 = vpack.c.bf16 %v7423_v19, %v7422_v63 }
0x1da8   :  { %11402 = vrcp.f32 %v7395_v28  ;;  %v10682_v49 = vpop.permute.xlu0 %10681 }
0x1da9   :  { %v7432_v60 = vpack.c.bf16 %v7421_v50, %v7420_v55  ;;  %11404 = vrcp.f32 %v7386_v8 }
0x1daa   :  { %11406 = vrcp.f32 %v7392_v42 }
0x1dab   :  { %v7389_v17 = vpop.xlane.xlu1 %7388  ;;  %10361 = vmatprep.mubr.msk.bf16.mxu1 %vm101_vm0, %v7432_v60  ;;  %v15804_v60 = vld [vmem:[#allocation30_spill] sm:$0xff] }
0x1dac   :  { %11408 = vrcp.f32 %v7389_v17  ;;  %10362 = vmatmul.mubr.msk.bf16.vlgmr.msra.gmra.mrb[156].mxu1 %vm101_vm0, %v7433_v11  ;;  %v10692_v8 = vpop.permute.xlu0 %10691  ;;  %v7873_v11 = vsel %vm514_vm1, %v15804_v60, %v10664_v44  ;;  %v15805_v17 = vld [vmem:[#allocation25_spill] sm:$0xff] }
0x1dad   :  { %10374 = vmatpush3.bf16.msra.mxu1 %v10792_v13 }
0x1daf   :  { %v7622_v38 = vpop.permute.xlu1 %7621 }
0x1db0   :  { %10367 = vmatprep.subr.bf16.mxu0 %v7622_v38  ;;  %v15003_v19 = vpop.permute.xlu0 %10701 }
0x1db1   :  { %10368 = vmatpush3.bf16.msra.mxu0 %v7622_v38  ;;  %v7872_v38 = vsel %vm514_vm1, %v15805_v17, %v10663_v61  ;;  %v10703_v61 = vunpack.i.l.bf16 %v15003_v19 }
0x1db2   :  { %v11403_v18 = vpop.eup %11402 }
0x1db3   :  { %v11405_v5 = vpop.eup %11404  ;;  %v7427_v52 = vmul.f32 %v11403_v18, %v14886_v26  ;;  %v10667_v62 = vpop.permute.xlu1 %10666  ;;  %v7888_v18 = vsel %vm3589_vm2, %v7872_v38, %v10673_v1 }
0x1db4   :  { %v11407_v56 = vpop.eup %11406  ;;  %v7424_v58 = vmul.f32 %v11405_v5, %v14882_v51  ;;  %v10793_v51 = vld [vmem:[%s15659_s2 + $0x18] sm:$0xff]   ;;  %v10669_v28 = vunpack.i.h.bf16 %v10667_v62  ;;  %v10668_v55 = vunpack.i.l.bf16 %v10667_v62  ;;  %v7889_v5 = vsel %vm3589_vm2, %v7873_v11, %v10674_v15 }
0x1db5   :  { %v7426_v45 = vmul.f32 %v11407_v56, %v14877_v29  ;;  %10375 = vmatprep.subr.bf16.mxu1 %v10793_v51 }
0x1db6   :  { %v11409_v36 = vpop.eup %11408  ;;  %10376 = vmatpush3.bf16.msra.mxu1 %v10793_v51 }
0x1db7   :  { %v7425_v37 = vmul.f32 %v11409_v36, %v14890_v46  ;;  %v7435_v9 = vpack.c.bf16 %v7427_v52, %v7426_v45  ;;  %v10677_v2 = vpop.permute.xlu1 %10676  ;;  %v15806_v36 = vld [vmem:[#allocation23_spill] sm:$0xff] }
0x1db8   :  { %v10679_v50 = vunpack.i.h.bf16 %v10677_v2  ;;  %v10678_v63 = vunpack.i.l.bf16 %v10677_v2  ;;  %v7875_v52 = vsel %vm514_vm1, %v15806_v36, %v10669_v28  ;;  %v15813_v36 = vld [vmem:[#allocation36_spill] sm:$0xff] }
0x1db9   :  { %v7434_v4 = vpack.c.bf16 %v7425_v37, %v7424_v58  ;;  %v15807_v58 = vld [vmem:[#allocation24_spill] sm:$0xff] }
0x1dba   :  { %v7874_v37 = vsel %vm514_vm1, %v15807_v58, %v10668_v55  ;;  %v7891_v51 = vsel %vm3589_vm2, %v7875_v52, %v10679_v50  ;;  %v7880_v52 = vsel %vm514_vm1, %v15813_v36, %v10703_v61 }
0x1dbb   :  { %10369 = vmatprep.mubr.msk.bf16.mxu0 %vm101_vm0, %v7434_v4  ;;  %v10687_v47 = vpop.permute.xlu1 %10686  ;;  %v7890_v13 = vsel %vm3589_vm2, %v7874_v37, %v10678_v63  ;;  %v15814_v37 = vld [vmem:[#allocation37_spill] sm:$0xff] }
0x1dbc   :  { %10370 = vmatmul.mubr.msk.bf16.vlgmr.msra.gmra.mrb[172].mxu0 %vm101_vm0, %v7435_v9 }
0x1dbf   :  { %v10697_v27 = vpop.permute.xlu1 %10696 }
0x1dc3   :  { %v15001_v39 = vpop.permute.xlu1 %10706 }
0x1dc4   :  { %v10709_v50 = vunpack.i.h.bf16 %v15001_v39  ;;  %v10708_v63 = vunpack.i.l.bf16 %v15001_v39 }
0x1dc6   :  { %v7883_v39 = vsel %vm514_vm1, %v15814_v37, %v10709_v50 }
0x1e6f   :  { %v10347_v26 = vpop.f32.mrb[152].mxu1 }
0x1e70   :  { %v7482_v29 = vpop.f32.mrb[153].mxu1 }
0x1e71   :  { %v10348_v46 = vpop.f32.mrb[154].mxu1 }
0x1e72   :  { %v10710_v23 = vpack.i.bf16 %v10348_v46, %v10347_v26  ;;  %v7485_v54 = vpop.f32.mrb[155].mxu1  ;;  %v10684_v46 = vunpack.i.h.bf16 %v10682_v49 }
0x1e73   :  { %v10715_v40 = vpack.i.bf16 %v7485_v54, %v7482_v29 }
0x1e74   :  { %10711 = vrot.lane.b32.xlu1 %v10710_v23, %s11579_s24  ;;  %v10683_v23 = vunpack.i.l.bf16 %v10682_v49 }
0x1e75   :  { %10716 = vrot.lane.b32.xlu0 %v10715_v40, %s11579_s24 }
0x1e77   :  { %v10355_v32 = vpop.f32.mrb[168].mxu0 }
0x1e78   :  { %10726 = vrot.lane.b32.xlu1 %v15798_v12, %s11566_s22  ;;  %v7543_v30 = vpop.f32.mrb[169].mxu0 }
0x1e79   :  { %10721 = vrot.lane.b32.xlu0 %v15799_v59, %s11566_s22  ;;  %v10356_v10 = vpop.f32.mrb[170].mxu0 }
0x1e7a   :  { %v10730_v22 = vpack.i.bf16 %v10356_v10, %v10355_v32  ;;  %v7546_v34 = vpop.f32.mrb[171].mxu0  ;;  %v10693_v32 = vunpack.i.l.bf16 %v10692_v8 }
0x1e7b   :  { %v10735_v31 = vpack.i.bf16 %v7546_v34, %v7543_v30  ;;  %v10688_v34 = vunpack.i.l.bf16 %v10687_v47 }
0x1e7c   :  { %10731 = vrot.lane.b32.xlu1 %v10730_v22, %s11579_s24  ;;  %v10689_v22 = vunpack.i.h.bf16 %v10687_v47 }
0x1e7d   :  { %10736 = vrot.lane.b32.xlu0 %v10735_v31, %s11579_s24 }
0x1e7f   :  { %v10363_v35 = vpop.f32.mrb[156].mxu1 }
0x1e80   :  { %10746 = vrot.lane.b32.xlu1 %v15800_v3, %s11564_s18  ;;  %v7604_v16 = vpop.f32.mrb[157].mxu1  ;;  %v10699_v3 = vunpack.i.h.bf16 %v10697_v27 }
0x1e81   :  { %10741 = vrot.lane.b32.xlu0 %v15801_v43, %s11564_s18  ;;  %v10364_v57 = vpop.f32.mrb[158].mxu1  ;;  %v15808_v43 = vld [vmem:[#allocation32_spill] sm:$0xff] }
0x1e82   :  { %v10750_v21 = vpack.i.bf16 %v10364_v57, %v10363_v35  ;;  %v7607_v14 = vpop.f32.mrb[159].mxu1  ;;  %v7876_v57 = vsel %vm514_vm1, %v15808_v43, %v10683_v23 }
0x1e83   :  { %v10755_v24 = vpack.i.bf16 %v7607_v14, %v7604_v16  ;;  %v10698_v16 = vunpack.i.l.bf16 %v10697_v27  ;;  %v15809_v14 = vld [vmem:[#allocation34_spill] sm:$0xff]  ;;  %v10704_v27 = vunpack.i.h.bf16 %v15003_v19 }
0x1e84   :  { %10751 = vrot.lane.b32.xlu1 %v10750_v21, %s11579_s24  ;;  %v10694_v21 = vunpack.i.h.bf16 %v10692_v8 }
0x1e85   :  { %10756 = vrot.lane.b32.xlu0 %v10755_v24, %s11579_s24  ;;  %v7877_v24 = vsel %vm514_vm1, %v15809_v14, %v10684_v46 }
0x1e86   :  { %v7893_v49 = vsel %vm3589_vm2, %v7877_v24, %v10694_v21 }
0x1e88   :  { %10766 = vrot.lane.b32.xlu1 %v15802_v20, %s11566_s22  ;;  %v7892_v20 = vsel %vm3589_vm2, %v7876_v57, %v10693_v32 }
0x1e89   :  { %10761 = vrot.lane.b32.xlu0 %v15803_v25, %s11566_s22 }
0x1e8f   :  { %v10371_v7 = vpop.f32.mrb[172].mxu0 }
0x1e90   :  { %v7665_v53 = vpop.f32.mrb[173].mxu0 }
0x1e91   :  { %v10372_v0 = vpop.f32.mrb[174].mxu0 }
0x1e92   :  { %v10775_v6 = vpack.i.bf16 %v10372_v0, %v10371_v7  ;;  %v7668_v42 = vpop.f32.mrb[175].mxu0  ;;  %v15810_v7 = vld [vmem:[#allocation33_spill] sm:$0xff]  ;;  %v15811_v0 = vld [vmem:[#allocation31_spill] sm:$0xff] }
0x1e93   :  { %v10770_v48 = vpack.i.bf16 %v7668_v42, %v7665_v53  ;;  %v7879_v53 = vsel %vm514_vm1, %v15810_v7, %v10689_v22  ;;  %v15817_v7 = vld [vmem:[#allocation39_spill] sm:$0xff] }
0x1e94   :  { %10776 = vrot.lane.b32.xlu1 %v10775_v6, %s11579_s24  ;;  %v7878_v6 = vsel %vm514_vm1, %v15811_v0, %v10688_v34  ;;  %v7895_v2 = vsel %vm3589_vm2, %v7879_v53, %v10699_v3 }
0x1e95   :  { %10771 = vrot.lane.b32.xlu0 %v10770_v48, %s11579_s24  ;;  %v7894_v41 = vsel %vm3589_vm2, %v7878_v6, %v10698_v16  ;;  %v15818_v6 = vld [vmem:[#allocation42_spill] sm:$0xff] }
0x1ee6   :  { %v10712_v56 = vpop.permute.xlu1 %10711 }
0x1ee7   :  { %v10714_v45 = vunpack.i.h.bf16 %v10712_v56  ;;  %v10713_v4 = vunpack.i.l.bf16 %v10712_v56  ;;  %v10717_v9 = vpop.permute.xlu0 %10716  ;;  %v15812_v56 = vld [vmem:[#allocation38_spill] sm:$0xff] }
0x1ee8   :  { %v10719_v26 = vunpack.i.h.bf16 %v10717_v9  ;;  %v10718_v29 = vunpack.i.l.bf16 %v10717_v9  ;;  %v7881_v19 = vsel %vm514_vm1, %v15812_v56, %v10704_v27 }
0x1ee9   :  { %v7907_v54 = vsel %vm3606_vm3, %v7891_v51, %v10714_v45  ;;  %v7906_v40 = vsel %vm3606_vm3, %v7890_v13, %v10713_v4  ;;  %v15815_v45 = vld [vmem:[#allocation35_spill] sm:$0xff] }
0x1eea   :  { %v7921_v12 = vpack.c.bf16 %v7907_v54, %v7906_v40  ;;  %v7904_v30 = vsel %vm3606_vm3, %v7888_v18, %v10718_v29  ;;  %v7905_v59 = vsel %vm3606_vm3, %v7889_v5, %v10719_v26  ;;  %v10727_v10 = vpop.permute.xlu1 %10726  ;;  %v7882_v4 = vsel %vm514_vm1, %v15815_v45, %v10708_v63  ;;  %v15822_v45 = vld [vmem:[#allocation28_spill] sm:$0xff] }
0x1eeb   :  { %v7920_v31 = vpack.c.bf16 %v7905_v59, %v7904_v30  ;;  %v10722_v35 = vpop.permute.xlu0 %10721  ;;  %v10729_v17 = vunpack.i.h.bf16 %v10727_v10  ;;  %v10728_v38 = vunpack.i.l.bf16 %v10727_v10 }
0x1eec   :  { %v10724_v18 = vunpack.i.h.bf16 %v10722_v35  ;;  %v10723_v5 = vunpack.i.l.bf16 %v10722_v35 }
0x1eed   :  { %10377 = vmatprep.mubr.msk.bf16.mxu1 %vm101_vm0, %v7920_v31  ;;  %v7899_v26 = vsel %vm3589_vm2, %v7883_v39, %v10729_v17  ;;  %v7898_v29 = vsel %vm3589_vm2, %v7882_v4, %v10728_v38 }
0x1eee   :  { %v10732_v25 = vpop.permute.xlu1 %10731  ;;  %10378 = vmatmul.mubr.msk.bf16.vlgmr.msra.gmra.mrb[160].mxu1 %vm101_vm0, %v7921_v12  ;;  %v7896_v54 = vsel %vm3589_vm2, %v7880_v52, %v10723_v5  ;;  %v7897_v40 = vsel %vm3589_vm2, %v7881_v19, %v10724_v18  ;;  %v15820_v19 = vld [vmem:[#allocation27_spill] sm:$0xff] }
0x1eef   :  { %v10734_v42 = vunpack.i.h.bf16 %v10732_v25  ;;  %v10733_v48 = vunpack.i.l.bf16 %v10732_v25  ;;  %v10737_v62 = vpop.permute.xlu0 %10736 }
0x1ef0   :  { %v10739_v33 = vunpack.i.h.bf16 %v10737_v62  ;;  %v10738_v47 = vunpack.i.l.bf16 %v10737_v62 }
0x1ef1   :  { %v7911_v8 = vsel %vm3606_vm3, %v7895_v2, %v10734_v42  ;;  %v7910_v44 = vsel %vm3606_vm3, %v7894_v41, %v10733_v48  ;;  %v15819_v48 = vld [vmem:[#allocation40_spill] sm:$0xff] }
0x1ef2   :  { %v7923_v15 = vpack.c.bf16 %v7911_v8, %v7910_v44  ;;  %v7908_v1 = vsel %vm3606_vm3, %v7892_v20, %v10738_v47  ;;  %v7909_v28 = vsel %vm3606_vm3, %v7893_v49, %v10739_v33  ;;  %v10747_v55 = vpop.permute.xlu1 %10746  ;;  %v15816_v20 = vld [vmem:[#allocation41_spill] sm:$0xff] }
0x1ef3   :  { %v7922_v60 = vpack.c.bf16 %v7909_v28, %v7908_v1  ;;  %v10742_v11 = vpop.permute.xlu0 %10741  ;;  %v10749_v31 = vunpack.i.h.bf16 %v10747_v55  ;;  %v10748_v35 = vunpack.i.l.bf16 %v10747_v55 }
0x1ef4   :  { %v10744_v16 = vunpack.i.h.bf16 %v10742_v11  ;;  %v10743_v43 = vunpack.i.l.bf16 %v10742_v11 }
0x1ef5   :  { %10381 = vmatprep.mubr.msk.bf16.mxu1 %vm101_vm0, %v7922_v60  ;;  %v7887_v25 = vsel %vm514_vm1, %v15816_v20, %v10749_v31  ;;  %v7886_v53 = vsel %vm514_vm1, %v15817_v7, %v10748_v35  ;;  %v15084_v60 = vld [vmem:[%s15660_s3 + $0x1] ss:$0 sm:$0xff] }
0x1ef6   :  { %v10752_v58 = vpop.permute.xlu1 %10751  ;;  %10382 = vmatmul.mubr.msk.bf16.gmra.mrb[164].mxu1 %vm101_vm0, %v7923_v15  ;;  %v7885_v42 = vsel %vm514_vm1, %v15818_v6, %v10744_v16  ;;  %v7884_v62 = vsel %vm514_vm1, %v15819_v48, %v10743_v43 }
0x1ef7   :  { %v10754_v9 = vunpack.i.h.bf16 %v10752_v58  ;;  %v10753_v13 = vunpack.i.l.bf16 %v10752_v58  ;;  %v10757_v51 = vpop.permute.xlu0 %10756  ;;  %v15821_v58 = vld [vmem:[#allocation29_spill] sm:$0xff] }
0x1ef8   :  { %v10759_v46 = vunpack.i.h.bf16 %v10757_v51  ;;  %v10758_v23 = vunpack.i.l.bf16 %v10757_v51 }
0x1ef9   :  { %v7915_v32 = vsel %vm3606_vm3, %v7899_v26, %v10754_v9  ;;  %v7914_v12 = vsel %vm3606_vm3, %v7898_v29, %v10753_v13  ;;  %v15823_v29 = vld [vmem:[#allocation14_spill] sm:$0xff] }
0x1efa   :  { %v7925_v30 = vpack.c.bf16 %v7915_v32, %v7914_v12  ;;  %v7912_v59 = vsel %vm3606_vm3, %v7896_v54, %v10758_v23  ;;  %v7913_v10 = vsel %vm3606_vm3, %v7897_v40, %v10759_v46  ;;  %v10767_v34 = vpop.permute.xlu1 %10766 }
0x1efb   :  { %v7924_v22 = vpack.c.bf16 %v7913_v10, %v7912_v59  ;;  %v10762_v3 = vpop.permute.xlu0 %10761  ;;  %v10769_v57 = vunpack.i.h.bf16 %v10767_v34  ;;  %v10768_v21 = vunpack.i.l.bf16 %v10767_v34  ;;  %v15824_v10 = vld [vmem:[#allocation12_spill] sm:$0xff]  ;;  %v15825_v34 = vld [vmem:[#allocation11_spill] sm:$0xff] }
0x1efc   :  { %v10764_v14 = vunpack.i.h.bf16 %v10762_v3  ;;  %v10763_v24 = vunpack.i.l.bf16 %v10762_v3  ;;  %v15826_v3 = vld [vmem:[#allocation18_spill] sm:$0xff] }
0x1efd   :  { %10385 = vmatprep.mubr.msk.bf16.mxu1 %vm101_vm0, %v7924_v22  ;;  %v7903_v47 = vsel %vm3589_vm2, %v7887_v25, %v10769_v57  ;;  %v7902_v49 = vsel %vm3589_vm2, %v7886_v53, %v10768_v21 }
0x1efe   :  { %10386 = vmatmul.mubr.msk.bf16.gmra.mrb[168].mxu1 %vm101_vm0, %v7925_v30  ;;  %v7900_v44 = vsel %vm3589_vm2, %v7884_v62, %v10763_v24  ;;  %v7901_v61 = vsel %vm3589_vm2, %v7885_v42, %v10764_v14  ;;  %v15827_v14 = vld [vmem:[#allocation13_spill] sm:$0xff]  ;;  %v15828_v62 = vld [vmem:[#allocation15_spill] sm:$0xff] }
0x1f06   :  { %v10777_v0 = vpop.permute.xlu1 %10776 }
0x1f07   :  { %v10779_v41 = vunpack.i.h.bf16 %v10777_v0  ;;  %v10778_v2 = vunpack.i.l.bf16 %v10777_v0  ;;  %v10772_v33 = vpop.permute.xlu0 %10771 }
0x1f08   :  { %v10774_v27 = vunpack.i.h.bf16 %v10772_v33  ;;  %v10773_v8 = vunpack.i.l.bf16 %v10772_v33 }
0x1f09   :  { %v7919_v15 = vsel %vm3606_vm3, %v7903_v47, %v10779_v41  ;;  %v7918_v1 = vsel %vm3606_vm3, %v7902_v49, %v10778_v2  ;;  %v15829_v2 = vld [vmem:[#allocation17_spill] sm:$0xff] }
0x1f0a   :  { %v7927_v28 = vpack.c.bf16 %v7919_v15, %v7918_v1  ;;  %v7916_v55 = vsel %vm3606_vm3, %v7900_v44, %v10773_v8  ;;  %v7917_v50 = vsel %vm3606_vm3, %v7901_v61, %v10774_v27  ;;  %v15830_v49 = vld [vmem:[#allocation21_spill] sm:$0xff]  ;;  %v15831_v44 = vld [vmem:[#allocation16_spill] sm:$0xff] }
0x1f0b   :  { %v7926_v63 = vpack.c.bf16 %v7917_v50, %v7916_v55 }
0x1f0d   :  { %10389 = vmatprep.mubr.msk.bf16.mxu1 %vm101_vm0, %v7926_v63 }
0x1f0e   :  { %10390 = vmatmul.mubr.msk.bf16.gmra.mrb[172].mxu1 %vm101_vm0, %v7927_v28 }
0x1fc1   :  { %v10379_v11 = vpop.f32.mrb[160].mxu1 }
0x1fc2   :  { %v8011_v17 = vpop.f32.mrb[161].mxu1  ;;  %v8020_v38 = vadd.f32 %v10379_v11, %v15084_v60 }
0x1fc3   :  { %v8012_v18 = vadd.f32 %v15084_v60, %v8011_v17  ;;  %v10380_v5 = vpop.f32.mrb[162].mxu1 }
0x1fc4   :  { %v8014_v56 = vpop.f32.mrb[163].mxu1  ;;  %v15093_v37 = vadd.f32 %v8020_v38, %v15821_v58  ;;  %v8023_v39 = vadd.f32 %v10380_v5, %v15084_v60 }
0x1fc5   :  { %v15089_v36 = vadd.f32 %v8012_v18, %v15820_v19  ;;  %v8015_v52 = vadd.f32 %v15084_v60, %v8014_v56  ;;  %v15832_v18 = vld [vmem:[#allocation19_spill] sm:$0xff] }
0x1fc6   :  { %v15104_v46 = vadd.f32 %v8023_v39, %v15823_v29  ;;  %v8100_v40 = vsel %vm101_vm0, %v15093_v37, 0.0  ;;  %v15834_v39 = vld [vmem:[#allocation20_spill] sm:$0xff] }
0x1fc7   :  { %v15097_v4 = vadd.f32 %v8015_v52, %v15822_v45  ;;  %v8094_v9 = vsel %vm101_vm0, %v15089_v36, 0.0  ;;  %v15833_v52 = vld [vmem:[#allocation22_spill] sm:$0xff] }
0x1fc8   :  { %8095 = vadd.xlane.f32.xlu0 %v8094_v9  ;;  %v8103_v35 = vsel %vm101_vm0, %v15104_v46, 0.0 }
0x1fc9   :  { %v10383_v13 = vpop.f32.mrb[164].mxu1  ;;  %v8097_v51 = vsel %vm101_vm0, %v15097_v4, 0.0 }
0x1fca   :  { %v8027_v26 = vpop.f32.mrb[165].mxu1  ;;  %8098 = vadd.xlane.f32.xlu1 %v8097_v51  ;;  %v8036_v59 = vadd.f32 %v10383_v13, %v15084_v60  ;;  %v15835_v13 = vld [vmem:[#allocation26_spill] sm:$0xff] }
0x1fcb   :  { %v8028_v23 = vadd.f32 %v15084_v60, %v8027_v26  ;;  %v10384_v54 = vpop.f32.mrb[166].mxu1 }
0x1fcc   :  { %v8030_v32 = vpop.f32.mrb[167].mxu1  ;;  %8101 = vadd.xlane.f32.xlu0 %v8100_v40  ;;  %v8039_v12 = vadd.f32 %v10384_v54, %v15084_v60  ;;  %v15126_v24 = vadd.f32 %v8036_v59, %v15827_v14 }
0x1fcd   :  { %v8031_v30 = vadd.f32 %v15084_v60, %v8030_v32  ;;  %v15113_v22 = vadd.f32 %v8028_v23, %v15824_v10 }
0x1fce   :  { %v15121_v16 = vadd.f32 %v8039_v12, %v15826_v3  ;;  %v8112_v47 = vsel %vm101_vm0, %v15126_v24, 0.0 }
0x1fcf   :  { %v15116_v31 = vadd.f32 %v8031_v30, %v15825_v34  ;;  %v8106_v7 = vsel %vm101_vm0, %v15113_v22, 0.0 }
0x1fd0   :  { %8104 = vadd.xlane.f32.xlu0 %v8103_v35  ;;  %v8115_v42 = vsel %vm101_vm0, %v15121_v16, 0.0 }
0x1fd1   :  { %v10387_v43 = vpop.f32.mrb[168].mxu1  ;;  %v8109_v57 = vsel %vm101_vm0, %v15116_v31, 0.0 }
0x1fd2   :  { %v8043_v21 = vpop.f32.mrb[169].mxu1  ;;  %8110 = vadd.xlane.f32.xlu1 %v8109_v57  ;;  %v8052_v48 = vadd.f32 %v10387_v43, %v15084_v60 }
0x1fd3   :  { %v8044_v20 = vadd.f32 %v15084_v60, %v8043_v21  ;;  %v10388_v25 = vpop.f32.mrb[170].mxu1 }
0x1fd4   :  { %v8046_v53 = vpop.f32.mrb[171].mxu1  ;;  %8107 = vadd.xlane.f32.xlu0 %v8106_v7  ;;  %v8055_v0 = vadd.f32 %v10388_v25, %v15084_v60  ;;  %v15150_v61 = vadd.f32 %v8052_v48, %v15831_v44 }
0x1fd5   :  { %v8047_v6 = vadd.f32 %v15084_v60, %v8046_v53  ;;  %v15137_v41 = vadd.f32 %v8044_v20, %v15828_v62 }
0x1fd6   :  { %8116 = vadd.xlane.f32.xlu1 %v8115_v42  ;;  %v15145_v27 = vadd.f32 %v8055_v0, %v15830_v49  ;;  %v8124_v28 = vsel %vm101_vm0, %v15150_v61, 0.0 }
0x1fd7   :  { %v15140_v33 = vadd.f32 %v8047_v6, %v15829_v2  ;;  %v8118_v15 = vsel %vm101_vm0, %v15137_v41, 0.0 }
0x1fd8   :  { %8113 = vadd.xlane.f32.xlu0 %v8112_v47  ;;  %v8127_v1 = vsel %vm101_vm0, %v15145_v27, 0.0 }
0x1fd9   :  { %v8121_v8 = vsel %vm101_vm0, %v15140_v33, 0.0 }
0x1fda   :  { %8122 = vadd.xlane.f32.xlu1 %v8121_v8 }
0x1fdc   :  { %8119 = vadd.xlane.f32.xlu0 %v8118_v15 }
0x1fde   :  { %8128 = vadd.xlane.f32.xlu1 %v8127_v1 }
0x1fe0   :  { %8125 = vadd.xlane.f32.xlu0 %v8124_v28 }
0x1fe1   :  { %v10391_v55 = vpop.f32.mrb[172].mxu1 }
0x1fe2   :  { %v8059_v50 = vpop.f32.mrb[173].mxu1  ;;  %v8068_v63 = vadd.f32 %v10391_v55, %v15084_v60 }
0x1fe3   :  { %v8060_v11 = vadd.f32 %v15084_v60, %v8059_v50  ;;  %v10392_v17 = vpop.f32.mrb[174].mxu1 }
0x1fe4   :  { %v8062_v38 = vpop.f32.mrb[175].mxu1  ;;  %v8071_v56 = vadd.f32 %v10392_v17, %v15084_v60  ;;  %v15166_v58 = vadd.f32 %v8068_v63, %v15833_v52 }
0x1fe5   :  { %v15161_v5 = vadd.f32 %v8060_v11, %v15832_v18  ;;  %v8063_v19 = vadd.f32 %v15084_v60, %v8062_v38 }
0x1fe6   :  { %v15174_v51 = vadd.f32 %v8071_v56, %v15835_v13  ;;  %v8136_v60 = vsel %vm101_vm0, %v15166_v58, 0.0 }
0x1fe7   :  { %v15169_v45 = vadd.f32 %v8063_v19, %v15834_v39  ;;  %v8130_v9 = vsel %vm101_vm0, %v15161_v5, 0.0 }
0x1fe8   :  { %8131 = vadd.xlane.f32.xlu0 %v8130_v9  ;;  %v8139_v29 = vsel %vm101_vm0, %v15174_v51, 0.0 }
0x1fe9   :  { %v8133_v26 = vsel %vm101_vm0, %v15169_v45, 0.0 }
0x1fea   :  { %8134 = vadd.xlane.f32.xlu1 %v8133_v26 }
0x1fec   :  { %8137 = vadd.xlane.f32.xlu0 %v8136_v60 }
0x1fee   :  { %8140 = vadd.xlane.f32.xlu1 %v8139_v29 }
0x2055   :  { %v8096_v23 = vpop.xlane.xlu0 %8095 }
0x2056   :  { %v8142_v54 = vmul.f32 0.03125, %v8096_v23 }
0x2057   :  { %v8099_v40 = vpop.xlane.xlu1 %8098 }
0x2058   :  { %v15183_v32 = vsub.f32 %v15089_v36, %v8142_v54  ;;  %v8143_v12 = vmul.f32 0.03125, %v8099_v40 }
0x2059   :  { %v8102_v30 = vpop.xlane.xlu0 %8101 }
0x205a   :  { %v15186_v59 = vsub.f32 %v15097_v4, %v8143_v12  ;;  %v8144_v10 = vmul.f32 0.03125, %v8102_v30  ;;  %v8174_v34 = vmul.f32 %v15183_v32, %v15183_v32 }
0x205c   :  { %v15191_v35 = vsub.f32 %v15093_v37, %v8144_v10  ;;  %v8190_v3 = vsel %vm101_vm0, %v8174_v34, 0.0  ;;  %v8175_v43 = vmul.f32 %v15186_v59, %v15186_v59 }
0x205d   :  { %8191 = vadd.xlane.f32.xlu0 %v8190_v3  ;;  %v8105_v57 = vpop.xlane.xlu0 %8104 }
0x205e   :  { %v8145_v21 = vmul.f32 0.03125, %v8105_v57  ;;  %v8193_v14 = vsel %vm101_vm0, %v8175_v43, 0.0  ;;  %v8176_v20 = vmul.f32 %v15191_v35, %v15191_v35 }
0x205f   :  { %8194 = vadd.xlane.f32.xlu1 %v8193_v14  ;;  %v8111_v25 = vpop.xlane.xlu1 %8110 }
0x2060   :  { %v15200_v7 = vsub.f32 %v15104_v46, %v8145_v21  ;;  %v8147_v53 = vmul.f32 0.03125, %v8111_v25  ;;  %v8196_v0 = vsel %vm101_vm0, %v8176_v20, 0.0 }
0x2061   :  { %8197 = vadd.xlane.f32.xlu0 %v8196_v0  ;;  %v8108_v6 = vpop.xlane.xlu0 %8107 }
0x2062   :  { %v15204_v42 = vsub.f32 %v15116_v31, %v8147_v53  ;;  %v8146_v48 = vmul.f32 0.03125, %v8108_v6  ;;  %v8177_v62 = vmul.f32 %v15200_v7, %v15200_v7 }
0x2063   :  { %v8117_v2 = vpop.xlane.xlu1 %8116 }
0x2064   :  { %v15209_v47 = vsub.f32 %v15113_v22, %v8146_v48  ;;  %v8149_v49 = vmul.f32 0.03125, %v8117_v2  ;;  %v8199_v8 = vsel %vm101_vm0, %v8177_v62, 0.0  ;;  %v8179_v44 = vmul.f32 %v15204_v42, %v15204_v42 }
0x2065   :  { %8200 = vadd.xlane.f32.xlu1 %v8199_v8  ;;  %v8114_v15 = vpop.xlane.xlu0 %8113 }
0x2066   :  { %v15215_v1 = vsub.f32 %v15121_v16, %v8149_v49  ;;  %v8148_v28 = vmul.f32 0.03125, %v8114_v15  ;;  %v8178_v55 = vmul.f32 %v15209_v47, %v15209_v47  ;;  %v8205_v63 = vsel %vm101_vm0, %v8179_v44, 0.0 }
0x2067   :  { %v8123_v50 = vpop.xlane.xlu1 %8122 }
0x2068   :  { %v15221_v11 = vsub.f32 %v15126_v24, %v8148_v28  ;;  %v8151_v17 = vmul.f32 0.03125, %v8123_v50  ;;  %v8202_v38 = vsel %vm101_vm0, %v8178_v55, 0.0  ;;  %v8181_v18 = vmul.f32 %v15215_v1, %v15215_v1 }
0x2069   :  { %8206 = vadd.xlane.f32.xlu1 %v8205_v63  ;;  %8203 = vadd.xlane.f32.xlu0 %v8202_v38  ;;  %v8120_v56 = vpop.xlane.xlu0 %8119 }
0x206a   :  { %v15227_v19 = vsub.f32 %v15140_v33, %v8151_v17  ;;  %v8150_v52 = vmul.f32 0.03125, %v8120_v56  ;;  %v8180_v39 = vmul.f32 %v15221_v11, %v15221_v11  ;;  %v8211_v13 = vsel %vm101_vm0, %v8181_v18, 0.0  ;;  %v10794_v56 = vld [vmem:[%s15661_s4 + $0x10] sm:$0xff]  }
0x206b   :  { %v8129_v9 = vpop.xlane.xlu1 %8128  ;;  %10393 = vmatprep.subr.bf16.mxu0 %v10794_v56 }
0x206c   :  { %v15233_v26 = vsub.f32 %v15137_v41, %v8150_v52  ;;  %v8153_v60 = vmul.f32 0.03125, %v8129_v9  ;;  %v8208_v29 = vsel %vm101_vm0, %v8180_v39, 0.0  ;;  %v8183_v23 = vmul.f32 %v15227_v19, %v15227_v19  ;;  %10394 = vmatpush3.bf16.msra.mxu0 %v10794_v56  ;;  %v10795_v39 = vld [vmem:[%s15661_s4 + $0x18] sm:$0xff]   ;;  %v10796_v9 = vld [vmem:[%s15663_s6 + $0x20] sm:$0xff]  }
0x206d   :  { %8212 = vadd.xlane.f32.xlu1 %v8211_v13  ;;  %8209 = vadd.xlane.f32.xlu0 %v8208_v29  ;;  %v8126_v54 = vpop.xlane.xlu0 %8125  ;;  %v10797_v13 = vld [vmem:[%s15663_s6 + $0x28] sm:$0xff]  }
0x206e   :  { %v15239_v40 = vsub.f32 %v15145_v27, %v8153_v60  ;;  %v8152_v12 = vmul.f32 0.03125, %v8126_v54  ;;  %v8182_v30 = vmul.f32 %v15233_v26, %v15233_v26  ;;  %v8217_v34 = vsel %vm101_vm0, %v8183_v23, 0.0  ;;  %10395 = vmatprep.subr.bf16.mxu0 %v10795_v39  ;;  %10413 = vmatprep.subr.bf16.mxu1 %v10796_v9 }
0x206f   :  { %10414 = vmatpush3.bf16.msra.mxu1 %v10796_v9 }
0x2070   :  { %v15244_v10 = vsub.f32 %v15150_v61, %v8152_v12  ;;  %v8214_v3 = vsel %vm101_vm0, %v8182_v30, 0.0  ;;  %v8185_v43 = vmul.f32 %v15239_v40, %v15239_v40  ;;  %10396 = vmatpush3.bf16.msra.mxu0 %v10795_v39  ;;  %10415 = vmatprep.subr.bf16.mxu1 %v10797_v13 }
0x2071   :  { %8218 = vadd.xlane.f32.xlu1 %v8217_v34  ;;  %8215 = vadd.xlane.f32.xlu0 %v8214_v3 }
0x2072   :  { %v8184_v57 = vmul.f32 %v15244_v10, %v15244_v10  ;;  %v8223_v21 = vsel %vm101_vm0, %v8185_v43, 0.0 }
0x2073   :  { %10416 = vmatpush3.bf16.msra.mxu1 %v10797_v13  ;;  %v15301_v13 = vld [vmem:[%s15668_s11 + $0x1] ss:$0 sm:$0xff] }
0x2074   :  { %v8220_v14 = vsel %vm101_vm0, %v8184_v57, 0.0 }
0x2075   :  { %8224 = vadd.xlane.f32.xlu1 %v8223_v21  ;;  %8221 = vadd.xlane.f32.xlu0 %v8220_v14  ;;  %v8132_v20 = vpop.xlane.xlu0 %8131 }
0x2076   :  { %v8154_v25 = vmul.f32 0.03125, %v8132_v20 }
0x2077   :  { %v8135_v53 = vpop.xlane.xlu1 %8134 }
0x2078   :  { %v15255_v0 = vsub.f32 %v15161_v5, %v8154_v25  ;;  %v8155_v6 = vmul.f32 0.03125, %v8135_v53 }
0x2079   :  { %v8138_v48 = vpop.xlane.xlu0 %8137 }
0x207a   :  { %v15258_v62 = vsub.f32 %v15169_v45, %v8155_v6  ;;  %v8156_v2 = vmul.f32 0.03125, %v8138_v48  ;;  %v8186_v49 = vmul.f32 %v15255_v0, %v15255_v0 }
0x207b   :  { %v8141_v8 = vpop.xlane.xlu1 %8140 }
0x207c   :  { %v15263_v44 = vsub.f32 %v15166_v58, %v8156_v2  ;;  %v8157_v15 = vmul.f32 0.03125, %v8141_v8  ;;  %v8226_v28 = vsel %vm101_vm0, %v8186_v49, 0.0  ;;  %v8187_v55 = vmul.f32 %v15258_v62, %v15258_v62  ;;  %v15293_v2 = vld [vmem:[%s15667_s10 + $0x1] ss:$0 sm:$0xff] }
0x207d   :  { %8227 = vadd.xlane.f32.xlu0 %v8226_v28 }
0x207e   :  { %v15269_v50 = vsub.f32 %v15174_v51, %v8157_v15  ;;  %v8229_v63 = vsel %vm101_vm0, %v8187_v55, 0.0  ;;  %v8188_v17 = vmul.f32 %v15263_v44, %v15263_v44 }
0x207f   :  { %8230 = vadd.xlane.f32.xlu1 %v8229_v63 }
0x2080   :  { %v8232_v38 = vsel %vm101_vm0, %v8188_v17, 0.0  ;;  %v8189_v18 = vmul.f32 %v15269_v50, %v15269_v50 }
0x2081   :  { %8233 = vadd.xlane.f32.xlu0 %v8232_v38 }
0x2082   :  { %v8235_v52 = vsel %vm101_vm0, %v8189_v18, 0.0 }
0x2083   :  { %8236 = vadd.xlane.f32.xlu1 %v8235_v52 }
0x20ea   :  { %v8192_v60 = vpop.xlane.xlu0 %8191 }
0x20eb   :  { %v8238_v29 = vmul.f32 0.03125, %v8192_v60 }
0x20ec   :  { %v8195_v23 = vpop.xlane.xlu1 %8194 }
0x20ed   :  { %v8254_v54 = vadd.f32 0.0001, %v8238_v29  ;;  %v8239_v12 = vmul.f32 0.03125, %v8195_v23 }
0x20ee   :  { %v8198_v30 = vpop.xlane.xlu0 %8197 }
0x20ef   :  { %11410 = vrsqrt.f32 %v8254_v54  ;;  %v8255_v34 = vadd.f32 0.0001, %v8239_v12  ;;  %v8240_v3 = vmul.f32 0.03125, %v8198_v30 }
0x20f1   :  { %11412 = vrsqrt.f32 %v8255_v34  ;;  %v8256_v43 = vadd.f32 0.0001, %v8240_v3 }
0x20f2   :  { %v8201_v57 = vpop.xlane.xlu1 %8200 }
0x20f3   :  { %11414 = vrsqrt.f32 %v8256_v43  ;;  %v8241_v21 = vmul.f32 0.03125, %v8201_v57 }
0x20f5   :  { %v8257_v14 = vadd.f32 0.0001, %v8241_v21 }
0x20f6   :  { %v8207_v20 = vpop.xlane.xlu1 %8206  ;;  %v8204_v25 = vpop.xlane.xlu0 %8203 }
0x20f7   :  { %11416 = vrsqrt.f32 %v8257_v14  ;;  %v8243_v53 = vmul.f32 0.03125, %v8207_v20  ;;  %v8242_v6 = vmul.f32 0.03125, %v8204_v25 }
0x20f9   :  { %v11411_v48 = vpop.eup %11410  ;;  %v8259_v49 = vadd.f32 0.0001, %v8243_v53  ;;  %v8258_v8 = vadd.f32 0.0001, %v8242_v6 }
0x20fa   :  { %v8286_v15 = vmul.f32 %v11411_v48, %v15183_v32  ;;  %v8213_v28 = vpop.xlane.xlu1 %8212  ;;  %v8210_v55 = vpop.xlane.xlu0 %8209 }
0x20fb   :  { %v11413_v63 = vpop.eup %11412  ;;  %11418 = vrsqrt.f32 %v8259_v49  ;;  %v8245_v17 = vmul.f32 0.03125, %v8213_v28  ;;  %v8244_v38 = vmul.f32 0.03125, %v8210_v55 }
0x20fc   :  { %v8287_v18 = vmul.f32 %v11413_v63, %v15186_v59  ;;  %11420 = vrsqrt.f32 %v8258_v8  ;;  %v8308_v56 = vmul.f32 %v15293_v2, %v8286_v15 }
0x20fd   :  { %v11415_v52 = vpop.eup %11414  ;;  %v8261_v39 = vadd.f32 0.0001, %v8245_v17  ;;  %v8260_v9 = vadd.f32 0.0001, %v8244_v38 }
0x20fe   :  { %v8288_v32 = vmul.f32 %v11415_v52, %v15191_v35  ;;  %v8219_v60 = vpop.xlane.xlu1 %8218  ;;  %v8216_v29 = vpop.xlane.xlu0 %8215  ;;  %v8309_v23 = vmul.f32 %v15293_v2, %v8287_v18  ;;  %v8330_v12 = vadd.f32 %v15301_v13, %v8308_v56 }
0x20ff   :  { %11422 = vrsqrt.f32 %v8261_v39  ;;  %v8247_v54 = vmul.f32 0.03125, %v8219_v60  ;;  %v8246_v59 = vmul.f32 0.03125, %v8216_v29 }
0x2100   :  { %11424 = vrsqrt.f32 %v8260_v9  ;;  %v8331_v30 = vadd.f32 %v15301_v13, %v8309_v23  ;;  %v8310_v57 = vmul.f32 %v15293_v2, %v8288_v32 }
0x2101   :  { %v11417_v34 = vpop.eup %11416  ;;  %v8263_v3 = vadd.f32 0.0001, %v8247_v54  ;;  %v8262_v43 = vadd.f32 0.0001, %v8246_v59 }
0x2102   :  { %v8289_v21 = vmul.f32 %v11417_v34, %v15200_v7  ;;  %v8225_v35 = vpop.xlane.xlu1 %8224  ;;  %v8222_v14 = vpop.xlane.xlu0 %8221  ;;  %v8346_v20 = vpack.c.bf16 %v8331_v30, %v8330_v12  ;;  %v8332_v55 = vadd.f32 %v15301_v13, %v8310_v57 }
0x2103   :  { %11426 = vrsqrt.f32 %v8263_v3  ;;  %v8249_v25 = vmul.f32 0.03125, %v8225_v35  ;;  %v8248_v53 = vmul.f32 0.03125, %v8222_v14 }
0x2104   :  { %v8311_v6 = vmul.f32 %v15293_v2, %v8289_v21  ;;  %11428 = vrsqrt.f32 %v8262_v43  ;;  %10397 = vmatprep.mubr.msk.bf16.mxu0 %vm101_vm0, %v8346_v20 }
0x2105   :  { %v11419_v48 = vpop.eup %11418  ;;  %v8265_v49 = vadd.f32 0.0001, %v8249_v25  ;;  %v8264_v8 = vadd.f32 0.0001, %v8248_v53 }
0x2106   :  { %v11421_v15 = vpop.eup %11420  ;;  %v8291_v28 = vmul.f32 %v11419_v48, %v15204_v42  ;;  %v8333_v7 = vadd.f32 %v15301_v13, %v8311_v6 }
0x2107   :  { %v8290_v63 = vmul.f32 %v11421_v15, %v15209_v47  ;;  %11430 = vrsqrt.f32 %v8265_v49 }
0x2108   :  { %11432 = vrsqrt.f32 %v8264_v8  ;;  %v8347_v17 = vpack.c.bf16 %v8333_v7, %v8332_v55  ;;  %v8313_v38 = vmul.f32 %v15293_v2, %v8291_v28 }
0x2109   :  { %v11423_v18 = vpop.eup %11422  ;;  %v8312_v56 = vmul.f32 %v15293_v2, %v8290_v63 }
0x210a   :  { %v11425_v52 = vpop.eup %11424  ;;  %v8293_v39 = vmul.f32 %v11423_v18, %v15215_v1  ;;  %10398 = vmatmul.mubr.msk.bf16.vlgmr.msra.gmra.mrb[176].mxu0 %vm101_vm0, %v8347_v17  ;;  %v8228_v42 = vpop.xlane.xlu0 %8227  ;;  %v8335_v9 = vadd.f32 %v15301_v13, %v8313_v38 }
0x210b   :  { %v8292_v32 = vmul.f32 %v11425_v52, %v15221_v11  ;;  %v8250_v60 = vmul.f32 0.03125, %v8228_v42  ;;  %v8334_v47 = vadd.f32 %v15301_v13, %v8312_v56 }
0x210c   :  { %v8231_v29 = vpop.xlane.xlu1 %8230  ;;  %v8315_v23 = vmul.f32 %v15293_v2, %v8293_v39 }
0x210d   :  { %v11427_v54 = vpop.eup %11426  ;;  %v8266_v59 = vadd.f32 0.0001, %v8250_v60  ;;  %v8251_v12 = vmul.f32 0.03125, %v8231_v29  ;;  %v8348_v30 = vpack.c.bf16 %v8335_v9, %v8334_v47  ;;  %v8314_v34 = vmul.f32 %v15293_v2, %v8292_v32 }
0x210e   :  { %v11429_v1 = vpop.eup %11428  ;;  %v8295_v3 = vmul.f32 %v11427_v54, %v15227_v19  ;;  %v8234_v43 = vpop.xlane.xlu0 %8233  ;;  %v8337_v57 = vadd.f32 %v15301_v13, %v8315_v23 }
0x210f   :  { %v8294_v11 = vmul.f32 %v11429_v1, %v15233_v26  ;;  %11434 = vrsqrt.f32 %v8266_v59  ;;  %v8267_v21 = vadd.f32 0.0001, %v8251_v12  ;;  %10401 = vmatprep.mubr.msk.bf16.mxu0 %vm101_vm0, %v8348_v30  ;;  %v8252_v35 = vmul.f32 0.03125, %v8234_v43  ;;  %v10799_v1 = vld [vmem:[%s15663_s6 + $0x38] sm:$0xff]  }
0x2110   :  { %v8237_v14 = vpop.xlane.xlu1 %8236  ;;  %v8336_v20 = vadd.f32 %v15301_v13, %v8314_v34  ;;  %v8317_v25 = vmul.f32 %v15293_v2, %v8295_v3 }
0x2111   :  { %v11431_v53 = vpop.eup %11430  ;;  %11436 = vrsqrt.f32 %v8267_v21  ;;  %v8268_v6 = vadd.f32 0.0001, %v8252_v35  ;;  %v8253_v48 = vmul.f32 0.03125, %v8237_v14  ;;  %v8316_v19 = vmul.f32 %v15293_v2, %v8294_v11 }
0x2112   :  { %v11433_v49 = vpop.eup %11432  ;;  %v8297_v8 = vmul.f32 %v11431_v53, %v15239_v40  ;;  %v8349_v26 = vpack.c.bf16 %v8337_v57, %v8336_v20  ;;  %v8339_v15 = vadd.f32 %v15301_v13, %v8317_v25 }
0x2113   :  { %v8296_v28 = vmul.f32 %v11433_v49, %v15244_v10  ;;  %11438 = vrsqrt.f32 %v8268_v6  ;;  %v8269_v55 = vadd.f32 0.0001, %v8253_v48  ;;  %v8338_v7 = vadd.f32 %v15301_v13, %v8316_v19 }
0x2114   :  { %10402 = vmatmul.mubr.msk.bf16.gmra.mrb[180].mxu0 %vm101_vm0, %v8349_v26  ;;  %v8319_v63 = vmul.f32 %v15293_v2, %v8297_v8 }
0x2115   :  { %11440 = vrsqrt.f32 %v8269_v55  ;;  %v8350_v17 = vpack.c.bf16 %v8339_v15, %v8338_v7  ;;  %v8318_v38 = vmul.f32 %v15293_v2, %v8296_v28 }
0x2116   :  { %v8341_v18 = vadd.f32 %v15301_v13, %v8319_v63 }
0x2117   :  { %10405 = vmatprep.mubr.msk.bf16.mxu0 %vm101_vm0, %v8350_v17  ;;  %v8340_v40 = vadd.f32 %v15301_v13, %v8318_v38 }
0x2119   :  { %v11435_v56 = vpop.eup %11434  ;;  %v8351_v10 = vpack.c.bf16 %v8341_v18, %v8340_v40 }
0x211a   :  { %v8298_v52 = vmul.f32 %v11435_v56, %v15255_v0 }
0x211b   :  { %v11437_v39 = vpop.eup %11436 }
0x211c   :  { %v8299_v42 = vmul.f32 %v11437_v39, %v15258_v62  ;;  %10406 = vmatmul.mubr.msk.bf16.gmra.mrb[184].mxu0 %vm101_vm0, %v8351_v10  ;;  %v8320_v9 = vmul.f32 %v15293_v2, %v8298_v52 }
0x211d   :  { %v11439_v32 = vpop.eup %11438 }
0x211e   :  { %v8300_v60 = vmul.f32 %v11439_v32, %v15263_v44  ;;  %v8321_v47 = vmul.f32 %v15293_v2, %v8299_v42  ;;  %v8342_v54 = vadd.f32 %v15301_v13, %v8320_v9 }
0x211f   :  { %v11441_v29 = vpop.eup %11440 }
0x2120   :  { %v8301_v23 = vmul.f32 %v11441_v29, %v15269_v50  ;;  %v8343_v59 = vadd.f32 %v15301_v13, %v8321_v47  ;;  %v8322_v0 = vmul.f32 %v15293_v2, %v8300_v60  ;;  %v10798_v50 = vld [vmem:[%s15663_s6 + $0x30] sm:$0xff]  }
0x2121   :  { %10417 = vmatprep.subr.bf16.mxu1 %v10798_v50 }
0x2122   :  { %v8352_v12 = vpack.c.bf16 %v8343_v59, %v8342_v54  ;;  %v8323_v62 = vmul.f32 %v15293_v2, %v8301_v23  ;;  %v8344_v30 = vadd.f32 %v15301_v13, %v8322_v0  ;;  %10418 = vmatpush3.bf16.msra.mxu1 %v10798_v50  ;;  %v9361_v2 = vld [vmem:[#allocation5 + $0x1] ss:$0 sm:$0xff] }
0x2123   :  { %10419 = vmatprep.subr.bf16.mxu1 %v10799_v1 }
0x2124   :  { %10409 = vmatprep.mubr.msk.bf16.mxu0 %vm101_vm0, %v8352_v12  ;;  %v8345_v44 = vadd.f32 %v15301_v13, %v8323_v62 }
0x2126   :  { %v8353_v34 = vpack.c.bf16 %v8345_v44, %v8344_v30  ;;  %10420 = vmatpush3.bf16.msra.mxu1 %v10799_v1 }
0x2128   :  { %10410 = vmatmul.mubr.msk.bf16.gmra.mrb[188].mxu0 %vm101_vm0, %v8353_v34 }
0x21dd   :  { %v10399_v3 = vpop.f32.mrb[176].mxu0 }
0x21de   :  { %v8446_v43 = vadd.f32 %v10399_v3, %v9361_v2  ;;  %v8437_v57 = vpop.f32.mrb[177].mxu0 }
0x21df   :  { %v8438_v13 = vadd.f32 %v9361_v2, %v8437_v57  ;;  %v10400_v11 = vpop.f32.mrb[178].mxu0 }
0x21e0   :  { %v8449_v21 = vadd.f32 %v10400_v11, %v9361_v2  ;;  %v8440_v35 = vpop.f32.mrb[179].mxu0  ;;  %v8502_v20 = vmax.f32 %v8446_v43, 0.0 }
0x21e1   :  { %v8441_v14 = vadd.f32 %v9361_v2, %v8440_v35  ;;  %v8500_v53 = vmax.f32 %v8438_v13, 0.0 }
0x21e2   :  { %v8503_v25 = vmax.f32 %v8449_v21, 0.0 }
0x21e3   :  { %v8501_v6 = vmax.f32 %v8441_v14, 0.0 }
0x21e4   :  { %v8517_v48 = vpack.c.bf16 %v8503_v25, %v8502_v20  ;;  %v15373_v25 = vld [vmem:[%s15664_s7 + $0x1] ss:$0 sm:$0xff] }
0x21e5   :  { %v8516_v19 = vpack.c.bf16 %v8501_v6, %v8500_v53 }
0x21e7   :  { %v10403_v49 = vpop.f32.mrb[180].mxu0  ;;  %10421 = vmatprep.mubr.msk.bf16.mxu1 %vm4260_vm4, %v8516_v19 }
0x21e8   :  { %v8462_v8 = vadd.f32 %v10403_v49, %v9361_v2  ;;  %v8453_v26 = vpop.f32.mrb[181].mxu0  ;;  %10422 = vmatmul.mubr.msk.bf16.vlgmr.msra.gmra.mrb[176].mxu1 %vm4260_vm4, %v8517_v48 }
0x21e9   :  { %v8454_v15 = vadd.f32 %v9361_v2, %v8453_v26  ;;  %v10404_v28 = vpop.f32.mrb[182].mxu0 }
0x21ea   :  { %v8465_v55 = vadd.f32 %v10404_v28, %v9361_v2  ;;  %v8456_v7 = vpop.f32.mrb[183].mxu0  ;;  %v8506_v17 = vmax.f32 %v8462_v8, 0.0 }
0x21eb   :  { %v8457_v63 = vadd.f32 %v9361_v2, %v8456_v7  ;;  %v8504_v18 = vmax.f32 %v8454_v15, 0.0 }
0x21ec   :  { %v8507_v38 = vmax.f32 %v8465_v55, 0.0 }
0x21ed   :  { %v8505_v40 = vmax.f32 %v8457_v63, 0.0 }
0x21ee   :  { %v8519_v56 = vpack.c.bf16 %v8507_v38, %v8506_v17 }
0x21ef   :  { %v8518_v10 = vpack.c.bf16 %v8505_v40, %v8504_v18  ;;  %v10407_v52 = vpop.f32.mrb[184].mxu0 }
0x21f0   :  { %v8478_v39 = vadd.f32 %v10407_v52, %v9361_v2  ;;  %v8469_v42 = vpop.f32.mrb[185].mxu0 }
0x21f1   :  { %v8470_v9 = vadd.f32 %v9361_v2, %v8469_v42  ;;  %v10408_v32 = vpop.f32.mrb[186].mxu0  ;;  %10425 = vmatprep.mubr.msk.bf16.mxu1 %vm4260_vm4, %v8518_v10 }
0x21f2   :  { %v8481_v60 = vadd.f32 %v10408_v32, %v9361_v2  ;;  %v8472_v47 = vpop.f32.mrb[187].mxu0  ;;  %10426 = vmatmul.mubr.msk.bf16.gmra.mrb[180].mxu1 %vm4260_vm4, %v8519_v56  ;;  %v8510_v23 = vmax.f32 %v8478_v39, 0.0 }
0x21f3   :  { %v8473_v29 = vadd.f32 %v9361_v2, %v8472_v47  ;;  %v8508_v59 = vmax.f32 %v8470_v9, 0.0 }
0x21f4   :  { %v8511_v54 = vmax.f32 %v8481_v60, 0.0 }
0x21f5   :  { %v8509_v0 = vmax.f32 %v8473_v29, 0.0 }
0x21f6   :  { %v8521_v12 = vpack.c.bf16 %v8511_v54, %v8510_v23 }
0x21f7   :  { %v8520_v62 = vpack.c.bf16 %v8509_v0, %v8508_v59 }
0x21f9   :  { %10429 = vmatprep.mubr.msk.bf16.mxu1 %vm4260_vm4, %v8520_v62 }
0x21fa   :  { %10430 = vmatmul.mubr.msk.bf16.gmra.mrb[184].mxu1 %vm4260_vm4, %v8521_v12 }
0x21fb   :  { %v10411_v30 = vpop.f32.mrb[188].mxu0 }
0x21fc   :  { %v8494_v44 = vadd.f32 %v10411_v30, %v9361_v2  ;;  %v8485_v34 = vpop.f32.mrb[189].mxu0 }
0x21fd   :  { %v8486_v50 = vadd.f32 %v9361_v2, %v8485_v34  ;;  %v10412_v1 = vpop.f32.mrb[190].mxu0 }
0x21fe   :  { %v8497_v3 = vadd.f32 %v10412_v1, %v9361_v2  ;;  %v8488_v43 = vpop.f32.mrb[191].mxu0  ;;  %v8514_v13 = vmax.f32 %v8494_v44, 0.0 }
0x21ff   :  { %v8489_v57 = vadd.f32 %v9361_v2, %v8488_v43  ;;  %v8512_v21 = vmax.f32 %v8486_v50, 0.0 }
0x2200   :  { %v8515_v11 = vmax.f32 %v8497_v3, 0.0 }
0x2201   :  { %v8513_v35 = vmax.f32 %v8489_v57, 0.0 }
0x2202   :  { %v8523_v14 = vpack.c.bf16 %v8515_v11, %v8514_v13 }
0x2203   :  { %v8522_v20 = vpack.c.bf16 %v8513_v35, %v8512_v21 }
0x2205   :  { %10433 = vmatprep.mubr.msk.bf16.mxu1 %vm4260_vm4, %v8522_v20 }
0x2206   :  { %10434 = vmatmul.mubr.msk.bf16.gmra.mrb[188].mxu1 %vm4260_vm4, %v8523_v14 }
0x22bb   :  { %v10423_v53 = vpop.f32.mrb[176].mxu1 }
0x22bc   :  { %v8623_v6 = vpop.f32.mrb[177].mxu1  ;;  %v8632_v48 = vadd.f32 %v10423_v53, %v15373_v25 }
0x22bd   :  { %v8624_v2 = vadd.f32 %v15373_v25, %v8623_v6  ;;  %v10424_v19 = vpop.f32.mrb[178].mxu1 }
0x22be   :  { %v8626_v49 = vpop.f32.mrb[179].mxu1  ;;  %v8635_v26 = vadd.f32 %v10424_v19, %v15373_v25  ;;  %v15383_v28 = vadd.f32 %v8632_v48, %v15093_v37 }
0x22bf   :  { %v15378_v8 = vadd.f32 %v8624_v2, %v15089_v36  ;;  %v8627_v15 = vadd.f32 %v15373_v25, %v8626_v49 }
0x22c0   :  { %v15391_v63 = vadd.f32 %v8635_v26, %v15104_v46  ;;  %v8710_v38 = vsel %vm101_vm0, %v15383_v28, 0.0 }
0x22c1   :  { %v15386_v55 = vadd.f32 %v8627_v15, %v15097_v4  ;;  %v8704_v7 = vsel %vm101_vm0, %v15378_v8, 0.0 }
0x22c2   :  { %8705 = vadd.xlane.f32.xlu0 %v8704_v7  ;;  %v8713_v56 = vsel %vm101_vm0, %v15391_v63, 0.0 }
0x22c3   :  { %v8707_v36 = vsel %vm101_vm0, %v15386_v55, 0.0 }
0x22c4   :  { %8708 = vadd.xlane.f32.xlu1 %v8707_v36 }
0x22c5   :  { %v10427_v17 = vpop.f32.mrb[180].mxu1 }
0x22c6   :  { %v8639_v37 = vpop.f32.mrb[181].mxu1  ;;  %8711 = vadd.xlane.f32.xlu0 %v8710_v38  ;;  %v8648_v4 = vadd.f32 %v10427_v17, %v15373_v25 }
0x22c7   :  { %v8640_v18 = vadd.f32 %v15373_v25, %v8639_v37  ;;  %v10428_v40 = vpop.f32.mrb[182].mxu1 }
0x22c8   :  { %v8642_v46 = vpop.f32.mrb[183].mxu1  ;;  %8714 = vadd.xlane.f32.xlu1 %v8713_v56  ;;  %v8651_v52 = vadd.f32 %v10428_v40, %v15373_v25  ;;  %v15407_v42 = vadd.f32 %v8648_v4, %v15126_v24 }
0x22c9   :  { %v15402_v10 = vadd.f32 %v8640_v18, %v15113_v22  ;;  %v8643_v39 = vadd.f32 %v15373_v25, %v8642_v46 }
0x22ca   :  { %v15415_v60 = vadd.f32 %v8651_v52, %v15121_v16 }
0x22cb   :  { %v15410_v9 = vadd.f32 %v8643_v39, %v15116_v31  ;;  %v8716_v32 = vsel %vm101_vm0, %v15402_v10, 0.0  ;;  %v8722_v31 = vsel %vm101_vm0, %v15407_v42, 0.0 }
0x22cc   :  { %8717 = vadd.xlane.f32.xlu0 %v8716_v32  ;;  %v8725_v62 = vsel %vm101_vm0, %v15415_v60, 0.0 }
0x22cd   :  { %v10431_v47 = vpop.f32.mrb[184].mxu1  ;;  %v8719_v22 = vsel %vm101_vm0, %v15410_v9, 0.0 }
0x22ce   :  { %8720 = vadd.xlane.f32.xlu1 %v8719_v22  ;;  %v8655_v29 = vpop.f32.mrb[185].mxu1  ;;  %v8664_v23 = vadd.f32 %v10431_v47, %v15373_v25 }
0x22cf   :  { %v8656_v24 = vadd.f32 %v15373_v25, %v8655_v29  ;;  %v10432_v54 = vpop.f32.mrb[186].mxu1 }
0x22d0   :  { %8723 = vadd.xlane.f32.xlu0 %v8722_v31  ;;  %v8658_v59 = vpop.f32.mrb[187].mxu1  ;;  %v8667_v16 = vadd.f32 %v10432_v54, %v15373_v25  ;;  %v15431_v30 = vadd.f32 %v8664_v23, %v15150_v61 }
0x22d1   :  { %v15424_v0 = vadd.f32 %v8656_v24, %v15137_v41  ;;  %v8659_v12 = vadd.f32 %v15373_v25, %v8658_v59 }
0x22d2   :  { %8726 = vadd.xlane.f32.xlu1 %v8725_v62  ;;  %v15439_v41 = vadd.f32 %v8667_v16, %v15145_v27  ;;  %v8734_v1 = vsel %vm101_vm0, %v15431_v30, 0.0 }
0x22d3   :  { %v15434_v44 = vadd.f32 %v8659_v12, %v15140_v33  ;;  %v8728_v34 = vsel %vm101_vm0, %v15424_v0, 0.0 }
0x22d4   :  { %8729 = vadd.xlane.f32.xlu0 %v8728_v34  ;;  %v8737_v61 = vsel %vm101_vm0, %v15439_v41, 0.0 }
0x22d5   :  { %v8731_v50 = vsel %vm101_vm0, %v15434_v44, 0.0 }
0x22d6   :  { %8732 = vadd.xlane.f32.xlu1 %v8731_v50 }
0x22d8   :  { %8735 = vadd.xlane.f32.xlu0 %v8734_v1 }
0x22d9   :  { %v10435_v33 = vpop.f32.mrb[188].mxu1 }
0x22da   :  { %8738 = vadd.xlane.f32.xlu1 %v8737_v61  ;;  %v8671_v3 = vpop.f32.mrb[189].mxu1  ;;  %v8680_v43 = vadd.f32 %v10435_v33, %v15373_v25 }
0x22db   :  { %v8672_v57 = vadd.f32 %v15373_v25, %v8671_v3  ;;  %v10436_v27 = vpop.f32.mrb[190].mxu1 }
0x22dc   :  { %v8674_v13 = vpop.f32.mrb[191].mxu1  ;;  %v8683_v21 = vadd.f32 %v10436_v27, %v15373_v25  ;;  %v15455_v14 = vadd.f32 %v8680_v43, %v15166_v58 }
0x22dd   :  { %v15450_v11 = vadd.f32 %v8672_v57, %v15161_v5  ;;  %v8675_v35 = vadd.f32 %v15373_v25, %v8674_v13 }
0x22de   :  { %v15463_v6 = vadd.f32 %v8683_v21, %v15174_v51  ;;  %v8746_v25 = vsel %vm101_vm0, %v15455_v14, 0.0 }
0x22df   :  { %v15458_v20 = vadd.f32 %v8675_v35, %v15169_v45  ;;  %v8740_v53 = vsel %vm101_vm0, %v15450_v11, 0.0 }
0x22e0   :  { %8741 = vadd.xlane.f32.xlu0 %v8740_v53  ;;  %v8749_v58 = vsel %vm101_vm0, %v15463_v6, 0.0 }
0x22e1   :  { %v8743_v5 = vsel %vm101_vm0, %v15458_v20, 0.0 }
0x22e2   :  { %8744 = vadd.xlane.f32.xlu1 %v8743_v5 }
0x22e4   :  { %8747 = vadd.xlane.f32.xlu0 %v8746_v25 }
0x22e6   :  { %8750 = vadd.xlane.f32.xlu1 %v8749_v58 }
0x234f   :  { %v8706_v45 = vpop.xlane.xlu0 %8705 }
0x2350   :  { %v8752_v48 = vmul.f32 0.03125, %v8706_v45 }
0x2351   :  { %v8709_v2 = vpop.xlane.xlu1 %8708 }
0x2352   :  { %v15472_v19 = vsub.f32 %v15378_v8, %v8752_v48  ;;  %v8753_v51 = vmul.f32 0.03125, %v8709_v2 }
0x2353   :  { %v8712_v49 = vpop.xlane.xlu0 %8711 }
0x2354   :  { %v15475_v26 = vsub.f32 %v15386_v55, %v8753_v51  ;;  %v8754_v15 = vmul.f32 0.03125, %v8712_v49  ;;  %v8784_v7 = vmul.f32 %v15472_v19, %v15472_v19 }
0x2355   :  { %v8715_v36 = vpop.xlane.xlu1 %8714 }
0x2356   :  { %v15480_v17 = vsub.f32 %v15383_v28, %v8754_v15  ;;  %v8755_v38 = vmul.f32 0.03125, %v8715_v36  ;;  %v8800_v37 = vsel %vm101_vm0, %v8784_v7, 0.0  ;;  %v8785_v8 = vmul.f32 %v15475_v26, %v15475_v26 }
0x2357   :  { %8801 = vadd.xlane.f32.xlu0 %v8800_v37 }
0x2358   :  { %v15486_v4 = vsub.f32 %v15391_v63, %v8755_v38  ;;  %v8803_v55 = vsel %vm101_vm0, %v8785_v8, 0.0  ;;  %v8786_v18 = vmul.f32 %v15480_v17, %v15480_v17 }
0x2359   :  { %v8718_v40 = vpop.xlane.xlu0 %8717  ;;  %8804 = vadd.xlane.f32.xlu1 %v8803_v55 }
0x235a   :  { %v8756_v56 = vmul.f32 0.03125, %v8718_v40  ;;  %v8806_v28 = vsel %vm101_vm0, %v8786_v18, 0.0  ;;  %v8787_v46 = vmul.f32 %v15486_v4, %v15486_v4 }
0x235b   :  { %v8721_v52 = vpop.xlane.xlu1 %8720  ;;  %8807 = vadd.xlane.f32.xlu0 %v8806_v28 }
0x235c   :  { %v15495_v39 = vsub.f32 %v15402_v10, %v8756_v56  ;;  %v8757_v63 = vmul.f32 0.03125, %v8721_v52  ;;  %v8809_v32 = vsel %vm101_vm0, %v8787_v46, 0.0  ;;  %v10800_v52 = vld [vmem:[%s15671_s14] sm:$0xff]  }
0x235d   :  { %v8724_v47 = vpop.xlane.xlu0 %8723  ;;  %8810 = vadd.xlane.f32.xlu1 %v8809_v32  ;;  %10437 = vmatprep.subr.bf16.mxu0 %v10800_v52 }
0x235e   :  { %v15499_v22 = vsub.f32 %v15410_v9, %v8757_v63  ;;  %v8758_v29 = vmul.f32 0.03125, %v8724_v47  ;;  %v8788_v23 = vmul.f32 %v15495_v39, %v15495_v39  ;;  %10438 = vmatpush3.bf16.msra.mxu0 %v10800_v52 }
0x235f   :  { %v8727_v24 = vpop.xlane.xlu1 %8726 }
0x2360   :  { %v15504_v54 = vsub.f32 %v15407_v42, %v8758_v29  ;;  %v8759_v31 = vmul.f32 0.03125, %v8727_v24  ;;  %v8812_v10 = vsel %vm101_vm0, %v8788_v23, 0.0  ;;  %v8789_v59 = vmul.f32 %v15499_v22, %v15499_v22 }
0x2361   :  { %8813 = vadd.xlane.f32.xlu0 %v8812_v10  ;;  %v8730_v16 = vpop.xlane.xlu0 %8729 }
0x2362   :  { %v15510_v12 = vsub.f32 %v15415_v60, %v8759_v31  ;;  %v8760_v9 = vmul.f32 0.03125, %v8730_v16  ;;  %v8815_v62 = vsel %vm101_vm0, %v8789_v59, 0.0  ;;  %v8790_v34 = vmul.f32 %v15504_v54, %v15504_v54 }
0x2363   :  { %v8733_v50 = vpop.xlane.xlu1 %8732  ;;  %8816 = vadd.xlane.f32.xlu1 %v8815_v62 }
0x2364   :  { %v15516_v42 = vsub.f32 %v15424_v0, %v8760_v9  ;;  %v8761_v1 = vmul.f32 0.03125, %v8733_v50  ;;  %v8818_v61 = vsel %vm101_vm0, %v8790_v34, 0.0  ;;  %v8791_v33 = vmul.f32 %v15510_v12, %v15510_v12 }
0x2365   :  { %8819 = vadd.xlane.f32.xlu0 %v8818_v61  ;;  %v8736_v60 = vpop.xlane.xlu0 %8735 }
0x2366   :  { %v15522_v3 = vsub.f32 %v15434_v44, %v8761_v1  ;;  %v8762_v43 = vmul.f32 0.03125, %v8736_v60  ;;  %v8821_v57 = vsel %vm101_vm0, %v8791_v33, 0.0  ;;  %v8792_v27 = vmul.f32 %v15516_v42, %v15516_v42 }
0x2367   :  { %v8739_v13 = vpop.xlane.xlu1 %8738  ;;  %8822 = vadd.xlane.f32.xlu1 %v8821_v57  ;;  %v15576_v57 = vld [vmem:[%s15669_s12] ss:$0 sm:$0xff] }
0x2368   :  { %v15528_v0 = vsub.f32 %v15431_v30, %v8762_v43  ;;  %v8763_v21 = vmul.f32 0.03125, %v8739_v13  ;;  %v8824_v35 = vsel %vm101_vm0, %v8792_v27, 0.0  ;;  %v8793_v53 = vmul.f32 %v15522_v3, %v15522_v3 }
0x2369   :  { %8825 = vadd.xlane.f32.xlu0 %v8824_v35 }
0x236a   :  { %v15534_v44 = vsub.f32 %v15439_v41, %v8763_v21  ;;  %v8827_v5 = vsel %vm101_vm0, %v8793_v53, 0.0  ;;  %v8794_v25 = vmul.f32 %v15528_v0, %v15528_v0 }
0x236b   :  { %8828 = vadd.xlane.f32.xlu1 %v8827_v5 }
0x236c   :  { %v8830_v58 = vsel %vm101_vm0, %v8794_v25, 0.0  ;;  %v8795_v30 = vmul.f32 %v15534_v44, %v15534_v44 }
0x236d   :  { %8831 = vadd.xlane.f32.xlu0 %v8830_v58  ;;  %v8742_v45 = vpop.xlane.xlu0 %8741 }
0x236e   :  { %v8833_v48 = vsel %vm101_vm0, %v8795_v30, 0.0  ;;  %v8764_v2 = vmul.f32 0.03125, %v8742_v45 }
0x236f   :  { %8834 = vadd.xlane.f32.xlu1 %v8833_v48  ;;  %v8745_v51 = vpop.xlane.xlu1 %8744 }
0x2370   :  { %v15544_v41 = vsub.f32 %v15450_v11, %v8764_v2  ;;  %v8765_v49 = vmul.f32 0.03125, %v8745_v51  ;;  %v15584_v2 = vld [vmem:[%s15670_s13] ss:$0 sm:$0xff] }
0x2371   :  { %v8748_v15 = vpop.xlane.xlu0 %8747 }
0x2372   :  { %v15547_v7 = vsub.f32 %v15458_v20, %v8765_v49  ;;  %v8766_v36 = vmul.f32 0.03125, %v8748_v15  ;;  %v8796_v38 = vmul.f32 %v15544_v41, %v15544_v41 }
0x2373   :  { %v8751_v37 = vpop.xlane.xlu1 %8750 }
0x2374   :  { %v15552_v8 = vsub.f32 %v15455_v14, %v8766_v36  ;;  %v8767_v55 = vmul.f32 0.03125, %v8751_v37  ;;  %v8836_v18 = vsel %vm101_vm0, %v8796_v38, 0.0  ;;  %v8797_v11 = vmul.f32 %v15547_v7, %v15547_v7 }
0x2375   :  { %8837 = vadd.xlane.f32.xlu0 %v8836_v18 }
0x2376   :  { %v15558_v40 = vsub.f32 %v15463_v6, %v8767_v55  ;;  %v8839_v20 = vsel %vm101_vm0, %v8797_v11, 0.0  ;;  %v8798_v56 = vmul.f32 %v15552_v8, %v15552_v8  ;;  %v10801_v6 = vld [vmem:[%s15671_s14 + $0x8] sm:$0xff]  }
0x2377   :  { %8840 = vadd.xlane.f32.xlu1 %v8839_v20  ;;  %10439 = vmatprep.subr.bf16.mxu0 %v10801_v6 }
0x2378   :  { %v8842_v28 = vsel %vm101_vm0, %v8798_v56, 0.0  ;;  %v8799_v14 = vmul.f32 %v15558_v40, %v15558_v40  ;;  %10440 = vmatpush3.bf16.msra.mxu0 %v10801_v6 }
0x2379   :  { %8843 = vadd.xlane.f32.xlu0 %v8842_v28 }
0x237a   :  { %v8845_v46 = vsel %vm101_vm0, %v8799_v14, 0.0 }
0x237b   :  { %8846 = vadd.xlane.f32.xlu1 %v8845_v46 }
0x23e4   :  { %v8802_v63 = vpop.xlane.xlu0 %8801 }
0x23e5   :  { %v8848_v32 = vmul.f32 0.03125, %v8802_v63 }
0x23e6   :  { %v8805_v47 = vpop.xlane.xlu1 %8804 }
0x23e7   :  { %v8864_v29 = vadd.f32 0.0001, %v8848_v32  ;;  %v8849_v23 = vmul.f32 0.03125, %v8805_v47 }
0x23e8   :  { %v8808_v24 = vpop.xlane.xlu0 %8807 }
0x23e9   :  { %11442 = vrsqrt.f32 %v8864_v29  ;;  %v8865_v31 = vadd.f32 0.0001, %v8849_v23  ;;  %v8850_v10 = vmul.f32 0.03125, %v8808_v24 }
0x23ea   :  { %v8811_v59 = vpop.xlane.xlu1 %8810 }
0x23eb   :  { %11444 = vrsqrt.f32 %v8865_v31  ;;  %v8866_v16 = vadd.f32 0.0001, %v8850_v10  ;;  %v8851_v9 = vmul.f32 0.03125, %v8811_v59 }
0x23ed   :  { %11446 = vrsqrt.f32 %v8866_v16  ;;  %v8867_v62 = vadd.f32 0.0001, %v8851_v9 }
0x23ee   :  { %v8814_v34 = vpop.xlane.xlu0 %8813 }
0x23ef   :  { %11448 = vrsqrt.f32 %v8867_v62  ;;  %v8852_v50 = vmul.f32 0.03125, %v8814_v34 }
0x23f0   :  { %v8817_v1 = vpop.xlane.xlu1 %8816 }
0x23f1   :  { %v8868_v61 = vadd.f32 0.0001, %v8852_v50  ;;  %v8853_v33 = vmul.f32 0.03125, %v8817_v1 }
0x23f2   :  { %v8820_v60 = vpop.xlane.xlu0 %8819 }
0x23f3   :  { %v11443_v43 = vpop.eup %11442  ;;  %11450 = vrsqrt.f32 %v8868_v61  ;;  %v8869_v27 = vadd.f32 0.0001, %v8853_v33  ;;  %v8854_v13 = vmul.f32 0.03125, %v8820_v60 }
0x23f4   :  { %v8896_v21 = vmul.f32 %v11443_v43, %v15472_v19  ;;  %v8823_v35 = vpop.xlane.xlu1 %8822 }
0x23f5   :  { %v11445_v53 = vpop.eup %11444  ;;  %11452 = vrsqrt.f32 %v8869_v27  ;;  %v8870_v5 = vadd.f32 0.0001, %v8854_v13  ;;  %v8855_v25 = vmul.f32 0.03125, %v8823_v35 }
0x23f6   :  { %v8897_v58 = vmul.f32 %v11445_v53, %v15475_v26  ;;  %v8826_v30 = vpop.xlane.xlu0 %8825  ;;  %v8918_v45 = vmul.f32 %v15576_v57, %v8896_v21 }
0x23f7   :  { %v11447_v48 = vpop.eup %11446  ;;  %11454 = vrsqrt.f32 %v8870_v5  ;;  %v8871_v51 = vadd.f32 0.0001, %v8855_v25  ;;  %v8856_v49 = vmul.f32 0.03125, %v8826_v30 }
0x23f8   :  { %v8898_v19 = vmul.f32 %v11447_v48, %v15480_v17  ;;  %v8829_v15 = vpop.xlane.xlu1 %8828  ;;  %v8919_v36 = vmul.f32 %v15576_v57, %v8897_v58  ;;  %v8940_v20 = vadd.f32 %v15584_v2, %v8918_v45 }
0x23f9   :  { %v11449_v38 = vpop.eup %11448  ;;  %11456 = vrsqrt.f32 %v8871_v51  ;;  %v8872_v26 = vadd.f32 0.0001, %v8856_v49  ;;  %v8857_v37 = vmul.f32 0.03125, %v8829_v15 }
0x23fa   :  { %v8920_v55 = vmul.f32 %v15576_v57, %v8898_v19  ;;  %v8899_v18 = vmul.f32 %v11449_v38, %v15486_v4  ;;  %v8832_v11 = vpop.xlane.xlu0 %8831  ;;  %v8941_v56 = vadd.f32 %v15584_v2, %v8919_v36 }
0x23fb   :  { %11458 = vrsqrt.f32 %v8872_v26  ;;  %v8873_v28 = vadd.f32 0.0001, %v8857_v37  ;;  %v8858_v14 = vmul.f32 0.03125, %v8832_v11 }
0x23fc   :  { %v8921_v17 = vmul.f32 %v15576_v57, %v8899_v18  ;;  %v8835_v46 = vpop.xlane.xlu1 %8834  ;;  %v8956_v52 = vpack.c.bf16 %v8941_v56, %v8940_v20  ;;  %v8942_v47 = vadd.f32 %v15584_v2, %v8920_v55 }
0x23fd   :  { %v11451_v6 = vpop.eup %11450  ;;  %11460 = vrsqrt.f32 %v8873_v28  ;;  %v8874_v63 = vadd.f32 0.0001, %v8858_v14  ;;  %v8859_v32 = vmul.f32 0.03125, %v8835_v46 }
0x23fe   :  { %v8943_v4 = vadd.f32 %v15584_v2, %v8921_v17  ;;  %v8900_v29 = vmul.f32 %v11451_v6, %v15495_v39  ;;  %10441 = vmatprep.mubr.msk.bf16.mxu0 %vm101_vm0, %v8956_v52 }
0x23ff   :  { %v11453_v23 = vpop.eup %11452  ;;  %11462 = vrsqrt.f32 %v8874_v63  ;;  %v8875_v24 = vadd.f32 0.0001, %v8859_v32 }
0x2400   :  { %v8901_v31 = vmul.f32 %v11453_v23, %v15499_v22  ;;  %v8957_v10 = vpack.c.bf16 %v8943_v4, %v8942_v47  ;;  %v8922_v59 = vmul.f32 %v15576_v57, %v8900_v29 }
0x2401   :  { %v11455_v16 = vpop.eup %11454  ;;  %11464 = vrsqrt.f32 %v8875_v24 }
0x2402   :  { %v8902_v9 = vmul.f32 %v11455_v16, %v15504_v54  ;;  %10442 = vmatmul.mubr.msk.bf16.vlgmr.msra.gmra.mrb[192].mxu0 %vm101_vm0, %v8957_v10  ;;  %v8838_v62 = vpop.xlane.xlu0 %8837  ;;  %v8923_v34 = vmul.f32 %v15576_v57, %v8901_v31  ;;  %v8944_v33 = vadd.f32 %v15584_v2, %v8922_v59 }
0x2403   :  { %v11457_v39 = vpop.eup %11456  ;;  %v8860_v50 = vmul.f32 0.03125, %v8838_v62 }
0x2404   :  { %v8903_v1 = vmul.f32 %v11457_v39, %v15510_v12  ;;  %v8841_v61 = vpop.xlane.xlu1 %8840  ;;  %v8945_v22 = vadd.f32 %v15584_v2, %v8923_v34  ;;  %v8924_v60 = vmul.f32 %v15576_v57, %v8902_v9 }
0x2405   :  { %v11459_v43 = vpop.eup %11458  ;;  %v8876_v27 = vadd.f32 0.0001, %v8860_v50  ;;  %v8861_v13 = vmul.f32 0.03125, %v8841_v61 }
0x2406   :  { %v8904_v54 = vmul.f32 %v11459_v43, %v15516_v42  ;;  %v8958_v21 = vpack.c.bf16 %v8945_v22, %v8944_v33  ;;  %v8844_v35 = vpop.xlane.xlu0 %8843  ;;  %v8925_v53 = vmul.f32 %v15576_v57, %v8903_v1  ;;  %v8946_v45 = vadd.f32 %v15584_v2, %v8924_v60 }
0x2407   :  { %v11461_v5 = vpop.eup %11460  ;;  %11466 = vrsqrt.f32 %v8876_v27  ;;  %v8877_v25 = vadd.f32 0.0001, %v8861_v13  ;;  %v8862_v12 = vmul.f32 0.03125, %v8844_v35 }
0x2408   :  { %v8905_v58 = vmul.f32 %v11461_v5, %v15522_v3  ;;  %10445 = vmatprep.mubr.msk.bf16.mxu0 %vm101_vm0, %v8958_v21  ;;  %v8847_v30 = vpop.xlane.xlu1 %8846  ;;  %v8947_v48 = vadd.f32 %v15584_v2, %v8925_v53  ;;  %v8926_v51 = vmul.f32 %v15576_v57, %v8904_v54 }
0x2409   :  { %v11463_v42 = vpop.eup %11462  ;;  %11468 = vrsqrt.f32 %v8877_v25  ;;  %v8878_v49 = vadd.f32 0.0001, %v8862_v12  ;;  %v8863_v19 = vmul.f32 0.03125, %v8847_v30 }
0x240a   :  { %v8906_v15 = vmul.f32 %v11463_v42, %v15528_v0  ;;  %v8959_v36 = vpack.c.bf16 %v8947_v48, %v8946_v45  ;;  %v8927_v38 = vmul.f32 %v15576_v57, %v8905_v58  ;;  %v8948_v55 = vadd.f32 %v15584_v2, %v8926_v51 }
0x240b   :  { %v11465_v26 = vpop.eup %11464  ;;  %11470 = vrsqrt.f32 %v8878_v49  ;;  %v8879_v3 = vadd.f32 0.0001, %v8863_v19 }
0x240c   :  { %v8907_v37 = vmul.f32 %v11465_v26, %v15534_v44  ;;  %10446 = vmatmul.mubr.msk.bf16.gmra.mrb[196].mxu0 %vm101_vm0, %v8959_v36  ;;  %v8949_v18 = vadd.f32 %v15584_v2, %v8927_v38  ;;  %v8928_v11 = vmul.f32 %v15576_v57, %v8906_v15 }
0x240d   :  { %11472 = vrsqrt.f32 %v8879_v3 }
0x240e   :  { %v8960_v20 = vpack.c.bf16 %v8949_v18, %v8948_v55  ;;  %v8929_v0 = vmul.f32 %v15576_v57, %v8907_v37  ;;  %v8950_v56 = vadd.f32 %v15584_v2, %v8928_v11 }
0x2410   :  { %10449 = vmatprep.mubr.msk.bf16.mxu0 %vm101_vm0, %v8960_v20  ;;  %v8951_v28 = vadd.f32 %v15584_v2, %v8929_v0 }
0x2411   :  { %v11467_v14 = vpop.eup %11466 }
0x2412   :  { %v8908_v44 = vmul.f32 %v11467_v14, %v15544_v41  ;;  %v8961_v17 = vpack.c.bf16 %v8951_v28, %v8950_v56 }
0x2413   :  { %v11469_v46 = vpop.eup %11468 }
0x2414   :  { %v8909_v52 = vmul.f32 %v11469_v46, %v15547_v7  ;;  %10450 = vmatmul.mubr.msk.bf16.gmra.mrb[200].mxu0 %vm101_vm0, %v8961_v17  ;;  %v8930_v6 = vmul.f32 %v15576_v57, %v8908_v44 }
0x2415   :  { %v11471_v63 = vpop.eup %11470 }
0x2416   :  { %v8910_v32 = vmul.f32 %v11471_v63, %v15552_v8  ;;  %v8931_v47 = vmul.f32 %v15576_v57, %v8909_v52  ;;  %v8952_v23 = vadd.f32 %v15584_v2, %v8930_v6 }
0x2417   :  { %v11473_v4 = vpop.eup %11472 }
0x2418   :  { %v8911_v29 = vmul.f32 %v11473_v4, %v15558_v40  ;;  %v8953_v41 = vadd.f32 %v15584_v2, %v8931_v47  ;;  %v8932_v24 = vmul.f32 %v15576_v57, %v8910_v32  ;;  %v9396_v40 = vld [vmem:[%s15672_s15] ss:$0 sm:$0xff]  ;;  %s11580_s15 = smov [#allocation7]  }
0x2419   :  { %s9129_s22 = sshll.u32 %s11580_s15, 4  ;;  %s9130_s22 = int_to_ptr.vmem [resolvable:$true] %s9129_s22 }
0x241a   :  { %v8962_v31 = vpack.c.bf16 %v8953_v41, %v8952_v23  ;;  %v8933_v7 = vmul.f32 %v15576_v57, %v8911_v29  ;;  %v8954_v10 = vadd.f32 %v15584_v2, %v8932_v24  ;;  %s11534_s3 = scalar_lea.vmem %s9130_s22, 2048  ;;  %p11539_p3 = scmp.lt.s32.totalorder %s9130_s22, %s9130_s22 }
0x241b   :  { %p11535_p2 = scmp.ne.s32.totalorder %s9130_s22, %s11534_s3  ;;  %p11540_p4 = scmp.lt.s32.totalorder %s11534_s3, %s11534_s3 }
0x241c   :  { %10453 = vmatprep.mubr.msk.bf16.mxu0 %vm101_vm0, %v8962_v31  ;;  %v8955_v8 = vadd.f32 %v15584_v2, %v8933_v7 }
0x241d   :  { %p11541_p5 = por %p11540_p4, %p11539_p3 }
0x241e   :  { %v8963_v59 = vpack.c.bf16 %v8955_v8, %v8954_v10 }
0x241f   :  { %p11542_p6 = pnand %p11541_p5, %p11535_p2 }
0x2420   :  { %10454 = vmatmul.mubr.msk.bf16.gmra.mrb[204].mxu0 %vm101_vm0, %v8963_v59 }
0x24d5   :  { %v10443_v16 = vpop.f32.mrb[192].mxu0 }
0x24d6   :  { %v9054_v9 = vadd.f32 %v10443_v16, %v9396_v40  ;;  %v9045_v62 = vpop.f32.mrb[193].mxu0 }
0x24d7   :  { %v9046_v34 = vadd.f32 %v9396_v40, %v9045_v62  ;;  %v10444_v39 = vpop.f32.mrb[194].mxu0 }
0x24d8   :  { %9110 = vst [vmem:[#allocation7 + $0x10] sm:$0xff] %v9054_v9  ;;  %v9057_v57 = vadd.f32 %v10444_v39, %v9396_v40  ;;  %v9048_v50 = vpop.f32.mrb[195].mxu0 }
0x24d9   :  { %9108 = vst [vmem:[#allocation7] sm:$0xff] %v9046_v34  ;;  %v9049_v1 = vadd.f32 %v9396_v40, %v9048_v50 }
0x24da   :  { %9111 = vst [vmem:[#allocation7 + $0x18] sm:$0xff] %v9057_v57 }
0x24db   :  { %9109 = vst [vmem:[#allocation7 + $0x8] sm:$0xff] %v9049_v1 }
0x24df   :  { %v10447_v2 = vpop.f32.mrb[196].mxu0 }
0x24e0   :  { %v9070_v61 = vadd.f32 %v10447_v2, %v9396_v40  ;;  %v9061_v33 = vpop.f32.mrb[197].mxu0 }
0x24e1   :  { %v9062_v22 = vadd.f32 %v9396_v40, %v9061_v33  ;;  %v10448_v60 = vpop.f32.mrb[198].mxu0 }
0x24e2   :  { %9114 = vst [vmem:[#allocation7 + $0x30] sm:$0xff] %v9070_v61  ;;  %v9073_v43 = vadd.f32 %v10448_v60, %v9396_v40  ;;  %v9064_v27 = vpop.f32.mrb[199].mxu0 }
0x24e3   :  { %9112 = vst [vmem:[#allocation7 + $0x20] sm:$0xff] %v9062_v22  ;;  %v9065_v13 = vadd.f32 %v9396_v40, %v9064_v27 }
0x24e4   :  { %9115 = vst [vmem:[#allocation7 + $0x38] sm:$0xff] %v9073_v43 }
0x24e5   :  { %9113 = vst [vmem:[#allocation7 + $0x28] sm:$0xff] %v9065_v13 }
0x24e7   :  { %v10451_v54 = vpop.f32.mrb[200].mxu0 }
0x24e8   :  { %v9086_v21 = vadd.f32 %v10451_v54, %v9396_v40  ;;  %v9077_v35 = vpop.f32.mrb[201].mxu0 }
0x24e9   :  { %v9078_v53 = vadd.f32 %v9396_v40, %v9077_v35  ;;  %v10452_v5 = vpop.f32.mrb[202].mxu0 }
0x24ea   :  { %9118 = vst [vmem:[#allocation7 + $0x50] sm:$0xff] %v9086_v21  ;;  %v9089_v25 = vadd.f32 %v10452_v5, %v9396_v40  ;;  %v9080_v12 = vpop.f32.mrb[203].mxu0 }
0x24eb   :  { %9116 = vst [vmem:[#allocation7 + $0x40] sm:$0xff] %v9078_v53  ;;  %v9081_v58 = vadd.f32 %v9396_v40, %v9080_v12 }
0x24ec   :  { %9119 = vst [vmem:[#allocation7 + $0x58] sm:$0xff] %v9089_v25 }
0x24ed   :  { %9117 = vst [vmem:[#allocation7 + $0x48] sm:$0xff] %v9081_v58 }
0x24f3   :  { %v10455_v30 = vpop.f32.mrb[204].mxu0 }
0x24f4   :  { %v9102_v45 = vadd.f32 %v10455_v30, %v9396_v40  ;;  %v9093_v48 = vpop.f32.mrb[205].mxu0 }
0x24f5   :  { %v9094_v51 = vadd.f32 %v9396_v40, %v9093_v48  ;;  %v10456_v42 = vpop.f32.mrb[206].mxu0 }
0x24f6   :  { %9122 = vst [vmem:[#allocation7 + $0x70] sm:$0xff] %v9102_v45  ;;  %v9105_v49 = vadd.f32 %v10456_v42, %v9396_v40  ;;  %v9096_v19 = vpop.f32.mrb[207].mxu0 }
0x24f7   :  { %9120 = vst [vmem:[#allocation7 + $0x60] sm:$0xff] %v9094_v51  ;;  %v9097_v15 = vadd.f32 %v9396_v40, %v9096_v19 }
0x24f8   :  { %9123 = vst [vmem:[#allocation7 + $0x78] sm:$0xff] %v9105_v49 }
0x24f9   :  { %9121 = vst [vmem:[#allocation7 + $0x68] sm:$0xff] %v9097_v15 }
0x24fa   :  { %11545 = shalt.err (!%p11542_p6)
}
0x24fb   :  { %s15836_s20 = sld [smem:[#allocation44_spill]] }
0x2501   :  { %s11546_s5 = scalar_lea.hbm %s15836_s20, 2048 }
0x2502   :  { %p11547_p7 = scmp.ne.s32.totalorder %s15836_s20, %s11546_s5  ;;  %p11550_p8 = scmp.lt.u32.totalorder %s11546_s5, %s15836_s20 }
0x2504   :  { %p11552_p9 = pnand %p11550_p8, %p11547_p7 }
0x2506   :  { %11555 = shalt.err (!%p11552_p9)
}
0x2507   :  { %s15837_s24 = smov 128  }
0x2508   :  { %9135 = dma.vmem_to_hbm [thread:$0]  %s9130_s22, 2048, %s15836_s20, [#allocation4], %s15837_s24, %s15837_s24, %s11564_s18  }
0x2509   :  { %11560 = dma.done.wait [#allocation4], 2048  }
0x250a   :  { %11561 = vsyncadd [#allocation4], 4294965248 }
0x250b   :  { %9139 = vsyncpa [#allocation3], 1 }
0x250c   :  { %9140 = vsyncpa [#allocation6], 1 }
0x250d   :  { %9141 = vsyncpa [#allocation4], 1 }

</bundles_post_ra>
